<compile_context>
chip_gen: v6e
topology: v6e:2x2x1
jax: 0.10.0
libtpu: 0.0.40
codegen_flags: <defaults>
</compile_context>

<pallas_src>
import functools

import jax
import jax.numpy as jnp
import numpy as np
from jax import lax
from jax.experimental import pallas as pl
from jax.experimental.pallas import tpu as pltpu

_FF_PAD = 8   # the 3-channel `ff` tensor is zero-padded to 8 rows so its im2col
              # tap blocks stay sublane-group aligned.

# All (dy, dx) roll offsets used by the 3x3 convs at dilations 1, 2, 3
# (dilation 3 == PyTorch's d_conv4, which is declared with dilation=3).
_TAP_OFFSETS = tuple((ky * d, kx * d)
                     for d in (1, 2, 3)
                     for ky in (-1, 0, 1)
                     for kx in (-1, 0, 1)
                     if not (ky == 0 and kx == 0))


def _round_up(x, m):
    return (x + m - 1) // m * m


def _wb_layout(C):
    """Row/lane offsets inside the packed bf16 matmul-weight slab (16-row aligned)."""
    lay = {}
    lay['w1'] = 0                                   # (C, 9C)   conv1
    lay['w2'] = _round_up(C, 16)                    # (C, 9C)   conv2
    lay['wm'] = lay['w2'] + _round_up(C, 16)        # (1, 9C)   conv_mask
    lay['wd'] = lay['wm'] + 16                      # (3, 27C)  d_conv1/2/4 fused
    lay['wf'] = lay['wd'] + 16                      # (1, 9*8)  fusion conv (ff padded to 8)
    lay['fine'] = lay['wf'] + 16                    # (C, 2C)   fine 1x1 split weights
    lay['rows'] = _round_up(lay['fine'] + C, 16)
    lay['lanes'] = max(_round_up(27 * C, 128), 128)
    return lay


def _wp_layout(C):
    """f32 side-parameter slab: bias/LN columns + channel-add weights."""
    return dict(rows=_round_up(C, 8),
                lanes=max(_round_up(8 + C + C // 2, 128), 128))


# --------------------------------- kernel -----------------------------------

def _attention_kernel(H, W, Bt, tap_bf16, x_ref, wb_ref, wp_ref, mk_ref, sc_ref, o_ref):
    f32, bf16 = jnp.float32, jnp.bfloat16
    cdt = bf16 if tap_bf16 else f32       # dtype the roll/mask assembly runs in
    HW = H * W
    C = x_ref.shape[1]
    C2 = C // 2
    L = Bt * HW
    K9, K27 = 9 * C, 27 * C
    lb = _wb_layout(C)

    prelu = lambda v, a: jnp.where(v >= 0, v, a * v)
    dot = lambda a, b: jnp.dot(a, b, preferred_element_type=f32)
    a1, a2, aca = sc_ref[0], sc_ref[1], sc_ref[2]
    b_mask, b_fuse = sc_ref[3], sc_ref[4]

    # ---- matmul weights: pre-cast bf16 slab -> aligned views, no per-step casts
    w1  = wb_ref[lb['w1']:lb['w1'] + C, 0:K9]
    w2  = wb_ref[lb['w2']:lb['w2'] + C, 0:K9]
    wm  = wb_ref[lb['wm']:lb['wm'] + 1, 0:K9]
    wd  = wb_ref[lb['wd']:lb['wd'] + 3, 0:K27]
    wfu = wb_ref[lb['wf']:lb['wf'] + 1, 0:9 * _FF_PAD]
    wfa = wb_ref[lb['fine']:lb['fine'] + C, 0:C]
    wfb = wb_ref[lb['fine']:lb['fine'] + C, C:2 * C]

    # ---- f32 biases / LayerNorm affine / channel-add weights -----------------
    b1    = wp_ref[0:C,  0:1]
    b2    = wp_ref[0:C,  1:2]
    bca1  = wp_ref[0:C2, 2:3]
    ln_g  = wp_ref[0:C2, 3:4]
    ln_b  = wp_ref[0:C2, 4:5]
    bca2  = wp_ref[0:C,  5:6]
    bfine = wp_ref[0:C,  6:7]
    bdil  = wp_ref[0:3,  7:8]
    wca1  = wp_ref[0:C2, 8:8 + C]                 # (C/2, C)  f32
    wca2  = wp_ref[0:C,  8 + C:8 + C + C2]        # (C, C/2)  f32

    # ---- host-precomputed boundary masks + per-image indicator, loaded once --
    mbase = _round_up(Bt, 8)
    ind = mk_ref[0:Bt, :]                                        # (Bt, L) 0/1
    masks = {off: mk_ref[mbase + j:mbase + j + 1, :]
             for j, off in enumerate(_TAP_OFFSETS)}              # (1, L) each

    def taps(v, dils):
        """im2col stack (bf16 MXU operand).  For each dilation d and tap
        (ky, kx), rows hold v shifted by (ky*d, kx*d) with zero padding at image
        borders; the precomputed 0/1 masks also stop cross-image bleed in the
        packed lane layout.  Rolls/mask-multiplies run in `cdt`; every piece is
        cast to bf16 *before* the concat."""
        vc = v if v.dtype == cdt else v.astype(cdt)
        pieces = []
        for d in dils:
            for ky in (-1, 0, 1):
                for kx in (-1, 0, 1):
                    dy, dx = ky * d, kx * d
                    s = dy * W + dx                          # source lane offset
                    t = vc if s == 0 else pltpu.roll(vc, (-s) % L, axis=1)
                    if (dy, dx) != (0, 0):
                        t = t * masks[(dy, dx)]
                    pieces.append(t if t.dtype == bf16 else t.astype(bf16))
        return jnp.concatenate(pieces, axis=0)

    x = x_ref[0, :, :]                                           # (C, L) f32

    # conv1 + PReLU, conv2 -- each one wide (C, 9C) @ (9C, L) bf16 MXU matmul
    out1 = prelu(dot(w1, taps(x, (1,))) + b1, a1)
    feat = dot(w2, taps(out1, (1,))) + b2                        # (C, L) f32

    # ---- spatial_pool: per-image softmax over 128-aligned lane slices --------
    logits = dot(wm, taps(feat, (1,))) + b_mask                  # (1, L)
    smx_parts = []
    for i in range(Bt):
        lg = logits[:, i * HW:(i + 1) * HW]                      # (1, HW)
        e = jnp.exp(lg - jnp.max(lg, axis=1, keepdims=True))
        smx_parts.append(
            e * pl.reciprocal(jnp.sum(e, axis=1, keepdims=True), approx=False))
    smx = jnp.concatenate(smx_parts, axis=1)                     # (1, L)

    # all Bt contexts with ONE MXU contraction over L (kept in f32)
    wsmx = (ind * smx).astype(f32)                               # (Bt, L) block-diag softmax
    context = lax.dot_general(feat, wsmx, (((1,), (1,)), ((), ())),
                              preferred_element_type=f32)        # (C, Bt)

    # channel_add_conv batched over the Bt image columns:
    # 1x1 -> LayerNorm([C/2,1,1]) -> PReLU -> 1x1
    h = dot(wca1, context) + bca1                                # (C/2, Bt)
    mu = jnp.mean(h, axis=0, keepdims=True)
    var = jnp.mean((h - mu) ** 2, axis=0, keepdims=True)
    hn = prelu((h - mu) * lax.rsqrt(var + 1e-5) * ln_g + ln_b, aca)
    ca = dot(wca2, hn) + bca2                                    # (C, Bt)

    # add each image's channel vector back onto its own lane slice (exact, f32)
    out = jnp.concatenate(
        [feat[:, i * HW:(i + 1) * HW] + ca[:, i:i + 1] for i in range(Bt)],
        axis=1)                                                  # (C, L) f32

    # fused dilated convs (dil 1/2/3 -> 27 taps): one (3, 27C) @ (27C, L) matmul
    ff = dot(wd, taps(out, (1, 2, 3))) + bdil                    # (3, L)
    ff8 = jnp.concatenate([ff.astype(cdt), jnp.zeros((_FF_PAD - 3, L), cdt)], axis=0)
    sp_mask = jax.nn.sigmoid(dot(wfu, taps(ff8, (1,))) + b_fuse)  # (1, L)
    sp_feat = out * sp_mask                                      # (C, L)

    # fine: 1x1 on cat([out, sp_feat]) as split-weight matmuls, residual, PReLU
    fine = dot(wfa, out.astype(bf16)) + dot(wfb, sp_feat.astype(bf16)) + bfine
    o_ref[0, :, :] = prelu(fine + x, a2)


# -------------------------------- wrapper ------------------------------------

def _device_kind():
    try:
        return jax.devices()[0].device_kind.lower()
    except Exception:
        return ""


def _pick_bt(B, C, HW, kind):
    """Images packed per grid step, sized from a rough VMEM budget (~86*C*L live
    bytes per step: bf16 27C-tap stack + a few f32 (C, L) temps)."""
    phys_mib = 64 if 'v7' in kind else 128
    budget = int(phys_mib * 1024 * 1024 * 0.4)    # headroom for I/O double-buffers
    cap = max(1, min(8, budget // max(1, 86 * C * HW)))
    best = 1
    for bt in range(1, B + 1):
        if B % bt or bt > cap:
            continue
        if 'v7' in kind and B // bt < 2 and B >= 2:
            continue          # keep G >= 2 so both v7x TensorCores get work
        best = bt
    return best


def _build_masks(H, W, Bt, dtype):
    """Rows 0..Bt-1: per-image lane indicator.  Rows mbase..mbase+23: 0/1
    boundary mask per (dy, dx) roll offset (also blocks cross-image bleed)."""
    HW = H * W
    L = Bt * HW
    mbase = _round_up(Bt, 8)
    rows = _round_up(mbase + len(_TAP_OFFSETS), 8)
    m = np.zeros((rows, L), np.float32)
    l = np.arange(L)
    img = l // HW
    pp = l % HW
    r = pp // W
    c = pp % W
    for i in range(Bt):
        m[i] = (img == i)
    for j, (dy, dx) in enumerate(_TAP_OFFSETS):
        m[mbase + j] = ((r + dy >= 0) & (r + dy < H) & (c + dx >= 0) & (c + dx < W))
    return jnp.asarray(m, dtype=dtype)


def attention_forward(x, kernel_params, block_batch=None):
    wb, wp, scalars = kernel_params
    B, C, H, W = x.shape
    HW = H * W
    kind = _device_kind()
    tap_bf16 = ('v6' in kind) or ('v7' in kind)   # bf16 roll/mask path; f32 on v5e/other
    Bt = block_batch if block_batch is not None else _pick_bt(B, C, HW, kind)
    assert B % Bt == 0, "batch must be divisible by the per-step image count"
    G = B // Bt
    L = Bt * HW

    masks = _build_masks(H, W, Bt, jnp.bfloat16 if tap_bf16 else jnp.float32)

    # Layout plumbing (wrapper side): pack Bt images per grid step along lanes.
    xw = x.reshape(G, Bt, C, HW).transpose(0, 2, 1, 3).reshape(G, C, L)

    if 'v7' in kind:
        vmem_limit = 48 * 1024 * 1024      # under v7x's 64 MiB physical VMEM
    elif 'v5' in kind or 'v6' in kind:
        vmem_limit = 100 * 1024 * 1024     # 128 MiB physical on v5e/v6e
    else:
        vmem_limit = 64 * 1024 * 1024

    out = pl.pallas_call(
        functools.partial(_attention_kernel, H, W, Bt, tap_bf16),
        out_shape=jax.ShapeDtypeStruct((G, C, L), jnp.float32),
        grid=(G,),
        in_specs=[
            pl.BlockSpec((1, C, L), lambda g: (g, 0, 0)),
            pl.BlockSpec(wb.shape, lambda g: (0, 0)),     # constant block -> fetched once
            pl.BlockSpec(wp.shape, lambda g: (0, 0)),
            pl.BlockSpec(masks.shape, lambda g: (0, 0)),
            pl.BlockSpec(memory_space=pltpu.MemorySpace.SMEM),
        ],
        out_specs=pl.BlockSpec((1, C, L), lambda g: (g, 0, 0)),
        compiler_params=pltpu.CompilerParams(
            dimension_semantics=("parallel",),
            vmem_limit_bytes=vmem_limit,
        ),
    )(xw, wb, wp, masks, scalars)
    # TODO(synk): for large H*W add an HW-tiling grid axis with a 3-pixel halo so
    # the per-step working set stays inside v7x's 64 MiB VMEM at real resolutions.
    return out.reshape(G, C, Bt, HW).transpose(0, 2, 1, 3).reshape(B, C, H, W)


# ----------------------- parameters (PyTorch layouts) ------------------------

def init_params(key, C):
    C2 = C // 2
    ks = jax.random.split(key, 20)
    nrm = lambda k, s, std: (std * jax.random.normal(k, s)).astype(jnp.float32)
    p = {}
    p['conv1_w'] = nrm(ks[0], (C, C, 3, 3), 0.15)
    p['conv1_b'] = nrm(ks[1], (C,), 0.05)
    p['conv2_w'] = nrm(ks[2], (C, C, 3, 3), 0.15)
    p['conv2_b'] = nrm(ks[3], (C,), 0.05)
    p['mask_w'] = nrm(ks[4], (1, C, 3, 3), (2.0 / (C * 9)) ** 0.5)  # kaiming fan_in
    p['mask_b'] = jnp.zeros((1,), jnp.float32)
    p['ca1_w'] = nrm(ks[5], (C2, C), 0.2)
    p['ca1_b'] = nrm(ks[6], (C2,), 0.05)
    p['ln_g'] = jnp.ones((C2,), jnp.float32)
    p['ln_b'] = jnp.zeros((C2,), jnp.float32)
    # NOTE: PyTorch's last_zero_init zero-inits this layer; small random values
    # are used here so the channel-add path is numerically exercised.
    p['ca2_w'] = nrm(ks[7], (C, C2), 0.1)
    p['ca2_b'] = nrm(ks[8], (C,), 0.02)
    p['d1_w'] = nrm(ks[9], (1, C, 3, 3), 0.15)
    p['d1_b'] = nrm(ks[10], (1,), 0.05)
    p['d2_w'] = nrm(ks[11], (1, C, 3, 3), 0.15)
    p['d2_b'] = nrm(ks[12], (1,), 0.05)
    p['d4_w'] = nrm(ks[13], (1, C, 3, 3), 0.15)   # dilation 3 (name kept from PyTorch)
    p['d4_b'] = nrm(ks[14], (1,), 0.05)
    p['fuse_w'] = nrm(ks[15], (1, 3, 3, 3), 0.3)
    p['fuse_b'] = nrm(ks[16], (1,), 0.05)
    p['fine_w'] = nrm(ks[17], (C, 2 * C), 0.15)
    p['fine_b'] = nrm(ks[18], (C,), 0.02)
    p['prelu1'] = jnp.float32(0.25)
    p['prelu2'] = jnp.float32(0.25)
    p['prelu_ca'] = jnp.float32(0.25)
    return p


def to_kernel_params(p):
    """Pack parameters into a bf16 matmul-weight slab + f32 param slab + SMEM vec."""
    C = p['conv1_w'].shape[0]
    C2 = C // 2
    lb = _wb_layout(C)
    lp = _wp_layout(C)

    def k9(w):
        # (Cout, Cin, 3, 3) -> (Cout, 9*Cin); column = (ky*3 + kx)*Cin + cin,
        # matching the row order of the in-kernel im2col tap stack.
        w = np.asarray(w, np.float32)
        co, ci = w.shape[0], w.shape[1]
        return np.transpose(w, (0, 2, 3, 1)).reshape(co, 9 * ci)

    wb = np.zeros((lb['rows'], lb['lanes']), np.float32)
    wb[lb['w1']:lb['w1'] + C, 0:9 * C] = k9(p['conv1_w'])
    wb[lb['w2']:lb['w2'] + C, 0:9 * C] = k9(p['conv2_w'])
    wb[lb['wm']:lb['wm'] + 1, 0:9 * C] = k9(p['mask_w'])
    rd = lb['wd']
    wb[rd + 0, 0 * 9 * C:1 * 9 * C] = k9(p['d1_w'])[0]
    wb[rd + 1, 1 * 9 * C:2 * 9 * C] = k9(p['d2_w'])[0]
    wb[rd + 2, 2 * 9 * C:3 * 9 * C] = k9(p['d4_w'])[0]
    fuse_pad = np.zeros((1, _FF_PAD, 3, 3), np.float32)
    fuse_pad[:, :3] = np.asarray(p['fuse_w'], np.float32)
    wb[lb['wf']:lb['wf'] + 1, 0:9 * _FF_PAD] = k9(fuse_pad)
    wb[lb['fine']:lb['fine'] + C, 0:2 * C] = np.asarray(p['fine_w'], np.float32)

    wp = np.zeros((lp['rows'], lp['lanes']), np.float32)
    wp[0:C,  0] = np.asarray(p['conv1_b'])
    wp[0:C,  1] = np.asarray(p['conv2_b'])
    wp[0:C2, 2] = np.asarray(p['ca1_b'])
    wp[0:C2, 3] = np.asarray(p['ln_g'])
    wp[0:C2, 4] = np.asarray(p['ln_b'])
    wp[0:C,  5] = np.asarray(p['ca2_b'])
    wp[0:C,  6] = np.asarray(p['fine_b'])
    wp[0, 7] = float(np.asarray(p['d1_b'])[0])
    wp[1, 7] = float(np.asarray(p['d2_b'])[0])
    wp[2, 7] = float(np.asarray(p['d4_b'])[0])
    wp[0:C2, 8:8 + C] = np.asarray(p['ca1_w'])
    wp[0:C,  8 + C:8 + C + C2] = np.asarray(p['ca2_w'])

    scalars = jnp.array([p['prelu1'], p['prelu2'], p['prelu_ca'],
                         p['mask_b'][0], p['fuse_b'][0]], dtype=jnp.float32)
    return jnp.asarray(wb, jnp.bfloat16), jnp.asarray(wp, jnp.float32), scalars


# ------------------------- pure-JAX reference (NCHW) -------------------------

def ref_forward(x, p):
    HI = lax.Precision.HIGHEST
    def conv(v, w, b, d=1):
        y = lax.conv_general_dilated(v, w, (1, 1), [(d, d), (d, d)],
                                     rhs_dilation=(d, d),
                                     dimension_numbers=('NCHW', 'OIHW', 'NCHW'),
                                     precision=HI)
        return y + b.reshape(1, -1, 1, 1)
    prelu = lambda v, a: jnp.where(v >= 0, v, a * v)
    B, C, H, W = x.shape
    out = prelu(conv(x, p['conv1_w'], p['conv1_b']), p['prelu1'])
    out = conv(out, p['conv2_w'], p['conv2_b'])
    logits = conv(out, p['mask_w'], p['mask_b']).reshape(B, H * W)
    smx = jax.nn.softmax(logits, axis=1)
    ctx = jnp.einsum('bcp,bp->bc', out.reshape(B, C, H * W), smx,
                     precision=HI).reshape(B, C, 1, 1)
    h = jnp.einsum('oc,bcij->boij', p['ca1_w'], ctx, precision=HI) + p['ca1_b'].reshape(1, -1, 1, 1)
    mu = jnp.mean(h, axis=(1, 2, 3), keepdims=True)
    var = jnp.mean((h - mu) ** 2, axis=(1, 2, 3), keepdims=True)
    h = (h - mu) / jnp.sqrt(var + 1e-5)
    h = h * p['ln_g'].reshape(1, -1, 1, 1) + p['ln_b'].reshape(1, -1, 1, 1)
    h = prelu(h, p['prelu_ca'])
    ctx_add = jnp.einsum('oc,bcij->boij', p['ca2_w'], h, precision=HI) + p['ca2_b'].reshape(1, -1, 1, 1)
    out = out + ctx_add
    ff1 = conv(out, p['d1_w'], p['d1_b'], 1)
    ff2 = conv(out, p['d2_w'], p['d2_b'], 2)
    ff4 = conv(out, p['d4_w'], p['d4_b'], 3)
    ff = jnp.concatenate([ff1, ff2, ff4], axis=1)
    sp_mask = jax.nn.sigmoid(conv(ff, p['fuse_w'], p['fuse_b'], 1))
    sp = out * sp_mask
    cat = jnp.concatenate([out, sp], axis=1)
    fine = jnp.einsum('oc,bchw->bohw', p['fine_w'], cat, precision=HI) + p['fine_b'].reshape(1, -1, 1, 1)
    return prelu(fine + x, p['prelu2'])


# ---------------------------------- main -------------------------------------

if __name__ == "__main__":
    B, C, H, W = 4, 8, 16, 16   # inplanes = 8
    key = jax.random.PRNGKey(0)
    kx, kp = jax.random.split(key)
    x = jax.random.normal(kx, (B, C, H, W), dtype=jnp.float32)

    params = init_params(kp, C)
    kparams = to_kernel_params(params)

    y = jax.block_until_ready(attention_forward(x, kparams))
    y_ref = jax.block_until_ready(ref_forward(x, params))

    err = float(jnp.max(jnp.abs(y - y_ref)))
    assert y.shape == (B, C, H, W)
    # bf16 MXU operands compounding through conv1->conv2->dilated->fusion->fine
    # vs the f32-HIGHEST reference; tolerance sized for that (softmax uses the
    # exact reciprocal now).
    assert np.isfinite(err) and err < 1.5e-1, f"max abs err too large: {err}"

    print("KERNEL_OK")
</pallas_src>

<mosaic_0001>
module attributes {stable_mosaic.version = 11 : i64} {
  func.func @_attention_kernel(%arg0: i32, %arg1: memref<1x8x1024xf32, #tpu.memory_space<vmem>>, %arg2: memref<96x256xbf16, #tpu.memory_space<vmem>>, %arg3: memref<8x128xf32, #tpu.memory_space<vmem>>, %arg4: memref<32x1024xf32, #tpu.memory_space<vmem>>, %arg5: memref<5xf32, #tpu.memory_space<smem>>, %arg6: memref<1x8x1024xf32, #tpu.memory_space<vmem>>) attributes {dimension_semantics = [#tpu.dimension_semantics<parallel>], iteration_bounds = array<i64: 1>, scalar_prefetch = 0 : i64, scratch_operands = 0 : i64, tpu.core_type = #tpu.core_type<tc>, window_params = [{transform_indices = @transform_0, window_bounds = array<i64: 1, 8, 1024>}, {pipeline_mode = #tpu.pipeline_mode<synchronous>, transform_indices = @transform_1, window_bounds = array<i64: 96, 256>}, {pipeline_mode = #tpu.pipeline_mode<synchronous>, transform_indices = @transform_2, window_bounds = array<i64: 8, 128>}, {pipeline_mode = #tpu.pipeline_mode<synchronous>, transform_indices = @transform_3, window_bounds = array<i64: 32, 1024>}, {transform_indices = @transform_4, window_bounds = array<i64: 5>}, {transform_indices = @transform_5, window_bounds = array<i64: 1, 8, 1024>}]} {
    %c0 = arith.constant 0 : index
    %0 = memref.load %arg5[%c0] : memref<5xf32, #tpu.memory_space<smem>>
    %c1 = arith.constant 1 : index
    %1 = memref.load %arg5[%c1] : memref<5xf32, #tpu.memory_space<smem>>
    %c2 = arith.constant 2 : index
    %2 = memref.load %arg5[%c2] : memref<5xf32, #tpu.memory_space<smem>>
    %c3 = arith.constant 3 : index
    %3 = memref.load %arg5[%c3] : memref<5xf32, #tpu.memory_space<smem>>
    %c4 = arith.constant 4 : index
    %4 = memref.load %arg5[%c4] : memref<5xf32, #tpu.memory_space<smem>>
    %c0_0 = arith.constant 0 : index
    %c0_1 = arith.constant 0 : index
    %5 = vector.load %arg2[%c0_0, %c0_1] : memref<96x256xbf16, #tpu.memory_space<vmem>>, vector<8x72xbf16>
    %c16 = arith.constant 16 : index
    %c0_2 = arith.constant 0 : index
    %6 = vector.load %arg2[%c16, %c0_2] : memref<96x256xbf16, #tpu.memory_space<vmem>>, vector<8x72xbf16>
    %c32 = arith.constant 32 : index
    %c0_3 = arith.constant 0 : index
    %7 = vector.load %arg2[%c32, %c0_3] : memref<96x256xbf16, #tpu.memory_space<vmem>>, vector<1x72xbf16>
    %c48 = arith.constant 48 : index
    %c0_4 = arith.constant 0 : index
    %8 = vector.load %arg2[%c48, %c0_4] : memref<96x256xbf16, #tpu.memory_space<vmem>>, vector<3x216xbf16>
    %c64 = arith.constant 64 : index
    %c0_5 = arith.constant 0 : index
    %9 = vector.load %arg2[%c64, %c0_5] : memref<96x256xbf16, #tpu.memory_space<vmem>>, vector<1x72xbf16>
    %c80 = arith.constant 80 : index
    %c0_6 = arith.constant 0 : index
    %10 = vector.load %arg2[%c80, %c0_6] : memref<96x256xbf16, #tpu.memory_space<vmem>>, vector<8x8xbf16>
    %c80_7 = arith.constant 80 : index
    %c8 = arith.constant 8 : index
    %11 = vector.load %arg2[%c80_7, %c8] : memref<96x256xbf16, #tpu.memory_space<vmem>>, vector<8x8xbf16>
    %c0_8 = arith.constant 0 : index
    %c0_9 = arith.constant 0 : index
    %12 = vector.load %arg3[%c0_8, %c0_9] : memref<8x128xf32, #tpu.memory_space<vmem>>, vector<8x1xf32>
    %c0_10 = arith.constant 0 : index
    %c1_11 = arith.constant 1 : index
    %13 = vector.load %arg3[%c0_10, %c1_11] : memref<8x128xf32, #tpu.memory_space<vmem>>, vector<8x1xf32>
    %c0_12 = arith.constant 0 : index
    %c2_13 = arith.constant 2 : index
    %14 = vector.load %arg3[%c0_12, %c2_13] : memref<8x128xf32, #tpu.memory_space<vmem>>, vector<4x1xf32>
    %c0_14 = arith.constant 0 : index
    %c3_15 = arith.constant 3 : index
    %15 = vector.load %arg3[%c0_14, %c3_15] : memref<8x128xf32, #tpu.memory_space<vmem>>, vector<4x1xf32>
    %c0_16 = arith.constant 0 : index
    %c4_17 = arith.constant 4 : index
    %16 = vector.load %arg3[%c0_16, %c4_17] : memref<8x128xf32, #tpu.memory_space<vmem>>, vector<4x1xf32>
    %c0_18 = arith.constant 0 : index
    %c5 = arith.constant 5 : index
    %17 = vector.load %arg3[%c0_18, %c5] : memref<8x128xf32, #tpu.memory_space<vmem>>, vector<8x1xf32>
    %c0_19 = arith.constant 0 : index
    %c6 = arith.constant 6 : index
    %18 = vector.load %arg3[%c0_19, %c6] : memref<8x128xf32, #tpu.memory_space<vmem>>, vector<8x1xf32>
    %c0_20 = arith.constant 0 : index
    %c7 = arith.constant 7 : index
    %19 = vector.load %arg3[%c0_20, %c7] : memref<8x128xf32, #tpu.memory_space<vmem>>, vector<3x1xf32>
    %c0_21 = arith.constant 0 : index
    %c8_22 = arith.constant 8 : index
    %20 = vector.load %arg3[%c0_21, %c8_22] : memref<8x128xf32, #tpu.memory_space<vmem>>, vector<4x8xf32>
    %c0_23 = arith.constant 0 : index
    %c16_24 = arith.constant 16 : index
    %21 = vector.load %arg3[%c0_23, %c16_24] : memref<8x128xf32, #tpu.memory_space<vmem>>, vector<8x4xf32>
    %c0_25 = arith.constant 0 : index
    %c0_26 = arith.constant 0 : index
    %22 = vector.load %arg4[%c0_25, %c0_26] : memref<32x1024xf32, #tpu.memory_space<vmem>>, vector<4x1024xf32>
    %c8_27 = arith.constant 8 : index
    %c0_28 = arith.constant 0 : index
    %23 = vector.load %arg4[%c8_27, %c0_28] : memref<32x1024xf32, #tpu.memory_space<vmem>>, vector<1x1024xf32>
    %c9 = arith.constant 9 : index
    %c0_29 = arith.constant 0 : index
    %24 = vector.load %arg4[%c9, %c0_29] : memref<32x1024xf32, #tpu.memory_space<vmem>>, vector<1x1024xf32>
    %c10 = arith.constant 10 : index
    %c0_30 = arith.constant 0 : index
    %25 = vector.load %arg4[%c10, %c0_30] : memref<32x1024xf32, #tpu.memory_space<vmem>>, vector<1x1024xf32>
    %c11 = arith.constant 11 : index
    %c0_31 = arith.constant 0 : index
    %26 = vector.load %arg4[%c11, %c0_31] : memref<32x1024xf32, #tpu.memory_space<vmem>>, vector<1x1024xf32>
    %c12 = arith.constant 12 : index
    %c0_32 = arith.constant 0 : index
    %27 = vector.load %arg4[%c12, %c0_32] : memref<32x1024xf32, #tpu.memory_space<vmem>>, vector<1x1024xf32>
    %c13 = arith.constant 13 : index
    %c0_33 = arith.constant 0 : index
    %28 = vector.load %arg4[%c13, %c0_33] : memref<32x1024xf32, #tpu.memory_space<vmem>>, vector<1x1024xf32>
    %c14 = arith.constant 14 : index
    %c0_34 = arith.constant 0 : index
    %29 = vector.load %arg4[%c14, %c0_34] : memref<32x1024xf32, #tpu.memory_space<vmem>>, vector<1x1024xf32>
    %c15 = arith.constant 15 : index
    %c0_35 = arith.constant 0 : index
    %30 = vector.load %arg4[%c15, %c0_35] : memref<32x1024xf32, #tpu.memory_space<vmem>>, vector<1x1024xf32>
    %c16_36 = arith.constant 16 : index
    %c0_37 = arith.constant 0 : index
    %31 = vector.load %arg4[%c16_36, %c0_37] : memref<32x1024xf32, #tpu.memory_space<vmem>>, vector<1x1024xf32>
    %c17 = arith.constant 17 : index
    %c0_38 = arith.constant 0 : index
    %32 = vector.load %arg4[%c17, %c0_38] : memref<32x1024xf32, #tpu.memory_space<vmem>>, vector<1x1024xf32>
    %c18 = arith.constant 18 : index
    %c0_39 = arith.constant 0 : index
    %33 = vector.load %arg4[%c18, %c0_39] : memref<32x1024xf32, #tpu.memory_space<vmem>>, vector<1x1024xf32>
    %c19 = arith.constant 19 : index
    %c0_40 = arith.constant 0 : index
    %34 = vector.load %arg4[%c19, %c0_40] : memref<32x1024xf32, #tpu.memory_space<vmem>>, vector<1x1024xf32>
    %c20 = arith.constant 20 : index
    %c0_41 = arith.constant 0 : index
    %35 = vector.load %arg4[%c20, %c0_41] : memref<32x1024xf32, #tpu.memory_space<vmem>>, vector<1x1024xf32>
    %c21 = arith.constant 21 : index
    %c0_42 = arith.constant 0 : index
    %36 = vector.load %arg4[%c21, %c0_42] : memref<32x1024xf32, #tpu.memory_space<vmem>>, vector<1x1024xf32>
    %c22 = arith.constant 22 : index
    %c0_43 = arith.constant 0 : index
    %37 = vector.load %arg4[%c22, %c0_43] : memref<32x1024xf32, #tpu.memory_space<vmem>>, vector<1x1024xf32>
    %c23 = arith.constant 23 : index
    %c0_44 = arith.constant 0 : index
    %38 = vector.load %arg4[%c23, %c0_44] : memref<32x1024xf32, #tpu.memory_space<vmem>>, vector<1x1024xf32>
    %c24 = arith.constant 24 : index
    %c0_45 = arith.constant 0 : index
    %39 = vector.load %arg4[%c24, %c0_45] : memref<32x1024xf32, #tpu.memory_space<vmem>>, vector<1x1024xf32>
    %c25 = arith.constant 25 : index
    %c0_46 = arith.constant 0 : index
    %40 = vector.load %arg4[%c25, %c0_46] : memref<32x1024xf32, #tpu.memory_space<vmem>>, vector<1x1024xf32>
    %c26 = arith.constant 26 : index
    %c0_47 = arith.constant 0 : index
    %41 = vector.load %arg4[%c26, %c0_47] : memref<32x1024xf32, #tpu.memory_space<vmem>>, vector<1x1024xf32>
    %c27 = arith.constant 27 : index
    %c0_48 = arith.constant 0 : index
    %42 = vector.load %arg4[%c27, %c0_48] : memref<32x1024xf32, #tpu.memory_space<vmem>>, vector<1x1024xf32>
    %c28 = arith.constant 28 : index
    %c0_49 = arith.constant 0 : index
    %43 = vector.load %arg4[%c28, %c0_49] : memref<32x1024xf32, #tpu.memory_space<vmem>>, vector<1x1024xf32>
    %c29 = arith.constant 29 : index
    %c0_50 = arith.constant 0 : index
    %44 = vector.load %arg4[%c29, %c0_50] : memref<32x1024xf32, #tpu.memory_space<vmem>>, vector<1x1024xf32>
    %c30 = arith.constant 30 : index
    %c0_51 = arith.constant 0 : index
    %45 = vector.load %arg4[%c30, %c0_51] : memref<32x1024xf32, #tpu.memory_space<vmem>>, vector<1x1024xf32>
    %c31 = arith.constant 31 : index
    %c0_52 = arith.constant 0 : index
    %46 = vector.load %arg4[%c31, %c0_52] : memref<32x1024xf32, #tpu.memory_space<vmem>>, vector<1x1024xf32>
    %c0_53 = arith.constant 0 : index
    %c0_54 = arith.constant 0 : index
    %c0_55 = arith.constant 0 : index
    %47 = vector.load %arg1[%c0_53, %c0_54, %c0_55] : memref<1x8x1024xf32, #tpu.memory_space<vmem>>, vector<1x8x1024xf32>
    %48 = vector.shape_cast %47 : vector<1x8x1024xf32> to vector<8x1024xf32>
    %c17_i32 = arith.constant 17 : i32
    %49 = tpu.dynamic_rotate %48 by %c17_i32 dim 1 : vector<8x1024xf32>, i32 -> vector<8x1024xf32>
    %50 = vector.broadcast %23 : vector<1x1024xf32> to vector<8x1024xf32>
    %51 = arith.mulf %49, %50 : vector<8x1024xf32>
    %52 = arith.truncf %51 : vector<8x1024xf32> to vector<8x1024xbf16>
    %c16_i32 = arith.constant 16 : i32
    %53 = tpu.dynamic_rotate %48 by %c16_i32 dim 1 : vector<8x1024xf32>, i32 -> vector<8x1024xf32>
    %54 = vector.broadcast %24 : vector<1x1024xf32> to vector<8x1024xf32>
    %55 = arith.mulf %53, %54 : vector<8x1024xf32>
    %56 = arith.truncf %55 : vector<8x1024xf32> to vector<8x1024xbf16>
    %c15_i32 = arith.constant 15 : i32
    %57 = tpu.dynamic_rotate %48 by %c15_i32 dim 1 : vector<8x1024xf32>, i32 -> vector<8x1024xf32>
    %58 = vector.broadcast %25 : vector<1x1024xf32> to vector<8x1024xf32>
    %59 = arith.mulf %57, %58 : vector<8x1024xf32>
    %60 = arith.truncf %59 : vector<8x1024xf32> to vector<8x1024xbf16>
    %c1_i32 = arith.constant 1 : i32
    %61 = tpu.dynamic_rotate %48 by %c1_i32 dim 1 : vector<8x1024xf32>, i32 -> vector<8x1024xf32>
    %62 = vector.broadcast %26 : vector<1x1024xf32> to vector<8x1024xf32>
    %63 = arith.mulf %61, %62 : vector<8x1024xf32>
    %64 = arith.truncf %63 : vector<8x1024xf32> to vector<8x1024xbf16>
    %65 = arith.truncf %48 : vector<8x1024xf32> to vector<8x1024xbf16>
    %c1023_i32 = arith.constant 1023 : i32
    %66 = tpu.dynamic_rotate %48 by %c1023_i32 dim 1 : vector<8x1024xf32>, i32 -> vector<8x1024xf32>
    %67 = vector.broadcast %27 : vector<1x1024xf32> to vector<8x1024xf32>
    %68 = arith.mulf %66, %67 : vector<8x1024xf32>
    %69 = arith.truncf %68 : vector<8x1024xf32> to vector<8x1024xbf16>
    %c1009_i32 = arith.constant 1009 : i32
    %70 = tpu.dynamic_rotate %48 by %c1009_i32 dim 1 : vector<8x1024xf32>, i32 -> vector<8x1024xf32>
    %71 = vector.broadcast %28 : vector<1x1024xf32> to vector<8x1024xf32>
    %72 = arith.mulf %70, %71 : vector<8x1024xf32>
    %73 = arith.truncf %72 : vector<8x1024xf32> to vector<8x1024xbf16>
    %c1008_i32 = arith.constant 1008 : i32
    %74 = tpu.dynamic_rotate %48 by %c1008_i32 dim 1 : vector<8x1024xf32>, i32 -> vector<8x1024xf32>
    %75 = vector.broadcast %29 : vector<1x1024xf32> to vector<8x1024xf32>
    %76 = arith.mulf %74, %75 : vector<8x1024xf32>
    %77 = arith.truncf %76 : vector<8x1024xf32> to vector<8x1024xbf16>
    %c1007_i32 = arith.constant 1007 : i32
    %78 = tpu.dynamic_rotate %48 by %c1007_i32 dim 1 : vector<8x1024xf32>, i32 -> vector<8x1024xf32>
    %79 = vector.broadcast %30 : vector<1x1024xf32> to vector<8x1024xf32>
    %80 = arith.mulf %78, %79 : vector<8x1024xf32>
    %81 = arith.truncf %80 : vector<8x1024xf32> to vector<8x1024xbf16>
    %82 = tpu.concatenate %52, %56, %60, %64, %65, %69, %73, %77, %81 in 0 : vector<8x1024xbf16>, vector<8x1024xbf16>, vector<8x1024xbf16>, vector<8x1024xbf16>, vector<8x1024xbf16>, vector<8x1024xbf16>, vector<8x1024xbf16>, vector<8x1024xbf16>, vector<8x1024xbf16> -> vector<72x1024xbf16>
    %cst = arith.constant dense<0.000000e+00> : vector<8x1024xf32>
    %83 = tpu.matmul %5, %82, %cst {dimension_numbers = #tpu.dot_dimension_numbers<[1], [0], [0], [1], [0, 0, 1, 1], [], []>} : vector<8x72xbf16>, vector<72x1024xbf16>, vector<8x1024xf32> -> vector<8x1024xf32>
    %84 = vector.broadcast %12 : vector<8x1xf32> to vector<8x1024xf32>
    %85 = arith.addf %83, %84 : vector<8x1024xf32>
    %cst_56 = arith.constant 0.000000e+00 : f32
    %86 = vector.broadcast %cst_56 : f32 to vector<8x1024xf32>
    %87 = arith.cmpf oge, %85, %86 : vector<8x1024xf32>
    %88 = vector.broadcast %0 : f32 to vector<8x1024xf32>
    %89 = arith.mulf %88, %85 : vector<8x1024xf32>
    %90 = arith.select %87, %85, %89 : vector<8x1024xi1>, vector<8x1024xf32>
    %c17_i32_57 = arith.constant 17 : i32
    %91 = tpu.dynamic_rotate %90 by %c17_i32_57 dim 1 : vector<8x1024xf32>, i32 -> vector<8x1024xf32>
    %92 = vector.broadcast %23 : vector<1x1024xf32> to vector<8x1024xf32>
    %93 = arith.mulf %91, %92 : vector<8x1024xf32>
    %94 = arith.truncf %93 : vector<8x1024xf32> to vector<8x1024xbf16>
    %c16_i32_58 = arith.constant 16 : i32
    %95 = tpu.dynamic_rotate %90 by %c16_i32_58 dim 1 : vector<8x1024xf32>, i32 -> vector<8x1024xf32>
    %96 = vector.broadcast %24 : vector<1x1024xf32> to vector<8x1024xf32>
    %97 = arith.mulf %95, %96 : vector<8x1024xf32>
    %98 = arith.truncf %97 : vector<8x1024xf32> to vector<8x1024xbf16>
    %c15_i32_59 = arith.constant 15 : i32
    %99 = tpu.dynamic_rotate %90 by %c15_i32_59 dim 1 : vector<8x1024xf32>, i32 -> vector<8x1024xf32>
    %100 = vector.broadcast %25 : vector<1x1024xf32> to vector<8x1024xf32>
    %101 = arith.mulf %99, %100 : vector<8x1024xf32>
    %102 = arith.truncf %101 : vector<8x1024xf32> to vector<8x1024xbf16>
    %c1_i32_60 = arith.constant 1 : i32
    %103 = tpu.dynamic_rotate %90 by %c1_i32_60 dim 1 : vector<8x1024xf32>, i32 -> vector<8x1024xf32>
    %104 = vector.broadcast %26 : vector<1x1024xf32> to vector<8x1024xf32>
    %105 = arith.mulf %103, %104 : vector<8x1024xf32>
    %106 = arith.truncf %105 : vector<8x1024xf32> to vector<8x1024xbf16>
    %107 = arith.truncf %90 : vector<8x1024xf32> to vector<8x1024xbf16>
    %c1023_i32_61 = arith.constant 1023 : i32
    %108 = tpu.dynamic_rotate %90 by %c1023_i32_61 dim 1 : vector<8x1024xf32>, i32 -> vector<8x1024xf32>
    %109 = vector.broadcast %27 : vector<1x1024xf32> to vector<8x1024xf32>
    %110 = arith.mulf %108, %109 : vector<8x1024xf32>
    %111 = arith.truncf %110 : vector<8x1024xf32> to vector<8x1024xbf16>
    %c1009_i32_62 = arith.constant 1009 : i32
    %112 = tpu.dynamic_rotate %90 by %c1009_i32_62 dim 1 : vector<8x1024xf32>, i32 -> vector<8x1024xf32>
    %113 = vector.broadcast %28 : vector<1x1024xf32> to vector<8x1024xf32>
    %114 = arith.mulf %112, %113 : vector<8x1024xf32>
    %115 = arith.truncf %114 : vector<8x1024xf32> to vector<8x1024xbf16>
    %c1008_i32_63 = arith.constant 1008 : i32
    %116 = tpu.dynamic_rotate %90 by %c1008_i32_63 dim 1 : vector<8x1024xf32>, i32 -> vector<8x1024xf32>
    %117 = vector.broadcast %29 : vector<1x1024xf32> to vector<8x1024xf32>
    %118 = arith.mulf %116, %117 : vector<8x1024xf32>
    %119 = arith.truncf %118 : vector<8x1024xf32> to vector<8x1024xbf16>
    %c1007_i32_64 = arith.constant 1007 : i32
    %120 = tpu.dynamic_rotate %90 by %c1007_i32_64 dim 1 : vector<8x1024xf32>, i32 -> vector<8x1024xf32>
    %121 = vector.broadcast %30 : vector<1x1024xf32> to vector<8x1024xf32>
    %122 = arith.mulf %120, %121 : vector<8x1024xf32>
    %123 = arith.truncf %122 : vector<8x1024xf32> to vector<8x1024xbf16>
    %124 = tpu.concatenate %94, %98, %102, %106, %107, %111, %115, %119, %123 in 0 : vector<8x1024xbf16>, vector<8x1024xbf16>, vector<8x1024xbf16>, vector<8x1024xbf16>, vector<8x1024xbf16>, vector<8x1024xbf16>, vector<8x1024xbf16>, vector<8x1024xbf16>, vector<8x1024xbf16> -> vector<72x1024xbf16>
    %cst_65 = arith.constant dense<0.000000e+00> : vector<8x1024xf32>
    %125 = tpu.matmul %6, %124, %cst_65 {dimension_numbers = #tpu.dot_dimension_numbers<[1], [0], [0], [1], [0, 0, 1, 1], [], []>} : vector<8x72xbf16>, vector<72x1024xbf16>, vector<8x1024xf32> -> vector<8x1024xf32>
    %126 = vector.broadcast %13 : vector<8x1xf32> to vector<8x1024xf32>
    %127 = arith.addf %125, %126 : vector<8x1024xf32>
    %c17_i32_66 = arith.constant 17 : i32
    %128 = tpu.dynamic_rotate %127 by %c17_i32_66 dim 1 : vector<8x1024xf32>, i32 -> vector<8x1024xf32>
    %129 = vector.broadcast %23 : vector<1x1024xf32> to vector<8x1024xf32>
    %130 = arith.mulf %128, %129 : vector<8x1024xf32>
    %131 = arith.truncf %130 : vector<8x1024xf32> to vector<8x1024xbf16>
    %c16_i32_67 = arith.constant 16 : i32
    %132 = tpu.dynamic_rotate %127 by %c16_i32_67 dim 1 : vector<8x1024xf32>, i32 -> vector<8x1024xf32>
    %133 = vector.broadcast %24 : vector<1x1024xf32> to vector<8x1024xf32>
    %134 = arith.mulf %132, %133 : vector<8x1024xf32>
    %135 = arith.truncf %134 : vector<8x1024xf32> to vector<8x1024xbf16>
    %c15_i32_68 = arith.constant 15 : i32
    %136 = tpu.dynamic_rotate %127 by %c15_i32_68 dim 1 : vector<8x1024xf32>, i32 -> vector<8x1024xf32>
    %137 = vector.broadcast %25 : vector<1x1024xf32> to vector<8x1024xf32>
    %138 = arith.mulf %136, %137 : vector<8x1024xf32>
    %139 = arith.truncf %138 : vector<8x1024xf32> to vector<8x1024xbf16>
    %c1_i32_69 = arith.constant 1 : i32
    %140 = tpu.dynamic_rotate %127 by %c1_i32_69 dim 1 : vector<8x1024xf32>, i32 -> vector<8x1024xf32>
    %141 = vector.broadcast %26 : vector<1x1024xf32> to vector<8x1024xf32>
    %142 = arith.mulf %140, %141 : vector<8x1024xf32>
    %143 = arith.truncf %142 : vector<8x1024xf32> to vector<8x1024xbf16>
    %144 = arith.truncf %127 : vector<8x1024xf32> to vector<8x1024xbf16>
    %c1023_i32_70 = arith.constant 1023 : i32
    %145 = tpu.dynamic_rotate %127 by %c1023_i32_70 dim 1 : vector<8x1024xf32>, i32 -> vector<8x1024xf32>
    %146 = vector.broadcast %27 : vector<1x1024xf32> to vector<8x1024xf32>
    %147 = arith.mulf %145, %146 : vector<8x1024xf32>
    %148 = arith.truncf %147 : vector<8x1024xf32> to vector<8x1024xbf16>
    %c1009_i32_71 = arith.constant 1009 : i32
    %149 = tpu.dynamic_rotate %127 by %c1009_i32_71 dim 1 : vector<8x1024xf32>, i32 -> vector<8x1024xf32>
    %150 = vector.broadcast %28 : vector<1x1024xf32> to vector<8x1024xf32>
    %151 = arith.mulf %149, %150 : vector<8x1024xf32>
    %152 = arith.truncf %151 : vector<8x1024xf32> to vector<8x1024xbf16>
    %c1008_i32_72 = arith.constant 1008 : i32
    %153 = tpu.dynamic_rotate %127 by %c1008_i32_72 dim 1 : vector<8x1024xf32>, i32 -> vector<8x1024xf32>
    %154 = vector.broadcast %29 : vector<1x1024xf32> to vector<8x1024xf32>
    %155 = arith.mulf %153, %154 : vector<8x1024xf32>
    %156 = arith.truncf %155 : vector<8x1024xf32> to vector<8x1024xbf16>
    %c1007_i32_73 = arith.constant 1007 : i32
    %157 = tpu.dynamic_rotate %127 by %c1007_i32_73 dim 1 : vector<8x1024xf32>, i32 -> vector<8x1024xf32>
    %158 = vector.broadcast %30 : vector<1x1024xf32> to vector<8x1024xf32>
    %159 = arith.mulf %157, %158 : vector<8x1024xf32>
    %160 = arith.truncf %159 : vector<8x1024xf32> to vector<8x1024xbf16>
    %161 = tpu.concatenate %131, %135, %139, %143, %144, %148, %152, %156, %160 in 0 : vector<8x1024xbf16>, vector<8x1024xbf16>, vector<8x1024xbf16>, vector<8x1024xbf16>, vector<8x1024xbf16>, vector<8x1024xbf16>, vector<8x1024xbf16>, vector<8x1024xbf16>, vector<8x1024xbf16> -> vector<72x1024xbf16>
    %cst_74 = arith.constant dense<0.000000e+00> : vector<1x1024xf32>
    %162 = tpu.matmul %7, %161, %cst_74 {dimension_numbers = #tpu.dot_dimension_numbers<[1], [0], [0], [1], [0, 0, 1, 1], [], []>} : vector<1x72xbf16>, vector<72x1024xbf16>, vector<1x1024xf32> -> vector<1x1024xf32>
    %163 = vector.broadcast %3 : f32 to vector<1x1024xf32>
    %164 = arith.addf %162, %163 : vector<1x1024xf32>
    %165 = vector.extract_strided_slice %164 {offsets = [0, 0], sizes = [1, 256], strides = [1, 1]} : vector<1x1024xf32> to vector<1x256xf32>
    %cst_75 = arith.constant dense<0xFF800000> : vector<1xf32>
    %166 = vector.multi_reduction <maximumf>, %165, %cst_75 [1] : vector<1x256xf32> to vector<1xf32>
    %167 = vector.shape_cast %166 : vector<1xf32> to vector<1x1xf32>
    %168 = vector.broadcast %167 : vector<1x1xf32> to vector<1x256xf32>
    %169 = arith.subf %165, %168 : vector<1x256xf32>
    %170 = math.exp %169 : vector<1x256xf32>
    %cst_76 = arith.constant dense<0.000000e+00> : vector<1xf32>
    %171 = vector.multi_reduction <add>, %170, %cst_76 [1] : vector<1x256xf32> to vector<1xf32>
    %172 = vector.shape_cast %171 : vector<1xf32> to vector<1x1xf32>
    %173 = tpu.reciprocal %172 : vector<1x1xf32> -> vector<1x1xf32>
    %174 = vector.broadcast %173 : vector<1x1xf32> to vector<1x256xf32>
    %175 = arith.mulf %170, %174 : vector<1x256xf32>
    %176 = vector.extract_strided_slice %164 {offsets = [0, 256], sizes = [1, 256], strides = [1, 1]} : vector<1x1024xf32> to vector<1x256xf32>
    %cst_77 = arith.constant dense<0xFF800000> : vector<1xf32>
    %177 = vector.multi_reduction <maximumf>, %176, %cst_77 [1] : vector<1x256xf32> to vector<1xf32>
    %178 = vector.shape_cast %177 : vector<1xf32> to vector<1x1xf32>
    %179 = vector.broadcast %178 : vector<1x1xf32> to vector<1x256xf32>
    %180 = arith.subf %176, %179 : vector<1x256xf32>
    %181 = math.exp %180 : vector<1x256xf32>
    %cst_78 = arith.constant dense<0.000000e+00> : vector<1xf32>
    %182 = vector.multi_reduction <add>, %181, %cst_78 [1] : vector<1x256xf32> to vector<1xf32>
    %183 = vector.shape_cast %182 : vector<1xf32> to vector<1x1xf32>
    %184 = tpu.reciprocal %183 : vector<1x1xf32> -> vector<1x1xf32>
    %185 = vector.broadcast %184 : vector<1x1xf32> to vector<1x256xf32>
    %186 = arith.mulf %181, %185 : vector<1x256xf32>
    %187 = vector.extract_strided_slice %164 {offsets = [0, 512], sizes = [1, 256], strides = [1, 1]} : vector<1x1024xf32> to vector<1x256xf32>
    %cst_79 = arith.constant dense<0xFF800000> : vector<1xf32>
    %188 = vector.multi_reduction <maximumf>, %187, %cst_79 [1] : vector<1x256xf32> to vector<1xf32>
    %189 = vector.shape_cast %188 : vector<1xf32> to vector<1x1xf32>
    %190 = vector.broadcast %189 : vector<1x1xf32> to vector<1x256xf32>
    %191 = arith.subf %187, %190 : vector<1x256xf32>
    %192 = math.exp %191 : vector<1x256xf32>
    %cst_80 = arith.constant dense<0.000000e+00> : vector<1xf32>
    %193 = vector.multi_reduction <add>, %192, %cst_80 [1] : vector<1x256xf32> to vector<1xf32>
    %194 = vector.shape_cast %193 : vector<1xf32> to vector<1x1xf32>
    %195 = tpu.reciprocal %194 : vector<1x1xf32> -> vector<1x1xf32>
    %196 = vector.broadcast %195 : vector<1x1xf32> to vector<1x256xf32>
    %197 = arith.mulf %192, %196 : vector<1x256xf32>
    %198 = vector.extract_strided_slice %164 {offsets = [0, 768], sizes = [1, 256], strides = [1, 1]} : vector<1x1024xf32> to vector<1x256xf32>
    %cst_81 = arith.constant dense<0xFF800000> : vector<1xf32>
    %199 = vector.multi_reduction <maximumf>, %198, %cst_81 [1] : vector<1x256xf32> to vector<1xf32>
    %200 = vector.shape_cast %199 : vector<1xf32> to vector<1x1xf32>
    %201 = vector.broadcast %200 : vector<1x1xf32> to vector<1x256xf32>
    %202 = arith.subf %198, %201 : vector<1x256xf32>
    %203 = math.exp %202 : vector<1x256xf32>
    %cst_82 = arith.constant dense<0.000000e+00> : vector<1xf32>
    %204 = vector.multi_reduction <add>, %203, %cst_82 [1] : vector<1x256xf32> to vector<1xf32>
    %205 = vector.shape_cast %204 : vector<1xf32> to vector<1x1xf32>
    %206 = tpu.reciprocal %205 : vector<1x1xf32> -> vector<1x1xf32>
    %207 = vector.broadcast %206 : vector<1x1xf32> to vector<1x256xf32>
    %208 = arith.mulf %203, %207 : vector<1x256xf32>
    %209 = tpu.concatenate %175, %186, %197, %208 in 1 : vector<1x256xf32>, vector<1x256xf32>, vector<1x256xf32>, vector<1x256xf32> -> vector<1x1024xf32>
    %210 = vector.broadcast %209 : vector<1x1024xf32> to vector<4x1024xf32>
    %211 = arith.mulf %22, %210 : vector<4x1024xf32>
    %cst_83 = arith.constant dense<0.000000e+00> : vector<8x4xf32>
    %212 = tpu.matmul %127, %211, %cst_83 {dimension_numbers = #tpu.dot_dimension_numbers<[1], [1], [0], [0], [0, 0, 1, 0], [], []>} : vector<8x1024xf32>, vector<4x1024xf32>, vector<8x4xf32> -> vector<8x4xf32>
    %cst_84 = arith.constant dense<0.000000e+00> : vector<4x4xf32>
    %213 = tpu.matmul %20, %212, %cst_84 {dimension_numbers = #tpu.dot_dimension_numbers<[1], [0], [0], [1], [0, 0, 1, 1], [], []>} : vector<4x8xf32>, vector<8x4xf32>, vector<4x4xf32> -> vector<4x4xf32>
    %214 = vector.broadcast %14 : vector<4x1xf32> to vector<4x4xf32>
    %215 = arith.addf %213, %214 : vector<4x4xf32>
    %cst_85 = arith.constant dense<0.000000e+00> : vector<4xf32>
    %216 = vector.multi_reduction <add>, %215, %cst_85 [0] : vector<4x4xf32> to vector<4xf32>
    %217 = vector.shape_cast %216 : vector<4xf32> to vector<1x4xf32>
    %cst_86 = arith.constant 4.000000e+00 : f32
    %218 = vector.broadcast %cst_86 : f32 to vector<1x4xf32>
    %219 = arith.divf %217, %218 : vector<1x4xf32>
    %220 = vector.broadcast %219 : vector<1x4xf32> to vector<4x4xf32>
    %221 = arith.subf %215, %220 : vector<4x4xf32>
    %222 = arith.mulf %221, %221 : vector<4x4xf32>
    %cst_87 = arith.constant dense<0.000000e+00> : vector<4xf32>
    %223 = vector.multi_reduction <add>, %222, %cst_87 [0] : vector<4x4xf32> to vector<4xf32>
    %224 = vector.shape_cast %223 : vector<4xf32> to vector<1x4xf32>
    %cst_88 = arith.constant 4.000000e+00 : f32
    %225 = vector.broadcast %cst_88 : f32 to vector<1x4xf32>
    %226 = arith.divf %224, %225 : vector<1x4xf32>
    %227 = vector.broadcast %219 : vector<1x4xf32> to vector<4x4xf32>
    %228 = arith.subf %215, %227 : vector<4x4xf32>
    %cst_89 = arith.constant 9.99999974E-6 : f32
    %229 = vector.broadcast %cst_89 : f32 to vector<1x4xf32>
    %230 = arith.addf %226, %229 : vector<1x4xf32>
    %231 = math.rsqrt %230 : vector<1x4xf32>
    %232 = vector.broadcast %231 : vector<1x4xf32> to vector<4x4xf32>
    %233 = arith.mulf %228, %232 : vector<4x4xf32>
    %234 = vector.broadcast %15 : vector<4x1xf32> to vector<4x4xf32>
    %235 = arith.mulf %233, %234 : vector<4x4xf32>
    %236 = vector.broadcast %16 : vector<4x1xf32> to vector<4x4xf32>
    %237 = arith.addf %235, %236 : vector<4x4xf32>
    %cst_90 = arith.constant 0.000000e+00 : f32
    %238 = vector.broadcast %cst_90 : f32 to vector<4x4xf32>
    %239 = arith.cmpf oge, %237, %238 : vector<4x4xf32>
    %240 = vector.broadcast %2 : f32 to vector<4x4xf32>
    %241 = arith.mulf %240, %237 : vector<4x4xf32>
    %242 = arith.select %239, %237, %241 : vector<4x4xi1>, vector<4x4xf32>
    %cst_91 = arith.constant dense<0.000000e+00> : vector<8x4xf32>
    %243 = tpu.matmul %21, %242, %cst_91 {dimension_numbers = #tpu.dot_dimension_numbers<[1], [0], [0], [1], [0, 0, 1, 1], [], []>} : vector<8x4xf32>, vector<4x4xf32>, vector<8x4xf32> -> vector<8x4xf32>
    %244 = vector.broadcast %17 : vector<8x1xf32> to vector<8x4xf32>
    %245 = arith.addf %243, %244 : vector<8x4xf32>
    %246 = vector.extract_strided_slice %127 {offsets = [0, 0], sizes = [8, 256], strides = [1, 1]} : vector<8x1024xf32> to vector<8x256xf32>
    %247 = vector.extract_strided_slice %245 {offsets = [0, 0], sizes = [8, 1], strides = [1, 1]} : vector<8x4xf32> to vector<8x1xf32>
    %248 = vector.broadcast %247 : vector<8x1xf32> to vector<8x256xf32>
    %249 = arith.addf %246, %248 : vector<8x256xf32>
    %250 = vector.extract_strided_slice %127 {offsets = [0, 256], sizes = [8, 256], strides = [1, 1]} : vector<8x1024xf32> to vector<8x256xf32>
    %251 = vector.extract_strided_slice %245 {offsets = [0, 1], sizes = [8, 1], strides = [1, 1]} : vector<8x4xf32> to vector<8x1xf32>
    %252 = vector.broadcast %251 : vector<8x1xf32> to vector<8x256xf32>
    %253 = arith.addf %250, %252 : vector<8x256xf32>
    %254 = vector.extract_strided_slice %127 {offsets = [0, 512], sizes = [8, 256], strides = [1, 1]} : vector<8x1024xf32> to vector<8x256xf32>
    %255 = vector.extract_strided_slice %245 {offsets = [0, 2], sizes = [8, 1], strides = [1, 1]} : vector<8x4xf32> to vector<8x1xf32>
    %256 = vector.broadcast %255 : vector<8x1xf32> to vector<8x256xf32>
    %257 = arith.addf %254, %256 : vector<8x256xf32>
    %258 = vector.extract_strided_slice %127 {offsets = [0, 768], sizes = [8, 256], strides = [1, 1]} : vector<8x1024xf32> to vector<8x256xf32>
    %259 = vector.extract_strided_slice %245 {offsets = [0, 3], sizes = [8, 1], strides = [1, 1]} : vector<8x4xf32> to vector<8x1xf32>
    %260 = vector.broadcast %259 : vector<8x1xf32> to vector<8x256xf32>
    %261 = arith.addf %258, %260 : vector<8x256xf32>
    %262 = tpu.concatenate %249, %253, %257, %261 in 1 : vector<8x256xf32>, vector<8x256xf32>, vector<8x256xf32>, vector<8x256xf32> -> vector<8x1024xf32>
    %c17_i32_92 = arith.constant 17 : i32
    %263 = tpu.dynamic_rotate %262 by %c17_i32_92 dim 1 : vector<8x1024xf32>, i32 -> vector<8x1024xf32>
    %264 = vector.broadcast %23 : vector<1x1024xf32> to vector<8x1024xf32>
    %265 = arith.mulf %263, %264 : vector<8x1024xf32>
    %266 = arith.truncf %265 : vector<8x1024xf32> to vector<8x1024xbf16>
    %c16_i32_93 = arith.constant 16 : i32
    %267 = tpu.dynamic_rotate %262 by %c16_i32_93 dim 1 : vector<8x1024xf32>, i32 -> vector<8x1024xf32>
    %268 = vector.broadcast %24 : vector<1x1024xf32> to vector<8x1024xf32>
    %269 = arith.mulf %267, %268 : vector<8x1024xf32>
    %270 = arith.truncf %269 : vector<8x1024xf32> to vector<8x1024xbf16>
    %c15_i32_94 = arith.constant 15 : i32
    %271 = tpu.dynamic_rotate %262 by %c15_i32_94 dim 1 : vector<8x1024xf32>, i32 -> vector<8x1024xf32>
    %272 = vector.broadcast %25 : vector<1x1024xf32> to vector<8x1024xf32>
    %273 = arith.mulf %271, %272 : vector<8x1024xf32>
    %274 = arith.truncf %273 : vector<8x1024xf32> to vector<8x1024xbf16>
    %c1_i32_95 = arith.constant 1 : i32
    %275 = tpu.dynamic_rotate %262 by %c1_i32_95 dim 1 : vector<8x1024xf32>, i32 -> vector<8x1024xf32>
    %276 = vector.broadcast %26 : vector<1x1024xf32> to vector<8x1024xf32>
    %277 = arith.mulf %275, %276 : vector<8x1024xf32>
    %278 = arith.truncf %277 : vector<8x1024xf32> to vector<8x1024xbf16>
    %279 = arith.truncf %262 : vector<8x1024xf32> to vector<8x1024xbf16>
    %c1023_i32_96 = arith.constant 1023 : i32
    %280 = tpu.dynamic_rotate %262 by %c1023_i32_96 dim 1 : vector<8x1024xf32>, i32 -> vector<8x1024xf32>
    %281 = vector.broadcast %27 : vector<1x1024xf32> to vector<8x1024xf32>
    %282 = arith.mulf %280, %281 : vector<8x1024xf32>
    %283 = arith.truncf %282 : vector<8x1024xf32> to vector<8x1024xbf16>
    %c1009_i32_97 = arith.constant 1009 : i32
    %284 = tpu.dynamic_rotate %262 by %c1009_i32_97 dim 1 : vector<8x1024xf32>, i32 -> vector<8x1024xf32>
    %285 = vector.broadcast %28 : vector<1x1024xf32> to vector<8x1024xf32>
    %286 = arith.mulf %284, %285 : vector<8x1024xf32>
    %287 = arith.truncf %286 : vector<8x1024xf32> to vector<8x1024xbf16>
    %c1008_i32_98 = arith.constant 1008 : i32
    %288 = tpu.dynamic_rotate %262 by %c1008_i32_98 dim 1 : vector<8x1024xf32>, i32 -> vector<8x1024xf32>
    %289 = vector.broadcast %29 : vector<1x1024xf32> to vector<8x1024xf32>
    %290 = arith.mulf %288, %289 : vector<8x1024xf32>
    %291 = arith.truncf %290 : vector<8x1024xf32> to vector<8x1024xbf16>
    %c1007_i32_99 = arith.constant 1007 : i32
    %292 = tpu.dynamic_rotate %262 by %c1007_i32_99 dim 1 : vector<8x1024xf32>, i32 -> vector<8x1024xf32>
    %293 = vector.broadcast %30 : vector<1x1024xf32> to vector<8x1024xf32>
    %294 = arith.mulf %292, %293 : vector<8x1024xf32>
    %295 = arith.truncf %294 : vector<8x1024xf32> to vector<8x1024xbf16>
    %c34_i32 = arith.constant 34 : i32
    %296 = tpu.dynamic_rotate %262 by %c34_i32 dim 1 : vector<8x1024xf32>, i32 -> vector<8x1024xf32>
    %297 = vector.broadcast %31 : vector<1x1024xf32> to vector<8x1024xf32>
    %298 = arith.mulf %296, %297 : vector<8x1024xf32>
    %299 = arith.truncf %298 : vector<8x1024xf32> to vector<8x1024xbf16>
    %c32_i32 = arith.constant 32 : i32
    %300 = tpu.dynamic_rotate %262 by %c32_i32 dim 1 : vector<8x1024xf32>, i32 -> vector<8x1024xf32>
    %301 = vector.broadcast %32 : vector<1x1024xf32> to vector<8x1024xf32>
    %302 = arith.mulf %300, %301 : vector<8x1024xf32>
    %303 = arith.truncf %302 : vector<8x1024xf32> to vector<8x1024xbf16>
    %c30_i32 = arith.constant 30 : i32
    %304 = tpu.dynamic_rotate %262 by %c30_i32 dim 1 : vector<8x1024xf32>, i32 -> vector<8x1024xf32>
    %305 = vector.broadcast %33 : vector<1x1024xf32> to vector<8x1024xf32>
    %306 = arith.mulf %304, %305 : vector<8x1024xf32>
    %307 = arith.truncf %306 : vector<8x1024xf32> to vector<8x1024xbf16>
    %c2_i32 = arith.constant 2 : i32
    %308 = tpu.dynamic_rotate %262 by %c2_i32 dim 1 : vector<8x1024xf32>, i32 -> vector<8x1024xf32>
    %309 = vector.broadcast %34 : vector<1x1024xf32> to vector<8x1024xf32>
    %310 = arith.mulf %308, %309 : vector<8x1024xf32>
    %311 = arith.truncf %310 : vector<8x1024xf32> to vector<8x1024xbf16>
    %312 = arith.truncf %262 : vector<8x1024xf32> to vector<8x1024xbf16>
    %c1022_i32 = arith.constant 1022 : i32
    %313 = tpu.dynamic_rotate %262 by %c1022_i32 dim 1 : vector<8x1024xf32>, i32 -> vector<8x1024xf32>
    %314 = vector.broadcast %35 : vector<1x1024xf32> to vector<8x1024xf32>
    %315 = arith.mulf %313, %314 : vector<8x1024xf32>
    %316 = arith.truncf %315 : vector<8x1024xf32> to vector<8x1024xbf16>
    %c994_i32 = arith.constant 994 : i32
    %317 = tpu.dynamic_rotate %262 by %c994_i32 dim 1 : vector<8x1024xf32>, i32 -> vector<8x1024xf32>
    %318 = vector.broadcast %36 : vector<1x1024xf32> to vector<8x1024xf32>
    %319 = arith.mulf %317, %318 : vector<8x1024xf32>
    %320 = arith.truncf %319 : vector<8x1024xf32> to vector<8x1024xbf16>
    %c992_i32 = arith.constant 992 : i32
    %321 = tpu.dynamic_rotate %262 by %c992_i32 dim 1 : vector<8x1024xf32>, i32 -> vector<8x1024xf32>
    %322 = vector.broadcast %37 : vector<1x1024xf32> to vector<8x1024xf32>
    %323 = arith.mulf %321, %322 : vector<8x1024xf32>
    %324 = arith.truncf %323 : vector<8x1024xf32> to vector<8x1024xbf16>
    %c990_i32 = arith.constant 990 : i32
    %325 = tpu.dynamic_rotate %262 by %c990_i32 dim 1 : vector<8x1024xf32>, i32 -> vector<8x1024xf32>
    %326 = vector.broadcast %38 : vector<1x1024xf32> to vector<8x1024xf32>
    %327 = arith.mulf %325, %326 : vector<8x1024xf32>
    %328 = arith.truncf %327 : vector<8x1024xf32> to vector<8x1024xbf16>
    %c51_i32 = arith.constant 51 : i32
    %329 = tpu.dynamic_rotate %262 by %c51_i32 dim 1 : vector<8x1024xf32>, i32 -> vector<8x1024xf32>
    %330 = vector.broadcast %39 : vector<1x1024xf32> to vector<8x1024xf32>
    %331 = arith.mulf %329, %330 : vector<8x1024xf32>
    %332 = arith.truncf %331 : vector<8x1024xf32> to vector<8x1024xbf16>
    %c48_i32 = arith.constant 48 : i32
    %333 = tpu.dynamic_rotate %262 by %c48_i32 dim 1 : vector<8x1024xf32>, i32 -> vector<8x1024xf32>
    %334 = vector.broadcast %40 : vector<1x1024xf32> to vector<8x1024xf32>
    %335 = arith.mulf %333, %334 : vector<8x1024xf32>
    %336 = arith.truncf %335 : vector<8x1024xf32> to vector<8x1024xbf16>
    %c45_i32 = arith.constant 45 : i32
    %337 = tpu.dynamic_rotate %262 by %c45_i32 dim 1 : vector<8x1024xf32>, i32 -> vector<8x1024xf32>
    %338 = vector.broadcast %41 : vector<1x1024xf32> to vector<8x1024xf32>
    %339 = arith.mulf %337, %338 : vector<8x1024xf32>
    %340 = arith.truncf %339 : vector<8x1024xf32> to vector<8x1024xbf16>
    %c3_i32 = arith.constant 3 : i32
    %341 = tpu.dynamic_rotate %262 by %c3_i32 dim 1 : vector<8x1024xf32>, i32 -> vector<8x1024xf32>
    %342 = vector.broadcast %42 : vector<1x1024xf32> to vector<8x1024xf32>
    %343 = arith.mulf %341, %342 : vector<8x1024xf32>
    %344 = arith.truncf %343 : vector<8x1024xf32> to vector<8x1024xbf16>
    %345 = arith.truncf %262 : vector<8x1024xf32> to vector<8x1024xbf16>
    %c1021_i32 = arith.constant 1021 : i32
    %346 = tpu.dynamic_rotate %262 by %c1021_i32 dim 1 : vector<8x1024xf32>, i32 -> vector<8x1024xf32>
    %347 = vector.broadcast %43 : vector<1x1024xf32> to vector<8x1024xf32>
    %348 = arith.mulf %346, %347 : vector<8x1024xf32>
    %349 = arith.truncf %348 : vector<8x1024xf32> to vector<8x1024xbf16>
    %c979_i32 = arith.constant 979 : i32
    %350 = tpu.dynamic_rotate %262 by %c979_i32 dim 1 : vector<8x1024xf32>, i32 -> vector<8x1024xf32>
    %351 = vector.broadcast %44 : vector<1x1024xf32> to vector<8x1024xf32>
    %352 = arith.mulf %350, %351 : vector<8x1024xf32>
    %353 = arith.truncf %352 : vector<8x1024xf32> to vector<8x1024xbf16>
    %c976_i32 = arith.constant 976 : i32
    %354 = tpu.dynamic_rotate %262 by %c976_i32 dim 1 : vector<8x1024xf32>, i32 -> vector<8x1024xf32>
    %355 = vector.broadcast %45 : vector<1x1024xf32> to vector<8x1024xf32>
    %356 = arith.mulf %354, %355 : vector<8x1024xf32>
    %357 = arith.truncf %356 : vector<8x1024xf32> to vector<8x1024xbf16>
    %c973_i32 = arith.constant 973 : i32
    %358 = tpu.dynamic_rotate %262 by %c973_i32 dim 1 : vector<8x1024xf32>, i32 -> vector<8x1024xf32>
    %359 = vector.broadcast %46 : vector<1x1024xf32> to vector<8x1024xf32>
    %360 = arith.mulf %358, %359 : vector<8x1024xf32>
    %361 = arith.truncf %360 : vector<8x1024xf32> to vector<8x1024xbf16>
    %362 = tpu.concatenate %266, %270, %274, %278, %279, %283, %287, %291, %295, %299, %303, %307, %311, %312, %316, %320 in 0 : vector<8x1024xbf16>, vector<8x1024xbf16>, vector<8x1024xbf16>, vector<8x1024xbf16>, vector<8x1024xbf16>, vector<8x1024xbf16>, vector<8x1024xbf16>, vector<8x1024xbf16>, vector<8x1024xbf16>, vector<8x1024xbf16>, vector<8x1024xbf16>, vector<8x1024xbf16>, vector<8x1024xbf16>, vector<8x1024xbf16>, vector<8x1024xbf16>, vector<8x1024xbf16> -> vector<128x1024xbf16>
    %363 = tpu.concatenate %324, %328, %332, %336, %340, %344, %345, %349, %353, %357, %361 in 0 : vector<8x1024xbf16>, vector<8x1024xbf16>, vector<8x1024xbf16>, vector<8x1024xbf16>, vector<8x1024xbf16>, vector<8x1024xbf16>, vector<8x1024xbf16>, vector<8x1024xbf16>, vector<8x1024xbf16>, vector<8x1024xbf16>, vector<8x1024xbf16> -> vector<88x1024xbf16>
    %364 = tpu.concatenate %362, %363 in 0 : vector<128x1024xbf16>, vector<88x1024xbf16> -> vector<216x1024xbf16>
    %cst_100 = arith.constant dense<0.000000e+00> : vector<3x1024xf32>
    %365 = tpu.matmul %8, %364, %cst_100 {dimension_numbers = #tpu.dot_dimension_numbers<[1], [0], [0], [1], [0, 0, 1, 1], [], []>} : vector<3x216xbf16>, vector<216x1024xbf16>, vector<3x1024xf32> -> vector<3x1024xf32>
    %366 = vector.broadcast %19 : vector<3x1xf32> to vector<3x1024xf32>
    %367 = arith.addf %365, %366 : vector<3x1024xf32>
    %cst_101 = arith.constant 0.000000e+00 : f32
    %368 = vector.broadcast %cst_101 : f32 to vector<5x1024xf32>
    %369 = tpu.concatenate %367, %368 in 0 : vector<3x1024xf32>, vector<5x1024xf32> -> vector<8x1024xf32>
    %c17_i32_102 = arith.constant 17 : i32
    %370 = tpu.dynamic_rotate %369 by %c17_i32_102 dim 1 : vector<8x1024xf32>, i32 -> vector<8x1024xf32>
    %371 = vector.broadcast %23 : vector<1x1024xf32> to vector<8x1024xf32>
    %372 = arith.mulf %370, %371 : vector<8x1024xf32>
    %373 = arith.truncf %372 : vector<8x1024xf32> to vector<8x1024xbf16>
    %c16_i32_103 = arith.constant 16 : i32
    %374 = tpu.dynamic_rotate %369 by %c16_i32_103 dim 1 : vector<8x1024xf32>, i32 -> vector<8x1024xf32>
    %375 = vector.broadcast %24 : vector<1x1024xf32> to vector<8x1024xf32>
    %376 = arith.mulf %374, %375 : vector<8x1024xf32>
    %377 = arith.truncf %376 : vector<8x1024xf32> to vector<8x1024xbf16>
    %c15_i32_104 = arith.constant 15 : i32
    %378 = tpu.dynamic_rotate %369 by %c15_i32_104 dim 1 : vector<8x1024xf32>, i32 -> vector<8x1024xf32>
    %379 = vector.broadcast %25 : vector<1x1024xf32> to vector<8x1024xf32>
    %380 = arith.mulf %378, %379 : vector<8x1024xf32>
    %381 = arith.truncf %380 : vector<8x1024xf32> to vector<8x1024xbf16>
    %c1_i32_105 = arith.constant 1 : i32
    %382 = tpu.dynamic_rotate %369 by %c1_i32_105 dim 1 : vector<8x1024xf32>, i32 -> vector<8x1024xf32>
    %383 = vector.broadcast %26 : vector<1x1024xf32> to vector<8x1024xf32>
    %384 = arith.mulf %382, %383 : vector<8x1024xf32>
    %385 = arith.truncf %384 : vector<8x1024xf32> to vector<8x1024xbf16>
    %386 = arith.truncf %369 : vector<8x1024xf32> to vector<8x1024xbf16>
    %c1023_i32_106 = arith.constant 1023 : i32
    %387 = tpu.dynamic_rotate %369 by %c1023_i32_106 dim 1 : vector<8x1024xf32>, i32 -> vector<8x1024xf32>
    %388 = vector.broadcast %27 : vector<1x1024xf32> to vector<8x1024xf32>
    %389 = arith.mulf %387, %388 : vector<8x1024xf32>
    %390 = arith.truncf %389 : vector<8x1024xf32> to vector<8x1024xbf16>
    %c1009_i32_107 = arith.constant 1009 : i32
    %391 = tpu.dynamic_rotate %369 by %c1009_i32_107 dim 1 : vector<8x1024xf32>, i32 -> vector<8x1024xf32>
    %392 = vector.broadcast %28 : vector<1x1024xf32> to vector<8x1024xf32>
    %393 = arith.mulf %391, %392 : vector<8x1024xf32>
    %394 = arith.truncf %393 : vector<8x1024xf32> to vector<8x1024xbf16>
    %c1008_i32_108 = arith.constant 1008 : i32
    %395 = tpu.dynamic_rotate %369 by %c1008_i32_108 dim 1 : vector<8x1024xf32>, i32 -> vector<8x1024xf32>
    %396 = vector.broadcast %29 : vector<1x1024xf32> to vector<8x1024xf32>
    %397 = arith.mulf %395, %396 : vector<8x1024xf32>
    %398 = arith.truncf %397 : vector<8x1024xf32> to vector<8x1024xbf16>
    %c1007_i32_109 = arith.constant 1007 : i32
    %399 = tpu.dynamic_rotate %369 by %c1007_i32_109 dim 1 : vector<8x1024xf32>, i32 -> vector<8x1024xf32>
    %400 = vector.broadcast %30 : vector<1x1024xf32> to vector<8x1024xf32>
    %401 = arith.mulf %399, %400 : vector<8x1024xf32>
    %402 = arith.truncf %401 : vector<8x1024xf32> to vector<8x1024xbf16>
    %403 = tpu.concatenate %373, %377, %381, %385, %386, %390, %394, %398, %402 in 0 : vector<8x1024xbf16>, vector<8x1024xbf16>, vector<8x1024xbf16>, vector<8x1024xbf16>, vector<8x1024xbf16>, vector<8x1024xbf16>, vector<8x1024xbf16>, vector<8x1024xbf16>, vector<8x1024xbf16> -> vector<72x1024xbf16>
    %cst_110 = arith.constant dense<0.000000e+00> : vector<1x1024xf32>
    %404 = tpu.matmul %9, %403, %cst_110 {dimension_numbers = #tpu.dot_dimension_numbers<[1], [0], [0], [1], [0, 0, 1, 1], [], []>} : vector<1x72xbf16>, vector<72x1024xbf16>, vector<1x1024xf32> -> vector<1x1024xf32>
    %405 = vector.broadcast %4 : f32 to vector<1x1024xf32>
    %406 = arith.addf %404, %405 : vector<1x1024xf32>
    %407 = arith.negf %406 : vector<1x1024xf32>
    %408 = math.exp %407 : vector<1x1024xf32>
    %cst_111 = arith.constant 1.000000e+00 : f32
    %409 = vector.broadcast %cst_111 : f32 to vector<1x1024xf32>
    %410 = arith.addf %409, %408 : vector<1x1024xf32>
    %411 = arith.divf %409, %410 : vector<1x1024xf32>
    %412 = vector.broadcast %411 : vector<1x1024xf32> to vector<8x1024xf32>
    %413 = arith.mulf %262, %412 : vector<8x1024xf32>
    %414 = arith.truncf %262 : vector<8x1024xf32> to vector<8x1024xbf16>
    %cst_112 = arith.constant dense<0.000000e+00> : vector<8x1024xf32>
    %415 = tpu.matmul %10, %414, %cst_112 {dimension_numbers = #tpu.dot_dimension_numbers<[1], [0], [0], [1], [0, 0, 1, 1], [], []>} : vector<8x8xbf16>, vector<8x1024xbf16>, vector<8x1024xf32> -> vector<8x1024xf32>
    %416 = arith.truncf %413 : vector<8x1024xf32> to vector<8x1024xbf16>
    %cst_113 = arith.constant dense<0.000000e+00> : vector<8x1024xf32>
    %417 = tpu.matmul %11, %416, %cst_113 {dimension_numbers = #tpu.dot_dimension_numbers<[1], [0], [0], [1], [0, 0, 1, 1], [], []>} : vector<8x8xbf16>, vector<8x1024xbf16>, vector<8x1024xf32> -> vector<8x1024xf32>
    %418 = arith.addf %415, %417 : vector<8x1024xf32>
    %419 = vector.broadcast %18 : vector<8x1xf32> to vector<8x1024xf32>
    %420 = arith.addf %418, %419 : vector<8x1024xf32>
    %421 = arith.addf %420, %48 : vector<8x1024xf32>
    %cst_114 = arith.constant 0.000000e+00 : f32
    %422 = vector.broadcast %cst_114 : f32 to vector<8x1024xf32>
    %423 = arith.cmpf oge, %421, %422 : vector<8x1024xf32>
    %424 = vector.broadcast %1 : f32 to vector<8x1024xf32>
    %425 = arith.mulf %424, %421 : vector<8x1024xf32>
    %426 = arith.select %423, %421, %425 : vector<8x1024xi1>, vector<8x1024xf32>
    %c0_115 = arith.constant 0 : index
    %c0_116 = arith.constant 0 : index
    %c0_117 = arith.constant 0 : index
    %427 = vector.load %arg6[%c0_115, %c0_116, %c0_117] : memref<1x8x1024xf32, #tpu.memory_space<vmem>>, vector<1x8x1024xf32>
    %428 = vector.shape_cast %427 : vector<1x8x1024xf32> to vector<8x1024xf32>
    %429 = vector.shape_cast %426 : vector<8x1024xf32> to vector<1x8x1024xf32>
    tpu.vector_store %arg6[%c0_115, %c0_116, %c0_117], %429 {strides = array<i32>} : memref<1x8x1024xf32, #tpu.memory_space<vmem>>, vector<1x8x1024xf32>,
    return
  }
  func.func @transform_0(%arg0: i32) -> (i32, i32, i32) {
    %c0_i32 = arith.constant 0 : i32
    %c0_i32_0 = arith.constant 0 : i32
    %c0_i32_1 = arith.constant 0 : i32
    return %arg0, %c0_i32, %c0_i32_0 : i32, i32, i32
  }
  func.func @transform_1(%arg0: i32) -> (i32, i32) {
    %c0_i32 = arith.constant 0 : i32
    %c0_i32_0 = arith.constant 0 : i32
    %c0_i32_1 = arith.constant 0 : i32
    return %c0_i32, %c0_i32_0 : i32, i32
  }
  func.func @transform_2(%arg0: i32) -> (i32, i32) {
    %c0_i32 = arith.constant 0 : i32
    %c0_i32_0 = arith.constant 0 : i32
    %c0_i32_1 = arith.constant 0 : i32
    return %c0_i32, %c0_i32_0 : i32, i32
  }
  func.func @transform_3(%arg0: i32) -> (i32, i32) {
    %c0_i32 = arith.constant 0 : i32
    %c0_i32_0 = arith.constant 0 : i32
    %c0_i32_1 = arith.constant 0 : i32
    return %c0_i32, %c0_i32_0 : i32, i32
  }
  func.func @transform_4(%arg0: i32) -> i32 {
    %c0_i32 = arith.constant 0 : i32
    %c0_i32_0 = arith.constant 0 : i32
    return %c0_i32 : i32
  }
  func.func @transform_5(%arg0: i32) -> (i32, i32, i32) {
    %c0_i32 = arith.constant 0 : i32
    %c0_i32_0 = arith.constant 0 : i32
    %c0_i32_1 = arith.constant 0 : i32
    return %arg0, %c0_i32, %c0_i32_0 : i32, i32, i32
  }
}

</mosaic_0001>

<bundles_post_ra>
// kernel: tpu_custom_call.1
= control target key start
LH: loop header
LB: loop body
LE: loop exit
PB: predicated region body
PF: predicated region fallthrough
CT: control target
= control target key end

     0   :  { %10 = vsyncpa [#allocation3], 0  ;;  %s12009_s0 = inlined_call_operand.hbm [shape: f32[1,8,1024], index: 0, kind: input, shape index: {}]   ;;  %s12010_s1 = inlined_call_operand.hbm [shape: bf16[96,256], index: 1, kind: input, shape index: {}]   ;;  %s12011_s2 = inlined_call_operand.hbm [shape: f32[8,128], index: 2, kind: input, shape index: {}]   ;;  %s12012_s3 = inlined_call_operand.hbm [shape: f32[32,1024], index: 3, kind: input, shape index: {}]   ;;  %s12013_s4 = inlined_call_operand.vmem [shape: f32[5], index: 4, kind: input, shape index: {}]   ;;  %s12014_s5 = inlined_call_operand.hbm [shape: f32[1,8,1024], index: 5, kind: output, shape index: {}]  }
   0x1   :  { %11 = vsyncpa [#allocation7], 0 }
   0x2   :  { %12 = vsyncpa [#allocation10], 0 }
   0x3   :  { %13 = vsyncpa [#allocation5], 0 }
   0x4   :  { %14 = vsyncpa [#allocation4], 0  ;;  %s7407_s18 = smov [#allocation6]  }
   0x5   :  { %s30_s19 = sshll.u32 %s7407_s18, 4  ;;  %s31_s19 = int_to_ptr.vmem [resolvable:$true] %s30_s19 }
   0x6   :  { %s7293_s20 = scalar_lea.vmem %s31_s19, 1536  ;;  %p7298_p1 = scmp.lt.s32.totalorder %s31_s19, %s31_s19 }
   0x7   :  { %p7294_p0 = scmp.ne.s32.totalorder %s31_s19, %s7293_s20  ;;  %p7299_p2 = scmp.lt.s32.totalorder %s7293_s20, %s7293_s20 }
   0x9   :  { %p7300_p3 = por %p7299_p2, %p7298_p1 }
   0xb   :  { %p7301_p4 = pnand %p7300_p3, %p7294_p0 }
   0xd   :  { %7304 = shalt.err (!%p7301_p4)
}
   0xe   :  { %s7408_s21 = smov 128   ;;  %s7409_s22 = smov 8  }
   0xf   :  { %36 = dma.hbm_to_vmem [thread:$0]  %s12010_s1, 1536, %s31_s19, [#allocation7], %s7408_s21, %s7408_s21, %s7409_s22  }
  0x10   :  { %s7410_s25 = smov [#allocation2]   ;;  %s7411_s27 = smov [#allocation8]  }
  0x11   :  { %s21_s26 = sshll.u32 %s7410_s25, 4  ;;  %s43_s28 = sshll.u32 %s7411_s27, 4  ;;  %s22_s26 = int_to_ptr.vmem [resolvable:$true] %s21_s26  ;;  %s44_s28 = int_to_ptr.vmem [resolvable:$true] %s43_s28 }
  0x12   :  { %s7313_s29 = scalar_lea.vmem %s22_s26, 1024  ;;  %p7318_p6 = scmp.lt.s32.totalorder %s22_s26, %s22_s26 }
  0x13   :  { %p7314_p5 = scmp.ne.s32.totalorder %s22_s26, %s7313_s29  ;;  %p7319_p7 = scmp.lt.s32.totalorder %s7313_s29, %s7313_s29 }
  0x15   :  { %p7320_p8 = por %p7319_p7, %p7318_p6 }
  0x17   :  { %p7321_p9 = pnand %p7320_p8, %p7314_p5 }
  0x19   :  { %7324 = shalt.err (!%p7321_p9)
}
  0x1a   :  { %24 = dma.hbm_to_vmem [thread:$0]  %s12009_s0, 1024, %s22_s26, [#allocation3]  }
  0x1b   :  { %s7333_s7 = scalar_lea.vmem %s44_s28, 128  ;;  %p7338_p11 = scmp.lt.s32.totalorder %s44_s28, %s44_s28 }
  0x1c   :  { %p7334_p10 = scmp.ne.s32.totalorder %s44_s28, %s7333_s7  ;;  %p7339_p12 = scmp.lt.s32.totalorder %s7333_s7, %s7333_s7 }
  0x1e   :  { %p7340_p13 = por %p7339_p12, %p7338_p11 }
  0x20   :  { %p7341_p0 = pnand %p7340_p13, %p7334_p10 }
  0x22   :  { %7344 = shalt.err (!%p7341_p0)
}
  0x23   :  { %46 = dma.hbm_to_vmem [thread:$0]  %s12011_s2, 128, %s44_s28, [#allocation7]  }
  0x24   :  { %s7412_s9 = smov [#allocation9]  }
  0x25   :  { %s52_s10 = sshll.u32 %s7412_s9, 4  ;;  %s53_s10 = int_to_ptr.vmem [resolvable:$true] %s52_s10 }
  0x26   :  { %s7353_s11 = scalar_lea.vmem %s53_s10, 4096  ;;  %p7358_p2 = scmp.lt.s32.totalorder %s53_s10, %s53_s10 }
  0x27   :  { %p7354_p1 = scmp.ne.s32.totalorder %s53_s10, %s7353_s11  ;;  %p7359_p3 = scmp.lt.s32.totalorder %s7353_s11, %s7353_s11 }
  0x29   :  { %p7360_p4 = por %p7359_p3, %p7358_p2 }
  0x2b   :  { %p7361_p5 = pnand %p7360_p4, %p7354_p1 }
  0x2d   :  { %7364 = shalt.err (!%p7361_p5)
}
  0x2e   :  { %s7413_s0 = smov 1024   ;;  %s7414_s12 = smov 64  }
  0x2f   :  { %58 = dma.hbm_to_vmem [thread:$0]  %s12012_s3, 4096, %s53_s10, [#allocation10], %s7413_s0, %s7413_s0, %s7414_s12  }
  0x30   :  { %s65_s2 = sshll.u32 %s12013_s4, 4  ;;  %s66_s2 = int_to_ptr.vmem [resolvable:$true] %s65_s2 }
  0x31   :  { %s7365_s17 = scalar_lea.vmem %s66_s2, 16  ;;  %p7370_p7 = scmp.lt.s32.totalorder %s66_s2, %s66_s2 }
  0x32   :  { %p7366_p6 = scmp.ne.s32.totalorder %s66_s2, %s7365_s17  ;;  %p7371_p8 = scmp.lt.s32.totalorder %s7365_s17, %s7365_s17 }
  0x34   :  { %p7372_p9 = por %p7371_p8, %p7370_p7 }
  0x36   :  { %p7373_p10 = pnand %p7372_p9, %p7366_p6 }
  0x38   :  { %7376 = shalt.err (!%p7373_p10)
}
  0x39   :  { %s7415_s18 = smov [#allocation11]  }
  0x3a   :  { %68 = dma.vmem_to_smem %s66_s2, 16, %s7415_s18, [#allocation5]  }
  0x3b   :  { %7397 = dma.done.wait [#allocation3], 1024  }
  0x3c   :  { %7398 = vsyncadd [#allocation3], 4294966272 }
  0x3d   :  { %7399 = dma.done.wait [#allocation7], 1664  }
  0x3e   :  { %7400 = vsyncadd [#allocation7], 4294965632 }
  0x3f   :  { %7401 = dma.done.wait [#allocation10], 4096  }
  0x40   :  { %7402 = vsyncadd [#allocation10], 4294963200 }
  0x41   :  { %7403 = dma.done.wait [#allocation5], 16  }
  0x42   :  { %7404 = vsyncadd [#allocation5], 4294967280 }
  0x43   :  { %84 = sfence }
  0x44   :  { %v7497_v0 = vld [vmem:[#allocation2 + $0x10] sm:$0xff]  ;;  %v7499_v1 = vld [vmem:[#allocation2] sm:$0xff]  ;;  %s7416_s3 = smov 111   ;;  %v7505_v2 = vld [vmem:[#allocation2 + $0x8] sm:$0xff]  ;;  %s7417_s4 = smov 112   ;;  %v12015_v6 = vmov 0   ;;  %v228_v9 = vlaneseq }
  0x45   :  { %800 = vrot.lane.b32.xlu1 %v7497_v0, %s7416_s3  ;;  %796 = vrot.lane.b32.xlu0 %v7499_v1, %s7416_s3  ;;  %v7515_v3 = vld [vmem:[#allocation2 + $0x20] sm:$0xff]  ;;  %v7517_v4 = vld [vmem:[#allocation2 + $0x18] sm:$0xff]  ;;  %s7418_s19 = smov 113   ;;  %s7419_s20 = smov 127   ;;  %v7592_v7 = vld [vmem:[#allocation2 + $0x30] sm:$0xff]  ;;  %vm942_vm2 = vcmask 1043456  }
  0x46   :  { %s7420_s21 = smov 1   ;;  %v7551_v5 = vld [vmem:[#allocation2 + $0x38] sm:$0xff]  ;;  %s7421_s22 = smov 15   ;;  %1136 = vmatprep.mubr.bf16.mxu0 %v12015_v6  ;;  %1177 = vmatprep.mubr.bf16.mxu1 %v12015_v6  ;;  %v7594_v8 = vld [vmem:[#allocation2 + $0x28] sm:$0xff]  ;;  %v7628_v10 = vshrl.u32 %v228_v9, 7  ;;  %v7634_v13 = vand.u32 127, %v228_v9 }
  0x47   :  { %s7422_s23 = smov 16   ;;  %s7423_s24 = smov 17   ;;  %7200 = vset.pattern.permute.xlu0 %v12015_v6  ;;  %v137_v11 = vld [vmem:[#allocation9 + $0x47] ss:$8 sm:$0xf]  ;;  %vm12195_vm9 = vcmask 588800  }
  0x48   :  { %v138_v12 = vld [vmem:[#allocation9 + $0x47] ss:$8 sm:$0xf0]  ;;  %v7637_v14 = vsub.s32 0, %v7628_v10  ;;  %v7640_v15 = vsub.s32 1, %v7628_v10  ;;  %vm812_vm0 = vcmp.lt.s32.totalorder %v7634_v13, 111 }
  0x49   :  { %716 = vrot.lane.b32.xlu1 %v7505_v2, %s7417_s4  ;;  %798 = vrot.lane.b32.xlu0 %v7505_v2, %s7416_s3  ;;  %v7642_v16 = vor.u32 %v138_v12, %v137_v11  ;;  %v133_v19 = vld [vmem:[#allocation9 + $0x46] ss:$8 sm:$0xf]  ;;  %vm730_vm1 = vcmp.lt.s32.totalorder %v7634_v13, 112  ;;  %v7674_v30 = vsub.s32 3, %v7628_v10  ;;  %v7677_v31 = vsub.s32 2, %v7628_v10 }
  0x4a   :  { %12258 = vst [vmem:[#allocation18_spill] sm:$0xff] %v7637_v14  ;;  %12259 = vst [vmem:[#allocation19_spill] sm:$0xff] %v7640_v15  ;;  %v134_v20 = vld [vmem:[#allocation9 + $0x46] ss:$8 sm:$0xf0]  ;;  %vm12234_vm3 = vcmp.lt.s32.totalorder %v7634_v13, 113 }
  0x4b   :  { %v7653_v21 = vrot.slane %v7642_v16, %v7640_v15  ;;  %v7657_v22 = vrot.slane %v7642_v16, %v7637_v14  ;;  %v7659_v25 = vor.u32 %v134_v20, %v133_v19  ;;  %12262 = vst [vmem:[#allocation22_spill] sm:$0xff] %v7674_v30  ;;  %12263 = vst [vmem:[#allocation23_spill] sm:$0xff] %v7677_v31  ;;  %v129_v32 = vld [vmem:[#allocation9 + $0x45] ss:$8 sm:$0xf]  ;;  %vm12213_vm4 = vcmp.lt.s32.totalorder %v7634_v13, 127 }
  0x4c   :  { %v130_v33 = vld [vmem:[#allocation9 + $0x45] ss:$8 sm:$0xf0]  ;;  %v7696_v42 = vrot.slane %v7642_v16, %v7674_v30  ;;  %v7700_v43 = vrot.slane %v7642_v16, %v7677_v31  ;;  %v125_v63 = vld [vmem:[#allocation9 + $0x44] ss:$8 sm:$0xf] }
  0x4d   :  { %714 = vrot.lane.b32.xlu1 %v7499_v1, %s7417_s4  ;;  %718 = vrot.lane.b32.xlu0 %v7497_v0, %s7417_s4  ;;  %12260 = vst [vmem:[#allocation20_spill] sm:$0xff] %v7653_v21  ;;  %12261 = vst [vmem:[#allocation21_spill] sm:$0xff] %v7657_v22  ;;  %v7683_v36 = vrot.slane %v7659_v25, %v7640_v15  ;;  %v7692_v41 = vor.u32 %v130_v33, %v129_v32  ;;  %v97_v44 = vld [vmem:[#allocation8] sm:$0xff]  ;;  %vm12202_vm5 = vcmp.lt.s32.totalorder %v7634_v13, 1  ;;  %s86_s25 = sld [smem:[#allocation11]]  ;;  %s7426_s27 = smov 120  }
  0x4e   :  { %12265 = vst [vmem:[#allocation25_spill] sm:$0xff] %v7696_v42  ;;  %12266 = vst [vmem:[#allocation26_spill] sm:$0xff] %v7700_v43  ;;  %v7720_v53 = vrot.slane %v7659_v25, %v7637_v14  ;;  %v126_v9 = vld [vmem:[#allocation9 + $0x44] ss:$8 sm:$0xf0]  ;;  %vm12206_vm6 = vcmp.lt.s32.totalorder %v7634_v13, 15 }
  0x4f   :  { %12264 = vst [vmem:[#allocation24_spill] sm:$0xff] %v7683_v36  ;;  %v7714_v50 = vrot.slane %v7692_v41, %v7640_v15  ;;  %v114_v6 = vld [vmem:[#allocation9 + $0x41] ss:$8 sm:$0xf0]  ;;  %vm12207_vm7 = vcmp.lt.s32.totalorder %v7634_v13, 16  ;;  %vm12212_vm8 = vcmp.lt.s32.totalorder %v7634_v13, 17 }
  0x50   :  { %12268 = vst [vmem:[#allocation28_spill] sm:$0xff] %v7720_v53  ;;  %s7069_s26 = sld [smem:[#allocation11 + $0x3]]  ;;  %s7433_s29 = smov 98  }
  0x51   :  { %804 = vrot.lane.b32.xlu1 %v7515_v3, %s7416_s3  ;;  %802 = vrot.lane.b32.xlu0 %v7517_v4, %s7416_s3  ;;  %12267 = vst [vmem:[#allocation27_spill] sm:$0xff] %v7714_v50  ;;  %s7068_s28 = sld [smem:[#allocation11 + $0x2]]  ;;  %s7434_s30 = smov 126  }
  0x52   :  { %s7435_s6 = smov 2   ;;  %s7436_s7 = smov 30  }
  0x53   :  { %s7437_s1 = smov 32   ;;  %s7438_s8 = smov 34  }
  0x54   :  { %s7439_s9 = smov 77   ;;  %s7440_s10 = smov 80  }
  0x55   :  { %636 = vrot.lane.b32.xlu1 %v7497_v0, %s7418_s19  ;;  %634 = vrot.lane.b32.xlu0 %v7505_v2, %s7418_s19  ;;  %s7441_s11 = smov 83   ;;  %s7442_s0 = smov 125  }
  0x56   :  { %s7443_s12 = smov 3   ;;  %s7444_s13 = smov 45  }
  0x57   :  { %s7445_s14 = smov 48   ;;  %s7446_s15 = smov 51  }
  0x58   :  { %s7447_s16 = smov 94   ;;  %s7448_s2 = smov 96  }
  0x59   :  { %722 = vrot.lane.b32.xlu1 %v7515_v3, %s7417_s4  ;;  %720 = vrot.lane.b32.xlu0 %v7517_v4, %s7417_s4  ;;  %s7070_s17 = sld [smem:[#allocation11 + $0x4]] }
  0x5a   :  { %s7067_s18 = sld [smem:[#allocation11 + $0x1]] }
  0x5d   :  { %552 = vrot.lane.b32.xlu1 %v7505_v2, %s7419_s20  ;;  %632 = vrot.lane.b32.xlu0 %v7499_v1, %s7418_s19 }
  0x61   :  { %638 = vrot.lane.b32.xlu1 %v7517_v4, %s7418_s19  ;;  %554 = vrot.lane.b32.xlu0 %v7497_v0, %s7419_s20 }
  0x65   :  { %550 = vrot.lane.b32.xlu1 %v7499_v1, %s7419_s20  ;;  %640 = vrot.lane.b32.xlu0 %v7515_v3, %s7418_s19 }
  0x69   :  { %558 = vrot.lane.b32.xlu1 %v7515_v3, %s7419_s20  ;;  %556 = vrot.lane.b32.xlu0 %v7517_v4, %s7419_s20 }
  0x6d   :  { %462 = vrot.lane.b32.xlu1 %v7505_v2, %s7420_s21  ;;  %460 = vrot.lane.b32.xlu0 %v7499_v1, %s7420_s21 }
  0x71   :  { %378 = vrot.lane.b32.xlu1 %v7499_v1, %s7421_s22  ;;  %474 = vrot.lane.b32.xlu0 %v7551_v5, %s7420_s21 }
  0x75   :  { %464 = vrot.lane.b32.xlu1 %v7497_v0, %s7420_s21  ;;  %380 = vrot.lane.b32.xlu0 %v7505_v2, %s7421_s22 }
  0x79   :  { %392 = vrot.lane.b32.xlu1 %v7551_v5, %s7421_s22  ;;  %466 = vrot.lane.b32.xlu0 %v7517_v4, %s7420_s21 }
  0x7d   :  { %298 = vrot.lane.b32.xlu1 %v7505_v2, %s7422_s23  ;;  %296 = vrot.lane.b32.xlu0 %v7499_v1, %s7422_s23 }
  0x81   :  { %384 = vrot.lane.b32.xlu1 %v7517_v4, %s7421_s22  ;;  %382 = vrot.lane.b32.xlu0 %v7497_v0, %s7421_s22 }
  0x85   :  { %212 = vrot.lane.b32.xlu1 %v7499_v1, %s7423_s24  ;;  %310 = vrot.lane.b32.xlu0 %v7551_v5, %s7422_s23 }
  0x89   :  { %300 = vrot.lane.b32.xlu1 %v7497_v0, %s7422_s23  ;;  %214 = vrot.lane.b32.xlu0 %v7505_v2, %s7423_s24 }
  0x8d   :  { %226 = vrot.lane.b32.xlu1 %v7551_v5, %s7423_s24  ;;  %302 = vrot.lane.b32.xlu0 %v7517_v4, %s7422_s23 }
  0x91   :  { %218 = vrot.lane.b32.xlu1 %v7517_v4, %s7423_s24  ;;  %216 = vrot.lane.b32.xlu0 %v7497_v0, %s7423_s24 }
  0x95   :  { %808 = vrot.lane.b32.xlu1 %v7592_v7, %s7416_s3  ;;  %806 = vrot.lane.b32.xlu0 %v7594_v8, %s7416_s3 }
  0x99   :  { %726 = vrot.lane.b32.xlu1 %v7592_v7, %s7417_s4  ;;  %724 = vrot.lane.b32.xlu0 %v7594_v8, %s7417_s4 }
  0x9d   :  { %642 = vrot.lane.b32.xlu1 %v7594_v8, %s7418_s19  ;;  %810 = vrot.lane.b32.xlu0 %v7551_v5, %s7416_s3 }
  0xa1   :  { %728 = vrot.lane.b32.xlu1 %v7551_v5, %s7417_s4  ;;  %644 = vrot.lane.b32.xlu0 %v7592_v7, %s7418_s19 }
  0xa5   :  { %562 = vrot.lane.b32.xlu1 %v7592_v7, %s7419_s20  ;;  %560 = vrot.lane.b32.xlu0 %v7594_v8, %s7419_s20 }
  0xa9   :  { %564 = vrot.lane.b32.xlu1 %v7551_v5, %s7419_s20  ;;  %646 = vrot.lane.b32.xlu0 %v7551_v5, %s7418_s19 }
  0xad   :  { %470 = vrot.lane.b32.xlu1 %v7594_v8, %s7420_s21  ;;  %468 = vrot.lane.b32.xlu0 %v7515_v3, %s7420_s21 }
  0xb1   :  { %388 = vrot.lane.b32.xlu1 %v7594_v8, %s7421_s22  ;;  %386 = vrot.lane.b32.xlu0 %v7515_v3, %s7421_s22 }
  0xb5   :  { %304 = vrot.lane.b32.xlu1 %v7515_v3, %s7422_s23  ;;  %472 = vrot.lane.b32.xlu0 %v7592_v7, %s7420_s21 }
  0xb7   :  { %v801_v17 = vpop.permute.xlu1 %800  ;;  %v7644_v18 = vpop.permute.xlu0 %796 }
  0xb9   :  { %390 = vrot.lane.b32.xlu1 %v7592_v7, %s7421_s22  ;;  %306 = vrot.lane.b32.xlu0 %v7594_v8, %s7422_s23 }
  0xbb   :  { %v717_v23 = vpop.permute.xlu1 %716  ;;  %v799_v24 = vpop.permute.xlu0 %798 }
  0xbc   :  { %v819_v26 = vsel %vm812_vm0, %v7644_v18, %v799_v24  ;;  %v818_v27 = vsel %vm812_vm0, %v799_v24, %v801_v17  ;;  %v7736_v24 = vrot.slane %v7692_v41, %v7637_v14 }
  0xbd   :  { %222 = vrot.lane.b32.xlu1 %v7594_v8, %s7423_s24  ;;  %220 = vrot.lane.b32.xlu0 %v7515_v3, %s7423_s24  ;;  %v863_v28 = vmul.f32 %v7653_v21, %v818_v27  ;;  %v862_v29 = vmul.f32 %v7657_v22, %v819_v26  ;;  %v7738_v26 = vor.u32 %v126_v9, %v125_v63 }
  0xbe   :  { %12269 = vst [vmem:[#allocation29_spill] sm:$0xff] %v7736_v24 }
  0xbf   :  { %v7679_v34 = vpop.permute.xlu1 %714  ;;  %v719_v35 = vpop.permute.xlu0 %718  ;;  %v871_v37 = vpack.c.bf16 %v863_v28, %v863_v28  ;;  %v870_v38 = vpack.c.bf16 %v862_v29, %v862_v29  ;;  %v7742_v28 = vrot.slane %v7659_v25, %v7674_v30 }
  0xc0   :  { %v736_v39 = vsel %vm730_vm1, %v717_v23, %v719_v35  ;;  %v737_v59 = vsel %vm730_vm1, %v7679_v34, %v717_v23 }
  0xc1   :  { %224 = vrot.lane.b32.xlu1 %v7592_v7, %s7423_s24  ;;  %308 = vrot.lane.b32.xlu0 %v7592_v7, %s7422_s23  ;;  %v1081_v40 = vsel %vm942_vm2, %v870_v38, 0  ;;  %v781_v45 = vmul.f32 %v7683_v36, %v736_v39  ;;  %v780_v11 = vmul.f32 %v7720_v53, %v737_v59  ;;  %12270 = vst [vmem:[#allocation30_spill] sm:$0xff] %v7742_v28 }
  0xc2   :  { %7071 = vmatprep.subr.msk.bf16.mxu0 %vm942_vm2, %v871_v37  ;;  %v7751_v37 = vrot.slane %v7659_v25, %v7677_v31  ;;  %v7778_v59 = vrot.slane %v7738_v26, %v7637_v14 }
  0xc3   :  { %1111 = vmatpush1.bf16.msra.mxu0 %v1081_v40  ;;  %v7704_v46 = vpop.permute.xlu1 %804  ;;  %v803_v47 = vpop.permute.xlu0 %802  ;;  %v789_v54 = vpack.c.bf16 %v781_v45, %v781_v45  ;;  %v788_v27 = vpack.c.bf16 %v780_v11, %v780_v11  ;;  %v7766_v45 = vrot.slane %v7692_v41, %v7677_v31  ;;  %v543_v11 = vpack.c.bf16 %v7505_v2, %v7505_v2 }
  0xc4   :  { %v817_v48 = vsel %vm812_vm0, %v801_v17, %v803_v47  ;;  %v816_v49 = vsel %vm812_vm0, %v803_v47, %v7704_v46  ;;  %12271 = vst [vmem:[#allocation31_spill] sm:$0xff] %v7751_v37  ;;  %12274 = vst [vmem:[#allocation34_spill] sm:$0xff] %v7778_v59 }
  0xc5   :  { %v865_v51 = vmul.f32 %v7696_v42, %v816_v49  ;;  %v864_v52 = vmul.f32 %v7700_v43, %v817_v48  ;;  %1073 = vperm.xlu0 %7200, %v97_v44   ;;  %v935_v12 = vrot.slane %v789_v54, 4  ;;  %v7762_v44 = vrot.slane %v7738_v26, %v7640_v15  ;;  %12273 = vst [vmem:[#allocation33_spill] sm:$0xff] %v7766_v45 }
  0xc6   :  { %v934_v47 = vrot.slane %v788_v27, 4 }
  0xc7   :  { %v637_v55 = vpop.permute.xlu1 %636  ;;  %v635_v56 = vpop.permute.xlu0 %634  ;;  %v873_v57 = vpack.c.bf16 %v865_v51, %v865_v51  ;;  %v872_v58 = vpack.c.bf16 %v864_v52, %v864_v52  ;;  %12272 = vst [vmem:[#allocation32_spill] sm:$0xff] %v7762_v44 }
  0xc8   :  { %v654_v60 = vsel %vm12234_vm3, %v635_v56, %v637_v55 }
  0xc9   :  { %v699_v61 = vmul.f32 %v7714_v50, %v654_v60  ;;  %7073 = vmatprep.subr.msk.bf16.mxu1 %vm942_vm2, %v873_v57  ;;  %v1087_v62 = vsel %vm942_vm2, %v872_v58, 0  ;;  %v7782_v60 = vrot.slane %v7692_v41, %v7674_v30 }
  0xca   :  { %1152 = vmatpush1.bf16.msra.mxu1 %v1087_v62 }
  0xcb   :  { %v707_v17 = vpack.c.bf16 %v699_v61, %v699_v61  ;;  %v7731_v19 = vpop.permute.xlu1 %722  ;;  %v721_v20 = vpop.permute.xlu0 %720  ;;  %12275 = vst [vmem:[#allocation35_spill] sm:$0xff] %v7782_v60 }
  0xcc   :  { %v734_v33 = vsel %vm730_vm1, %v721_v20, %v7731_v19  ;;  %v735_v39 = vsel %vm730_vm1, %v719_v35, %v721_v20 }
  0xcd   :  { %v1045_v23 = vsel %vm942_vm2, %v707_v17, %v935_v12  ;;  %v783_v48 = vmul.f32 %v7742_v28, %v734_v33  ;;  %v782_v35 = vmul.f32 %v7751_v37, %v735_v39  ;;  %v121_v12 = vld [vmem:[#allocation9 + $0x43] ss:$8 sm:$0xf]  ;;  %v7799_v33 = vrot.slane %v7738_v26, %v7677_v31 }
  0xce   :  { %1112 = vmatprep.subr.bf16.mxu0 %v1045_v23  ;;  %v122_v17 = vld [vmem:[#allocation9 + $0x43] ss:$8 sm:$0xf0] }
  0xcf   :  { %v553_v29 = vpop.permute.xlu1 %552  ;;  %v7744_v32 = vpop.permute.xlu0 %632  ;;  %v791_v62 = vpack.c.bf16 %v783_v48, %v783_v48  ;;  %v790_v20 = vpack.c.bf16 %v782_v35, %v782_v35  ;;  %12276 = vst [vmem:[#allocation36_spill] sm:$0xff] %v7799_v33  ;;  %v7807_v48 = vor.u32 %v122_v17, %v121_v12 }
  0xd0   :  { %v655_v38 = vsel %vm12234_vm3, %v7744_v32, %v635_v56 }
  0xd1   :  { %v698_v40 = vmul.f32 %v7736_v24, %v655_v38 }
  0xd3   :  { %v706_v49 = vpack.c.bf16 %v698_v40, %v698_v40  ;;  %v639_v51 = vpop.permute.xlu1 %638  ;;  %v555_v52 = vpop.permute.xlu0 %554  ;;  %v7805_v40 = vrot.slane %v7738_v26, %v7674_v30 }
  0xd4   :  { %v653_v54 = vsel %vm12234_vm3, %v637_v55, %v639_v51  ;;  %v572_v56 = vsel %vm12213_vm4, %v553_v29, %v555_v52 }
  0xd5   :  { %v617_v57 = vmul.f32 %v7762_v44, %v572_v56  ;;  %v1041_v58 = vsel %vm942_vm2, %v706_v49, %v934_v47  ;;  %v700_v61 = vmul.f32 %v7766_v45, %v653_v54  ;;  %12277 = vst [vmem:[#allocation37_spill] sm:$0xff] %v7805_v40  ;;  %v937_v49 = vrot.slane %v791_v62, 4 }
  0xd6   :  { %1113 = vmatpush1.bf16.msra.mxu0 %v1041_v58  ;;  %v936_v58 = vrot.slane %v790_v20, 4 }
  0xd7   :  { %v625_v55 = vpack.c.bf16 %v617_v57, %v617_v57  ;;  %v7785_v63 = vpop.permute.xlu1 %550  ;;  %v7787_v9 = vpop.permute.xlu0 %640  ;;  %v708_v47 = vpack.c.bf16 %v700_v61, %v700_v61 }
  0xd8   :  { %v573_v23 = vsel %vm12213_vm4, %v7785_v63, %v553_v29  ;;  %v652_v27 = vsel %vm12234_vm3, %v639_v51, %v7787_v9  ;;  %v542_v29 = vpack.c.bf16 %v7499_v1, %v7499_v1 }
  0xd9   :  { %v919_v38 = vrot.slane %v625_v55, 4  ;;  %v616_v39 = vmul.f32 %v7778_v59, %v573_v23  ;;  %v701_v2 = vmul.f32 %v7782_v60, %v652_v27  ;;  %v1049_v20 = vsel %vm942_vm2, %v708_v47, %v936_v58  ;;  %v117_v23 = vld [vmem:[#allocation9 + $0x42] ss:$8 sm:$0xf] }
  0xda   :  { %v118_v27 = vld [vmem:[#allocation9 + $0x42] ss:$8 sm:$0xf0] }
  0xdb   :  { %v624_v51 = vpack.c.bf16 %v616_v39, %v616_v39  ;;  %v709_v35 = vpack.c.bf16 %v701_v2, %v701_v2  ;;  %v7811_v54 = vpop.permute.xlu1 %558  ;;  %v557_v56 = vpop.permute.xlu0 %556  ;;  %v1013_v57 = vsel %vm942_vm2, %v543_v11, %v919_v38  ;;  %v7825_v11 = vrot.slane %v7807_v48, %v7640_v15 }
  0xdc   :  { %v570_v55 = vsel %vm12213_vm4, %v557_v56, %v7811_v54  ;;  %v571_v61 = vsel %vm12213_vm4, %v555_v52, %v557_v56  ;;  %1114 = vmatprep.subr.bf16.mxu0 %v1013_v57  ;;  %v545_v52 = vpack.c.bf16 %v7517_v4, %v7517_v4  ;;  %v7835_v58 = vor.u32 %v118_v27, %v117_v23 }
  0xdd   :  { %v918_v1 = vrot.slane %v624_v51, 4  ;;  %v618_v62 = vmul.f32 %v7799_v33, %v571_v61  ;;  %v619_v12 = vmul.f32 %v7805_v40, %v570_v55  ;;  %v1053_v17 = vsel %vm942_vm2, %v709_v35, %v937_v49  ;;  %12278 = vst [vmem:[#allocation38_spill] sm:$0xff] %v7825_v11 }
  0xde   :  { %1153 = vmatprep.subr.bf16.mxu1 %v1053_v17  ;;  %v544_v49 = vpack.c.bf16 %v7497_v0, %v7497_v0 }
  0xdf   :  { %v626_v38 = vpack.c.bf16 %v618_v62, %v618_v62  ;;  %v627_v39 = vpack.c.bf16 %v619_v12, %v619_v12  ;;  %v463_v2 = vpop.permute.xlu1 %462  ;;  %v461_v51 = vpop.permute.xlu0 %460  ;;  %1154 = vmatpush1.bf16.msra.mxu1 %v1049_v20  ;;  %v1009_v56 = vsel %vm942_vm2, %v542_v29, %v918_v1  ;;  %v7842_v62 = vrot.slane %v7807_v48, %v7637_v14 }
  0xe0   :  { %v483_v35 = vsel %vm12202_vm5, %v461_v51, %v463_v2  ;;  %1115 = vmatpush1.bf16.msra.mxu0 %v1009_v56  ;;  %v7852_v12 = vrot.slane %v7835_v58, %v7640_v15  ;;  %v7868_v56 = vrot.slane %v7807_v48, %v7674_v30 }
  0xe1   :  { %v920_v47 = vrot.slane %v626_v38, 4  ;;  %v921_v57 = vrot.slane %v627_v39, 4  ;;  %v527_v4 = vmul.f32 %v7825_v11, %v483_v35  ;;  %12279 = vst [vmem:[#allocation39_spill] sm:$0xff] %v7842_v62  ;;  %v7860_v39 = vrot.slane %v7835_v58, %v7637_v14 }
  0xe2   :  { %12280 = vst [vmem:[#allocation40_spill] sm:$0xff] %v7852_v12  ;;  %12283 = vst [vmem:[#allocation43_spill] sm:$0xff] %v7868_v56 }
  0xe3   :  { %v379_v55 = vpop.permute.xlu1 %378  ;;  %v7838_v61 = vpop.permute.xlu0 %474  ;;  %v1021_v29 = vsel %vm942_vm2, %v545_v52, %v921_v57  ;;  %v1017_v0 = vsel %vm942_vm2, %v544_v49, %v920_v47  ;;  %v535_v17 = vpack.c.bf16 %v527_v4, %v527_v4  ;;  %12281 = vst [vmem:[#allocation41_spill] sm:$0xff] %v7860_v39 }
  0xe4   :  { %v484_v1 = vsel %vm12202_vm5, %v7838_v61, %v461_v51  ;;  %1155 = vmatprep.subr.bf16.mxu1 %v1021_v29  ;;  %v7864_v51 = vrot.slane %v7807_v48, %v7677_v31 }
  0xe5   :  { %1156 = vmatpush1.bf16.msra.mxu1 %v1017_v0  ;;  %v526_v20 = vmul.f32 %v7842_v62, %v484_v1  ;;  %v903_v49 = vrot.slane %v535_v17, 4 }
  0xe6   :  { %12282 = vst [vmem:[#allocation42_spill] sm:$0xff] %v7864_v51 }
  0xe7   :  { %v465_v23 = vpop.permute.xlu1 %464  ;;  %v381_v27 = vpop.permute.xlu0 %380  ;;  %v534_v35 = vpack.c.bf16 %v526_v20, %v526_v20 }
  0xe8   :  { %v401_v52 = vsel %vm12206_vm6, %v379_v55, %v381_v27  ;;  %v482_v47 = vsel %vm12202_vm5, %v463_v2, %v465_v23 }
  0xe9   :  { %v445_v38 = vmul.f32 %v7852_v12, %v401_v52  ;;  %v113_v52 = vld [vmem:[#allocation9 + $0x41] ss:$8 sm:$0xf]  ;;  %v528_v2 = vmul.f32 %v7864_v51, %v482_v47  ;;  %v109_v47 = vld [vmem:[#allocation9 + $0x40] ss:$8 sm:$0xf] }
  0xeb   :  { %v453_v57 = vpack.c.bf16 %v445_v38, %v445_v38  ;;  %v7872_v4 = vpop.permute.xlu1 %392  ;;  %v7874_v29 = vpop.permute.xlu0 %466  ;;  %v902_v38 = vrot.slane %v534_v35, 4  ;;  %v536_v35 = vpack.c.bf16 %v528_v2, %v528_v2 }
  0xec   :  { %v402_v0 = vsel %vm12206_vm6, %v7872_v4, %v379_v55  ;;  %v481_v1 = vsel %vm12202_vm5, %v465_v23, %v7874_v29  ;;  %v7886_v55 = vor.u32 %v114_v6, %v113_v52 }
  0xed   :  { %v444_v17 = vmul.f32 %v7860_v39, %v402_v0  ;;  %v981_v20 = vsel %vm942_vm2, %v453_v57, %v903_v49  ;;  %v529_v60 = vmul.f32 %v7868_v56, %v481_v1  ;;  %v7892_v0 = vrot.slane %v7835_v58, %v7677_v31  ;;  %v110_v57 = vld [vmem:[#allocation9 + $0x40] ss:$8 sm:$0xf0] }
  0xee   :  { %1116 = vmatprep.subr.bf16.mxu0 %v981_v20  ;;  %v7896_v49 = vrot.slane %v7835_v58, %v7674_v30  ;;  %v7900_v6 = vrot.slane %v7886_v55, %v7640_v15  ;;  %v904_v39 = vrot.slane %v536_v35, 4  ;;  %v7917_v51 = vrot.slane %v7886_v55, %v7637_v14 }
  0xef   :  { %v452_v62 = vpack.c.bf16 %v444_v17, %v444_v17  ;;  %v299_v40 = vpop.permute.xlu1 %298  ;;  %v297_v45 = vpop.permute.xlu0 %296  ;;  %12284 = vst [vmem:[#allocation44_spill] sm:$0xff] %v7892_v0  ;;  %v537_v1 = vpack.c.bf16 %v529_v60, %v529_v60 }
  0xf0   :  { %12285 = vst [vmem:[#allocation45_spill] sm:$0xff] %v7896_v49  ;;  %12286 = vst [vmem:[#allocation46_spill] sm:$0xff] %v7900_v6  ;;  %v319_v17 = vsel %vm12207_vm7, %v297_v45, %v299_v40 }
  0xf1   :  { %v977_v23 = vsel %vm942_vm2, %v452_v62, %v902_v38  ;;  %12287 = vst [vmem:[#allocation47_spill] sm:$0xff] %v7917_v51  ;;  %v905_v56 = vrot.slane %v537_v1, 4  ;;  %v363_v28 = vmul.f32 %v7900_v6, %v319_v17 }
  0xf2   :  { %1117 = vmatpush1.bf16.msra.mxu0 %v977_v23  ;;  %v7913_v23 = vor.u32 %v110_v57, %v109_v47 }
  0xf3   :  { %v7902_v52 = vpop.permute.xlu1 %384  ;;  %v383_v62 = vpop.permute.xlu0 %382  ;;  %v371_v1 = vpack.c.bf16 %v363_v28, %v363_v28 }
  0xf4   :  { %v399_v20 = vsel %vm12206_vm6, %v383_v62, %v7902_v52  ;;  %v400_v2 = vsel %vm12206_vm6, %v381_v27, %v383_v62  ;;  %v7929_v35 = vrot.slane %v7913_v23, %v7640_v15  ;;  %v7944_v28 = vrot.slane %v7913_v23, %v7637_v14 }
  0xf5   :  { %v446_v38 = vmul.f32 %v7892_v0, %v400_v2  ;;  %v447_v60 = vmul.f32 %v7896_v49, %v399_v20  ;;  %v7935_v20 = vrot.slane %v7886_v55, %v7677_v31  ;;  %v7976_v14 = vsub.s32 5, %v7628_v10 }
  0xf6   :  { %12288 = vst [vmem:[#allocation48_spill] sm:$0xff] %v7929_v35  ;;  %12290 = vst [vmem:[#allocation50_spill] sm:$0xff] %v7944_v28 }
  0xf7   :  { %v454_v33 = vpack.c.bf16 %v446_v38, %v446_v38  ;;  %v455_v37 = vpack.c.bf16 %v447_v60, %v447_v60  ;;  %v213_v42 = vpop.permute.xlu1 %212  ;;  %v7920_v43 = vpop.permute.xlu0 %310  ;;  %12289 = vst [vmem:[#allocation49_spill] sm:$0xff] %v7935_v20  ;;  %v887_v38 = vrot.slane %v371_v1, 4  ;;  %v7970_v1 = vsub.s32 4, %v7628_v10  ;;  %12295 = vst [vmem:[#allocation55_spill] sm:$0xff] %v7976_v14 }
  0xf8   :  { %v320_v27 = vsel %vm12207_vm7, %v7920_v43, %v297_v45 }
  0xf9   :  { %v989_v47 = vsel %vm942_vm2, %v455_v37, %v905_v56  ;;  %v985_v57 = vsel %vm942_vm2, %v454_v33, %v904_v39  ;;  %v362_v62 = vmul.f32 %v7917_v51, %v320_v27  ;;  %v7948_v33 = vrot.slane %v7886_v55, %v7674_v30  ;;  %12294 = vst [vmem:[#allocation54_spill] sm:$0xff] %v7970_v1 }
  0xfa   :  { %1157 = vmatprep.subr.bf16.mxu1 %v989_v47  ;;  %v7952_v39 = vrot.slane %v7913_v23, %v7677_v31  ;;  %v7967_v31 = vrot.slane %v7913_v23, %v7674_v30 }
  0xfb   :  { %v301_v17 = vpop.permute.xlu1 %300  ;;  %v215_v45 = vpop.permute.xlu0 %214  ;;  %1158 = vmatpush1.bf16.msra.mxu1 %v985_v57  ;;  %12291 = vst [vmem:[#allocation51_spill] sm:$0xff] %v7948_v33  ;;  %v370_v60 = vpack.c.bf16 %v362_v62, %v362_v62 }
  0xfc   :  { %v318_v37 = vsel %vm12207_vm7, %v299_v40, %v301_v17  ;;  %v237_v56 = vsel %vm12212_vm8, %v213_v42, %v215_v45  ;;  %12292 = vst [vmem:[#allocation52_spill] sm:$0xff] %v7952_v39  ;;  %12293 = vst [vmem:[#allocation53_spill] sm:$0xff] %v7967_v31 }
  0xfd   :  { %v281_v2 = vmul.f32 %v7929_v35, %v237_v56  ;;  %v364_v40 = vmul.f32 %v7935_v20, %v318_v37 }
  0xff   :  { %v289_v27 = vpack.c.bf16 %v281_v2, %v281_v2  ;;  %v7955_v47 = vpop.permute.xlu1 %226  ;;  %v7957_v57 = vpop.permute.xlu0 %302  ;;  %v372_v51 = vpack.c.bf16 %v364_v40, %v364_v40 }
 0x100   :  { %v238_v56 = vsel %vm12212_vm8, %v7955_v47, %v213_v42  ;;  %v317_v15 = vsel %vm12207_vm7, %v301_v17, %v7957_v57  ;;  %v886_v42 = vrot.slane %v370_v60, 4 }
 0x101   :  { %v280_v62 = vmul.f32 %v7944_v28, %v238_v56  ;;  %v365_v37 = vmul.f32 %v7948_v33, %v317_v15  ;;  %v949_v2 = vsel %vm942_vm2, %v289_v27, %v887_v38  ;;  %v7987_v38 = vrot.slane %v7642_v16, %v7970_v1 }
 0x102   :  { %1118 = vmatprep.subr.bf16.mxu0 %v949_v2  ;;  %v7994_v56 = vrot.slane %v7642_v16, %v7976_v14 }
 0x103   :  { %v288_v17 = vpack.c.bf16 %v280_v62, %v280_v62  ;;  %v373_v35 = vpack.c.bf16 %v365_v37, %v365_v37  ;;  %v7978_v6 = vpop.permute.xlu1 %218  ;;  %v217_v30 = vpop.permute.xlu0 %216  ;;  %12296 = vst [vmem:[#allocation56_spill] sm:$0xff] %v7987_v38  ;;  %v7996_v62 = vld [vmem:[#allocation6] sm:$0xf]  ;;  %v888_v37 = vrot.slane %v372_v51, 4 }
 0x104   :  { %v235_v20 = vsel %vm12212_vm8, %v217_v30, %v7978_v6  ;;  %v236_v15 = vsel %vm12212_vm8, %v215_v45, %v217_v30  ;;  %12297 = vst [vmem:[#allocation57_spill] sm:$0xff] %v7994_v56 }
 0x105   :  { %v282_v27 = vmul.f32 %v7952_v39, %v236_v15  ;;  %v283_v60 = vmul.f32 %v7967_v31, %v235_v20  ;;  %v945_v40 = vsel %vm942_vm2, %v288_v17, %v886_v42  ;;  %v889_v30 = vrot.slane %v373_v35, 4 }
 0x106   :  { %1119 = vmatpush1.bf16.msra.mxu0 %v945_v40  ;;  %v8004_v42 = vsub.s32 6, %v7628_v10 }
 0x107   :  { %v290_v45 = vpack.c.bf16 %v282_v27, %v282_v27  ;;  %v291_v2 = vpack.c.bf16 %v283_v60, %v283_v60  ;;  %v809_v28 = vpop.permute.xlu1 %808  ;;  %v807_v0 = vpop.permute.xlu0 %806  ;;  %v8014_v27 = vrot.slane %v7659_v25, %v7976_v14 }
 0x108   :  { %v814_v15 = vsel %vm812_vm0, %v807_v0, %v809_v28  ;;  %v815_v20 = vsel %vm812_vm0, %v7704_v46, %v807_v0  ;;  %12298 = vst [vmem:[#allocation58_spill] sm:$0xff] %v8004_v42  ;;  %v8017_v46 = vsub.s32 7, %v7628_v10  ;;  %v12301_v0 = vmov 0  }
 0x109   :  { %v866_v17 = vmul.f32 %v7987_v38, %v815_v20  ;;  %v867_v40 = vmul.f32 %v7994_v56, %v814_v15  ;;  %7072 = vmatmul.mubr.msk.bf16.vlgmr.msra.gmra.mxu0 %vm12195_vm9, %v7996_v62  ;;  %v957_v51 = vsel %vm942_vm2, %v291_v2, %v889_v30  ;;  %v953_v35 = vsel %vm942_vm2, %v290_v45, %v888_v37 }
 0x10a   :  { %1159 = vmatprep.subr.bf16.mxu1 %v957_v51  ;;  %12299 = vst [vmem:[#allocation59_spill] sm:$0xff] %v8014_v27  ;;  %12300 = vst [vmem:[#allocation60_spill] sm:$0xff] %v8017_v46  ;;  %1218 = vmatprep.mubr.bf16.mxu0 %v12301_v0  ;;  %v8024_v37 = vrot.slane %v7659_v25, %v7970_v1  ;;  %v8030_v10 = vrot.slane %v7642_v16, %v8004_v42 }
 0x10b   :  { %v874_v60 = vpack.c.bf16 %v866_v17, %v866_v17  ;;  %v875_v20 = vpack.c.bf16 %v867_v40, %v867_v40  ;;  %v727_v15 = vpop.permute.xlu1 %726  ;;  %v725_v56 = vpop.permute.xlu0 %724  ;;  %1160 = vmatpush1.bf16.msra.mxu1 %v953_v35  ;;  %v8040_v40 = vrot.slane %v7642_v16, %v8017_v46  ;;  %v8044_v35 = vrot.slane %v7692_v41, %v7970_v1 }
 0x10c   :  { %v732_v30 = vsel %vm730_vm1, %v725_v56, %v727_v15  ;;  %12302 = vst [vmem:[#allocation61_spill] sm:$0xff] %v8024_v37  ;;  %12303 = vst [vmem:[#allocation62_spill] sm:$0xff] %v8030_v10  ;;  %v733_v2 = vsel %vm730_vm1, %v7731_v19, %v725_v56 }
 0x10d   :  { %7075 = vmatprep.subr.msk.bf16.mxu0 %vm942_vm2, %v875_v20  ;;  %v1093_v45 = vsel %vm942_vm2, %v874_v60, 0  ;;  %v785_v17 = vmul.f32 %v8014_v27, %v732_v30  ;;  %12304 = vst [vmem:[#allocation63_spill] sm:$0xff] %v8040_v40  ;;  %12305 = vst [vmem:[#allocation64_spill] sm:$0xff] %v8044_v35  ;;  %v8048_v20 = vrot.slane %v7659_v25, %v8017_v46 }
 0x10e   :  { %7074 = vmatmul.mubr.msk.bf16.vlgmr.msra.gmra.mxu1 %vm12195_vm9, %v7996_v62  ;;  %1193 = vmatpush1.bf16.msra.mxu0 %v1093_v45  ;;  %v8061_v30 = vrot.slane %v7692_v41, %v7976_v14  ;;  %v784_v45 = vmul.f32 %v8024_v37, %v733_v2  ;;  %v8067_v27 = vrot.slane %v7659_v25, %v8004_v42 }
 0x10f   :  { %v643_v51 = vpop.permute.xlu1 %642  ;;  %v811_v60 = vpop.permute.xlu0 %810  ;;  %12306 = vst [vmem:[#allocation65_spill] sm:$0xff] %v8048_v20  ;;  %1259 = vmatprep.mubr.bf16.mxu1 %v12301_v0  ;;  %v8080_v2 = vrot.slane %v7738_v26, %v8017_v46  ;;  %v8085_v37 = vrot.slane %v7738_v26, %v8004_v42 }
 0x110   :  { %v651_v19 = vsel %vm12234_vm3, %v7787_v9, %v643_v51  ;;  %v813_v16 = vsel %vm812_vm0, %v809_v28, %v811_v60  ;;  %v820_v56 = vsel %vm812_vm0, %v811_v60, %v7644_v18  ;;  %12307 = vst [vmem:[#allocation66_spill] sm:$0xff] %v8061_v30  ;;  %12308 = vst [vmem:[#allocation67_spill] sm:$0xff] %v8067_v27 }
 0x111   :  { %v868_v38 = vmul.f32 %v8030_v10, %v813_v16  ;;  %v8071_v9 = vrot.slane %v7738_v26, %v7970_v1  ;;  %v793_v28 = vpack.c.bf16 %v785_v17, %v785_v17  ;;  %v869_v39 = vmul.f32 %v8040_v40, %v820_v56  ;;  %12311 = vst [vmem:[#allocation70_spill] sm:$0xff] %v8080_v2 }
 0x112   :  { %v8076_v18 = vrot.slane %v7738_v26, %v7976_v14  ;;  %v702_v60 = vmul.f32 %v8044_v35, %v651_v19  ;;  %12312 = vst [vmem:[#allocation71_spill] sm:$0xff] %v8085_v37  ;;  %v8089_v17 = vrot.slane %v7692_v41, %v8017_v46  ;;  %v792_v19 = vpack.c.bf16 %v784_v45, %v784_v45 }
 0x113   :  { %12309 = vst [vmem:[#allocation68_spill] sm:$0xff] %v8071_v9  ;;  %v876_v16 = vpack.c.bf16 %v868_v38, %v868_v38  ;;  %v729_v25 = vpop.permute.xlu1 %728  ;;  %v645_v10 = vpop.permute.xlu0 %644  ;;  %v877_v56 = vpack.c.bf16 %v869_v39, %v869_v39  ;;  %v8101_v26 = vrot.slane %v7692_v41, %v8004_v42  ;;  %v547_v39 = vpack.c.bf16 %v7594_v8, %v7594_v8 }
 0x114   :  { %12310 = vst [vmem:[#allocation69_spill] sm:$0xff] %v8076_v18  ;;  %12313 = vst [vmem:[#allocation72_spill] sm:$0xff] %v8089_v17  ;;  %v731_v40 = vsel %vm730_vm1, %v727_v15, %v729_v25  ;;  %v738_v31 = vsel %vm730_vm1, %v729_v25, %v7679_v34  ;;  %v650_v38 = vsel %vm12234_vm3, %v643_v51, %v645_v10  ;;  %v939_v33 = vrot.slane %v793_v28, 4 }
 0x115   :  { %v703_v35 = vmul.f32 %v8061_v30, %v650_v38  ;;  %12314 = vst [vmem:[#allocation73_spill] sm:$0xff] %v8101_v26  ;;  %v786_v15 = vmul.f32 %v8067_v27, %v731_v40  ;;  %v787_v49 = vmul.f32 %v8048_v20, %v738_v31  ;;  %7077 = vmatprep.subr.msk.bf16.mxu1 %vm942_vm2, %v877_v56  ;;  %v1099_v34 = vsel %vm942_vm2, %v876_v16, 0 }
 0x116   :  { %v710_v51 = vpack.c.bf16 %v702_v60, %v702_v60  ;;  %1234 = vmatpush1.bf16.msra.mxu1 %v1099_v34  ;;  %v8111_v41 = vrot.slane %v7807_v48, %v7970_v1  ;;  %v546_v8 = vpack.c.bf16 %v7515_v3, %v7515_v3  ;;  %v549_v28 = vpack.c.bf16 %v7551_v5, %v7551_v5 }
 0x117   :  { %v711_v45 = vpack.c.bf16 %v703_v35, %v703_v35  ;;  %v563_v25 = vpop.permute.xlu1 %562  ;;  %v561_v38 = vpop.permute.xlu0 %560  ;;  %v8122_v35 = vrot.slane %v7807_v48, %v7976_v14  ;;  %v938_v60 = vrot.slane %v792_v19, 4  ;;  %v8130_v3 = vrot.slane %v7835_v58, %v7970_v1 }
 0x118   :  { %12315 = vst [vmem:[#allocation74_spill] sm:$0xff] %v8111_v41  ;;  %v568_v40 = vsel %vm12213_vm4, %v561_v38, %v563_v25  ;;  %v569_v31 = vsel %vm12213_vm4, %v7811_v54, %v561_v38  ;;  %v794_v34 = vpack.c.bf16 %v786_v15, %v786_v15  ;;  %v795_v20 = vpack.c.bf16 %v787_v49, %v787_v49 }
 0x119   :  { %12316 = vst [vmem:[#allocation75_spill] sm:$0xff] %v8122_v35  ;;  %v620_v16 = vmul.f32 %v8071_v9, %v569_v31  ;;  %v621_v56 = vmul.f32 %v8076_v18, %v568_v40  ;;  %12317 = vst [vmem:[#allocation76_spill] sm:$0xff] %v8130_v3  ;;  %v1061_v54 = vsel %vm942_vm2, %v711_v45, %v939_v33 }
 0x11a   :  { %v8135_v38 = vrot.slane %v7835_v58, %v7976_v14  ;;  %1194 = vmatprep.subr.bf16.mxu0 %v1061_v54  ;;  %v1057_v31 = vsel %vm942_vm2, %v710_v51, %v938_v60  ;;  %v548_v40 = vpack.c.bf16 %v7592_v7, %v7592_v7 }
 0x11b   :  { %v628_v27 = vpack.c.bf16 %v620_v16, %v620_v16  ;;  %v629_v30 = vpack.c.bf16 %v621_v56, %v621_v56  ;;  %v565_v5 = vpop.permute.xlu1 %564  ;;  %v647_v19 = vpop.permute.xlu0 %646  ;;  %1195 = vmatpush1.bf16.msra.mxu0 %v1057_v31  ;;  %v940_v56 = vrot.slane %v794_v34, 4 }
 0x11c   :  { %12318 = vst [vmem:[#allocation77_spill] sm:$0xff] %v8135_v38  ;;  %v567_v15 = vsel %vm12213_vm4, %v563_v25, %v565_v5  ;;  %v574_v49 = vsel %vm12213_vm4, %v565_v5, %v7785_v63  ;;  %v649_v33 = vsel %vm12234_vm3, %v645_v10, %v647_v19  ;;  %v656_v45 = vsel %vm12234_vm3, %v647_v19, %v7744_v32 }
 0x11d   :  { %v922_v16 = vrot.slane %v628_v27, 4  ;;  %v923_v51 = vrot.slane %v629_v30, 4  ;;  %v622_v60 = vmul.f32 %v8085_v37, %v567_v15  ;;  %v623_v7 = vmul.f32 %v8080_v2, %v574_v49 }
 0x11e   :  { %v941_v25 = vrot.slane %v795_v20, 4  ;;  %v704_v54 = vmul.f32 %v8101_v26, %v649_v33  ;;  %v705_v63 = vmul.f32 %v8089_v17, %v656_v45 }
 0x11f   :  { %v630_v5 = vpack.c.bf16 %v622_v60, %v622_v60  ;;  %v631_v18 = vpack.c.bf16 %v623_v7, %v623_v7  ;;  %v471_v10 = vpop.permute.xlu1 %470  ;;  %v469_v9 = vpop.permute.xlu0 %468  ;;  %v1029_v12 = vsel %vm942_vm2, %v547_v39, %v923_v51  ;;  %v1025_v32 = vsel %vm942_vm2, %v546_v8, %v922_v16 }
 0x120   :  { %v712_v27 = vpack.c.bf16 %v704_v54, %v704_v54  ;;  %v713_v30 = vpack.c.bf16 %v705_v63, %v705_v63  ;;  %v479_v19 = vsel %vm12202_vm5, %v469_v9, %v471_v10  ;;  %v480_v20 = vsel %vm12202_vm5, %v7874_v29, %v469_v9  ;;  %1196 = vmatprep.subr.bf16.mxu0 %v1029_v12 }
 0x121   :  { %v924_v34 = vrot.slane %v630_v5, 4  ;;  %v925_v31 = vrot.slane %v631_v18, 4  ;;  %v530_v15 = vmul.f32 %v8111_v41, %v480_v20  ;;  %v531_v49 = vmul.f32 %v8122_v35, %v479_v19  ;;  %1197 = vmatpush1.bf16.msra.mxu0 %v1025_v32 }
 0x122   :  { %v1069_v39 = vsel %vm942_vm2, %v713_v30, %v941_v25  ;;  %v1065_v8 = vsel %vm942_vm2, %v712_v27, %v940_v56  ;;  %v8168_v12 = vrot.slane %v7807_v48, %v8017_v46  ;;  %v8177_v60 = vrot.slane %v7807_v48, %v8004_v42 }
 0x123   :  { %v539_v33 = vpack.c.bf16 %v531_v49, %v531_v49  ;;  %1235 = vmatprep.subr.bf16.mxu1 %v1069_v39  ;;  %v389_v45 = vpop.permute.xlu1 %388  ;;  %v387_v16 = vpop.permute.xlu0 %386  ;;  %v1037_v51 = vsel %vm942_vm2, %v549_v28, %v925_v31  ;;  %v538_v29 = vpack.c.bf16 %v530_v15, %v530_v15  ;;  %v1033_v25 = vsel %vm942_vm2, %v548_v40, %v924_v34 }
 0x124   :  { %12319 = vst [vmem:[#allocation78_spill] sm:$0xff] %v8168_v12  ;;  %v397_v9 = vsel %vm12206_vm6, %v387_v16, %v389_v45  ;;  %v398_v18 = vsel %vm12206_vm6, %v7902_v52, %v387_v16  ;;  %1236 = vmatpush1.bf16.msra.mxu1 %v1065_v8  ;;  %12320 = vst [vmem:[#allocation79_spill] sm:$0xff] %v8177_v60  ;;  %v8184_v32 = vrot.slane %v7886_v55, %v7970_v1 }
 0x125   :  { %v907_v7 = vrot.slane %v539_v33, 4  ;;  %v448_v28 = vmul.f32 %v8130_v3, %v398_v18  ;;  %v449_v56 = vmul.f32 %v8135_v38, %v397_v9  ;;  %1237 = vmatprep.subr.bf16.mxu1 %v1037_v51  ;;  %v906_v27 = vrot.slane %v538_v29, 4 }
 0x126   :  { %12321 = vst [vmem:[#allocation80_spill] sm:$0xff] %v8184_v32  ;;  %v8199_v31 = vrot.slane %v7835_v58, %v8004_v42  ;;  %v8221_v18 = vrot.slane %v7913_v23, %v7970_v1 }
 0x127   :  { %v456_v54 = vpack.c.bf16 %v448_v28, %v448_v28  ;;  %v457_v63 = vpack.c.bf16 %v449_v56, %v449_v56  ;;  %v305_v5 = vpop.permute.xlu1 %304  ;;  %v473_v52 = vpop.permute.xlu0 %472  ;;  %v8235_v56 = vrot.slane %v7913_v23, %v8017_v46 }
 0x128   :  { %v316_v48 = vsel %vm12207_vm7, %v7957_v57, %v305_v5  ;;  %v477_v30 = vsel %vm12202_vm5, %v473_v52, %v7838_v61  ;;  %v478_v40 = vsel %vm12202_vm5, %v471_v10, %v473_v52  ;;  %1238 = vmatpush1.bf16.msra.mxu1 %v1033_v25  ;;  %12322 = vst [vmem:[#allocation81_spill] sm:$0xff] %v8199_v31  ;;  %12325 = vst [vmem:[#allocation84_spill] sm:$0xff] %v8221_v18 }
 0x129   :  { %v532_v19 = vmul.f32 %v8177_v60, %v478_v40  ;;  %v533_v20 = vmul.f32 %v8168_v12, %v477_v30  ;;  %v997_v34 = vsel %vm942_vm2, %v457_v63, %v907_v7  ;;  %v8203_v57 = vrot.slane %v7835_v58, %v8017_v46  ;;  %12328 = vst [vmem:[#allocation87_spill] sm:$0xff] %v8235_v56 }
 0x12a   :  { %1198 = vmatprep.subr.bf16.mxu0 %v997_v34  ;;  %v8207_v61 = vrot.slane %v7886_v55, %v7976_v14  ;;  %v993_v10 = vsel %vm942_vm2, %v456_v54, %v906_v27  ;;  %v366_v15 = vmul.f32 %v8184_v32, %v316_v48  ;;  %v8225_v7 = vrot.slane %v7913_v23, %v7976_v14 }
 0x12b   :  { %12323 = vst [vmem:[#allocation82_spill] sm:$0xff] %v8203_v57  ;;  %v540_v49 = vpack.c.bf16 %v532_v19, %v532_v19  ;;  %v541_v39 = vpack.c.bf16 %v533_v20, %v533_v20  ;;  %v391_v8 = vpop.permute.xlu1 %390  ;;  %v307_v33 = vpop.permute.xlu0 %306  ;;  %1199 = vmatpush1.bf16.msra.mxu0 %v993_v10  ;;  %v8239_v27 = vrot.slane %v7886_v55, %v8017_v46 }
 0x12c   :  { %12324 = vst [vmem:[#allocation83_spill] sm:$0xff] %v8207_v61  ;;  %v395_v16 = vsel %vm12206_vm6, %v391_v8, %v7872_v4  ;;  %v396_v58 = vsel %vm12206_vm6, %v389_v45, %v391_v8  ;;  %v315_v51 = vsel %vm12207_vm7, %v305_v5, %v307_v33  ;;  %12326 = vst [vmem:[#allocation85_spill] sm:$0xff] %v8225_v7 }
 0x12d   :  { %v908_v29 = vrot.slane %v540_v49, 4  ;;  %v450_v9 = vmul.f32 %v8199_v31, %v396_v58  ;;  %v451_v28 = vmul.f32 %v8203_v57, %v395_v16  ;;  %v367_v4 = vmul.f32 %v8207_v61, %v315_v51  ;;  %12329 = vst [vmem:[#allocation88_spill] sm:$0xff] %v8239_v27  ;;  %v12345_v61 = vld [vmem:[#allocation53_spill] sm:$0xff] }
 0x12e   :  { %v8231_v45 = vrot.slane %v7913_v23, %v8004_v42  ;;  %v374_v25 = vpack.c.bf16 %v366_v15, %v366_v15  ;;  %v909_v54 = vrot.slane %v541_v39, 4  ;;  %v8250_v34 = vrot.slane %v7886_v55, %v8004_v42 }
 0x12f   :  { %v458_v63 = vpack.c.bf16 %v450_v9, %v450_v9  ;;  %v223_v5 = vpop.permute.xlu1 %222  ;;  %v221_v52 = vpop.permute.xlu0 %220  ;;  %v459_v48 = vpack.c.bf16 %v451_v28, %v451_v28  ;;  %v375_v30 = vpack.c.bf16 %v367_v4, %v367_v4 }
 0x130   :  { %12327 = vst [vmem:[#allocation86_spill] sm:$0xff] %v8231_v45  ;;  %v233_v40 = vsel %vm12212_vm8, %v221_v52, %v223_v5  ;;  %v234_v19 = vsel %vm12212_vm8, %v7978_v6, %v221_v52  ;;  %12330 = vst [vmem:[#allocation89_spill] sm:$0xff] %v8250_v34  ;;  %v890_v39 = vrot.slane %v374_v25, 4 }
 0x131   :  { %v284_v23 = vmul.f32 %v8221_v18, %v234_v19  ;;  %v285_v20 = vmul.f32 %v8225_v7, %v233_v40  ;;  %v1001_v10 = vsel %vm942_vm2, %v458_v63, %v908_v29  ;;  %v891_v15 = vrot.slane %v375_v30, 4 }
 0x132   :  { %v1005_v49 = vsel %vm942_vm2, %v459_v48, %v909_v54 }
 0x133   :  { %v292_v8 = vpack.c.bf16 %v284_v23, %v284_v23  ;;  %v293_v16 = vpack.c.bf16 %v285_v20, %v285_v20  ;;  %1239 = vmatprep.subr.bf16.mxu1 %v1005_v49  ;;  %v225_v58 = vpop.permute.xlu1 %224  ;;  %v309_v51 = vpop.permute.xlu0 %308 }
 0x134   :  { %v231_v6 = vsel %vm12212_vm8, %v225_v58, %v7955_v47  ;;  %v232_v9 = vsel %vm12212_vm8, %v223_v5, %v225_v58  ;;  %v313_v55 = vsel %vm12207_vm7, %v309_v51, %v7920_v43  ;;  %v314_v29 = vsel %vm12207_vm7, %v307_v33, %v309_v51  ;;  %1240 = vmatpush1.bf16.msra.mxu1 %v1001_v10 }
 0x135   :  { %v286_v28 = vmul.f32 %v8231_v45, %v232_v9  ;;  %v287_v4 = vmul.f32 %v8235_v56, %v231_v6  ;;  %v368_v25 = vmul.f32 %v8250_v34, %v314_v29  ;;  %v369_v54 = vmul.f32 %v8239_v27, %v313_v55 }
 0x136   :  { %v965_v47 = vsel %vm942_vm2, %v293_v16, %v891_v15  ;;  %v961_v63 = vsel %vm942_vm2, %v292_v8, %v890_v39  ;;  %v8280_v10 = vstv %s86_s25 }
 0x137   :  { %v294_v5 = vpack.c.bf16 %v286_v28, %v286_v28  ;;  %v376_v52 = vpack.c.bf16 %v368_v25, %v368_v25  ;;  %v377_v48 = vpack.c.bf16 %v369_v54, %v369_v54  ;;  %1200 = vmatprep.subr.bf16.mxu0 %v965_v47  ;;  %v295_v43 = vpack.c.bf16 %v287_v4, %v287_v4 }
 0x138   :  { %1201 = vmatpush1.bf16.msra.mxu0 %v961_v63 }
 0x139   :  { %v892_v33 = vrot.slane %v376_v52, 4  ;;  %v893_v30 = vrot.slane %v377_v48, 4 }
 0x13b   :  { %7076 = vmatmul.mubr.msk.bf16.vlgmr.msra.gmra.mxu0 %vm12195_vm9, %v7996_v62  ;;  %v973_v40 = vsel %vm942_vm2, %v295_v43, %v893_v30  ;;  %v969_v19 = vsel %vm942_vm2, %v294_v5, %v892_v33 }
 0x13c   :  { %1241 = vmatprep.subr.bf16.mxu1 %v973_v40  ;;  %1876 = vmatprep.mubr.bf16.mxu0 %v12301_v0 }
 0x13d   :  { %1242 = vmatpush1.bf16.msra.mxu1 %v969_v19 }
 0x140   :  { %7078 = vmatmul.mubr.msk.bf16.vlgmr.msra.gmra.mxu1 %vm12195_vm9, %v7996_v62  ;;  %v8278_v23 = vpop.permute.xlu0 %1073 }
 0x141   :  { %1917 = vmatprep.mubr.bf16.mxu1 %v12301_v0 }
 0x1c9   :  { %v1138_v20 = vpop.f32.mrf.mxu0 }
 0x1ca   :  { %v1139_v15 = vadd.f32 %v1138_v20, %v8278_v23 }
 0x1cb   :  { %v1140_v49 = vpop.f32.mrf.mxu0 }
 0x1cc   :  { %vm1268_vm10 = vcmp.ge.f32.partialorder %v1139_v15, 0.0  ;;  %v1277_v39 = vmul.f32 %v8280_v10, %v1139_v15  ;;  %v1141_v4 = vadd.f32 %v1140_v49, %v8278_v23 }
 0x1cd   :  { %v1142_v8 = vpop.f32.mrf.mxu0 }
 0x1ce   :  { %v8284_v16 = vsel %vm1268_vm10, %v1139_v15, %v1277_v39  ;;  %v1179_v58 = vpop.f32.mrf.mxu1  ;;  %v1278_v25 = vmul.f32 %v8280_v10, %v1141_v4  ;;  %vm1269_vm12 = vcmp.ge.f32.partialorder %v1141_v4, 0.0 }
 0x1cf   :  { %v1180_v62 = vadd.f32 %v1179_v58, %v8278_v23  ;;  %v1143_v51 = vpop.f32.mrf.mxu0  ;;  %1581 = vrot.lane.b32.xlu1 %v8284_v16, %s7416_s3 }
 0x1d0   :  { %v1181_v6 = vpop.f32.mrf.mxu1  ;;  %v8318_v54 = vsel %vm1269_vm12, %v1141_v4, %v1278_v25  ;;  %vm2720_vm12 = vcmask 1040384  }
 0x1d1   :  { %vm1270_vm11 = vcmp.ge.f32.partialorder %v1180_v62, 0.0  ;;  %v1279_v9 = vmul.f32 %v8280_v10, %v1180_v62  ;;  %v1182_v47 = vadd.f32 %v1181_v6, %v8278_v23 }
 0x1d2   :  { %v1183_v55 = vpop.f32.mrf.mxu1 }
 0x1d3   :  { %v8290_v29 = vsel %vm1270_vm11, %v1180_v62, %v1279_v9  ;;  %1541 = vrot.lane.b32.xlu1 %v8284_v16, %s7417_s4  ;;  %v1280_v63 = vmul.f32 %v8280_v10, %v1182_v47  ;;  %vm1271_vm13 = vcmp.ge.f32.partialorder %v1182_v47, 0.0 }
 0x1d4   :  { %v1184_v28 = vpop.f32.mrf.mxu1  ;;  %1585 = vrot.lane.b32.xlu0 %v8290_v29, %s7416_s3 }
 0x1d5   :  { %v8338_v5 = vsel %vm1271_vm13, %v1182_v47, %v1280_v63  ;;  %vm7428_vm13 = vmmov 0  }
 0x1d7   :  { %1505 = vrot.lane.b32.xlu1 %v8290_v29, %s7418_s19 }
 0x1d8   :  { %1545 = vrot.lane.b32.xlu0 %v8290_v29, %s7417_s4 }
 0x1db   :  { %1461 = vrot.lane.b32.xlu1 %v8284_v16, %s7419_s20 }
 0x1dc   :  { %1501 = vrot.lane.b32.xlu0 %v8284_v16, %s7418_s19 }
 0x1df   :  { %1373 = vrot.lane.b32.xlu1 %v8284_v16, %s7421_s22 }
 0x1e0   :  { %1465 = vrot.lane.b32.xlu0 %v8290_v29, %s7419_s20 }
 0x1e3   :  { %1293 = vrot.lane.b32.xlu1 %v8284_v16, %s7423_s24 }
 0x1e4   :  { %1413 = vrot.lane.b32.xlu0 %v8284_v16, %s7420_s21 }
 0x1e7   :  { %1417 = vrot.lane.b32.xlu1 %v8290_v29, %s7420_s21 }
 0x1e8   :  { %1333 = vrot.lane.b32.xlu0 %v8284_v16, %s7422_s23 }
 0x1eb   :  { %1583 = vrot.lane.b32.xlu1 %v8318_v54, %s7416_s3 }
 0x1ec   :  { %1377 = vrot.lane.b32.xlu0 %v8290_v29, %s7421_s22 }
 0x1ef   :  { %1543 = vrot.lane.b32.xlu1 %v8318_v54, %s7417_s4 }
 0x1f0   :  { %1337 = vrot.lane.b32.xlu0 %v8290_v29, %s7422_s23 }
 0x1f3   :  { %1463 = vrot.lane.b32.xlu1 %v8318_v54, %s7419_s20 }
 0x1f4   :  { %1297 = vrot.lane.b32.xlu0 %v8290_v29, %s7423_s24 }
 0x1f7   :  { %1415 = vrot.lane.b32.xlu1 %v8318_v54, %s7420_s21 }
 0x1f8   :  { %1503 = vrot.lane.b32.xlu0 %v8318_v54, %s7418_s19 }
 0x1fb   :  { %v1220_v52 = vpop.f32.mrf.mxu0  ;;  %1467 = vrot.lane.b32.xlu1 %v8338_v5, %s7419_s20 }
 0x1fc   :  { %1587 = vrot.lane.b32.xlu0 %v8338_v5, %s7416_s3  ;;  %v1221_v20 = vadd.f32 %v1220_v52, %v8278_v23 }
 0x1fd   :  { %v1222_v48 = vpop.f32.mrf.mxu0 }
 0x1fe   :  { %v1281_v49 = vmul.f32 %v8280_v10, %v1221_v20  ;;  %vm1272_vm14 = vcmp.ge.f32.partialorder %v1221_v20, 0.0  ;;  %v1223_v9 = vadd.f32 %v1222_v48, %v8278_v23  ;;  %v12095_v48 = vmov 1  }
 0x1ff   :  { %1335 = vrot.lane.b32.xlu1 %v8318_v54, %s7422_s23  ;;  %v1224_v43 = vpop.f32.mrf.mxu0  ;;  %7201 = vset.pattern.permute.xlu0 %v12095_v48 }
 0x200   :  { %v1261_v33 = vpop.f32.mrf.mxu1  ;;  %1547 = vrot.lane.b32.xlu0 %v8338_v5, %s7417_s4  ;;  %v8362_v39 = vsel %vm1272_vm14, %v1221_v20, %v1281_v49  ;;  %v1282_v28 = vmul.f32 %v8280_v10, %v1223_v9  ;;  %vm1273_vm11 = vcmp.ge.f32.partialorder %v1223_v9, 0.0  ;;  %vm12180_vm14 = vcmask 64512  }
 0x201   :  { %v1225_v30 = vpop.f32.mrf.mxu0  ;;  %v1262_v8 = vadd.f32 %v1261_v33, %v8278_v23  ;;  %v7274_v33 = vld [vmem:[#allocation8] sm:$0xff] }
 0x202   :  { %v1263_v40 = vpop.f32.mrf.mxu1  ;;  %v8402_v4 = vsel %vm1273_vm11, %v1223_v9, %v1282_v28  ;;  %vm3240_vm11 = vcmask 31744  }
 0x203   :  { %1379 = vrot.lane.b32.xlu1 %v8338_v5, %s7421_s22  ;;  %v1283_v58 = vmul.f32 %v8280_v10, %v1262_v8  ;;  %vm1274_vm15 = vcmp.ge.f32.partialorder %v1262_v8, 0.0  ;;  %v1264_v51 = vadd.f32 %v1263_v40, %v8278_v23 }
 0x204   :  { %1507 = vrot.lane.b32.xlu0 %v8338_v5, %s7418_s19  ;;  %v1265_v19 = vpop.f32.mrf.mxu1 }
 0x205   :  { %v8378_v62 = vsel %vm1274_vm15, %v1262_v8, %v1283_v58  ;;  %v1284_v6 = vmul.f32 %v8280_v10, %v1264_v51  ;;  %vm1275_vm10 = vcmp.ge.f32.partialorder %v1264_v51, 0.0  ;;  %vm3197_vm15 = vcmask 27648  }
 0x206   :  { %v1266_v15 = vpop.f32.mrf.mxu1 }
 0x207   :  { %1339 = vrot.lane.b32.xlu1 %v8338_v5, %s7422_s23  ;;  %v8391_v55 = vsel %vm1275_vm10, %v1264_v51, %v1284_v6 }
 0x208   :  { %1375 = vrot.lane.b32.xlu0 %v8318_v54, %s7421_s22 }
 0x20b   :  { %1299 = vrot.lane.b32.xlu1 %v8338_v5, %s7423_s24 }
 0x20c   :  { %1295 = vrot.lane.b32.xlu0 %v8318_v54, %s7423_s24 }
 0x20f   :  { %1589 = vrot.lane.b32.xlu1 %v8362_v39, %s7416_s3 }
 0x210   :  { %1419 = vrot.lane.b32.xlu0 %v8338_v5, %s7420_s21 }
 0x213   :  { %1549 = vrot.lane.b32.xlu1 %v8362_v39, %s7417_s4 }
 0x214   :  { %1469 = vrot.lane.b32.xlu0 %v8362_v39, %s7419_s20 }
 0x217   :  { %1509 = vrot.lane.b32.xlu1 %v8362_v39, %s7418_s19 }
 0x218   :  { %1421 = vrot.lane.b32.xlu0 %v8362_v39, %s7420_s21 }
 0x21b   :  { %1593 = vrot.lane.b32.xlu1 %v8378_v62, %s7416_s3 }
 0x21c   :  { %1341 = vrot.lane.b32.xlu0 %v8362_v39, %s7422_s23 }
 0x21f   :  { %1553 = vrot.lane.b32.xlu1 %v8378_v62, %s7417_s4 }
 0x220   :  { %1301 = vrot.lane.b32.xlu0 %v8362_v39, %s7423_s24 }
 0x223   :  { %1513 = vrot.lane.b32.xlu1 %v8378_v62, %s7418_s19 }
 0x224   :  { %1427 = vrot.lane.b32.xlu0 %v8391_v55, %s7420_s21 }
 0x227   :  { %1473 = vrot.lane.b32.xlu1 %v8378_v62, %s7419_s20 }
 0x228   :  { %1347 = vrot.lane.b32.xlu0 %v8391_v55, %s7422_s23 }
 0x22b   :  { %1381 = vrot.lane.b32.xlu1 %v8362_v39, %s7421_s22 }
 0x22c   :  { %1591 = vrot.lane.b32.xlu0 %v8402_v4, %s7416_s3 }
 0x22f   :  { %1387 = vrot.lane.b32.xlu1 %v8391_v55, %s7421_s22 }
 0x230   :  { %1551 = vrot.lane.b32.xlu0 %v8402_v4, %s7417_s4 }
 0x233   :  { %1307 = vrot.lane.b32.xlu1 %v8391_v55, %s7423_s24 }
 0x234   :  { %1511 = vrot.lane.b32.xlu0 %v8402_v4, %s7418_s19 }
 0x237   :  { %1555 = vrot.lane.b32.xlu1 %v8391_v55, %s7417_s4 }
 0x238   :  { %1471 = vrot.lane.b32.xlu0 %v8402_v4, %s7419_s20 }
 0x23b   :  { %1423 = vrot.lane.b32.xlu1 %v8402_v4, %s7420_s21 }
 0x23c   :  { %1595 = vrot.lane.b32.xlu0 %v8391_v55, %s7416_s3 }
 0x23f   :  { %1475 = vrot.lane.b32.xlu1 %v8391_v55, %s7419_s20 }
 0x240   :  { %1515 = vrot.lane.b32.xlu0 %v8391_v55, %s7418_s19 }
 0x241   :  { %v8428_v23 = vpop.permute.xlu1 %1581 }
 0x243   :  { %1343 = vrot.lane.b32.xlu1 %v8402_v4, %s7422_s23 }
 0x244   :  { %1383 = vrot.lane.b32.xlu0 %v8402_v4, %s7421_s22 }
 0x245   :  { %v8434_v10 = vpop.permute.xlu1 %1541 }
 0x246   :  { %v8436_v25 = vpop.permute.xlu0 %1585 }
 0x247   :  { %1303 = vrot.lane.b32.xlu1 %v8402_v4, %s7423_s24 }
 0x248   :  { %1425 = vrot.lane.b32.xlu0 %v8378_v62, %s7420_s21 }
 0x249   :  { %v8442_v47 = vpop.permute.xlu1 %1505 }
 0x24a   :  { %v8444_v63 = vpop.permute.xlu0 %1545 }
 0x24b   :  { %1385 = vrot.lane.b32.xlu1 %v8378_v62, %s7421_s22 }
 0x24c   :  { %1345 = vrot.lane.b32.xlu0 %v8378_v62, %s7422_s23 }
 0x24d   :  { %v8450_v52 = vpop.permute.xlu1 %1461 }
 0x24e   :  { %v8453_v43 = vpop.permute.xlu0 %1501 }
 0x24f   :  { %1305 = vrot.lane.b32.xlu1 %v8378_v62, %s7423_s24 }
 0x250   :  { %1814 = vperm.xlu0 %7201, %v7274_v33  }
 0x251   :  { %v8457_v30 = vpop.permute.xlu1 %1373 }
 0x252   :  { %v8459_v40 = vpop.permute.xlu0 %1465 }
 0x255   :  { %v8461_v19 = vpop.permute.xlu1 %1293 }
 0x256   :  { %v8463_v20 = vpop.permute.xlu0 %1413 }
 0x259   :  { %v8465_v15 = vpop.permute.xlu1 %1417 }
 0x25a   :  { %v8467_v49 = vpop.permute.xlu0 %1333 }
 0x25d   :  { %v1584_v8 = vpop.permute.xlu1 %1583 }
 0x25e   :  { %v1602_v58 = vsel %vm812_vm0, %v1584_v8, %v8436_v25  ;;  %v1603_v51 = vsel %vm812_vm0, %v8428_v23, %v1584_v8  ;;  %v8475_v6 = vpop.permute.xlu0 %1377 }
 0x25f   :  { %v1605_v9 = vmul.f32 %v1603_v51, %v7657_v22  ;;  %v1606_v28 = vmul.f32 %v1602_v58, %v7653_v21 }
 0x261   :  { %v1613_v33 = vpack.c.bf16 %v1605_v9, %v1605_v9  ;;  %v1614_v48 = vpack.c.bf16 %v1606_v28, %v1606_v28  ;;  %v1544_v46 = vpop.permute.xlu1 %1543 }
 0x262   :  { %v8479_v42 = vpop.permute.xlu0 %1337  ;;  %v1563_v1 = vsel %vm730_vm1, %v8434_v10, %v1544_v46  ;;  %v1562_v8 = vsel %vm730_vm1, %v1544_v46, %v8444_v63 }
 0x263   :  { %7079 = vmatprep.subr.msk.bf16.mxu0 %vm942_vm2, %v1614_v48  ;;  %v1821_v14 = vsel %vm942_vm2, %v1613_v33, 0  ;;  %v1565_v58 = vmul.f32 %v1563_v1, %v7720_v53  ;;  %v1566_v21 = vmul.f32 %v1562_v8, %v7683_v36 }
 0x264   :  { %1851 = vmatpush1.bf16.msra.mxu0 %v1821_v14 }
 0x265   :  { %v1464_v51 = vpop.permute.xlu1 %1463  ;;  %v1573_v14 = vpack.c.bf16 %v1565_v58, %v1565_v58  ;;  %v1574_v53 = vpack.c.bf16 %v1566_v21, %v1566_v21 }
 0x266   :  { %v1482_v9 = vsel %vm12213_vm4, %v1464_v51, %v8459_v40  ;;  %v8493_v28 = vpop.permute.xlu0 %1297  ;;  %v1483_v48 = vsel %vm12213_vm4, %v8450_v52, %v1464_v51 }
 0x267   :  { %v1486_v33 = vmul.f32 %v1482_v9, %v7762_v44  ;;  %v1485_v46 = vmul.f32 %v1483_v48, %v7778_v59  ;;  %v1677_v36 = vrot.slane %v1573_v14, 4  ;;  %v1678_v48 = vrot.slane %v1574_v53, 4 }
 0x268   :  { %v1453_v14 = vpack.c.bf16 %v8284_v16, %v8284_v16  ;;  %v12331_v16 = vld [vmem:[#allocation40_spill] sm:$0xff] }
 0x269   :  { %v8500_v22 = vpop.permute.xlu1 %1415  ;;  %v1494_v56 = vpack.c.bf16 %v1486_v33, %v1486_v33  ;;  %v1493_v58 = vpack.c.bf16 %v1485_v46, %v1485_v46 }
 0x26a   :  { %v1504_v1 = vpop.permute.xlu0 %1503  ;;  %v1435_v53 = vsel %vm12202_vm5, %v8463_v20, %v8500_v22 }
 0x26b   :  { %v1522_v45 = vsel %vm12234_vm3, %v1504_v1, %v8442_v47  ;;  %v1523_v8 = vsel %vm12234_vm3, %v8453_v43, %v1504_v1  ;;  %v1662_v59 = vrot.slane %v1494_v56, 4  ;;  %v1454_v1 = vpack.c.bf16 %v8318_v54, %v8318_v54 }
 0x26c   :  { %v1525_v51 = vmul.f32 %v1523_v8, %v7736_v24  ;;  %v1526_v9 = vmul.f32 %v1522_v45, %v7714_v50  ;;  %v1661_v8 = vrot.slane %v1493_v58, 4  ;;  %v12336_v50 = vld [vmem:[#allocation30_spill] sm:$0xff] }
 0x26d   :  { %v1468_v44 = vpop.permute.xlu1 %1467  ;;  %v1755_v56 = vsel %vm942_vm2, %v1454_v1, %v1662_v59 }
 0x26e   :  { %v1588_v27 = vpop.permute.xlu0 %1587  ;;  %v1533_v21 = vpack.c.bf16 %v1525_v51, %v1525_v51  ;;  %v1534_v33 = vpack.c.bf16 %v1526_v9, %v1526_v9 }
 0x270   :  { %v1787_v34 = vsel %vm942_vm2, %v1534_v33, %v1678_v48  ;;  %v1783_v31 = vsel %vm942_vm2, %v1533_v21, %v1677_v36  ;;  %v1438_v36 = vmul.f32 %v1435_v53, %v7825_v11  ;;  %v12332_v53 = vld [vmem:[#allocation26_spill] sm:$0xff]  ;;  %v12338_v11 = vld [vmem:[#allocation37_spill] sm:$0xff] }
 0x271   :  { %v8512_v57 = vpop.permute.xlu1 %1335  ;;  %1852 = vmatprep.subr.bf16.mxu0 %v1787_v34  ;;  %v1751_v34 = vsel %vm942_vm2, %v1453_v14, %v1661_v8 }
 0x272   :  { %v1548_v45 = vpop.permute.xlu0 %1547  ;;  %1853 = vmatpush1.bf16.msra.mxu0 %v1783_v31  ;;  %v1446_v9 = vpack.c.bf16 %v1438_v36, %v1438_v36  ;;  %v1601_v31 = vsel %vm812_vm0, %v8436_v25, %v1588_v27 }
 0x273   :  { %1854 = vmatprep.subr.bf16.mxu0 %v1755_v56  ;;  %v1607_v56 = vmul.f32 %v1601_v31, %v12332_v53  ;;  %v1481_v31 = vsel %vm12213_vm4, %v8459_v40, %v1468_v44  ;;  %v12335_v40 = vld [vmem:[#allocation36_spill] sm:$0xff] }
 0x274   :  { %v1646_v33 = vrot.slane %v1446_v9, 4  ;;  %v1561_v9 = vsel %vm730_vm1, %v8444_v63, %v1548_v45 }
 0x275   :  { %v8524_v46 = vpop.permute.xlu1 %1379 }
 0x276   :  { %v1508_v54 = vpop.permute.xlu0 %1507  ;;  %1855 = vmatpush1.bf16.msra.mxu0 %v1751_v34 }
 0x279   :  { %v8528_v51 = vpop.permute.xlu1 %1339 }
 0x27a   :  { %v1376_v58 = vpop.permute.xlu0 %1375 }
 0x27b   :  { %v1395_v59 = vsel %vm12206_vm6, %v8457_v30, %v1376_v58 }
 0x27c   :  { %v1398_v48 = vmul.f32 %v1395_v59, %v12331_v16  ;;  %v1615_v59 = vpack.c.bf16 %v1607_v56, %v1607_v56 }
 0x27d   :  { %v8537_v21 = vpop.permute.xlu1 %1299 }
 0x27e   :  { %v1406_v1 = vpack.c.bf16 %v1398_v48, %v1398_v48  ;;  %v8539_v8 = vpop.permute.xlu0 %1295  ;;  %v12333_v48 = vld [vmem:[#allocation25_spill] sm:$0xff] }
 0x280   :  { %v1723_v14 = vsel %vm942_vm2, %v1406_v1, %v1646_v33  ;;  %v1521_v33 = vsel %vm12234_vm3, %v8442_v47, %v1508_v54 }
 0x281   :  { %v8543_v36 = vpop.permute.xlu1 %1589  ;;  %1856 = vmatprep.subr.bf16.mxu0 %v1723_v14 }
 0x282   :  { %v1600_v34 = vsel %vm812_vm0, %v1588_v27, %v8543_v36  ;;  %v8548_v25 = vpop.permute.xlu0 %1419  ;;  %v12334_v27 = vld [vmem:[#allocation31_spill] sm:$0xff] }
 0x283   :  { %v1608_v16 = vmul.f32 %v1600_v34, %v12333_v48  ;;  %v1567_v53 = vmul.f32 %v1561_v9, %v12334_v27  ;;  %v1433_v63 = vsel %vm12202_vm5, %v8465_v15, %v8548_v25  ;;  %v1487_v48 = vmul.f32 %v1481_v31, %v12335_v40  ;;  %v12337_v27 = vld [vmem:[#allocation33_spill] sm:$0xff] }
 0x284   :  { %v1827_v9 = vsel %vm942_vm2, %v1615_v59, 0  ;;  %v1527_v24 = vmul.f32 %v1521_v33, %v12337_v27  ;;  %v1434_v59 = vsel %vm12202_vm5, %v8500_v22, %v8465_v15  ;;  %v1456_v27 = vpack.c.bf16 %v8338_v5, %v8338_v5 }
 0x285   :  { %v1616_v1 = vpack.c.bf16 %v1608_v16, %v1608_v16  ;;  %v8560_v14 = vpop.permute.xlu1 %1549  ;;  %v1575_v31 = vpack.c.bf16 %v1567_v53, %v1567_v53  ;;  %v1495_v33 = vpack.c.bf16 %v1487_v48, %v1487_v48  ;;  %v1393_v53 = vsel %vm12206_vm6, %v8475_v6, %v8524_v46 }
 0x286   :  { %v1560_v56 = vsel %vm730_vm1, %v1548_v45, %v8560_v14  ;;  %v8570_v34 = vpop.permute.xlu0 %1469  ;;  %v12339_v45 = vld [vmem:[#allocation43_spill] sm:$0xff]  ;;  %v1314_v5 = vsel %vm12212_vm8, %v8539_v8, %v8493_v28 }
 0x287   :  { %v1568_v47 = vmul.f32 %v1560_v56, %v12336_v50  ;;  %v1480_v16 = vsel %vm12213_vm4, %v1468_v44, %v8570_v34  ;;  %7081 = vmatprep.subr.msk.bf16.mxu1 %vm942_vm2, %v1616_v1  ;;  %v1440_v60 = vmul.f32 %v1433_v63, %v12339_v45  ;;  %v12340_v1 = vld [vmem:[#allocation35_spill] sm:$0xff]  ;;  %v1394_v63 = vsel %vm12206_vm6, %v1376_v58, %v8475_v6 }
 0x288   :  { %v1488_v12 = vmul.f32 %v1480_v16, %v12338_v11  ;;  %1892 = vmatpush1.bf16.msra.mxu1 %v1827_v9  ;;  %v12343_v58 = vld [vmem:[#allocation51_spill] sm:$0xff] }
 0x289   :  { %v1576_v7 = vpack.c.bf16 %v1568_v47, %v1568_v47  ;;  %v8582_v38 = vpop.permute.xlu1 %1509  ;;  %v1448_v47 = vpack.c.bf16 %v1440_v60, %v1440_v60  ;;  %v1354_v60 = vsel %vm12207_vm7, %v8512_v57, %v8479_v42 }
 0x28a   :  { %v1496_v56 = vpack.c.bf16 %v1488_v12, %v1488_v12  ;;  %v1520_v44 = vsel %vm12234_vm3, %v1508_v54, %v8582_v38  ;;  %v8587_v50 = vpop.permute.xlu0 %1421  ;;  %v1535_v12 = vpack.c.bf16 %v1527_v24, %v1527_v24  ;;  %v1353_v54 = vsel %vm12207_vm7, %v8479_v42, %v8528_v51 }
 0x28b   :  { %v1528_v16 = vmul.f32 %v1520_v44, %v12340_v1  ;;  %v1680_v22 = vrot.slane %v1576_v7, 4  ;;  %v12341_v44 = vld [vmem:[#allocation42_spill] sm:$0xff]  ;;  %v1679_v1 = vrot.slane %v1575_v31, 4  ;;  %v1313_v24 = vsel %vm12212_vm8, %v8493_v28, %v8537_v21  ;;  %v12342_v7 = vld [vmem:[#allocation45_spill] sm:$0xff] }
 0x28c   :  { %v1664_v15 = vrot.slane %v1496_v56, 4  ;;  %v1439_v11 = vmul.f32 %v1434_v59, %v12341_v44  ;;  %v1400_v6 = vmul.f32 %v1393_v53, %v12342_v7  ;;  %v1360_v56 = vmul.f32 %v1353_v54, %v12343_v58 }
 0x28d   :  { %v1536_v48 = vpack.c.bf16 %v1528_v16, %v1528_v16  ;;  %v8605_v9 = vpop.permute.xlu1 %1593  ;;  %v1663_v59 = vrot.slane %v1495_v33, 4  ;;  %v12344_v16 = vld [vmem:[#allocation44_spill] sm:$0xff]  ;;  %v1791_v40 = vsel %vm942_vm2, %v1535_v12, %v1679_v1  ;;  %v1320_v17 = vmul.f32 %v1313_v24, %v12345_v61  ;;  %v12346_v33 = vld [vmem:[#allocation49_spill] sm:$0xff] }
 0x28e   :  { %v8612_v45 = vpop.permute.xlu0 %1341  ;;  %v1399_v44 = vmul.f32 %v1394_v63, %v12344_v16  ;;  %v1648_v42 = vrot.slane %v1448_v47, 4  ;;  %v1763_v54 = vsel %vm942_vm2, %v1456_v27, %v1664_v15  ;;  %v1455_v1 = vpack.c.bf16 %v8290_v29, %v8290_v29  ;;  %v12347_v61 = vld [vmem:[#allocation52_spill] sm:$0xff] }
 0x28f   :  { %v1795_v31 = vsel %vm942_vm2, %v1536_v48, %v1680_v22  ;;  %v1447_v22 = vpack.c.bf16 %v1439_v11, %v1439_v11  ;;  %v1359_v48 = vmul.f32 %v1354_v60, %v12346_v33  ;;  %v1408_v12 = vpack.c.bf16 %v1400_v6, %v1400_v6 }
 0x290   :  { %1893 = vmatprep.subr.bf16.mxu1 %v1795_v31  ;;  %v1368_v24 = vpack.c.bf16 %v1360_v56, %v1360_v56  ;;  %v1407_v31 = vpack.c.bf16 %v1399_v44, %v1399_v44  ;;  %v1319_v28 = vmul.f32 %v1314_v5, %v12347_v61  ;;  %v1328_v47 = vpack.c.bf16 %v1320_v17, %v1320_v17 }
 0x291   :  { %1894 = vmatpush1.bf16.msra.mxu1 %v1791_v40  ;;  %v8630_v53 = vpop.permute.xlu1 %1553  ;;  %v1759_v40 = vsel %vm942_vm2, %v1455_v1, %v1663_v59  ;;  %v1731_v11 = vsel %vm942_vm2, %v1408_v12, %v1648_v42  ;;  %v1647_v27 = vrot.slane %v1447_v22, 4  ;;  %v1367_v15 = vpack.c.bf16 %v1359_v48, %v1359_v48  ;;  %v12348_v42 = vld [vmem:[#allocation46_spill] sm:$0xff]  ;;  %v12349_v1 = vld [vmem:[#allocation48_spill] sm:$0xff] }
 0x292   :  { %v8634_v63 = vpop.permute.xlu0 %1301  ;;  %1895 = vmatprep.subr.bf16.mxu1 %v1763_v54  ;;  %v1355_v29 = vsel %vm12207_vm7, %v8467_v49, %v8512_v57  ;;  %v1632_v44 = vrot.slane %v1368_v24, 4  ;;  %v1327_v6 = vpack.c.bf16 %v1319_v28, %v1319_v28  ;;  %v1315_v17 = vsel %vm12212_vm8, %v8461_v19, %v8539_v8 }
 0x293   :  { %v1727_v56 = vsel %vm942_vm2, %v1407_v31, %v1647_v27  ;;  %v1358_v54 = vmul.f32 %v1355_v29, %v12348_v42  ;;  %v1631_v22 = vrot.slane %v1367_v15, 4  ;;  %v1318_v12 = vmul.f32 %v1315_v17, %v12349_v1  ;;  %v12350_v31 = vld [vmem:[#allocation39_spill] sm:$0xff] }
 0x294   :  { %v1699_v5 = vsel %vm942_vm2, %v1328_v47, %v1632_v44  ;;  %v1432_v24 = vsel %vm12202_vm5, %v8548_v25, %v8587_v50  ;;  %v8673_v47 = vld [vmem:[#allocation6 + $0x10] sm:$0xf]  ;;  %v1352_v44 = vsel %vm12207_vm7, %v8528_v51, %v8612_v45 }
 0x295   :  { %1896 = vmatpush1.bf16.msra.mxu1 %v1759_v40  ;;  %v8640_v16 = vpop.permute.xlu1 %1513  ;;  %v1695_v8 = vsel %vm942_vm2, %v1327_v6, %v1631_v22  ;;  %v1326_v15 = vpack.c.bf16 %v1318_v12, %v1318_v12  ;;  %v8680_v29 = vmul.f32 %v1432_v24, %v8111_v41  ;;  %v12352_v24 = vld [vmem:[#allocation41_spill] sm:$0xff]  ;;  %v8718_v25 = vmul.f32 %v1352_v44, %v8184_v32 }
 0x296   :  { %v8643_v60 = vpop.permute.xlu0 %1427  ;;  %1897 = vmatprep.subr.bf16.mxu1 %v1731_v11 }
 0x297   :  { %v1436_v57 = vsel %vm12202_vm5, %v8643_v60, %v8463_v20  ;;  %v1366_v20 = vpack.c.bf16 %v1358_v54, %v1358_v54 }
 0x298   :  { %v1437_v28 = vmul.f32 %v1436_v57, %v12350_v31  ;;  %v12354_v31 = vld [vmem:[#allocation56_spill] sm:$0xff] }
 0x299   :  { %1898 = vmatpush1.bf16.msra.mxu1 %v1727_v56  ;;  %v8654_v59 = vpop.permute.xlu1 %1473  ;;  %v12351_v56 = vld [vmem:[#allocation47_spill] sm:$0xff]  ;;  %v1630_v54 = vrot.slane %v1366_v20, 4 }
 0x29a   :  { %v8662_v48 = vpop.permute.xlu0 %1347  ;;  %1899 = vmatprep.subr.bf16.mxu1 %v1699_v5  ;;  %v1445_v6 = vpack.c.bf16 %v1437_v28, %v1437_v28 }
 0x29b   :  { %v1356_v11 = vsel %vm12207_vm7, %v8662_v48, %v8467_v49  ;;  %v1691_v12 = vsel %vm942_vm2, %v1326_v15, %v1630_v54  ;;  %v12357_v54 = vld [vmem:[#allocation50_spill] sm:$0xff] }
 0x29c   :  { %v1357_v17 = vmul.f32 %v1356_v11, %v12351_v56 }
 0x29d   :  { %1900 = vmatpush1.bf16.msra.mxu1 %v1695_v8  ;;  %v8671_v40 = vpop.permute.xlu1 %1381 }
 0x29e   :  { %v1592_v27 = vpop.permute.xlu0 %1591 }
 0x29f   :  { %v1598_v22 = vsel %vm812_vm0, %v1592_v27, %v8605_v9  ;;  %v1599_v8 = vsel %vm812_vm0, %v8543_v36, %v1592_v27  ;;  %v1645_v27 = vrot.slane %v1445_v6, 4 }
 0x2a0   :  { %7082 = vmatmul.mubr.msk.bf16.vlgmr.msra.gmra.mxu1 %vm12195_vm9, %v8673_v47 }
 0x2a1   :  { %v8691_v49 = vpop.permute.xlu1 %1387  ;;  %1999 = vmatprep.mubr.bf16.mxu1 %v12301_v0 }
 0x2a2   :  { %v1396_v51 = vsel %vm12206_vm6, %v8691_v49, %v8457_v30  ;;  %v1552_v57 = vpop.permute.xlu0 %1551  ;;  %v12356_v30 = vld [vmem:[#allocation61_spill] sm:$0xff] }
 0x2a3   :  { %v1397_v28 = vmul.f32 %v1396_v51, %v12352_v24  ;;  %v1558_v20 = vsel %vm730_vm1, %v1552_v57, %v8630_v53  ;;  %v1559_v11 = vsel %vm730_vm1, %v8560_v14, %v1552_v57  ;;  %v1365_v51 = vpack.c.bf16 %v1357_v17, %v1357_v17  ;;  %v12353_v24 = vld [vmem:[#allocation59_spill] sm:$0xff]  ;;  %v12355_v57 = vld [vmem:[#allocation57_spill] sm:$0xff] }
 0x2a4   :  { %v1570_v56 = vmul.f32 %v1558_v20, %v12353_v24  ;;  %v1609_v14 = vmul.f32 %v1599_v8, %v12354_v31  ;;  %v1610_v1 = vmul.f32 %v1598_v22, %v12355_v57  ;;  %v1569_v42 = vmul.f32 %v1559_v11, %v12356_v30  ;;  %v12358_v11 = vld [vmem:[#allocation66_spill] sm:$0xff] }
 0x2a5   :  { %v1405_v5 = vpack.c.bf16 %v1397_v28, %v1397_v28  ;;  %v8724_v41 = vpop.permute.xlu1 %1307  ;;  %v1392_v20 = vsel %vm12206_vm6, %v8524_v46, %v8671_v40  ;;  %v1629_v36 = vrot.slane %v1365_v51, 4 }
 0x2a6   :  { %v1316_v15 = vsel %vm12212_vm8, %v8724_v41, %v8461_v19  ;;  %v1512_v44 = vpop.permute.xlu0 %1511  ;;  %v1312_v19 = vsel %vm12212_vm8, %v8537_v21, %v8634_v63  ;;  %v1617_v28 = vpack.c.bf16 %v1609_v14, %v1609_v14  ;;  %v12361_v14 = vld [vmem:[#allocation68_spill] sm:$0xff] }
 0x2a7   :  { %v1317_v6 = vmul.f32 %v1316_v15, %v12357_v54  ;;  %v1518_v17 = vsel %vm12234_vm3, %v1512_v44, %v8640_v16  ;;  %v1519_v8 = vsel %vm12234_vm3, %v8582_v38, %v1512_v44  ;;  %v1719_v22 = vsel %vm942_vm2, %v1405_v5, %v1645_v27  ;;  %v12359_v5 = vld [vmem:[#allocation64_spill] sm:$0xff] }
 0x2a8   :  { %v1530_v15 = vmul.f32 %v1518_v17, %v12358_v11  ;;  %1857 = vmatpush1.bf16.msra.mxu0 %v1719_v22  ;;  %v1578_v38 = vpack.c.bf16 %v1570_v56, %v1570_v56  ;;  %v1529_v27 = vmul.f32 %v1519_v8, %v12359_v5  ;;  %v1577_v54 = vpack.c.bf16 %v1569_v42, %v1569_v42  ;;  %v12360_v42 = vld [vmem:[#allocation67_spill] sm:$0xff] }
 0x2a9   :  { %v1325_v44 = vpack.c.bf16 %v1317_v6, %v1317_v6  ;;  %v1556_v32 = vpop.permute.xlu1 %1555  ;;  %1858 = vmatprep.subr.bf16.mxu0 %v1691_v12  ;;  %v1618_v17 = vpack.c.bf16 %v1610_v1, %v1610_v1 }
 0x2aa   :  { %v1557_v21 = vsel %vm730_vm1, %v8630_v53, %v1556_v32  ;;  %v1564_v46 = vsel %vm730_vm1, %v1556_v32, %v8434_v10  ;;  %v1472_v57 = vpop.permute.xlu0 %1471  ;;  %v1538_v22 = vpack.c.bf16 %v1530_v15, %v1530_v15  ;;  %v12362_v53 = vld [vmem:[#allocation69_spill] sm:$0xff]  ;;  %v8770_v32 = vmul.f32 %v1312_v19, %v8221_v18 }
 0x2ab   :  { %v1478_v56 = vsel %vm12213_vm4, %v1472_v57, %v8654_v59  ;;  %v1479_v12 = vsel %vm12213_vm4, %v8570_v34, %v1472_v57  ;;  %v1571_v51 = vmul.f32 %v1557_v21, %v12360_v42  ;;  %v1687_v11 = vsel %vm942_vm2, %v1325_v44, %v1629_v36  ;;  %v12363_v15 = vld [vmem:[#allocation65_spill] sm:$0xff] }
 0x2ac   :  { %v1489_v6 = vmul.f32 %v1479_v12, %v12361_v14  ;;  %v1490_v8 = vmul.f32 %v1478_v56, %v12362_v53  ;;  %v1682_v10 = vrot.slane %v1578_v38, 4  ;;  %v1537_v1 = vpack.c.bf16 %v1529_v27, %v1529_v27  ;;  %1859 = vmatpush1.bf16.msra.mxu0 %v1687_v11 }
 0x2ad   :  { %v1572_v24 = vmul.f32 %v1564_v46, %v12363_v15  ;;  %v8773_v30 = vpop.permute.xlu1 %1423  ;;  %v8776_v34 = vmul.f32 %v1392_v20, %v8130_v3  ;;  %v1681_v57 = vrot.slane %v1577_v54, 4  ;;  %7083 = vmatprep.subr.msk.bf16.mxu0 %vm942_vm2, %v1618_v17  ;;  %v1833_v36 = vsel %vm942_vm2, %v1617_v28, 0  ;;  %v12364_v46 = vld [vmem:[#allocation62_spill] sm:$0xff] }
 0x2ae   :  { %v1498_v21 = vpack.c.bf16 %v1490_v8, %v1490_v8  ;;  %v1596_v56 = vpop.permute.xlu0 %1595  ;;  %v1497_v44 = vpack.c.bf16 %v1489_v6, %v1489_v6  ;;  %v1431_v19 = vsel %vm12202_vm5, %v8587_v50, %v8773_v30  ;;  %v1803_v20 = vsel %vm942_vm2, %v1538_v22, %v1682_v10 }
 0x2af   :  { %v1597_v11 = vsel %vm812_vm0, %v8605_v9, %v1596_v56  ;;  %v1579_v38 = vpack.c.bf16 %v1571_v51, %v1571_v51  ;;  %v1604_v27 = vsel %vm812_vm0, %v1596_v56, %v8428_v23  ;;  %7080 = vmatmul.mubr.msk.bf16.vlgmr.msra.gmra.mxu0 %vm12195_vm9, %v8673_v47  ;;  %v12365_v50 = vpack.c.bf16 %v8680_v29, %v8680_v29  ;;  %v12366_v9 = vld [vmem:[#allocation63_spill] sm:$0xff] }
 0x2b0   :  { %v1666_v54 = vrot.slane %v1498_v21, 4  ;;  %v1611_v28 = vmul.f32 %v1597_v11, %v12364_v46  ;;  %v1580_v12 = vpack.c.bf16 %v1572_v24, %v1572_v24  ;;  %v1612_v6 = vmul.f32 %v1604_v27, %v12366_v9  ;;  %1933 = vmatpush1.bf16.msra.mxu0 %v1833_v36  ;;  %1958 = vmatprep.mubr.bf16.mxu0 %v12301_v0 }
 0x2b1   :  { %v8797_v17 = vrot.slane %v12365_v50, 4  ;;  %v1476_v22 = vpop.permute.xlu1 %1475  ;;  %v1799_v51 = vsel %vm942_vm2, %v1537_v1, %v1681_v57  ;;  %v1442_v23 = vmul.f32 %v1431_v19, %v8122_v35  ;;  %1934 = vmatprep.subr.bf16.mxu0 %v1803_v20  ;;  %v1665_v21 = vrot.slane %v1497_v44, 4 }
 0x2b2   :  { %v1619_v8 = vpack.c.bf16 %v1611_v28, %v1611_v28  ;;  %v1477_v10 = vsel %vm12213_vm4, %v8654_v59, %v1476_v22  ;;  %v1484_v29 = vsel %vm12213_vm4, %v1476_v22, %v8450_v52  ;;  %v1516_v24 = vpop.permute.xlu0 %1515  ;;  %v1620_v56 = vpack.c.bf16 %v1612_v6, %v1612_v6  ;;  %v12368_v28 = vld [vmem:[#allocation72_spill] sm:$0xff] }
 0x2b3   :  { %v1491_v36 = vmul.f32 %v1477_v10, %v8085_v37  ;;  %v1492_v1 = vmul.f32 %v1484_v29, %v8080_v2  ;;  %v1517_v57 = vsel %vm12234_vm3, %v8640_v16, %v1516_v24  ;;  %v1524_v59 = vsel %vm12234_vm3, %v1516_v24, %v8453_v43 }
 0x2b4   :  { %v1839_v19 = vsel %vm942_vm2, %v1619_v8, 0  ;;  %v12367_v52 = vpack.c.bf16 %v8402_v4, %v8402_v4  ;;  %v1531_v27 = vmul.f32 %v1517_v57, %v8101_v26  ;;  %v1532_v50 = vmul.f32 %v1524_v59, %v12368_v28  ;;  %1935 = vmatpush1.bf16.msra.mxu0 %v1799_v51  ;;  %7085 = vmatprep.subr.msk.bf16.mxu1 %vm942_vm2, %v1620_v56 }
 0x2b5   :  { %v1499_v11 = vpack.c.bf16 %v1491_v36, %v1491_v36  ;;  %v1500_v20 = vpack.c.bf16 %v1492_v1, %v1492_v1  ;;  %v1344_v6 = vpop.permute.xlu1 %1343  ;;  %v1409_v16 = vpack.c.bf16 %v8776_v34, %v8776_v34  ;;  %v1683_v22 = vrot.slane %v1579_v38, 4  ;;  %1974 = vmatpush1.bf16.msra.mxu1 %v1839_v19  ;;  %v12369_v36 = vld [vmem:[#allocation83_spill] sm:$0xff] }
 0x2b6   :  { %v1771_v44 = vsel %vm942_vm2, %v12367_v52, %v1666_v54  ;;  %v1450_v43 = vpack.c.bf16 %v1442_v23, %v1442_v23  ;;  %v1351_v4 = vsel %vm12207_vm7, %v8612_v45, %v1344_v6  ;;  %v1384_v54 = vpop.permute.xlu0 %1383  ;;  %v1684_v8 = vrot.slane %v1580_v12, 4  ;;  %v12371_v45 = vld [vmem:[#allocation77_spill] sm:$0xff] }
 0x2b7   :  { %1936 = vmatprep.subr.bf16.mxu0 %v1771_v44  ;;  %v1668_v10 = vrot.slane %v1500_v20, 4  ;;  %v1539_v29 = vpack.c.bf16 %v1531_v27, %v1531_v27  ;;  %v1540_v24 = vpack.c.bf16 %v1532_v50, %v1532_v50  ;;  %v1667_v51 = vrot.slane %v1499_v11, 4  ;;  %v12374_v50 = vld [vmem:[#allocation85_spill] sm:$0xff] }
 0x2b8   :  { %v1362_v1 = vmul.f32 %v1351_v4, %v12369_v36  ;;  %v1391_v34 = vsel %vm12206_vm6, %v8671_v40, %v1384_v54  ;;  %v12370_v38 = vpack.c.bf16 %v8362_v39, %v8362_v39  ;;  %v12372_v19 = vpack.c.bf16 %v8391_v55, %v8391_v55  ;;  %v12375_v4 = vld [vmem:[#allocation79_spill] sm:$0xff]  ;;  %v12396_v36 = vld [vmem:[#allocation29_spill] sm:$0xff] }
 0x2b9   :  { %v1402_v56 = vmul.f32 %v1391_v34, %v12371_v45  ;;  %v1811_v12 = vsel %vm942_vm2, %v1540_v24, %v1684_v8  ;;  %v1304_v57 = vpop.permute.xlu1 %1303  ;;  %v1807_v59 = vsel %vm942_vm2, %v1539_v29, %v1683_v22  ;;  %v12373_v40 = vpack.c.bf16 %v8718_v25, %v8718_v25 }
 0x2ba   :  { %v1767_v23 = vsel %vm942_vm2, %v12370_v38, %v1665_v21  ;;  %v1779_v52 = vsel %vm942_vm2, %v12372_v19, %v1668_v10  ;;  %v1650_v39 = vrot.slane %v1450_v43, 4  ;;  %v1370_v11 = vpack.c.bf16 %v1362_v1, %v1362_v1  ;;  %1975 = vmatprep.subr.bf16.mxu1 %v1811_v12  ;;  %v1426_v20 = vpop.permute.xlu0 %1425  ;;  %v12376_v10 = vld [vmem:[#allocation78_spill] sm:$0xff] }
 0x2bb   :  { %1937 = vmatpush1.bf16.msra.mxu0 %v1767_v23  ;;  %v1633_v44 = vrot.slane %v12373_v40, 4  ;;  %v1311_v21 = vsel %vm12212_vm8, %v8634_v63, %v1304_v57  ;;  %v1410_v27 = vpack.c.bf16 %v1402_v56, %v1402_v56  ;;  %v1429_v55 = vsel %vm12202_vm5, %v1426_v20, %v8643_v60  ;;  %1976 = vmatpush1.bf16.msra.mxu1 %v1807_v59  ;;  %v12379_v19 = vld [vmem:[#allocation82_spill] sm:$0xff] }
 0x2bc   :  { %v1322_v22 = vmul.f32 %v1311_v21, %v12374_v50  ;;  %v1430_v25 = vsel %vm12202_vm5, %v8773_v30, %v1426_v20  ;;  %v1329_v43 = vpack.c.bf16 %v8770_v32, %v8770_v32  ;;  %v1444_v63 = vmul.f32 %v1429_v55, %v12376_v10  ;;  %1977 = vmatprep.subr.bf16.mxu1 %v1779_v52  ;;  %v12381_v21 = vld [vmem:[#allocation88_spill] sm:$0xff] }
 0x2bd   :  { %v1443_v8 = vmul.f32 %v1430_v25, %v12375_v4  ;;  %v1735_v29 = vsel %vm942_vm2, %v1409_v16, %v8797_v17  ;;  %v1634_v24 = vrot.slane %v1370_v11, 4  ;;  %v1386_v34 = vpop.permute.xlu1 %1385  ;;  %v1739_v60 = vsel %vm942_vm2, %v1410_v27, %v1650_v39  ;;  %v12378_v16 = vld [vmem:[#allocation81_spill] sm:$0xff] }
 0x2be   :  { %v1330_v1 = vpack.c.bf16 %v1322_v22, %v1322_v22  ;;  %v12377_v30 = vpack.c.bf16 %v8378_v62, %v8378_v62  ;;  %v1452_v32 = vpack.c.bf16 %v1444_v63, %v1444_v63  ;;  %v1389_v56 = vsel %vm12206_vm6, %v1386_v34, %v8691_v49  ;;  %1938 = vmatprep.subr.bf16.mxu0 %v1739_v60  ;;  %v1346_v17 = vpop.permute.xlu0 %1345  ;;  %v12380_v49 = vld [vmem:[#allocation89_spill] sm:$0xff]  ;;  %v12383_v60 = vld [vmem:[#allocation87_spill] sm:$0xff] }
 0x2bf   :  { %v1451_v23 = vpack.c.bf16 %v1443_v8, %v1443_v8  ;;  %v1390_v12 = vsel %vm12206_vm6, %v1384_v54, %v1386_v34  ;;  %v1404_v52 = vmul.f32 %v1389_v56, %v12379_v19  ;;  %v1349_v62 = vsel %vm12207_vm7, %v1346_v17, %v8662_v48  ;;  %1939 = vmatpush1.bf16.msra.mxu0 %v1735_v29  ;;  %v12382_v29 = vld [vmem:[#allocation86_spill] sm:$0xff] }
 0x2c0   :  { %v1775_v38 = vsel %vm942_vm2, %v12377_v30, %v1667_v51  ;;  %v1403_v59 = vmul.f32 %v1390_v12, %v12378_v16  ;;  %v1350_v51 = vsel %vm12207_vm7, %v1344_v6, %v1346_v17  ;;  %v1652_v39 = vrot.slane %v1452_v32, 4  ;;  %v12395_v16 = vld [vmem:[#allocation38_spill] sm:$0xff] }
 0x2c1   :  { %v1651_v40 = vrot.slane %v1451_v23, 4  ;;  %v1363_v11 = vmul.f32 %v1350_v51, %v12380_v49  ;;  %v1364_v54 = vmul.f32 %v1349_v62, %v12381_v21  ;;  %1978 = vmatpush1.bf16.msra.mxu1 %v1775_v38  ;;  %v1412_v27 = vpack.c.bf16 %v1404_v52, %v1404_v52  ;;  %v1306_v55 = vpop.permute.xlu1 %1305 }
 0x2c2   :  { %v1411_v20 = vpack.c.bf16 %v1403_v59, %v1403_v59  ;;  %v1707_v22 = vsel %vm942_vm2, %v1330_v1, %v1634_v24  ;;  %v1703_v25 = vsel %vm942_vm2, %v1329_v43, %v1633_v44  ;;  %v1309_v6 = vsel %vm12212_vm8, %v1306_v55, %v8724_v41 }
 0x2c3   :  { %v1371_v8 = vpack.c.bf16 %v1363_v11, %v1363_v11  ;;  %v1372_v48 = vpack.c.bf16 %v1364_v54, %v1364_v54  ;;  %1940 = vmatprep.subr.bf16.mxu0 %v1707_v22  ;;  %v1310_v63 = vsel %vm12212_vm8, %v1304_v57, %v1306_v55  ;;  %v1324_v30 = vmul.f32 %v1309_v6, %v12383_v60 }
 0x2c4   :  { %v1323_v34 = vmul.f32 %v1310_v63, %v12382_v29  ;;  %1941 = vmatpush1.bf16.msra.mxu0 %v1703_v25  ;;  %v1747_v24 = vsel %vm942_vm2, %v1412_v27, %v1652_v39  ;;  %v1743_v1 = vsel %vm942_vm2, %v1411_v20, %v1651_v40 }
 0x2c5   :  { %v1635_v44 = vrot.slane %v1371_v8, 4  ;;  %v1636_v43 = vrot.slane %v1372_v48, 4  ;;  %1979 = vmatprep.subr.bf16.mxu1 %v1747_v24  ;;  %v1332_v23 = vpack.c.bf16 %v1324_v30, %v1324_v30 }
 0x2c6   :  { %v1331_v38 = vpack.c.bf16 %v1323_v34, %v1323_v34  ;;  %1980 = vmatpush1.bf16.msra.mxu1 %v1743_v1 }
 0x2c7   :  { %7084 = vmatmul.mubr.msk.bf16.vlgmr.msra.gmra.mxu0 %vm12195_vm9, %v8673_v47  ;;  %v1715_v41 = vsel %vm942_vm2, %v1332_v23, %v1636_v43 }
 0x2c8   :  { %v1711_v57 = vsel %vm942_vm2, %v1331_v38, %v1635_v44  ;;  %2588 = vmatprep.mubr.bf16.mxu0 %v12301_v0  ;;  %1981 = vmatprep.subr.bf16.mxu1 %v1715_v41 }
 0x2ca   :  { %1982 = vmatpush1.bf16.msra.mxu1 %v1711_v57 }
 0x2cb   :  { %v8902_v59 = vpop.permute.xlu0 %1814 }
 0x2cd   :  { %7086 = vmatmul.mubr.msk.bf16.vlgmr.msra.gmra.mxu1 %vm12195_vm9, %v8673_v47 }
 0x2ce   :  { %2629 = vmatprep.mubr.bf16.mxu1 %v12301_v0 }
 0x360   :  { %v1919_v32 = vpop.f32.mrf.mxu1 }
 0x361   :  { %v8935_v20 = vadd.f32 %v1919_v32, %v8902_v59 }
 0x362   :  { %v1921_v56 = vpop.f32.mrf.mxu1 }
 0x363   :  { %v8958_v6 = vadd.f32 %v1921_v56, %v8902_v59 }
 0x364   :  { %v1923_v12 = vpop.f32.mrf.mxu1 }
 0x366   :  { %v1924_v17 = vpop.f32.mrf.mxu1 }
 0x36f   :  { %v1878_v52 = vpop.f32.mrf.mxu0 }
 0x370   :  { %v8905_v62 = vadd.f32 %v1878_v52, %v8902_v59 }
 0x371   :  { %v1880_v51 = vpop.f32.mrf.mxu0 }
 0x372   :  { %12384 = vst [vmem:[#allocation90_spill] sm:$0xff] %v8905_v62  ;;  %2216 = vrot.lane.b32.xlu0 %v8905_v62, %s7418_s19  ;;  %2296 = vrot.lane.b32.xlu1 %v8905_v62, %s7416_s3  ;;  %v8920_v39 = vadd.f32 %v1880_v51, %v8902_v59  ;;  %v12389_v51 = vld [vmem:[#allocation21_spill] sm:$0xff] }
 0x373   :  { %v1882_v47 = vpop.f32.mrf.mxu0 }
 0x374   :  { %12385 = vst [vmem:[#allocation91_spill] sm:$0xff] %v8920_v39 }
 0x375   :  { %v1883_v40 = vpop.f32.mrf.mxu0 }
 0x376   :  { %2128 = vrot.lane.b32.xlu0 %v8905_v62, %s7420_s21  ;;  %2256 = vrot.lane.b32.xlu1 %v8905_v62, %s7417_s4 }
 0x37a   :  { %2048 = vrot.lane.b32.xlu0 %v8905_v62, %s7422_s23  ;;  %2176 = vrot.lane.b32.xlu1 %v8905_v62, %s7419_s20 }
 0x37e   :  { %2218 = vrot.lane.b32.xlu0 %v8920_v39, %s7418_s19  ;;  %2088 = vrot.lane.b32.xlu1 %v8905_v62, %s7421_s22 }
 0x382   :  { %2090 = vrot.lane.b32.xlu0 %v8920_v39, %s7421_s22  ;;  %2008 = vrot.lane.b32.xlu1 %v8905_v62, %s7423_s24 }
 0x386   :  { %2010 = vrot.lane.b32.xlu0 %v8920_v39, %s7423_s24  ;;  %2298 = vrot.lane.b32.xlu1 %v8920_v39, %s7416_s3 }
 0x387   :  { %v1960_v11 = vpop.f32.mrf.mxu0 }
 0x388   :  { %v8981_v63 = vadd.f32 %v1960_v11, %v8902_v59 }
 0x389   :  { %v1962_v54 = vpop.f32.mrf.mxu0 }
 0x38a   :  { %2300 = vrot.lane.b32.xlu0 %v8935_v20, %s7416_s3  ;;  %2258 = vrot.lane.b32.xlu1 %v8920_v39, %s7417_s4  ;;  %v8996_v34 = vadd.f32 %v1962_v54, %v8902_v59 }
 0x38b   :  { %v1964_v27 = vpop.f32.mrf.mxu0 }
 0x38d   :  { %v2001_v22 = vpop.f32.mrf.mxu1  ;;  %v1965_v55 = vpop.f32.mrf.mxu0 }
 0x38e   :  { %2260 = vrot.lane.b32.xlu0 %v8935_v20, %s7417_s4  ;;  %2178 = vrot.lane.b32.xlu1 %v8920_v39, %s7419_s20  ;;  %v9011_v30 = vadd.f32 %v2001_v22, %v8902_v59  ;;  %v12390_v22 = vld [vmem:[#allocation20_spill] sm:$0xff] }
 0x38f   :  { %v2003_v25 = vpop.f32.mrf.mxu1 }
 0x390   :  { %v9018_v24 = vadd.f32 %v2003_v25, %v8902_v59 }
 0x391   :  { %v2005_v8 = vpop.f32.mrf.mxu1 }
 0x392   :  { %2180 = vrot.lane.b32.xlu0 %v8935_v20, %s7419_s20  ;;  %2130 = vrot.lane.b32.xlu1 %v8920_v39, %s7420_s21 }
 0x393   :  { %v2006_v48 = vpop.f32.mrf.mxu1 }
 0x396   :  { %2092 = vrot.lane.b32.xlu0 %v8935_v20, %s7421_s22  ;;  %2050 = vrot.lane.b32.xlu1 %v8920_v39, %s7422_s23 }
 0x39a   :  { %2012 = vrot.lane.b32.xlu0 %v8935_v20, %s7423_s24  ;;  %2220 = vrot.lane.b32.xlu1 %v8935_v20, %s7418_s19 }
 0x39e   :  { %2302 = vrot.lane.b32.xlu0 %v8958_v6, %s7416_s3  ;;  %2132 = vrot.lane.b32.xlu1 %v8935_v20, %s7420_s21 }
 0x3a2   :  { %2262 = vrot.lane.b32.xlu0 %v8958_v6, %s7417_s4  ;;  %2052 = vrot.lane.b32.xlu1 %v8935_v20, %s7422_s23 }
 0x3a6   :  { %2182 = vrot.lane.b32.xlu0 %v8958_v6, %s7419_s20  ;;  %2222 = vrot.lane.b32.xlu1 %v8958_v6, %s7418_s19 }
 0x3aa   :  { %2134 = vrot.lane.b32.xlu0 %v8958_v6, %s7420_s21  ;;  %2094 = vrot.lane.b32.xlu1 %v8958_v6, %s7421_s22 }
 0x3ae   :  { %2054 = vrot.lane.b32.xlu0 %v8958_v6, %s7422_s23  ;;  %2014 = vrot.lane.b32.xlu1 %v8958_v6, %s7423_s24 }
 0x3b2   :  { %2224 = vrot.lane.b32.xlu0 %v8981_v63, %s7418_s19  ;;  %2304 = vrot.lane.b32.xlu1 %v8981_v63, %s7416_s3 }
 0x3b6   :  { %2136 = vrot.lane.b32.xlu0 %v8981_v63, %s7420_s21  ;;  %2264 = vrot.lane.b32.xlu1 %v8981_v63, %s7417_s4 }
 0x3ba   :  { %2096 = vrot.lane.b32.xlu0 %v8981_v63, %s7421_s22  ;;  %2184 = vrot.lane.b32.xlu1 %v8981_v63, %s7419_s20 }
 0x3be   :  { %2306 = vrot.lane.b32.xlu0 %v8996_v34, %s7416_s3  ;;  %2226 = vrot.lane.b32.xlu1 %v8996_v34, %s7418_s19 }
 0x3c2   :  { %2266 = vrot.lane.b32.xlu0 %v8996_v34, %s7417_s4  ;;  %2138 = vrot.lane.b32.xlu1 %v8996_v34, %s7420_s21 }
 0x3c6   :  { %2186 = vrot.lane.b32.xlu0 %v8996_v34, %s7419_s20  ;;  %2098 = vrot.lane.b32.xlu1 %v8996_v34, %s7421_s22 }
 0x3ca   :  { %2228 = vrot.lane.b32.xlu0 %v9011_v30, %s7418_s19  ;;  %2308 = vrot.lane.b32.xlu1 %v9011_v30, %s7416_s3 }
 0x3ce   :  { %2142 = vrot.lane.b32.xlu0 %v9018_v24, %s7420_s21  ;;  %2268 = vrot.lane.b32.xlu1 %v9011_v30, %s7417_s4 }
 0x3d2   :  { %2062 = vrot.lane.b32.xlu0 %v9018_v24, %s7422_s23  ;;  %2188 = vrot.lane.b32.xlu1 %v9011_v30, %s7419_s20 }
 0x3d6   :  { %2140 = vrot.lane.b32.xlu0 %v9011_v30, %s7420_s21  ;;  %2102 = vrot.lane.b32.xlu1 %v9018_v24, %s7421_s22 }
 0x3da   :  { %2310 = vrot.lane.b32.xlu0 %v9018_v24, %s7416_s3  ;;  %2022 = vrot.lane.b32.xlu1 %v9018_v24, %s7423_s24 }
 0x3de   :  { %2230 = vrot.lane.b32.xlu0 %v9018_v24, %s7418_s19  ;;  %2056 = vrot.lane.b32.xlu1 %v8981_v63, %s7422_s23 }
 0x3e2   :  { %2058 = vrot.lane.b32.xlu0 %v8996_v34, %s7422_s23  ;;  %2270 = vrot.lane.b32.xlu1 %v9018_v24, %s7417_s4 }
 0x3e4   :  { %v9044_v1 = vpop.permute.xlu0 %2216  ;;  %v9046_v44 = vpop.permute.xlu1 %2296 }
 0x3e5   :  { %12386 = vst [vmem:[#allocation92_spill] sm:$0xff] %v9044_v1 }
 0x3e6   :  { %2016 = vrot.lane.b32.xlu0 %v8981_v63, %s7423_s24  ;;  %2190 = vrot.lane.b32.xlu1 %v9018_v24, %s7419_s20 }
 0x3e8   :  { %v9052_v43 = vpop.permute.xlu0 %2128  ;;  %v9054_v38 = vpop.permute.xlu1 %2256 }
 0x3e9   :  { %12387 = vst [vmem:[#allocation93_spill] sm:$0xff] %v9054_v38 }
 0x3ea   :  { %2060 = vrot.lane.b32.xlu0 %v9011_v30, %s7422_s23  ;;  %2100 = vrot.lane.b32.xlu1 %v9011_v30, %s7421_s22 }
 0x3ec   :  { %v9060_v23 = vpop.permute.xlu0 %2048  ;;  %v9062_v41 = vpop.permute.xlu1 %2176 }
 0x3ed   :  { %12388 = vst [vmem:[#allocation94_spill] sm:$0xff] %v9062_v41 }
 0x3ee   :  { %2018 = vrot.lane.b32.xlu1 %v8996_v34, %s7423_s24 }
 0x3f0   :  { %v2219_v57 = vpop.permute.xlu0 %2218  ;;  %v9066_v32 = vpop.permute.xlu1 %2088 }
 0x3f2   :  { %2020 = vrot.lane.b32.xlu1 %v9011_v30, %s7423_s24 }
 0x3f4   :  { %v9070_v56 = vpop.permute.xlu0 %2090  ;;  %v9072_v12 = vpop.permute.xlu1 %2008 }
 0x3f8   :  { %v9074_v17 = vpop.permute.xlu0 %2010  ;;  %v2299_v59 = vpop.permute.xlu1 %2298 }
 0x3f9   :  { %v2318_v52 = vsel %vm812_vm0, %v9046_v44, %v2299_v59 }
 0x3fa   :  { %v2320_v47 = vmul.f32 %v2318_v52, %v12389_v51 }
 0x3fc   :  { %v9080_v40 = vpop.permute.xlu0 %2300  ;;  %v2259_v11 = vpop.permute.xlu1 %2258  ;;  %v2328_v27 = vpack.c.bf16 %v2320_v47, %v2320_v47 }
 0x3fd   :  { %v2317_v54 = vsel %vm812_vm0, %v2299_v59, %v9080_v40  ;;  %v2278_v52 = vsel %vm730_vm1, %v9054_v38, %v2259_v11 }
 0x3fe   :  { %v2321_v55 = vmul.f32 %v2317_v54, %v12390_v22  ;;  %v2533_v60 = vsel %vm942_vm2, %v2328_v27, 0  ;;  %v12391_v54 = vld [vmem:[#allocation28_spill] sm:$0xff] }
 0x3ff   :  { %v12393_v27 = vld [vmem:[#allocation32_spill] sm:$0xff] }
 0x400   :  { %v2329_v25 = vpack.c.bf16 %v2321_v55, %v2321_v55  ;;  %v9086_v8 = vpop.permute.xlu0 %2260  ;;  %v2179_v48 = vpop.permute.xlu1 %2178  ;;  %v2280_v55 = vmul.f32 %v2278_v52, %v12391_v54  ;;  %v2238_v52 = vsel %vm12234_vm3, %v9044_v1, %v2219_v57  ;;  %v12394_v54 = vld [vmem:[#allocation34_spill] sm:$0xff] }
 0x401   :  { %v2277_v59 = vsel %vm730_vm1, %v2259_v11, %v9086_v8  ;;  %v2240_v2 = vmul.f32 %v2238_v52, %v12396_v36  ;;  %v12398_v52 = vld [vmem:[#allocation40_spill] sm:$0xff] }
 0x402   :  { %7087 = vmatprep.subr.msk.bf16.mxu0 %vm942_vm2, %v2329_v25  ;;  %v12392_v25 = vld [vmem:[#allocation24_spill] sm:$0xff] }
 0x403   :  { %2563 = vmatpush1.bf16.msra.mxu0 %v2533_v60  ;;  %v2281_v22 = vmul.f32 %v2277_v59, %v12392_v25  ;;  %v2198_v60 = vsel %vm12213_vm4, %v9062_v41, %v2179_v48  ;;  %v2288_v59 = vpack.c.bf16 %v2280_v55, %v2280_v55  ;;  %v12397_v41 = vld [vmem:[#allocation27_spill] sm:$0xff]  ;;  %v2110_v55 = vsel %vm12206_vm6, %v9066_v32, %v9070_v56 }
 0x404   :  { %v2181_v51 = vpop.permute.xlu0 %2180  ;;  %v9093_v29 = vpop.permute.xlu1 %2130  ;;  %v2200_v25 = vmul.f32 %v2198_v60, %v12394_v54  ;;  %v2248_v28 = vpack.c.bf16 %v2240_v2, %v2240_v2  ;;  %v2113_v36 = vmul.f32 %v2110_v55, %v12398_v52  ;;  %v2168_v2 = vpack.c.bf16 %v8905_v62, %v8905_v62  ;;  %v12403_v52 = vld [vmem:[#allocation36_spill] sm:$0xff] }
 0x405   :  { %v2197_v47 = vsel %vm12213_vm4, %v2179_v48, %v2181_v51  ;;  %v2150_v11 = vsel %vm12202_vm5, %v9052_v43, %v9093_v29  ;;  %v2289_v19 = vpack.c.bf16 %v2281_v22, %v2281_v22  ;;  %v2392_v60 = vrot.slane %v2288_v59, 4 }
 0x406   :  { %v2201_v50 = vmul.f32 %v2197_v47, %v12393_v27  ;;  %v2153_v47 = vmul.f32 %v2150_v11, %v12395_v16  ;;  %v2208_v22 = vpack.c.bf16 %v2200_v25, %v2200_v25 }
 0x407   :  { %v2498_v26 = vsel %vm942_vm2, %v2248_v28, %v2392_v60 }
 0x408   :  { %v9106_v21 = vpop.permute.xlu0 %2092  ;;  %v9108_v49 = vpop.permute.xlu1 %2050  ;;  %v2209_v48 = vpack.c.bf16 %v2201_v50, %v2201_v50  ;;  %v2393_v50 = vrot.slane %v2289_v19, 4  ;;  %v2161_v11 = vpack.c.bf16 %v2153_v47, %v2153_v47 }
 0x40a   :  { %v2377_v54 = vrot.slane %v2209_v48, 4  ;;  %v2361_v59 = vrot.slane %v2161_v11, 4  ;;  %v2121_v48 = vpack.c.bf16 %v2113_v36, %v2113_v36  ;;  %v12400_v36 = vld [vmem:[#allocation26_spill] sm:$0xff] }
 0x40c   :  { %v9119_v27 = vpop.permute.xlu0 %2012  ;;  %v2221_v18 = vpop.permute.xlu1 %2220 }
 0x40d   :  { %v2237_v37 = vsel %vm12234_vm3, %v2219_v57, %v2221_v18 }
 0x40e   :  { %v2241_v4 = vmul.f32 %v2237_v37, %v12397_v41  ;;  %v2169_v37 = vpack.c.bf16 %v8920_v39, %v8920_v39  ;;  %v2376_v41 = vrot.slane %v2208_v22, 4  ;;  %v2438_v22 = vsel %vm942_vm2, %v2121_v48, %v2361_v59  ;;  %v12404_v39 = vld [vmem:[#allocation33_spill] sm:$0xff] }
 0x410   :  { %v2249_v16 = vpack.c.bf16 %v2241_v4, %v2241_v4  ;;  %v2303_v15 = vpop.permute.xlu0 %2302  ;;  %v2133_v42 = vpop.permute.xlu1 %2132  ;;  %v2470_v4 = vsel %vm942_vm2, %v2169_v37, %v2377_v54 }
 0x412   :  { %v2502_v57 = vsel %vm942_vm2, %v2249_v16, %v2393_v50  ;;  %v2466_v16 = vsel %vm942_vm2, %v2168_v2, %v2376_v41 }
 0x413   :  { %2564 = vmatprep.subr.bf16.mxu0 %v2502_v57 }
 0x414   :  { %v2263_v25 = vpop.permute.xlu0 %2262  ;;  %2565 = vmatpush1.bf16.msra.mxu0 %v2498_v26  ;;  %v2053_v19 = vpop.permute.xlu1 %2052  ;;  %v2316_v26 = vsel %vm812_vm0, %v9080_v40, %v2303_v15 }
 0x415   :  { %2566 = vmatprep.subr.bf16.mxu0 %v2470_v4  ;;  %v2322_v41 = vmul.f32 %v2316_v26, %v12400_v36  ;;  %v2276_v11 = vsel %vm730_vm1, %v9086_v8, %v2263_v25  ;;  %v12401_v8 = vld [vmem:[#allocation25_spill] sm:$0xff] }
 0x417   :  { %v2330_v4 = vpack.c.bf16 %v2322_v41, %v2322_v41 }
 0x418   :  { %v2183_v47 = vpop.permute.xlu0 %2182  ;;  %v2223_v55 = vpop.permute.xlu1 %2222  ;;  %2567 = vmatpush1.bf16.msra.mxu0 %v2466_v16 }
 0x419   :  { %2568 = vmatprep.subr.bf16.mxu0 %v2438_v22  ;;  %v2196_v59 = vsel %vm12213_vm4, %v2181_v51, %v2183_v47  ;;  %v2236_v2 = vsel %vm12234_vm3, %v2221_v18, %v2223_v55  ;;  %v12402_v22 = vld [vmem:[#allocation31_spill] sm:$0xff]  ;;  %v2149_v18 = vsel %vm12202_vm5, %v9093_v29, %v2133_v42  ;;  %v12408_v29 = vld [vmem:[#allocation42_spill] sm:$0xff] }
 0x41a   :  { %v2282_v26 = vmul.f32 %v2276_v11, %v12402_v22  ;;  %v2202_v36 = vmul.f32 %v2196_v59, %v12403_v52  ;;  %v2242_v38 = vmul.f32 %v2236_v2, %v12404_v39  ;;  %v12407_v59 = vld [vmem:[#allocation30_spill] sm:$0xff]  ;;  %v2539_v52 = vsel %vm942_vm2, %v2330_v4, 0 }
 0x41b   :  { %v2154_v2 = vmul.f32 %v2149_v18, %v12408_v29 }
 0x41c   :  { %v9139_v28 = vpop.permute.xlu0 %2134  ;;  %v9141_v60 = vpop.permute.xlu1 %2094  ;;  %v2290_v10 = vpack.c.bf16 %v2282_v26, %v2282_v26 }
 0x41d   :  { %v2148_v48 = vsel %vm12202_vm5, %v2133_v42, %v9139_v28  ;;  %v2108_v26 = vsel %vm12206_vm6, %v9106_v21, %v9141_v60 }
 0x41e   :  { %v2115_v39 = vmul.f32 %v2108_v26, %v12342_v7  ;;  %v12410_v26 = vld [vmem:[#allocation44_spill] sm:$0xff] }
 0x420   :  { %v9146_v54 = vpop.permute.xlu0 %2054  ;;  %v9148_v50 = vpop.permute.xlu1 %2014 }
 0x421   :  { %12399 = vst [vmem:[#allocation95_spill] sm:$0xff] %v9146_v54  ;;  %v2068_v42 = vsel %vm12207_vm7, %v2053_v19, %v9146_v54 }
 0x422   :  { %v2075_v18 = vmul.f32 %v2068_v42, %v12343_v58 }
 0x424   :  { %v9154_v57 = vpop.permute.xlu0 %2224  ;;  %v9156_v37 = vpop.permute.xlu1 %2304 }
 0x425   :  { %v2315_v40 = vsel %vm812_vm0, %v2303_v15, %v9156_v37  ;;  %v2235_v51 = vsel %vm12234_vm3, %v2223_v55, %v9154_v57  ;;  %v12406_v55 = vld [vmem:[#allocation35_spill] sm:$0xff] }
 0x426   :  { %v2323_v16 = vmul.f32 %v2315_v40, %v12401_v8  ;;  %v12405_v40 = vld [vmem:[#allocation43_spill] sm:$0xff]  ;;  %v2243_v22 = vmul.f32 %v2235_v51, %v12406_v55  ;;  %v2162_v55 = vpack.c.bf16 %v2154_v2, %v2154_v2  ;;  %v2171_v2 = vpack.c.bf16 %v8958_v6, %v8958_v6 }
 0x427   :  { %v2155_v8 = vmul.f32 %v2148_v48, %v12405_v40  ;;  %v2210_v48 = vpack.c.bf16 %v2202_v36, %v2202_v36 }
 0x428   :  { %v2331_v62 = vpack.c.bf16 %v2323_v16, %v2323_v16  ;;  %v9174_v15 = vpop.permute.xlu0 %2136  ;;  %v9176_v41 = vpop.permute.xlu1 %2264 }
 0x429   :  { %v2275_v11 = vsel %vm730_vm1, %v2263_v25, %v9176_v41  ;;  %v2069_v25 = vsel %vm12207_vm7, %v9108_v49, %v2053_v19  ;;  %v2163_v4 = vpack.c.bf16 %v2155_v8, %v2155_v8  ;;  %v2251_v19 = vpack.c.bf16 %v2243_v22, %v2243_v22 }
 0x42a   :  { %v2283_v16 = vmul.f32 %v2275_v11, %v12407_v59  ;;  %7089 = vmatprep.subr.msk.bf16.mxu1 %vm942_vm2, %v2331_v62  ;;  %v2250_v62 = vpack.c.bf16 %v2242_v38, %v2242_v38  ;;  %v2109_v38 = vsel %vm12206_vm6, %v9070_v56, %v9106_v21  ;;  %v2394_v8 = vrot.slane %v2290_v10, 4 }
 0x42b   :  { %2604 = vmatpush1.bf16.msra.mxu1 %v2539_v52  ;;  %v2074_v22 = vmul.f32 %v2069_v25, %v12346_v33  ;;  %v2378_v42 = vrot.slane %v2210_v48, 4  ;;  %v2363_v21 = vrot.slane %v2163_v4, 4  ;;  %v2083_v56 = vpack.c.bf16 %v2075_v18, %v2075_v18 }
 0x42c   :  { %v2291_v51 = vpack.c.bf16 %v2283_v16, %v2283_v16  ;;  %v9197_v40 = vpop.permute.xlu0 %2096  ;;  %v9199_v11 = vpop.permute.xlu1 %2184  ;;  %v12409_v16 = vld [vmem:[#allocation37_spill] sm:$0xff]  ;;  %v2506_v10 = vsel %vm942_vm2, %v2250_v62, %v2394_v8  ;;  %v2170_v25 = vpack.c.bf16 %v8935_v20, %v8935_v20  ;;  %v2029_v48 = vsel %vm12212_vm8, %v9074_v17, %v9119_v27 }
 0x42d   :  { %v2195_v52 = vsel %vm12213_vm4, %v2183_v47, %v9199_v11  ;;  %v2362_v8 = vrot.slane %v2162_v55, 4  ;;  %v2070_v55 = vsel %vm12207_vm7, %v9060_v23, %v9108_v49 }
 0x42e   :  { %v2395_v36 = vrot.slane %v2291_v51, 4  ;;  %v2203_v29 = vmul.f32 %v2195_v52, %v12409_v16  ;;  %v2028_v51 = vsel %vm12212_vm8, %v9119_v27, %v9148_v50  ;;  %v2114_v52 = vmul.f32 %v2109_v38, %v12410_v26 }
 0x42f   :  { %v2474_v38 = vsel %vm942_vm2, %v2170_v25, %v2378_v42  ;;  %v2034_v27 = vmul.f32 %v2029_v48, %v12347_v61  ;;  %v9258_v48 = vld [vmem:[#allocation6 + $0x20] sm:$0x1] }
 0x430   :  { %v2211_v59 = vpack.c.bf16 %v2203_v29, %v2203_v29  ;;  %v9215_v54 = vpop.permute.xlu0 %2306  ;;  %v9217_v1 = vpop.permute.xlu1 %2226  ;;  %v2510_v47 = vsel %vm942_vm2, %v2251_v19, %v2395_v36  ;;  %v2123_v19 = vpack.c.bf16 %v2115_v39, %v2115_v39  ;;  %v12411_v36 = vld [vmem:[#allocation53_spill] sm:$0xff]  ;;  %v2122_v58 = vpack.c.bf16 %v2114_v52, %v2114_v52 }
 0x431   :  { %2605 = vmatprep.subr.bf16.mxu1 %v2510_v47  ;;  %v2035_v62 = vmul.f32 %v2028_v51, %v12411_v36  ;;  %v2082_v47 = vpack.c.bf16 %v2074_v22, %v2074_v22 }
 0x432   :  { %v2379_v29 = vrot.slane %v2211_v59, 4  ;;  %2606 = vmatpush1.bf16.msra.mxu1 %v2506_v10  ;;  %v2347_v10 = vrot.slane %v2083_v56, 4  ;;  %v2446_v33 = vsel %vm942_vm2, %v2123_v19, %v2363_v21  ;;  %v2442_v42 = vsel %vm942_vm2, %v2122_v58, %v2362_v8  ;;  %v12413_v8 = vld [vmem:[#allocation48_spill] sm:$0xff] }
 0x433   :  { %v2043_v39 = vpack.c.bf16 %v2035_v62, %v2035_v62  ;;  %v2346_v22 = vrot.slane %v2082_v47, 4  ;;  %v2042_v56 = vpack.c.bf16 %v2034_v27, %v2034_v27  ;;  %v2030_v58 = vsel %vm12212_vm8, %v9072_v12, %v9074_v17 }
 0x434   :  { %v2267_v4 = vpop.permute.xlu0 %2266  ;;  %v9236_v18 = vpop.permute.xlu1 %2138  ;;  %v2478_v59 = vsel %vm942_vm2, %v2171_v2, %v2379_v29  ;;  %v12412_v29 = vld [vmem:[#allocation46_spill] sm:$0xff]  ;;  %v2033_v47 = vmul.f32 %v2030_v58, %v12413_v8  ;;  %v2147_v17 = vsel %vm12202_vm5, %v9139_v28, %v9174_v15 }
 0x435   :  { %2607 = vmatprep.subr.bf16.mxu1 %v2478_v59  ;;  %v2414_v21 = vsel %vm942_vm2, %v2043_v39, %v2347_v10  ;;  %v2410_v25 = vsel %vm942_vm2, %v2042_v56, %v2346_v22  ;;  %v2234_v10 = vsel %vm12234_vm3, %v9154_v57, %v9217_v1  ;;  %v2274_v28 = vsel %vm730_vm1, %v9176_v41, %v2267_v4 }
 0x436   :  { %2608 = vmatpush1.bf16.msra.mxu1 %v2474_v38  ;;  %v2107_v38 = vsel %vm12206_vm6, %v9141_v60, %v9197_v40  ;;  %v2146_v60 = vsel %vm12202_vm5, %v9174_v15, %v9236_v18  ;;  %v9326_v58 = vmul.f32 %v2234_v10, %v12359_v5 }
 0x437   :  { %2609 = vmatprep.subr.bf16.mxu1 %v2446_v33  ;;  %v2073_v33 = vmul.f32 %v2070_v55, %v12412_v29  ;;  %v12414_v55 = vld [vmem:[#allocation39_spill] sm:$0xff]  ;;  %v9316_v56 = vmul.f32 %v2107_v38, %v8130_v3 }
 0x438   :  { %v9242_v51 = vpop.permute.xlu0 %2186  ;;  %v9244_v36 = vpop.permute.xlu1 %2098 }
 0x439   :  { %v2081_v49 = vpack.c.bf16 %v2073_v33, %v2073_v33  ;;  %v2194_v39 = vsel %vm12213_vm4, %v9199_v11, %v9242_v51 }
 0x43a   :  { %2610 = vmatpush1.bf16.msra.mxu1 %v2442_v42  ;;  %v2204_v41 = vmul.f32 %v2194_v39, %v12361_v14 }
 0x43b   :  { %2611 = vmatprep.subr.bf16.mxu1 %v2414_v21  ;;  %v12415_v21 = vld [vmem:[#allocation74_spill] sm:$0xff] }
 0x43c   :  { %v9253_v2 = vpop.permute.xlu0 %2228  ;;  %v9255_v52 = vpop.permute.xlu1 %2308  ;;  %v9313_v15 = vmul.f32 %v2147_v17, %v12415_v21  ;;  %v2157_v17 = vmul.f32 %v2146_v60, %v8122_v35  ;;  %v2212_v21 = vpack.c.bf16 %v2204_v41, %v2204_v41 }
 0x43e   :  { %2612 = vmatpush1.bf16.msra.mxu1 %v2410_v25  ;;  %v2041_v25 = vpack.c.bf16 %v2033_v47, %v2033_v47  ;;  %v2106_v47 = vsel %vm12206_vm6, %v9197_v40, %v9244_v36  ;;  %v2165_v35 = vpack.c.bf16 %v2157_v17, %v2157_v17 }
 0x440   :  { %v9264_v19 = vpop.permute.xlu0 %2142  ;;  %v9266_v62 = vpop.permute.xlu1 %2268 }
 0x441   :  { %v2151_v59 = vsel %vm12202_vm5, %v9264_v19, %v9052_v43  ;;  %7090 = vmatmul.mubr.msk.bf16.vlgmr.msra.gmra.mxu1 %vm12195_vm9, %v9258_v48  ;;  %v2314_v43 = vsel %vm812_vm0, %v9156_v37, %v9215_v54  ;;  %v2345_v37 = vrot.slane %v2081_v49, 4  ;;  %v12416_v49 = vld [vmem:[#allocation61_spill] sm:$0xff]  ;;  %v2273_v38 = vsel %vm730_vm1, %v2267_v4, %v9266_v62 }
 0x442   :  { %2711 = vmatprep.mubr.bf16.mxu1 %v12301_v0  ;;  %v2152_v57 = vmul.f32 %v2151_v59, %v12414_v55  ;;  %v9319_v33 = vmul.f32 %v2314_v43, %v12354_v31  ;;  %v2284_v59 = vmul.f32 %v2274_v28, %v12416_v49  ;;  %v12417_v28 = vld [vmem:[#allocation47_spill] sm:$0xff]  ;;  %v2117_v4 = vmul.f32 %v2106_v47, %v12371_v45  ;;  %v12419_v43 = vld [vmem:[#allocation41_spill] sm:$0xff] }
 0x443   :  { %v2406_v3 = vsel %vm942_vm2, %v2041_v25, %v2345_v37  ;;  %v12418_v37 = vld [vmem:[#allocation59_spill] sm:$0xff] }
 0x444   :  { %v9306_v22 = vpop.permute.xlu0 %2062  ;;  %v9308_v42 = vpop.permute.xlu1 %2188  ;;  %v2160_v10 = vpack.c.bf16 %v2152_v57, %v2152_v57  ;;  %v2252_v57 = vpack.c.bf16 %v9326_v58, %v9326_v58  ;;  %v2285_v25 = vmul.f32 %v2273_v38, %v12418_v37 }
 0x445   :  { %v2071_v11 = vsel %vm12207_vm7, %v9306_v22, %v9060_v23  ;;  %v2332_v23 = vpack.c.bf16 %v9319_v33, %v9319_v33  ;;  %v2313_v33 = vsel %vm812_vm0, %v9215_v54, %v9255_v52  ;;  %v2193_v41 = vsel %vm12213_vm4, %v9242_v51, %v9308_v42 }
 0x446   :  { %v2072_v60 = vmul.f32 %v2071_v11, %v12417_v28  ;;  %v2292_v11 = vpack.c.bf16 %v2284_v59, %v2284_v59  ;;  %v2360_v58 = vrot.slane %v2160_v10, 4  ;;  %v12420_v10 = vld [vmem:[#allocation57_spill] sm:$0xff]  ;;  %v2293_v51 = vpack.c.bf16 %v2285_v25, %v2285_v25 }
 0x447   :  { %v2205_v37 = vmul.f32 %v2193_v41, %v12362_v53  ;;  %v2380_v41 = vrot.slane %v2212_v21, 4  ;;  %v12424_v21 = vld [vmem:[#allocation78_spill] sm:$0xff] }
 0x448   :  { %v2141_v27 = vpop.permute.xlu0 %2140  ;;  %v9343_v39 = vpop.permute.xlu1 %2102  ;;  %v2080_v59 = vpack.c.bf16 %v2072_v60, %v2072_v60  ;;  %v2325_v60 = vmul.f32 %v2313_v33, %v12420_v10  ;;  %v2396_v5 = vrot.slane %v2292_v11, 4  ;;  %v12422_v33 = vld [vmem:[#allocation66_spill] sm:$0xff] }
 0x449   :  { %v2111_v40 = vsel %vm12206_vm6, %v9343_v39, %v9066_v32  ;;  %v2233_v32 = vsel %vm12234_vm3, %v9217_v1, %v9253_v2  ;;  %v2144_v11 = vsel %vm12202_vm5, %v2141_v27, %v9264_v19 }
 0x44a   :  { %v2112_v14 = vmul.f32 %v2111_v40, %v12419_v43  ;;  %v2245_v25 = vmul.f32 %v2233_v32, %v12422_v33  ;;  %v2344_v10 = vrot.slane %v2080_v59, 4 }
 0x44c   :  { %v2311_v17 = vpop.permute.xlu0 %2310  ;;  %v9373_v38 = vpop.permute.xlu1 %2022  ;;  %v2120_v47 = vpack.c.bf16 %v2112_v14, %v2112_v14 }
 0x44d   :  { %v2312_v54 = vsel %vm812_vm0, %v9255_v52, %v2311_v17  ;;  %v2319_v40 = vsel %vm812_vm0, %v2311_v17, %v9046_v44  ;;  %v2031_v1 = vsel %vm12212_vm8, %v9373_v38, %v9072_v12  ;;  %v12421_v52 = vld [vmem:[#allocation50_spill] sm:$0xff]  ;;  %v2365_v44 = vrot.slane %v2165_v35, 4 }
 0x44e   :  { %v2326_v45 = vmul.f32 %v2312_v54, %v12364_v46  ;;  %v2327_v14 = vmul.f32 %v2319_v40, %v12366_v9  ;;  %v2032_v49 = vmul.f32 %v2031_v1, %v12421_v52  ;;  %v2434_v31 = vsel %vm942_vm2, %v2120_v47, %v2360_v58  ;;  %v12425_v47 = vld [vmem:[#allocation93_spill] sm:$0xff] }
 0x44f   :  { %v2125_v17 = vpack.c.bf16 %v2117_v4, %v2117_v4  ;;  %2569 = vmatpush1.bf16.msra.mxu0 %v2434_v31  ;;  %v2333_v40 = vpack.c.bf16 %v2325_v60, %v2325_v60  ;;  %v2397_v1 = vrot.slane %v2293_v51, 4  ;;  %v12423_v4 = vld [vmem:[#allocation92_spill] sm:$0xff]  ;;  %v2253_v58 = vpack.c.bf16 %v2245_v25, %v2245_v25 }
 0x450   :  { %v2334_v61 = vpack.c.bf16 %v2326_v45, %v2326_v45  ;;  %v2335_v7 = vpack.c.bf16 %v2327_v14, %v2327_v14  ;;  %v2231_v12 = vpop.permute.xlu0 %2230  ;;  %v2057_v26 = vpop.permute.xlu1 %2056  ;;  %v2040_v54 = vpack.c.bf16 %v2032_v49, %v2032_v49  ;;  %2570 = vmatprep.subr.bf16.mxu0 %v2406_v3  ;;  %v2213_v45 = vpack.c.bf16 %v2205_v37, %v2205_v37  ;;  %v12427_v51 = vld [vmem:[#allocation72_spill] sm:$0xff]  ;;  %v12428_v14 = vld [vmem:[#allocation67_spill] sm:$0xff] }
 0x451   :  { %v2232_v31 = vsel %vm12234_vm3, %v9253_v2, %v2231_v12  ;;  %v2239_v32 = vsel %vm12234_vm3, %v2231_v12, %v12423_v4  ;;  %v2145_v3 = vsel %vm12202_vm5, %v9236_v18, %v2141_v27  ;;  %v2545_v37 = vsel %vm942_vm2, %v2332_v23, 0  ;;  %v12426_v27 = vld [vmem:[#allocation73_spill] sm:$0xff] }
 0x452   :  { %7093 = vmatprep.subr.msk.bf16.mxu1 %vm942_vm2, %v2335_v7  ;;  %v2551_v35 = vsel %vm942_vm2, %v2334_v61, 0  ;;  %v2402_v19 = vsel %vm942_vm2, %v2040_v54, %v2344_v10  ;;  %v9408_v7 = vmul.f32 %v2144_v11, %v12424_v21  ;;  %v2514_v2 = vsel %vm942_vm2, %v2252_v57, %v2396_v5  ;;  %v12429_v57 = vld [vmem:[#allocation65_spill] sm:$0xff]  ;;  %v12430_v11 = vld [vmem:[#allocation79_spill] sm:$0xff] }
 0x453   :  { %2686 = vmatpush1.bf16.msra.mxu1 %v2551_v35  ;;  %2571 = vmatpush1.bf16.msra.mxu0 %v2402_v19  ;;  %v9420_v18 = vsel %vm942_vm2, %v2125_v17, %v2365_v44  ;;  %v2246_v60 = vmul.f32 %v2232_v31, %v12426_v27  ;;  %v2247_v23 = vmul.f32 %v2239_v32, %v12427_v51  ;;  %v2381_v25 = vrot.slane %v2213_v45, 4 }
 0x454   :  { %v2059_v61 = vpop.permute.xlu0 %2058  ;;  %v2271_v49 = vpop.permute.xlu1 %2270  ;;  %7091 = vmatprep.subr.msk.bf16.mxu0 %vm942_vm2, %v2333_v40  ;;  %v2518_v54 = vsel %vm942_vm2, %v2253_v58, %v2397_v1  ;;  %v12431_v44 = vpack.c.bf16 %v8981_v63, %v8981_v63  ;;  %v12432_v40 = vpack.c.bf16 %v9313_v15, %v9313_v15  ;;  %v2167_v45 = vpack.c.bf16 %v9408_v7, %v9408_v7  ;;  %v12433_v1 = vld [vmem:[#allocation95_spill] sm:$0xff] }
 0x455   :  { %v2272_v59 = vsel %vm730_vm1, %v9266_v62, %v2271_v49  ;;  %v2279_v10 = vsel %vm730_vm1, %v2271_v49, %v12425_v47  ;;  %v9427_v62 = vmul.f32 %v2145_v3, %v12430_v11  ;;  %v2067_v3 = vsel %vm12207_vm7, %v12433_v1, %v2057_v26  ;;  %v12434_v49 = vld [vmem:[#allocation94_spill] sm:$0xff]  ;;  %v12438_v1 = vld [vmem:[#allocation80_spill] sm:$0xff] }
 0x456   :  { %v2286_v5 = vmul.f32 %v2272_v59, %v12428_v14  ;;  %v2287_v12 = vmul.f32 %v2279_v10, %v12429_v57  ;;  %7088 = vmatmul.mubr.msk.bf16.vlgmr.msra.gmra.mxu0 %vm12195_vm9, %v9258_v48  ;;  %v2482_v17 = vsel %vm942_vm2, %v12431_v44, %v2380_v41  ;;  %v2364_v35 = vrot.slane %v12432_v40, 4 }
 0x457   :  { %2645 = vmatpush1.bf16.msra.mxu0 %v2545_v37  ;;  %2670 = vmatprep.mubr.bf16.mxu0 %v12301_v0  ;;  %v2066_v41 = vsel %vm12207_vm7, %v2057_v26, %v2059_v61  ;;  %v2254_v37 = vpack.c.bf16 %v2246_v60, %v2246_v60  ;;  %v2255_v58 = vpack.c.bf16 %v2247_v23, %v2247_v23  ;;  %v12436_v26 = vld [vmem:[#allocation70_spill] sm:$0xff] }
 0x458   :  { %v2294_v31 = vpack.c.bf16 %v2286_v5, %v2286_v5  ;;  %v2295_v4 = vpack.c.bf16 %v2287_v12, %v2287_v12  ;;  %v2017_v32 = vpop.permute.xlu0 %2016  ;;  %v2191_v19 = vpop.permute.xlu1 %2190  ;;  %2646 = vmatprep.subr.bf16.mxu0 %v2518_v54  ;;  %v12435_v5 = vld [vmem:[#allocation71_spill] sm:$0xff] }
 0x459   :  { %v2192_v15 = vsel %vm12213_vm4, %v9308_v42, %v2191_v19  ;;  %v2199_v7 = vsel %vm12213_vm4, %v2191_v19, %v12434_v49  ;;  %v2027_v10 = vsel %vm12212_vm8, %v9148_v50, %v2017_v32  ;;  %v12437_v42 = vpack.c.bf16 %v8996_v34, %v8996_v34  ;;  %v12439_v54 = vld [vmem:[#allocation83_spill] sm:$0xff] }
 0x45a   :  { %v2398_v59 = vrot.slane %v2294_v31, 4  ;;  %v2399_v47 = vrot.slane %v2295_v4, 4  ;;  %v2206_v12 = vmul.f32 %v2192_v15, %v12435_v5  ;;  %v2207_v44 = vmul.f32 %v2199_v7, %v12436_v26 }
 0x45b   :  { %v2486_v40 = vsel %vm942_vm2, %v12437_v42, %v2381_v25  ;;  %v2076_v19 = vmul.f32 %v2067_v3, %v12438_v1  ;;  %v2077_v60 = vmul.f32 %v2066_v41, %v12439_v54  ;;  %2647 = vmatpush1.bf16.msra.mxu0 %v2514_v2  ;;  %v2166_v3 = vpack.c.bf16 %v9427_v62, %v9427_v62  ;;  %v12440_v2 = vld [vmem:[#allocation84_spill] sm:$0xff] }
 0x45c   :  { %v2061_v23 = vpop.permute.xlu0 %2060  ;;  %v2101_v31 = vpop.permute.xlu1 %2100  ;;  %v2526_v4 = vsel %vm942_vm2, %v2255_v58, %v2399_v47  ;;  %v2522_v50 = vsel %vm942_vm2, %v2254_v37, %v2398_v59  ;;  %v2214_v49 = vpack.c.bf16 %v2206_v12, %v2206_v12  ;;  %v2215_v15 = vpack.c.bf16 %v2207_v44, %v2207_v44  ;;  %2648 = vmatprep.subr.bf16.mxu0 %v2486_v40  ;;  %v12441_v47 = vld [vmem:[#allocation81_spill] sm:$0xff] }
 0x45d   :  { %v2064_v7 = vsel %vm12207_vm7, %v2061_v23, %v9306_v22  ;;  %v2065_v25 = vsel %vm12207_vm7, %v2059_v61, %v2061_v23  ;;  %v2036_v41 = vmul.f32 %v2027_v10, %v12440_v2  ;;  %v2104_v58 = vsel %vm12206_vm6, %v2101_v31, %v9343_v39  ;;  %2687 = vmatprep.subr.bf16.mxu1 %v2526_v4  ;;  %v12442_v61 = vld [vmem:[#allocation82_spill] sm:$0xff]  ;;  %v12443_v40 = vld [vmem:[#allocation89_spill] sm:$0xff]  ;;  %v12444_v23 = vld [vmem:[#allocation88_spill] sm:$0xff] }
 0x45e   :  { %v2105_v37 = vsel %vm12206_vm6, %v9244_v36, %v2101_v31  ;;  %v2382_v59 = vrot.slane %v2214_v49, 4  ;;  %v2383_v22 = vrot.slane %v2215_v15, 4  ;;  %v2119_v44 = vmul.f32 %v2104_v58, %v12442_v61  ;;  %2688 = vmatpush1.bf16.msra.mxu1 %v2522_v50  ;;  %v142_v54 = vld [vmem:[#allocation9 + $0x80] ss:$8 sm:$0xf0] }
 0x45f   :  { %v2118_v12 = vmul.f32 %v2105_v37, %v12441_v47  ;;  %v2367_v42 = vrot.slane %v2167_v45, 4  ;;  %v2085_v62 = vpack.c.bf16 %v2077_v60, %v2077_v60  ;;  %v2078_v10 = vmul.f32 %v2065_v25, %v12443_v40  ;;  %2649 = vmatpush1.bf16.msra.mxu0 %v2482_v17  ;;  %v12446_v60 = vld [vmem:[#allocation85_spill] sm:$0xff] }
 0x460   :  { %v2079_v21 = vmul.f32 %v2064_v7, %v12444_v23  ;;  %v2019_v39 = vpop.permute.xlu1 %2018  ;;  %v2084_v11 = vpack.c.bf16 %v2076_v19, %v2076_v19  ;;  %v2127_v2 = vpack.c.bf16 %v2119_v44, %v2119_v44  ;;  %2650 = vmatprep.subr.bf16.mxu0 %v9420_v18  ;;  %v12445_v31 = vpack.c.bf16 %v9018_v24, %v9018_v24  ;;  %v12467_v23 = vld [vmem:[#allocation23_spill] sm:$0xff] }
 0x461   :  { %v2026_v36 = vsel %vm12212_vm8, %v2017_v32, %v2019_v39  ;;  %v2126_v45 = vpack.c.bf16 %v2118_v12, %v2118_v12  ;;  %v12447_v17 = vpack.c.bf16 %v9011_v30, %v9011_v30  ;;  %v2366_v49 = vrot.slane %v2166_v3, 4 }
 0x462   :  { %v2494_v4 = vsel %vm942_vm2, %v12445_v31, %v2383_v22  ;;  %v2037_v50 = vmul.f32 %v2026_v36, %v12446_v60  ;;  %v2044_v15 = vpack.c.bf16 %v2036_v41, %v2036_v41  ;;  %v12448_v18 = vpack.c.bf16 %v9316_v56, %v9316_v56  ;;  %v12449_v56 = vld [vmem:[#allocation86_spill] sm:$0xff] }
 0x463   :  { %2689 = vmatprep.subr.bf16.mxu1 %v2494_v4  ;;  %v2490_v19 = vsel %vm942_vm2, %v12447_v17, %v2382_v59  ;;  %v2462_v7 = vsel %vm942_vm2, %v2127_v2, %v2367_v42  ;;  %v2349_v25 = vrot.slane %v2085_v62, 4  ;;  %v2086_v58 = vpack.c.bf16 %v2078_v10, %v2078_v10  ;;  %v12451_v4 = vld [vmem:[#allocation91_spill] sm:$0xff] }
 0x464   :  { %2690 = vmatpush1.bf16.msra.mxu1 %v2490_v19  ;;  %v2450_v32 = vsel %vm942_vm2, %v12448_v18, %v2364_v35  ;;  %v2087_v37 = vpack.c.bf16 %v2079_v21, %v2079_v21  ;;  %v2045_v22 = vpack.c.bf16 %v2037_v50, %v2037_v50  ;;  %v2021_v12 = vpop.permute.xlu1 %2020  ;;  %v2348_v44 = vrot.slane %v2084_v11, 4  ;;  %v12450_v35 = vld [vmem:[#allocation87_spill] sm:$0xff] }
 0x465   :  { %2651 = vmatpush1.bf16.msra.mxu0 %v2450_v32  ;;  %2691 = vmatprep.subr.bf16.mxu1 %v2462_v7  ;;  %v2024_v3 = vsel %vm12212_vm8, %v2021_v12, %v9373_v38  ;;  %v2025_v41 = vsel %vm12212_vm8, %v2019_v39, %v2021_v12  ;;  %v2458_v2 = vsel %vm942_vm2, %v2126_v45, %v2366_v49  ;;  %v2350_v11 = vrot.slane %v2086_v58, 4 }
 0x466   :  { %v2038_v59 = vmul.f32 %v2025_v41, %v12449_v56  ;;  %v2039_v36 = vmul.f32 %v2024_v3, %v12450_v35  ;;  %v2422_v21 = vsel %vm942_vm2, %v2045_v22, %v2349_v25  ;;  %v2418_v42 = vsel %vm942_vm2, %v2044_v15, %v2348_v44 }
 0x467   :  { %2652 = vmatprep.subr.bf16.mxu0 %v2422_v21  ;;  %v2351_v62 = vrot.slane %v2087_v37, 4  ;;  %v2528_v45 = vstv %s7069_s26 }
 0x468   :  { %2692 = vmatpush1.bf16.msra.mxu1 %v2458_v2  ;;  %v2046_v10 = vpack.c.bf16 %v2038_v59, %v2038_v59  ;;  %v2047_v31 = vpack.c.bf16 %v2039_v36, %v2039_v36 }
 0x469   :  { %2653 = vmatpush1.bf16.msra.mxu0 %v2418_v42 }
 0x46a   :  { %v2430_v38 = vsel %vm942_vm2, %v2047_v31, %v2351_v62  ;;  %v2426_v39 = vsel %vm942_vm2, %v2046_v10, %v2350_v11 }
 0x46b   :  { %2693 = vmatprep.subr.bf16.mxu1 %v2430_v38 }
 0x46c   :  { %7092 = vmatmul.mubr.msk.bf16.vlgmr.msra.gmra.mxu0 %vm12195_vm9, %v9258_v48  ;;  %2694 = vmatpush1.bf16.msra.mxu1 %v2426_v39 }
 0x46d   :  { %2901 = vmatprep.mubr.f32.mxu0 %v12451_v4 }
 0x46f   :  { %7094 = vmatmul.mubr.msk.bf16.vlgmr.msra.gmra.mxu1 %vm12195_vm9, %v9258_v48  ;;  %vm5608_vm9 = vcmask 719872  }
 0x470   :  { %2971 = vmatprep.mubr.f32.mxu1 %v8958_v6 }
 0x501   :  { %v2631_v50 = vpop.f32.mrf.mxu1 }
 0x502   :  { %v2632_v17 = vadd.f32 %v2631_v50, %v2528_v45 }
 0x503   :  { %v2633_v19 = vpop.f32.mrf.mxu1 }
 0x504   :  { %v2740_v49 = vsel %vm2720_vm12, %v2632_v17, -inf  ;;  %v2634_v15 = vadd.f32 %v2633_v19, %v2528_v45 }
 0x505   :  { %v2635_v18 = vpop.f32.mrf.mxu1 }
 0x506   :  { %v2741_v32 = vsel %vm2720_vm12, %v2634_v15, -inf }
 0x507   :  { %v2742_v7 = vmax.f32 %v2740_v49, %v2741_v32  ;;  %v2636_v25 = vpop.f32.mrf.mxu1 }
 0x509   :  { %2743 = vmax.xlane.f32.xlu1 %v2742_v7 }
 0x516   :  { %v2590_v58 = vpop.f32.mrf.mxu0 }
 0x517   :  { %v2591_v37 = vadd.f32 %v2590_v58, %v2528_v45 }
 0x518   :  { %v2592_v48 = vpop.f32.mrf.mxu0 }
 0x519   :  { %v2721_v22 = vsel %vm2720_vm12, %v2591_v37, -inf  ;;  %v2593_v12 = vadd.f32 %v2592_v48, %v2528_v45 }
 0x51a   :  { %v2594_v44 = vpop.f32.mrf.mxu0 }
 0x51b   :  { %v2722_v3 = vsel %vm2720_vm12, %v2593_v12, -inf }
 0x51c   :  { %v2723_v41 = vmax.f32 %v2721_v22, %v2722_v3  ;;  %v2595_v59 = vpop.f32.mrf.mxu0 }
 0x51e   :  { %2724 = vmax.xlane.f32.xlu0 %v2723_v41 }
 0x52c   :  { %v2672_v36 = vpop.f32.mrf.mxu0 }
 0x52d   :  { %v2673_v2 = vadd.f32 %v2672_v36, %v2528_v45 }
 0x52e   :  { %v2674_v21 = vpop.f32.mrf.mxu0 }
 0x52f   :  { %v2675_v42 = vadd.f32 %v2674_v21, %v2528_v45  ;;  %v2713_v62 = vpop.f32.mrf.mxu1  ;;  %v2759_v10 = vsel %vm2720_vm12, %v2673_v2, -inf }
 0x530   :  { %v2676_v11 = vpop.f32.mrf.mxu0  ;;  %v2714_v38 = vadd.f32 %v2713_v62, %v2528_v45 }
 0x531   :  { %v2760_v31 = vsel %vm2720_vm12, %v2675_v42, -inf  ;;  %v2715_v19 = vpop.f32.mrf.mxu1 }
 0x532   :  { %v2761_v39 = vmax.f32 %v2759_v10, %v2760_v31  ;;  %v2677_v50 = vpop.f32.mrf.mxu0  ;;  %v2716_v49 = vadd.f32 %v2715_v19, %v2528_v45  ;;  %v2778_v32 = vsel %vm2720_vm12, %v2714_v38, -inf }
 0x533   :  { %v2717_v18 = vpop.f32.mrf.mxu1 }
 0x534   :  { %2762 = vmax.xlane.f32.xlu0 %v2761_v39  ;;  %v2779_v7 = vsel %vm2720_vm12, %v2716_v49, -inf }
 0x535   :  { %v2780_v25 = vmax.f32 %v2778_v32, %v2779_v7  ;;  %v2718_v58 = vpop.f32.mrf.mxu1 }
 0x538   :  { %2781 = vmax.xlane.f32.xlu0 %v2780_v25 }
 0x592   :  { %v2744_v48 = vpop.xlane.xlu1 %2743 }
 0x593   :  { %v2745_v22 = vsub.f32 %v2632_v17, %v2744_v48  ;;  %v2746_v44 = vsub.f32 %v2634_v15, %v2744_v48 }
 0x595   :  { %v2747_v3 = vmul.f32 1.442695, %v2745_v22  ;;  %v2749_v41 = vmul.f32 1.442695, %v2746_v44 }
 0x597   :  { %7216 = vpow2.f32 %v2747_v3 }
 0x598   :  { %7218 = vpow2.f32 %v2749_v41 }
 0x5a4   :  { %v7217_v59 = vpop.eup %7216 }
 0x5a5   :  { %v7219_v36 = vpop.eup %7218  ;;  %v2751_v45 = vsel %vm2720_vm12, %v7217_v59, 0.0 }
 0x5a6   :  { %v2752_v21 = vsel %vm2720_vm12, %v7219_v36, 0.0 }
 0x5a7   :  { %v2753_v11 = vadd.f32 %v2752_v21, %v2751_v45  ;;  %v2725_v62 = vpop.xlane.xlu0 %2724 }
 0x5a8   :  { %v2726_v10 = vsub.f32 %v2591_v37, %v2725_v62  ;;  %v2727_v31 = vsub.f32 %v2593_v12, %v2725_v62 }
 0x5a9   :  { %2754 = vadd.xlane.f32.xlu0 %v2753_v11 }
 0x5aa   :  { %v2728_v39 = vmul.f32 1.442695, %v2726_v10  ;;  %v2730_v50 = vmul.f32 1.442695, %v2727_v31 }
 0x5ac   :  { %7220 = vpow2.f32 %v2728_v39  ;;  %v9535_v39 = vld [vmem:[#allocation8] sm:$0xf] }
 0x5ad   :  { %7222 = vpow2.f32 %v2730_v50 }
 0x5b9   :  { %v7221_v17 = vpop.eup %7220 }
 0x5ba   :  { %v7223_v15 = vpop.eup %7222  ;;  %v2732_v19 = vsel %vm2720_vm12, %v7221_v17, 0.0 }
 0x5bb   :  { %v2733_v32 = vsel %vm2720_vm12, %v7223_v15, 0.0 }
 0x5bc   :  { %v2734_v58 = vadd.f32 %v2733_v32, %v2732_v19 }
 0x5bd   :  { %v2763_v18 = vpop.xlane.xlu0 %2762 }
 0x5be   :  { %v2764_v7 = vsub.f32 %v2673_v2, %v2763_v18  ;;  %v2765_v25 = vsub.f32 %v2675_v42, %v2763_v18  ;;  %2735 = vadd.xlane.f32.xlu1 %v2734_v58  ;;  %v12452_v58 = vld [vmem:[#allocation18_spill] sm:$0xff] }
 0x5c0   :  { %v2766_v48 = vmul.f32 1.442695, %v2764_v7  ;;  %v2768_v22 = vmul.f32 1.442695, %v2765_v25  ;;  %v103_v7 = vld [vmem:[#allocation9 + $0x18] sm:$0xf] }
 0x5c1   :  { %v2782_v37 = vpop.xlane.xlu0 %2781  ;;  %v102_v25 = vld [vmem:[#allocation9 + $0x10] sm:$0xf] }
 0x5c2   :  { %7224 = vpow2.f32 %v2766_v48  ;;  %v2783_v12 = vsub.f32 %v2714_v38, %v2782_v37  ;;  %v2784_v44 = vsub.f32 %v2716_v49, %v2782_v37 }
 0x5c3   :  { %7226 = vpow2.f32 %v2768_v22 }
 0x5c4   :  { %v2785_v3 = vmul.f32 1.442695, %v2783_v12  ;;  %v2787_v41 = vmul.f32 1.442695, %v2784_v44 }
 0x5c6   :  { %7228 = vpow2.f32 %v2785_v3 }
 0x5c7   :  { %7230 = vpow2.f32 %v2787_v41 }
 0x5cf   :  { %v7225_v45 = vpop.eup %7224 }
 0x5d0   :  { %v7227_v21 = vpop.eup %7226  ;;  %v2770_v11 = vsel %vm2720_vm12, %v7225_v45, 0.0 }
 0x5d1   :  { %v2771_v2 = vsel %vm2720_vm12, %v7227_v21, 0.0 }
 0x5d2   :  { %v2772_v42 = vadd.f32 %v2771_v2, %v2770_v11  ;;  %v100_v11 = vld [vmem:[#allocation9] sm:$0xf] }
 0x5d3   :  { %v7229_v62 = vpop.eup %7228 }
 0x5d4   :  { %v7231_v10 = vpop.eup %7230  ;;  %2773 = vadd.xlane.f32.xlu1 %v2772_v42  ;;  %v2789_v31 = vsel %vm2720_vm12, %v7229_v62, 0.0 }
 0x5d5   :  { %v2790_v38 = vsel %vm2720_vm12, %v7231_v10, 0.0  ;;  %vm4095_vm12 = vcmp.lt.s32.totalorder %v7634_v13, 98 }
 0x5d6   :  { %v2791_v49 = vadd.f32 %v2790_v38, %v2789_v31 }
 0x5d8   :  { %2792 = vadd.xlane.f32.xlu0 %v2791_v49 }
 0x5e5   :  { %3122 = vrot.lane.b32.xlu1 %v9535_v39, %s7426_s27 }
 0x632   :  { %v2755_v50 = vpop.xlane.xlu0 %2754 }
 0x633   :  { %7232 = vrcp.f32 %v2755_v50 }
 0x640   :  { %v7233_v19 = vpop.eup %7232 }
 0x641   :  { %v2758_v18 = vmul.f32 %v7233_v19, %v7219_v36  ;;  %v2757_v32 = vmul.f32 %v7233_v19, %v7217_v59  ;;  %v101_v59 = vld [vmem:[#allocation9 + $0x8] sm:$0xf]  ;;  %v12453_v19 = vld [vmem:[#allocation90_spill] sm:$0xff] }
 0x643   :  { %v2812_v48 = vrot.slane %v2758_v18, %v12452_v58  ;;  %v2808_v22 = vrot.slane %v2757_v32, %v12452_v58  ;;  %v105_v32 = vld [vmem:[#allocation9 + $0x28] sm:$0xf] }
 0x645   :  { %v2832_v37 = vmul.f32 %v2812_v48, %v103_v7  ;;  %v2831_v12 = vmul.f32 %v2808_v22, %v102_v25  ;;  %v104_v7 = vld [vmem:[#allocation9 + $0x20] sm:$0xf] }
 0x647   :  { %2937 = vmatprep.subr.mxu1 %v2832_v37  ;;  %v2736_v44 = vpop.xlane.xlu1 %2735 }
 0x648   :  { %2938 = vmatpush1.xpose.msra.mxu1 %v2831_v12  ;;  %7234 = vrcp.f32 %v2736_v44 }
 0x64b   :  { %2972 = vmatmul.mubr.f32.vlgmr.msra.gmra.mxu1 %v8935_v20 }
 0x64c   :  { %3111 = vmatprep.mubr.f32.mxu1 %v9018_v24 }
 0x655   :  { %v7235_v3 = vpop.eup %7234 }
 0x656   :  { %v2739_v41 = vmul.f32 %v7235_v3, %v7223_v15  ;;  %v2738_v36 = vmul.f32 %v7235_v3, %v7221_v17 }
 0x658   :  { %v2804_v2 = vrot.slane %v2739_v41, %v12452_v58  ;;  %v2800_v42 = vrot.slane %v2738_v36, %v12452_v58  ;;  %v107_v41 = vld [vmem:[#allocation9 + $0x38] sm:$0xf]  ;;  %v106_v36 = vld [vmem:[#allocation9 + $0x30] sm:$0xf] }
 0x65a   :  { %v2830_v31 = vmul.f32 %v2804_v2, %v101_v59  ;;  %v2829_v38 = vmul.f32 %v2800_v42, %v100_v11  ;;  %v7427_v2 = vmov 0.0   ;;  %v7431_v42 = vmov 4  }
 0x65c   :  { %2867 = vmatprep.subr.mxu0 %v2830_v31  ;;  %v7275_v31 = vld [vmem:[#allocation8] sm:$0xff] }
 0x65d   :  { %v2774_v49 = vpop.xlane.xlu1 %2773  ;;  %2868 = vmatpush1.xpose.msra.mxu0 %v2829_v38 }
 0x65e   :  { %7236 = vrcp.f32 %v2774_v49 }
 0x660   :  { %2902 = vmatmul.mubr.f32.vlgmr.msra.gmra.mxu0 %v12453_v19 }
 0x661   :  { %v2793_v50 = vpop.xlane.xlu0 %2792  ;;  %3041 = vmatprep.mubr.f32.mxu0 %v8996_v34 }
 0x662   :  { %7238 = vrcp.f32 %v2793_v50 }
 0x66b   :  { %v7237_v15 = vpop.eup %7236 }
 0x66c   :  { %v2777_v17 = vmul.f32 %v7237_v15, %v7227_v21  ;;  %v2776_v18 = vmul.f32 %v7237_v15, %v7225_v45 }
 0x66e   :  { %v2820_v25 = vrot.slane %v2777_v17, %v12452_v58  ;;  %v2816_v48 = vrot.slane %v2776_v18, %v12452_v58 }
 0x66f   :  { %v7239_v22 = vpop.eup %7238 }
 0x670   :  { %v2834_v37 = vmul.f32 %v2820_v25, %v105_v32  ;;  %v2833_v12 = vmul.f32 %v2816_v48, %v104_v7  ;;  %v2796_v44 = vmul.f32 %v7239_v22, %v7231_v10  ;;  %v2795_v3 = vmul.f32 %v7239_v22, %v7229_v62  ;;  %v3123_v22 = vpop.permute.xlu1 %3122 }
 0x671   :  { %v7429_v62 = vmov 2   ;;  %v7430_v10 = vmov 3  }
 0x672   :  { %3007 = vmatprep.subr.mxu0 %v2834_v37  ;;  %v2828_v59 = vrot.slane %v2796_v44, %v12452_v58  ;;  %v2824_v11 = vrot.slane %v2795_v3, %v12452_v58  ;;  %7202 = vset.pattern.permute.xlu0 %v7429_v62 }
 0x673   :  { %3008 = vmatpush1.xpose.msra.mxu0 %v2833_v12  ;;  %7203 = vset.pattern.permute.xlu1 %v7430_v10 }
 0x674   :  { %v2836_v45 = vmul.f32 %v2828_v59, %v107_v41  ;;  %v2835_v21 = vmul.f32 %v2824_v11, %v106_v36  ;;  %7145 = vmatprep.subr.mxu0 %v7427_v2  ;;  %3119 = vperm.xlu0 %7202, %v9535_v39  }
 0x675   :  { %3221 = vperm.xlu1 %7203, %v9535_v39  }
 0x676   :  { %3042 = vmatmul.mubr.f32.vlgmr.msra.gmra.mxu0 %v8981_v63  ;;  %3077 = vmatprep.subr.mxu1 %v2836_v45 }
 0x677   :  { %3078 = vmatpush1.xpose.msra.mxu1 %v2835_v21  ;;  %7147 = vmatprep.mubr.msk.f32.mxu0 %vm7428_vm13, %v7427_v2 }
 0x678   :  { %7150 = vmatprep.subr.mxu1 %v7427_v2 }
 0x679   :  { %7204 = vset.pattern.permute.xlu1 %v7431_v42 }
 0x67a   :  { %3112 = vmatmul.mubr.f32.vlgmr.msra.gmra.mxu1 %v9011_v30  ;;  %3226 = vperm.xlu1 %7204, %v9535_v39   ;;  %v7432_v39 = vmov 5  }
 0x67b   :  { %7152 = vmatprep.mubr.msk.f32.mxu1 %vm7428_vm13, %v7427_v2  ;;  %vm4013_vm13 = vcmp.lt.s32.totalorder %v7634_v13, 126 }
 0x67e   :  { %3238 = vrot.lane.b32.xlu1 %v7275_v31, %s7417_s4 }
 0x67f   :  { %7205 = vset.pattern.permute.xlu1 %v7432_v39 }
 0x682   :  { %3235 = vperm.xlu1 %7205, %v7275_v31  }
 0x686   :  { %7206 = vset.pattern.permute.xlu1 %v12301_v0 }
 0x6ef   :  { %v3120_v12 = vpop.permute.xlu0 %3119 }
 0x70b   :  { %v2973_v38 = vpop.f32.mrf.mxu1 }
 0x70d   :  { %v2975_v49 = vpop.f32.mrf.mxu1 }
 0x720   :  { %v2903_v50 = vpop.f32.mrf.mxu0 }
 0x721   :  { %v2974_v18 = vadd.f32 %v2973_v38, %v2903_v50 }
 0x722   :  { %v2905_v15 = vpop.f32.mrf.mxu0 }
 0x736   :  { %v3043_v17 = vpop.f32.mrf.mxu0 }
 0x737   :  { %v3044_v7 = vadd.f32 %v3043_v17, %v2974_v18 }
 0x738   :  { %v3045_v32 = vpop.f32.mrf.mxu0 }
 0x73a   :  { %v3113_v25 = vpop.f32.mrf.mxu1 }
 0x73b   :  { %v3114_v48 = vadd.f32 %v3113_v25, %v3044_v7 }
 0x73c   :  { %v3115_v37 = vpop.f32.mrf.mxu1 }
 0x73d   :  { %7146 = vmatpush3.msra.mxu0 %v3114_v48  ;;  %v3222_v37 = vpop.permute.xlu1 %3221 }
 0x73e   :  { %7148 = vmatmul.mubr.msk.f32.vlgmr.msra.gmra.mxu0 %vm12180_vm14, %v3123_v22  ;;  %vm3685_vm14 = vcmp.lt.s32.totalorder %v7634_v13, 34 }
 0x7fe   :  { %v3193_v44 = vpop.f32.mrf.mxu0 }
 0x7ff   :  { %v3194_v3 = vadd.f32 %v3193_v44, %v3120_v12  ;;  %v3227_v44 = vpop.permute.xlu1 %3226 }
 0x800   :  { %v7149_v41 = vpop.f32.mrf.mxu0 }
 0x801   :  { %v3198_v36 = vsel %vm3197_vm15, %v3194_v3, 0.0 }
 0x802   :  { %v3199_v59 = vrot.slane %v3198_v36, 4 }
 0x804   :  { %v3200_v11 = vadd.f32 %v3199_v59, %v3198_v36  ;;  %v3231_v36 = vstv %s7068_s28 }
 0x806   :  { %v3201_v45 = vrot.slane %v3200_v11, 2 }
 0x808   :  { %v3202_v21 = vadd.f32 %v3201_v45, %v3200_v11  ;;  %v3239_v11 = vpop.permute.xlu1 %3238 }
 0x80a   :  { %v3203_v2 = vrot.slane %v3202_v21, 1 }
 0x80c   :  { %v3204_v42 = vadd.f32 %v3203_v2, %v3202_v21  ;;  %v3236_v21 = vpop.permute.xlu1 %3235 }
 0x80e   :  { %v3206_v38 = vmul.f32 0.25, %v3204_v42 }
 0x810   :  { %v3207_v49 = vsub.f32 %v3194_v3, %v3206_v38 }
 0x812   :  { %v3208_v50 = vmul.f32 %v3207_v49, %v3207_v49 }
 0x814   :  { %v3209_v15 = vsel %vm3197_vm15, %v3208_v50, 0.0  ;;  %v12454_v50 = vmov 1   ;;  %vm3931_vm15 = vcmp.lt.s32.totalorder %v7634_v13, 2 }
 0x815   :  { %v3210_v17 = vrot.slane %v3209_v15, 4 }
 0x817   :  { %v3211_v31 = vadd.f32 %v3210_v17, %v3209_v15 }
 0x819   :  { %v3212_v18 = vrot.slane %v3211_v31, 2 }
 0x81b   :  { %v3213_v32 = vadd.f32 %v3212_v18, %v3211_v31 }
 0x81d   :  { %v3214_v7 = vrot.slane %v3213_v32, 1 }
 0x81f   :  { %v3215_v25 = vadd.f32 %v3214_v7, %v3213_v32  ;;  %v157_v7 = vld [vmem:[#allocation9 + $0x84] ss:$8 sm:$0xf] }
 0x821   :  { %v3216_v48 = vmul.f32 0.25, %v3215_v25  ;;  %v158_v25 = vld [vmem:[#allocation9 + $0x84] ss:$8 sm:$0xf0] }
 0x823   :  { %v3217_v22 = vadd.f32 1e-05, %v3216_v48  ;;  %v12461_v48 = vld [vmem:[#allocation19_spill] sm:$0xff] }
 0x825   :  { %7240 = vrsqrt.f32 %v3217_v22 }
 0x832   :  { %v7241_v39 = vpop.eup %7240 }
 0x833   :  { %v3219_v12 = vmul.f32 %v7241_v39, %v3207_v49 }
 0x835   :  { %v3224_v41 = vmul.f32 %v3222_v37, %v3219_v12  ;;  %v9712_v37 = vor.u32 %v158_v25, %v157_v7 }
 0x837   :  { %v3229_v59 = vadd.f32 %v3227_v44, %v3224_v41 }
 0x839   :  { %vm3230_vm10 = vcmp.ge.f32.partialorder %v3229_v59, 0.0  ;;  %v3232_v3 = vmul.f32 %v3231_v36, %v3229_v59 }
 0x83b   :  { %v3233_v45 = vsel %vm3230_vm10, %v3229_v59, %v3232_v3  ;;  %v4030_v3 = vrot.slane %v9712_v37, %v12461_v48  ;;  %vm3849_vm10 = vcmp.lt.s32.totalorder %v7634_v13, 30 }
 0x83c   :  { %7151 = vmatpush3.msk.msra.mxu1 %vm942_vm2, %v3233_v45  ;;  %v154_v45 = vld [vmem:[#allocation9 + $0x83] ss:$8 sm:$0xf0] }
 0x83d   :  { %7153 = vmatmul.mubr.msk.f32.vlgmr.msra.gmra.mxu1 %vm3240_vm11, %v3239_v11  ;;  %v153_v11 = vld [vmem:[#allocation9 + $0x83] ss:$8 sm:$0xf]  ;;  %vm3767_vm11 = vcmp.lt.s32.totalorder %v7634_v13, 32 }
 0x8fd   :  { %v3312_v2 = vpop.f32.mrf.mxu1 }
 0x8fe   :  { %v3313_v42 = vadd.f32 %v3312_v2, %v3236_v21 }
 0x8ff   :  { %v7154_v38 = vpop.f32.mrf.mxu1 }
 0x900   :  { %3318 = vperm.xlu1 %7206, %v3313_v42  }
 0x904   :  { %7207 = vset.pattern.permute.xlu1 %v12454_v50 }
 0x905   :  { %3324 = vperm.xlu1 %7207, %v3313_v42  }
 0x909   :  { %7208 = vset.pattern.permute.xlu1 %v7430_v10 }
 0x90a   :  { %3336 = vperm.xlu1 %7208, %v3313_v42  }
 0x90e   :  { %7209 = vset.pattern.permute.xlu1 %v7429_v62 }
 0x90f   :  { %3330 = vperm.xlu1 %7209, %v3313_v42  }
 0x97b   :  { %v3319_v49 = vpop.permute.xlu1 %3318 }
 0x97c   :  { %v9566_v15 = vadd.f32 %v3319_v49, %v12451_v4  ;;  %v9571_v17 = vadd.f32 %v3319_v49, %v12453_v19  ;;  %v9740_v49 = vor.u32 %v154_v45, %v153_v11 }
 0x97e   :  { %12455 = vst [vmem:[#allocation92_spill] sm:$0xff] %v9566_v15  ;;  %4081 = vrot.lane.b32.xlu0 %v9566_v15, %s7433_s29  ;;  %12456 = vst [vmem:[#allocation93_spill] sm:$0xff] %v9571_v17 }
 0x980   :  { %v3325_v31 = vpop.permute.xlu1 %3324 }
 0x981   :  { %v9574_v18 = vadd.f32 %v3325_v31, %v8935_v20 }
 0x982   :  { %4079 = vrot.lane.b32.xlu0 %v9571_v17, %s7433_s29 }
 0x983   :  { %12457 = vst [vmem:[#allocation95_spill] sm:$0xff] %v9574_v18  ;;  %4083 = vrot.lane.b32.xlu1 %v9574_v18, %s7433_s29 }
 0x985   :  { %v9584_v4 = vpop.permute.xlu1 %3336 }
 0x986   :  { %4001 = vrot.lane.b32.xlu0 %v9574_v18, %s7434_s30  ;;  %v9592_v20 = vadd.f32 %v9584_v4, %v9018_v24  ;;  %v9609_v24 = vadd.f32 %v3325_v31, %v8958_v6  ;;  %v161_v6 = vld [vmem:[#allocation9 + $0x85] ss:$8 sm:$0xf] }
 0x987   :  { %3999 = vrot.lane.b32.xlu1 %v9566_v15, %s7434_s30 }
 0x988   :  { %12458 = vst [vmem:[#allocation94_spill] sm:$0xff] %v9592_v20  ;;  %12460 = vst [vmem:[#allocation90_spill] sm:$0xff] %v9609_v24 }
 0x98a   :  { %3915 = vrot.lane.b32.xlu0 %v9571_v17, %s7435_s6  ;;  %v9598_v19 = vpop.permute.xlu1 %3330 }
 0x98b   :  { %3997 = vrot.lane.b32.xlu1 %v9571_v17, %s7434_s30  ;;  %v9606_v62 = vadd.f32 %v9598_v19, %v8981_v63  ;;  %v162_v63 = vld [vmem:[#allocation9 + $0x85] ss:$8 sm:$0xf0] }
 0x98c   :  { %v9703_v10 = vor.u32 %v162_v63, %v161_v6  ;;  %v4026_v6 = vrot.slane %v9712_v37, %v12452_v58 }
 0x98d   :  { %12459 = vst [vmem:[#allocation91_spill] sm:$0xff] %v9606_v62 }
 0x98e   :  { %3929 = vrot.lane.b32.xlu0 %v9592_v20, %s7435_s6  ;;  %v4112_v22 = vrot.slane %v9703_v10, %v12461_v48  ;;  %v4108_v12 = vrot.slane %v9703_v10, %v12452_v58  ;;  %v4116_v40 = vrot.slane %v9703_v10, %v12467_v23 }
 0x98f   :  { %3917 = vrot.lane.b32.xlu1 %v9566_v15, %s7435_s6 }
 0x992   :  { %3835 = vrot.lane.b32.xlu0 %v9566_v15, %s7436_s7 }
 0x993   :  { %3833 = vrot.lane.b32.xlu1 %v9571_v17, %s7436_s7 }
 0x996   :  { %4087 = vrot.lane.b32.xlu0 %v9606_v62, %s7433_s29 }
 0x997   :  { %4085 = vrot.lane.b32.xlu1 %v9609_v24, %s7433_s29 }
 0x99a   :  { %3751 = vrot.lane.b32.xlu0 %v9571_v17, %s7437_s1 }
 0x99b   :  { %3847 = vrot.lane.b32.xlu1 %v9592_v20, %s7436_s7 }
 0x99e   :  { %4003 = vrot.lane.b32.xlu0 %v9609_v24, %s7434_s30 }
 0x99f   :  { %3753 = vrot.lane.b32.xlu1 %v9566_v15, %s7437_s1 }
 0x9a2   :  { %3765 = vrot.lane.b32.xlu0 %v9592_v20, %s7437_s1 }
 0x9a3   :  { %4005 = vrot.lane.b32.xlu1 %v9606_v62, %s7434_s30 }
 0x9a6   :  { %3671 = vrot.lane.b32.xlu0 %v9566_v15, %s7438_s8 }
 0x9a7   :  { %3669 = vrot.lane.b32.xlu1 %v9571_v17, %s7438_s8 }
 0x9aa   :  { %3631 = vrot.lane.b32.xlu0 %v9566_v15, %s7416_s3 }
 0x9ab   :  { %3683 = vrot.lane.b32.xlu1 %v9592_v20, %s7438_s8 }
 0x9ae   :  { %3919 = vrot.lane.b32.xlu0 %v9574_v18, %s7435_s6 }
 0x9af   :  { %3633 = vrot.lane.b32.xlu1 %v9574_v18, %s7416_s3 }
 0x9b2   :  { %3629 = vrot.lane.b32.xlu0 %v9571_v17, %s7416_s3 }
 0x9b3   :  { %3921 = vrot.lane.b32.xlu1 %v9609_v24, %s7435_s6 }
 0x9b6   :  { %3593 = vrot.lane.b32.xlu0 %v9574_v18, %s7417_s4 }
 0x9b7   :  { %3591 = vrot.lane.b32.xlu1 %v9566_v15, %s7417_s4 }
 0x9ba   :  { %3839 = vrot.lane.b32.xlu0 %v9609_v24, %s7436_s7 }
 0x9bb   :  { %3837 = vrot.lane.b32.xlu1 %v9574_v18, %s7436_s7 }
 0x9be   :  { %3551 = vrot.lane.b32.xlu0 %v9566_v15, %s7418_s19 }
 0x9bf   :  { %3589 = vrot.lane.b32.xlu1 %v9571_v17, %s7417_s4 }
 0x9c2   :  { %3755 = vrot.lane.b32.xlu0 %v9574_v18, %s7437_s1 }
 0x9c3   :  { %3553 = vrot.lane.b32.xlu1 %v9574_v18, %s7418_s19 }
 0x9c6   :  { %3549 = vrot.lane.b32.xlu0 %v9571_v17, %s7418_s19 }
 0x9c7   :  { %3757 = vrot.lane.b32.xlu1 %v9609_v24, %s7437_s1 }
 0x9ca   :  { %3513 = vrot.lane.b32.xlu0 %v9574_v18, %s7419_s20 }
 0x9cb   :  { %3511 = vrot.lane.b32.xlu1 %v9566_v15, %s7419_s20 }
 0x9ce   :  { %3675 = vrot.lane.b32.xlu0 %v9609_v24, %s7438_s8 }
 0x9cf   :  { %3673 = vrot.lane.b32.xlu1 %v9574_v18, %s7438_s8 }
 0x9d2   :  { %3635 = vrot.lane.b32.xlu0 %v9609_v24, %s7416_s3 }
 0x9d3   :  { %3509 = vrot.lane.b32.xlu1 %v9571_v17, %s7419_s20 }
 0x9d6   :  { %3461 = vrot.lane.b32.xlu0 %v9571_v17, %s7420_s21 }
 0x9d7   :  { %3637 = vrot.lane.b32.xlu1 %v9606_v62, %s7416_s3 }
 0x9da   :  { %3595 = vrot.lane.b32.xlu0 %v9609_v24, %s7417_s4 }
 0x9db   :  { %3463 = vrot.lane.b32.xlu1 %v9566_v15, %s7420_s21 }
 0x9de   :  { %3475 = vrot.lane.b32.xlu0 %v9592_v20, %s7420_s21 }
 0x9df   :  { %3597 = vrot.lane.b32.xlu1 %v9606_v62, %s7417_s4 }
 0x9e2   :  { %3423 = vrot.lane.b32.xlu0 %v9566_v15, %s7421_s22 }
 0x9e3   :  { %3421 = vrot.lane.b32.xlu1 %v9571_v17, %s7421_s22 }
 0x9e6   :  { %3557 = vrot.lane.b32.xlu0 %v9606_v62, %s7418_s19 }
 0x9e7   :  { %3555 = vrot.lane.b32.xlu1 %v9609_v24, %s7418_s19 }
 0x9ea   :  { %3381 = vrot.lane.b32.xlu0 %v9571_v17, %s7422_s23 }
 0x9eb   :  { %3435 = vrot.lane.b32.xlu1 %v9592_v20, %s7421_s22 }
 0x9ee   :  { %3515 = vrot.lane.b32.xlu0 %v9609_v24, %s7419_s20 }
 0x9ef   :  { %3383 = vrot.lane.b32.xlu1 %v9566_v15, %s7422_s23 }
 0x9f0   :  { %v4082_v32 = vpop.permute.xlu0 %4081 }
 0x9f2   :  { %3395 = vrot.lane.b32.xlu0 %v9592_v20, %s7422_s23 }
 0x9f3   :  { %3517 = vrot.lane.b32.xlu1 %v9606_v62, %s7419_s20 }
 0x9f4   :  { %v9714_v39 = vpop.permute.xlu0 %4079 }
 0x9f5   :  { %v9718_v44 = vpop.permute.xlu1 %4083  ;;  %v4102_v41 = vsel %vm4095_vm12, %v9714_v39, %v4082_v32 }
 0x9f6   :  { %v4101_v36 = vsel %vm4095_vm12, %v4082_v32, %v9718_v44  ;;  %3343 = vrot.lane.b32.xlu0 %v9566_v15, %s7423_s24  ;;  %v4145_v2 = vmul.f32 %v4108_v12, %v4102_v41  ;;  %v3944_v41 = vrot.slane %v9740_v49, %v12452_v58 }
 0x9f7   :  { %v4146_v59 = vmul.f32 %v4112_v22, %v4101_v36  ;;  %3341 = vrot.lane.b32.xlu1 %v9571_v17, %s7423_s24 }
 0x9f8   :  { %v9733_v21 = vpop.permute.xlu0 %4001  ;;  %v4153_v32 = vpack.c.bf16 %v4145_v2, %v4145_v2 }
 0x9f9   :  { %v4154_v42 = vpack.c.bf16 %v4146_v59, %v4146_v59  ;;  %v4000_v38 = vpop.permute.xlu1 %3999 }
 0x9fa   :  { %v4019_v50 = vsel %vm4013_vm13, %v4000_v38, %v9733_v21  ;;  %3465 = vrot.lane.b32.xlu0 %v9574_v18, %s7420_s21  ;;  %v5101_v45 = vrot.slane %v4153_v32, 4  ;;  %v149_v32 = vld [vmem:[#allocation9 + $0x82] ss:$8 sm:$0xf] }
 0x9fb   :  { %v4064_v31 = vmul.f32 %v4030_v3, %v4019_v50  ;;  %3355 = vrot.lane.b32.xlu1 %v9592_v20, %s7423_s24  ;;  %v5102_v7 = vrot.slane %v4154_v42, 4  ;;  %v3948_v3 = vrot.slane %v9740_v49, %v12461_v48  ;;  %v9770_v50 = vpack.c.bf16 %v9566_v15, %v9566_v15 }
 0x9fc   :  { %v3916_v63 = vpop.permute.xlu0 %3915 }
 0x9fd   :  { %v4072_v25 = vpack.c.bf16 %v4064_v31, %v4064_v31  ;;  %v9746_v22 = vpop.permute.xlu1 %3997  ;;  %12463 = vst [vmem:[#allocation96_spill] sm:$0xff] %v9770_v50  ;;  %v5086_v35 = vrot.slane %v9770_v50, 4 }
 0x9fe   :  { %v4020_v12 = vsel %vm4013_vm13, %v9746_v22, %v4000_v38  ;;  %3425 = vrot.lane.b32.xlu0 %v9574_v18, %s7421_s22 }
 0x9ff   :  { %v4063_v36 = vmul.f32 %v4026_v6, %v4020_v12  ;;  %3467 = vrot.lane.b32.xlu1 %v9609_v24, %s7420_s21  ;;  %v5339_v59 = vsel %vm942_vm2, %v4072_v25, %v5102_v7  ;;  %v150_v7 = vld [vmem:[#allocation9 + $0x82] ss:$8 sm:$0xf0]  ;;  %v9779_v25 = vpack.c.bf16 %v9571_v17, %v9571_v17 }
 0xa00   :  { %v9761_v11 = vpop.permute.xlu0 %3929  ;;  %5636 = vmatprep.subr.bf16.mxu0 %v5339_v59 }
 0xa01   :  { %12462 = vst [vmem:[#allocation19_spill] sm:$0xff] %v9761_v11  ;;  %v4071_v2 = vpack.c.bf16 %v4063_v36, %v4063_v36  ;;  %v3939_v42 = vsel %vm3931_vm15, %v9761_v11, %v3916_v63  ;;  %v9766_v38 = vpop.permute.xlu1 %3917  ;;  %12464 = vst [vmem:[#allocation97_spill] sm:$0xff] %v9779_v25 }
 0xa02   :  { %v3981_v31 = vmul.f32 %v3944_v41, %v3939_v42  ;;  %v3938_v6 = vsel %vm3931_vm15, %v3916_v63, %v9766_v38  ;;  %4899 = vrot.lane.b32.xlu0 %v9571_v17, %s7439_s9  ;;  %v9786_v42 = vor.u32 %v150_v7, %v149_v32  ;;  %v146_v32 = vld [vmem:[#allocation9 + $0x81] ss:$8 sm:$0xf0] }
 0xa03   :  { %v3982_v12 = vmul.f32 %v3948_v3, %v3938_v6  ;;  %3427 = vrot.lane.b32.xlu1 %v9609_v24, %s7421_s22  ;;  %v5335_v41 = vsel %vm942_vm2, %v4071_v2, %v5101_v45  ;;  %v5085_v3 = vrot.slane %v9779_v25, 4  ;;  %v145_v6 = vld [vmem:[#allocation9 + $0x81] ss:$8 sm:$0xf] }
 0xa04   :  { %v3989_v36 = vpack.c.bf16 %v3981_v31, %v3981_v31  ;;  %v9784_v59 = vpop.permute.xlu0 %3835  ;;  %5637 = vmatpush1.bf16.msra.mxu0 %v5335_v41  ;;  %v3866_v7 = vrot.slane %v9786_v42, %v12461_v48 }
 0xa05   :  { %v3990_v63 = vpack.c.bf16 %v3982_v12, %v3982_v12  ;;  %v3834_v0 = vpop.permute.xlu1 %3833 }
 0xa06   :  { %4903 = vrot.lane.b32.xlu0 %v9574_v18, %s7439_s9  ;;  %v5303_v31 = vsel %vm942_vm2, %v3989_v36, %v5085_v3  ;;  %v3856_v41 = vsel %vm3849_vm10, %v3834_v0, %v9784_v59 }
 0xa07   :  { %4901 = vrot.lane.b32.xlu1 %v9566_v15, %s7439_s9  ;;  %v5307_v45 = vsel %vm942_vm2, %v3990_v63, %v5086_v35  ;;  %v9808_v35 = vor.u32 %v146_v32, %v145_v6  ;;  %v3862_v63 = vrot.slane %v9786_v42, %v12452_v58  ;;  %v3900_v3 = vmul.f32 %v3866_v7, %v3856_v41 }
 0xa08   :  { %v9796_v2 = vpop.permute.xlu0 %4087  ;;  %5638 = vmatprep.subr.bf16.mxu0 %v5307_v45  ;;  %v12465_v45 = vld [vmem:[#allocation22_spill] sm:$0xff] }
 0xa09   :  { %5639 = vmatpush1.bf16.msra.mxu0 %v5303_v31  ;;  %v4086_v12 = vpop.permute.xlu1 %4085  ;;  %v4120_v31 = vrot.slane %v9703_v10, %v12465_v45  ;;  %v3784_v7 = vrot.slane %v9808_v35, %v12461_v48  ;;  %v3908_v60 = vpack.c.bf16 %v3900_v3, %v3900_v3 }
 0xa0a   :  { %3387 = vrot.lane.b32.xlu0 %v9609_v24, %s7422_s23  ;;  %v4099_v47 = vsel %vm4095_vm12, %v4086_v12, %v9796_v2  ;;  %v4100_v32 = vsel %vm4095_vm12, %v9718_v44, %v4086_v12  ;;  %v141_v12 = vld [vmem:[#allocation9 + $0x80] ss:$8 sm:$0xf] }
 0xa0b   :  { %3385 = vrot.lane.b32.xlu1 %v9574_v18, %s7422_s23  ;;  %v4148_v26 = vmul.f32 %v4120_v31, %v4099_v47  ;;  %v4147_v1 = vmul.f32 %v4116_v40, %v4100_v32  ;;  %v5070_v32 = vrot.slane %v3908_v60, 4 }
 0xa0c   :  { %v3752_v36 = vpop.permute.xlu0 %3751 }
 0xa0d   :  { %v9814_v56 = vpop.permute.xlu1 %3847  ;;  %v4156_v27 = vpack.c.bf16 %v4148_v26, %v4148_v26 }
 0xa0e   :  { %12466 = vst [vmem:[#allocation22_spill] sm:$0xff] %v9814_v56  ;;  %v3857_v6 = vsel %vm3849_vm10, %v9814_v56, %v3834_v0  ;;  %4821 = vrot.lane.b32.xlu0 %v9574_v18, %s7440_s10  ;;  %v4034_v0 = vrot.slane %v9712_v37, %v12467_v23 }
 0xa0f   :  { %4819 = vrot.lane.b32.xlu1 %v9566_v15, %s7440_s10  ;;  %v3899_v41 = vmul.f32 %v3862_v63, %v3857_v6  ;;  %v3780_v63 = vrot.slane %v9808_v35, %v12452_v58  ;;  %v9854_v6 = vor.u32 %v142_v54, %v141_v12 }
 0xa10   :  { %v4004_v61 = vpop.permute.xlu0 %4003 }
 0xa11   :  { %v4018_v5 = vsel %vm4013_vm13, %v9733_v21, %v4004_v61  ;;  %v9839_v44 = vpop.permute.xlu1 %3753  ;;  %v4038_v21 = vrot.slane %v9712_v37, %v12465_v45  ;;  %v3907_v3 = vpack.c.bf16 %v3899_v41, %v3899_v41 }
 0xa12   :  { %v3774_v51 = vsel %vm3767_vm11, %v3752_v36, %v9839_v44  ;;  %3345 = vrot.lane.b32.xlu0 %v9574_v18, %s7423_s24  ;;  %v4065_v31 = vmul.f32 %v4034_v0, %v4018_v5  ;;  %v3702_v0 = vrot.slane %v9854_v6, %v12461_v48 }
 0xa13   :  { %v3818_v47 = vmul.f32 %v3784_v7, %v3774_v51  ;;  %4817 = vrot.lane.b32.xlu1 %v9571_v17, %s7440_s10  ;;  %v4155_v7 = vpack.c.bf16 %v4147_v1, %v4147_v1  ;;  %v5069_v54 = vrot.slane %v3907_v3, 4  ;;  %v3698_v3 = vrot.slane %v9854_v6, %v12452_v58 }
 0xa14   :  { %v9852_v40 = vpop.permute.xlu0 %3765  ;;  %v4073_v60 = vpack.c.bf16 %v4065_v31, %v4065_v31 }
 0xa15   :  { %12468 = vst [vmem:[#allocation23_spill] sm:$0xff] %v9852_v40  ;;  %v3826_v57 = vpack.c.bf16 %v3818_v47, %v3818_v47  ;;  %v3775_v14 = vsel %vm3767_vm11, %v9852_v40, %v3752_v36  ;;  %v9859_v51 = vpop.permute.xlu1 %4005  ;;  %v5104_v36 = vrot.slane %v4156_v27, 4 }
 0xa16   :  { %v3817_v46 = vmul.f32 %v3780_v63, %v3775_v14  ;;  %v4017_v41 = vsel %vm4013_vm13, %v4004_v61, %v9859_v51  ;;  %4737 = vrot.lane.b32.xlu0 %v9566_v15, %s7441_s11  ;;  %v5103_v63 = vrot.slane %v4155_v7, 4 }
 0xa17   :  { %v4066_v5 = vmul.f32 %v4038_v21, %v4017_v41  ;;  %3347 = vrot.lane.b32.xlu1 %v9609_v24, %s7423_s24  ;;  %v5275_v26 = vsel %vm942_vm2, %v3826_v57, %v5070_v32 }
 0xa18   :  { %v3825_v1 = vpack.c.bf16 %v3817_v46, %v3817_v46  ;;  %v9870_v14 = vpop.permute.xlu0 %3671  ;;  %5640 = vmatprep.subr.bf16.mxu0 %v5275_v26  ;;  %v5343_v21 = vsel %vm942_vm2, %v4073_v60, %v5103_v63 }
 0xa19   :  { %v4074_v61 = vpack.c.bf16 %v4066_v5, %v4066_v5  ;;  %v3670_v12 = vpop.permute.xlu1 %3669  ;;  %v3952_v5 = vrot.slane %v9740_v49, %v12467_v23 }
 0xa1a   :  { %v3692_v47 = vsel %vm3685_vm14, %v3670_v12, %v9870_v14  ;;  %4735 = vrot.lane.b32.xlu0 %v9571_v17, %s7441_s11  ;;  %v5271_v57 = vsel %vm942_vm2, %v3825_v1, %v5069_v54 }
 0xa1b   :  { %4739 = vrot.lane.b32.xlu1 %v9574_v18, %s7441_s11  ;;  %5641 = vmatpush1.bf16.msra.mxu0 %v5271_v57  ;;  %v5347_v46 = vsel %vm942_vm2, %v4074_v61, %v5104_v36  ;;  %v3736_v31 = vmul.f32 %v3702_v0, %v3692_v47  ;;  %v12470_v61 = vld [vmem:[#allocation20_spill] sm:$0xff] }
 0xa1c   :  { %v3632_v27 = vpop.permute.xlu0 %3631  ;;  %5677 = vmatprep.subr.bf16.mxu1 %v5347_v46 }
 0xa1d   :  { %5678 = vmatpush1.bf16.msra.mxu1 %v5343_v21  ;;  %v9886_v32 = vpop.permute.xlu1 %3683  ;;  %v3744_v54 = vpack.c.bf16 %v3736_v31, %v3736_v31  ;;  %v9921_v31 = vpack.c.bf16 %v9609_v24, %v9609_v24 }
 0xa1e   :  { %12469 = vst [vmem:[#allocation98_spill] sm:$0xff] %v9886_v32  ;;  %v3693_v7 = vsel %vm3685_vm14, %v9886_v32, %v3670_v12  ;;  %4657 = vrot.lane.b32.xlu0 %v9574_v18, %s7442_s0  ;;  %v3956_v12 = vrot.slane %v9740_v49, %v12465_v45 }
 0xa1f   :  { %4655 = vrot.lane.b32.xlu1 %v9566_v15, %s7442_s0  ;;  %v3735_v41 = vmul.f32 %v3698_v3, %v3693_v7  ;;  %v5054_v57 = vrot.slane %v3744_v54, 4  ;;  %12472 = vst [vmem:[#allocation100_spill] sm:$0xff] %v9921_v31  ;;  %v12473_v7 = vld [vmem:[#allocation21_spill] sm:$0xff]  ;;  %v5088_v32 = vrot.slane %v9921_v31, 4 }
 0xa20   :  { %v3920_v26 = vpop.permute.xlu0 %3919 }
 0xa21   :  { %v3937_v60 = vsel %vm3931_vm15, %v9766_v38, %v3920_v26  ;;  %v9900_v1 = vpop.permute.xlu1 %3633  ;;  %v3743_v63 = vpack.c.bf16 %v3735_v41, %v3735_v41 }
 0xa22   :  { %v3650_v36 = vsel %vm812_vm0, %v3632_v27, %v9900_v1  ;;  %4905 = vrot.lane.b32.xlu0 %v9609_v24, %s7439_s9  ;;  %v3983_v47 = vmul.f32 %v3952_v5, %v3937_v60  ;;  %v9931_v5 = vpack.c.bf16 %v9574_v18, %v9574_v18 }
 0xa23   :  { %v3654_v0 = vmul.f32 %v3650_v36, %v12470_v61  ;;  %4653 = vrot.lane.b32.xlu1 %v9571_v17, %s7442_s0  ;;  %v5053_v60 = vrot.slane %v3743_v63, 4 }
 0xa24   :  { %v9912_v38 = vpop.permute.xlu0 %3629  ;;  %12474 = vst [vmem:[#allocation101_spill] sm:$0xff] %v9931_v5 }
 0xa25   :  { %12471 = vst [vmem:[#allocation99_spill] sm:$0xff] %v9912_v38  ;;  %v3662_v46 = vpack.c.bf16 %v3654_v0, %v3654_v0  ;;  %v3651_v21 = vsel %vm812_vm0, %v9912_v38, %v3632_v27  ;;  %v9917_v3 = vpop.permute.xlu1 %3921  ;;  %v3991_v0 = vpack.c.bf16 %v3983_v47, %v3983_v47 }
 0xa26   :  { %v3653_v36 = vmul.f32 %v3651_v21, %v12473_v7  ;;  %v3936_v41 = vsel %vm3931_vm15, %v3920_v26, %v9917_v3  ;;  %4571 = vrot.lane.b32.xlu0 %v9571_v17, %s7443_s12 }
 0xa27   :  { %v3984_v27 = vmul.f32 %v3956_v12, %v3936_v41  ;;  %4907 = vrot.lane.b32.xlu1 %v9606_v62, %s7439_s9  ;;  %v5243_v54 = vsel %vm942_vm2, %v3662_v46, %v5054_v57  ;;  %v5087_v41 = vrot.slane %v9931_v5, 4 }
 0xa28   :  { %v3661_v21 = vpack.c.bf16 %v3653_v36, %v3653_v36  ;;  %v9936_v61 = vpop.permute.xlu0 %3593  ;;  %5642 = vmatprep.subr.bf16.mxu0 %v5243_v54  ;;  %v12475_v54 = vld [vmem:[#allocation24_spill] sm:$0xff] }
 0xa29   :  { %v3992_v26 = vpack.c.bf16 %v3984_v27, %v3984_v27  ;;  %v3592_v7 = vpop.permute.xlu1 %3591  ;;  %v5311_v57 = vsel %vm942_vm2, %v3991_v0, %v5087_v41  ;;  %v3870_v0 = vrot.slane %v9786_v42, %v12467_v23 }
 0xa2a   :  { %4823 = vrot.lane.b32.xlu0 %v9609_v24, %s7440_s10  ;;  %v5239_v12 = vsel %vm942_vm2, %v3661_v21, %v5053_v60  ;;  %v3610_v36 = vsel %vm730_vm1, %v3592_v7, %v9936_v61  ;;  %v3874_v60 = vrot.slane %v9786_v42, %v12465_v45 }
 0xa2b   :  { %4573 = vrot.lane.b32.xlu1 %v9566_v15, %s7443_s12  ;;  %5643 = vmatpush1.bf16.msra.mxu0 %v5239_v12  ;;  %v5315_v63 = vsel %vm942_vm2, %v3992_v26, %v5088_v32  ;;  %v3614_v32 = vmul.f32 %v3610_v36, %v12475_v54  ;;  %v3788_v36 = vrot.slane %v9808_v35, %v12467_v23 }
 0xa2c   :  { %v9946_v47 = vpop.permute.xlu0 %3839  ;;  %5679 = vmatprep.subr.bf16.mxu1 %v5315_v63  ;;  %v12477_v63 = vld [vmem:[#allocation28_spill] sm:$0xff] }
 0xa2d   :  { %5680 = vmatpush1.bf16.msra.mxu1 %v5311_v57  ;;  %v3838_v46 = vpop.permute.xlu1 %3837  ;;  %v3622_v9 = vpack.c.bf16 %v3614_v32, %v3614_v32  ;;  %v3792_v32 = vrot.slane %v9808_v35, %v12465_v45 }
 0xa2e   :  { %4585 = vrot.lane.b32.xlu0 %v9592_v20, %s7443_s12  ;;  %v3854_v26 = vsel %vm3849_vm10, %v3838_v46, %v9946_v47  ;;  %v3855_v41 = vsel %vm3849_vm10, %v9784_v59, %v3838_v46  ;;  %v12478_v46 = vld [vmem:[#allocation27_spill] sm:$0xff] }
 0xa2f   :  { %4825 = vrot.lane.b32.xlu1 %v9606_v62, %s7440_s10  ;;  %v3902_v38 = vmul.f32 %v3874_v60, %v3854_v26  ;;  %v3901_v53 = vmul.f32 %v3870_v0, %v3855_v41  ;;  %v5038_v0 = vrot.slane %v3622_v9, 4 }
 0xa30   :  { %v3552_v27 = vpop.permute.xlu0 %3551 }
 0xa31   :  { %v9959_v21 = vpop.permute.xlu1 %3589  ;;  %v3910_v41 = vpack.c.bf16 %v3902_v38, %v3902_v38 }
 0xa32   :  { %12476 = vst [vmem:[#allocation102_spill] sm:$0xff] %v9959_v21  ;;  %v3611_v12 = vsel %vm730_vm1, %v9959_v21, %v3592_v7  ;;  %4491 = vrot.lane.b32.xlu0 %v9566_v15, %s7444_s13 }
 0xa33   :  { %4489 = vrot.lane.b32.xlu1 %v9571_v17, %s7444_s13  ;;  %v3613_v57 = vmul.f32 %v3611_v12, %v12477_v63 }
 0xa34   :  { %v3756_v54 = vpop.permute.xlu0 %3755 }
 0xa35   :  { %v3773_v7 = vsel %vm3767_vm11, %v9839_v44, %v3756_v54  ;;  %v9982_v21 = vpop.permute.xlu1 %3553  ;;  %v3621_v60 = vpack.c.bf16 %v3613_v57, %v3613_v57 }
 0xa36   :  { %v3570_v59 = vsel %vm12234_vm3, %v3552_v27, %v9982_v21  ;;  %4743 = vrot.lane.b32.xlu0 %v9606_v62, %s7441_s11  ;;  %v3819_v44 = vmul.f32 %v3788_v36, %v3773_v7 }
 0xa37   :  { %v3574_v12 = vmul.f32 %v3570_v59, %v12478_v46  ;;  %4741 = vrot.lane.b32.xlu1 %v9609_v24, %s7441_s11  ;;  %v3909_v59 = vpack.c.bf16 %v3901_v53, %v3901_v53  ;;  %v12480_v46 = vld [vmem:[#allocation29_spill] sm:$0xff] }
 0xa38   :  { %v9994_v26 = vpop.permute.xlu0 %3549  ;;  %v3827_v57 = vpack.c.bf16 %v3819_v44, %v3819_v44 }
 0xa39   :  { %12479 = vst [vmem:[#allocation103_spill] sm:$0xff] %v9994_v26  ;;  %v3582_v63 = vpack.c.bf16 %v3574_v12, %v3574_v12  ;;  %v3571_v33 = vsel %vm12234_vm3, %v9994_v26, %v3552_v27  ;;  %v9999_v40 = vpop.permute.xlu1 %3757  ;;  %v5037_v27 = vrot.slane %v3621_v60, 4 }
 0xa3a   :  { %v3573_v56 = vmul.f32 %v3571_v33, %v12480_v46  ;;  %v3772_v11 = vsel %vm3767_vm11, %v3756_v54, %v9999_v40  ;;  %4407 = vrot.lane.b32.xlu0 %v9571_v17, %s7445_s14  ;;  %v5072_v33 = vrot.slane %v3910_v41, 4  ;;  %v5071_v54 = vrot.slane %v3909_v59, 4 }
 0xa3b   :  { %v3820_v9 = vmul.f32 %v3792_v32, %v3772_v11  ;;  %4503 = vrot.lane.b32.xlu1 %v9592_v20, %s7444_s13  ;;  %v5211_v38 = vsel %vm942_vm2, %v3582_v63, %v5038_v0  ;;  %v12481_v63 = vld [vmem:[#allocation32_spill] sm:$0xff]  ;;  %v3706_v0 = vrot.slane %v9854_v6, %v12467_v23  ;;  %v3710_v59 = vrot.slane %v9854_v6, %v12465_v45 }
 0xa3c   :  { %v3581_v36 = vpack.c.bf16 %v3573_v56, %v3573_v56  ;;  %v10010_v53 = vpop.permute.xlu0 %3513  ;;  %5644 = vmatprep.subr.bf16.mxu0 %v5211_v38  ;;  %v5279_v44 = vsel %vm942_vm2, %v3827_v57, %v5071_v54 }
 0xa3d   :  { %v3828_v7 = vpack.c.bf16 %v3820_v9, %v3820_v9  ;;  %v3512_v12 = vpop.permute.xlu1 %3511 }
 0xa3e   :  { %v3530_v46 = vsel %vm12213_vm4, %v3512_v12, %v10010_v53  ;;  %4659 = vrot.lane.b32.xlu0 %v9609_v24, %s7442_s0  ;;  %v5207_v11 = vsel %vm942_vm2, %v3581_v36, %v5037_v27 }
 0xa3f   :  { %v3534_v32 = vmul.f32 %v3530_v46, %v12481_v63  ;;  %4409 = vrot.lane.b32.xlu1 %v9566_v15, %s7445_s14  ;;  %5645 = vmatpush1.bf16.msra.mxu0 %v5207_v11  ;;  %v5283_v56 = vsel %vm942_vm2, %v3828_v7, %v5072_v33 }
 0xa40   :  { %v10022_v60 = vpop.permute.xlu0 %3675  ;;  %5681 = vmatprep.subr.bf16.mxu1 %v5283_v56 }
 0xa41   :  { %v3542_v41 = vpack.c.bf16 %v3534_v32, %v3534_v32  ;;  %5682 = vmatpush1.bf16.msra.mxu1 %v5279_v44  ;;  %v3674_v46 = vpop.permute.xlu1 %3673  ;;  %v12483_v32 = vld [vmem:[#allocation34_spill] sm:$0xff] }
 0xa42   :  { %v3690_v9 = vsel %vm3685_vm14, %v3674_v46, %v10022_v60  ;;  %v3691_v38 = vsel %vm3685_vm14, %v9870_v14, %v3674_v46  ;;  %4421 = vrot.lane.b32.xlu0 %v9592_v20, %s7445_s14  ;;  %v12484_v44 = vld [vmem:[#allocation26_spill] sm:$0xff] }
 0xa43   :  { %v5022_v27 = vrot.slane %v3542_v41, 4  ;;  %4661 = vrot.lane.b32.xlu1 %v9606_v62, %s7442_s0  ;;  %v3737_v57 = vmul.f32 %v3706_v0, %v3691_v38  ;;  %v3738_v33 = vmul.f32 %v3710_v59, %v3690_v9 }
 0xa44   :  { %v3636_v36 = vpop.permute.xlu0 %3635 }
 0xa45   :  { %v3649_v7 = vsel %vm812_vm0, %v9900_v1, %v3636_v36  ;;  %v10042_v54 = vpop.permute.xlu1 %3509  ;;  %v5179_v11 = vsel %vm942_vm2, %v9770_v50, %v5022_v27  ;;  %v3745_v1 = vpack.c.bf16 %v3737_v57, %v3737_v57  ;;  %v3746_v59 = vpack.c.bf16 %v3738_v33, %v3738_v33  ;;  %v12485_v27 = vld [vmem:[#allocation25_spill] sm:$0xff] }
 0xa46   :  { %12482 = vst [vmem:[#allocation104_spill] sm:$0xff] %v10042_v54  ;;  %v3531_v14 = vsel %vm12213_vm4, %v10042_v54, %v3512_v12  ;;  %4327 = vrot.lane.b32.xlu0 %v9566_v15, %s7446_s15  ;;  %5646 = vmatprep.subr.bf16.mxu0 %v5179_v11  ;;  %v3655_v0 = vmul.f32 %v3649_v7, %v12484_v44 }
 0xa47   :  { %v3533_v56 = vmul.f32 %v3531_v14, %v12483_v32  ;;  %4325 = vrot.lane.b32.xlu1 %v9571_v17, %s7446_s15  ;;  %v5055_v57 = vrot.slane %v3745_v1, 4  ;;  %v5056_v14 = vrot.slane %v3746_v59, 4 }
 0xa48   :  { %v3462_v41 = vpop.permute.xlu0 %3461  ;;  %v3663_v7 = vpack.c.bf16 %v3655_v0, %v3655_v0 }
 0xa49   :  { %v3541_v46 = vpack.c.bf16 %v3533_v56, %v3533_v56  ;;  %v10055_v9 = vpop.permute.xlu1 %3637 }
 0xa4a   :  { %v3648_v12 = vsel %vm812_vm0, %v3636_v36, %v10055_v9  ;;  %4245 = vrot.lane.b32.xlu0 %v9566_v15, %s7447_s16  ;;  %v5247_v59 = vsel %vm942_vm2, %v3663_v7, %v5055_v57  ;;  %v12488_v57 = vld [vmem:[#allocation31_spill] sm:$0xff] }
 0xa4b   :  { %v5021_v38 = vrot.slane %v3541_v46, 4  ;;  %v3656_v11 = vmul.f32 %v3648_v12, %v12485_v27  ;;  %4339 = vrot.lane.b32.xlu1 %v9592_v20, %s7446_s15  ;;  %v12487_v12 = vld [vmem:[#allocation38_spill] sm:$0xff]  ;;  %v12490_v27 = vld [vmem:[#allocation40_spill] sm:$0xff] }
 0xa4c   :  { %v3596_v33 = vpop.permute.xlu0 %3595 }
 0xa4d   :  { %v3664_v56 = vpack.c.bf16 %v3656_v11, %v3656_v11  ;;  %v10065_v44 = vpop.permute.xlu1 %3463  ;;  %v5175_v36 = vsel %vm942_vm2, %v9779_v25, %v5021_v38  ;;  %v3609_v46 = vsel %vm730_vm1, %v9936_v61, %v3596_v33 }
 0xa4e   :  { %v3483_v63 = vsel %vm12202_vm5, %v3462_v41, %v10065_v44  ;;  %4575 = vrot.lane.b32.xlu0 %v9574_v18, %s7443_s12  ;;  %5647 = vmatpush1.bf16.msra.mxu0 %v5175_v36  ;;  %v3615_v7 = vmul.f32 %v3609_v46, %v12488_v57 }
 0xa4f   :  { %4247 = vrot.lane.b32.xlu1 %v9574_v18, %s7447_s16  ;;  %v5251_v1 = vsel %vm942_vm2, %v3664_v56, %v5056_v14  ;;  %v3486_v38 = vmul.f32 %v3483_v63, %v12487_v12  ;;  %v12489_v56 = vld [vmem:[#allocation30_spill] sm:$0xff] }
 0xa50   :  { %v10077_v0 = vpop.permute.xlu0 %3475  ;;  %5683 = vmatprep.subr.bf16.mxu1 %v5251_v1 }
 0xa51   :  { %12486 = vst [vmem:[#allocation105_spill] sm:$0xff] %v10077_v0  ;;  %5684 = vmatpush1.bf16.msra.mxu1 %v5247_v59  ;;  %v10084_v11 = vpop.permute.xlu1 %3597  ;;  %v3494_v61 = vpack.c.bf16 %v3486_v38, %v3486_v38  ;;  %v3484_v59 = vsel %vm12202_vm5, %v10077_v0, %v3462_v41  ;;  %v3623_v38 = vpack.c.bf16 %v3615_v7, %v3615_v7  ;;  %v12492_v7 = vld [vmem:[#allocation33_spill] sm:$0xff] }
 0xa52   :  { %v3608_v36 = vsel %vm730_vm1, %v3596_v33, %v10084_v11  ;;  %4243 = vrot.lane.b32.xlu0 %v9571_v17, %s7447_s16  ;;  %v3485_v12 = vmul.f32 %v3484_v59, %v12414_v55  ;;  %v10126_v59 = vadd.f32 %v9598_v19, %v8996_v34 }
 0xa53   :  { %4577 = vrot.lane.b32.xlu1 %v9609_v24, %s7443_s12  ;;  %v3616_v63 = vmul.f32 %v3608_v36, %v12489_v56  ;;  %v5006_v56 = vrot.slane %v3494_v61, 4 }
 0xa54   :  { %v10094_v14 = vpop.permute.xlu0 %3423  ;;  %12494 = vst [vmem:[#allocation107_spill] sm:$0xff] %v10126_v59 }
 0xa55   :  { %v3422_v1 = vpop.permute.xlu1 %3421  ;;  %v3624_v41 = vpack.c.bf16 %v3616_v63, %v3616_v63 }
 0xa56   :  { %v3443_v33 = vsel %vm12206_vm6, %v3422_v1, %v10094_v14  ;;  %4165 = vrot.lane.b32.xlu0 %v9574_v18, %s7448_s2 }
 0xa57   :  { %v3446_v46 = vmul.f32 %v3443_v33, %v12490_v27  ;;  %4163 = vrot.lane.b32.xlu1 %v9566_v15, %s7448_s2  ;;  %v12493_v27 = vld [vmem:[#allocation35_spill] sm:$0xff] }
 0xa58   :  { %v10108_v36 = vpop.permute.xlu0 %3557 }
 0xa59   :  { %12491 = vst [vmem:[#allocation106_spill] sm:$0xff] %v10108_v36  ;;  %v3454_v32 = vpack.c.bf16 %v3446_v46, %v3446_v46  ;;  %v3556_v57 = vpop.permute.xlu1 %3555  ;;  %v5039_v46 = vrot.slane %v3623_v38, 4 }
 0xa5a   :  { %v3568_v0 = vsel %vm12234_vm3, %v3556_v57, %v10108_v36  ;;  %v3569_v33 = vsel %vm12234_vm3, %v9982_v21, %v3556_v57  ;;  %4495 = vrot.lane.b32.xlu0 %v9609_v24, %s7444_s13  ;;  %v3493_v21 = vpack.c.bf16 %v3485_v12, %v3485_v12  ;;  %v5040_v57 = vrot.slane %v3624_v41, 4 }
 0xa5b   :  { %v3575_v15 = vmul.f32 %v3569_v33, %v12492_v7  ;;  %v3576_v61 = vmul.f32 %v3568_v0, %v12493_v27  ;;  %4493 = vrot.lane.b32.xlu1 %v9574_v18, %s7444_s13  ;;  %v5147_v63 = vsel %vm942_vm2, %v3454_v32, %v5006_v56  ;;  %v10142_v12 = vadd.f32 %v9584_v4, %v9011_v30  ;;  %v12497_v33 = vld [vmem:[#allocation36_spill] sm:$0xff]  ;;  %v10155_v30 = vld [vmem:[#allocation6 + $0x30] sm:$0x33] }
 0xa5c   :  { %v3382_v55 = vpop.permute.xlu0 %3381  ;;  %5648 = vmatprep.subr.bf16.mxu0 %v5147_v63  ;;  %v5005_v56 = vrot.slane %v3493_v21, 4  ;;  %vm4177_vm3 = vcmp.lt.s32.totalorder %v7634_v13, 96 }
 0xa5d   :  { %v3583_v54 = vpack.c.bf16 %v3575_v15, %v3575_v15  ;;  %v3584_v26 = vpack.c.bf16 %v3576_v61, %v3576_v61  ;;  %v10128_v36 = vpop.permute.xlu1 %3435  ;;  %12496 = vst [vmem:[#allocation109_spill] sm:$0xff] %v10142_v12 }
 0xa5e   :  { %12495 = vst [vmem:[#allocation108_spill] sm:$0xff] %v10128_v36  ;;  %v3444_v0 = vsel %vm12206_vm6, %v10128_v36, %v3422_v1  ;;  %4089 = vrot.lane.b32.xlu0 %v10126_v59, %s7433_s29  ;;  %v178_v36 = vld [vmem:[#allocation9 + $0xc1] ss:$8 sm:$0xf0] }
 0xa5f   :  { %v3445_v32 = vmul.f32 %v3444_v0, %v12419_v43  ;;  %4161 = vrot.lane.b32.xlu1 %v9571_v17, %s7448_s2  ;;  %v5219_v34 = vsel %vm942_vm2, %v3584_v26, %v5040_v57  ;;  %v5215_v19 = vsel %vm942_vm2, %v3583_v54, %v5039_v46 }
 0xa60   :  { %v3516_v15 = vpop.permute.xlu0 %3515  ;;  %5685 = vmatprep.subr.bf16.mxu1 %v5219_v34 }
 0xa61   :  { %v3453_v1 = vpack.c.bf16 %v3445_v32, %v3445_v32  ;;  %v3529_v38 = vsel %vm12213_vm4, %v10010_v53, %v3516_v15  ;;  %5686 = vmatpush1.bf16.msra.mxu1 %v5215_v19  ;;  %v10147_v41 = vpop.permute.xlu1 %3383  ;;  %v10162_v53 = vcombine.high %v10155_v30, %v10155_v30 }
 0xa62   :  { %v3535_v61 = vmul.f32 %v3529_v38, %v12497_v33  ;;  %v3403_v26 = vsel %vm12207_vm7, %v3382_v55, %v10147_v41  ;;  %4411 = vrot.lane.b32.xlu0 %v9574_v18, %s7445_s14 }
 0xa63   :  { %4091 = vrot.lane.b32.xlu1 %v10142_v12, %s7433_s29  ;;  %v5143_v4 = vsel %vm942_vm2, %v3453_v1, %v5005_v56  ;;  %v3406_v63 = vmul.f32 %v3403_v26, %v12412_v29  ;;  %7101 = vmatprep.mubr.msk.bf16.mxu0 %vm5608_vm9, %v10162_v53 }
 0xa64   :  { %v10164_v54 = vpop.permute.xlu0 %3395  ;;  %5649 = vmatpush1.bf16.msra.mxu0 %v5143_v4  ;;  %7103 = vmatprep.mubr.msk.bf16.mxu1 %vm5608_vm9, %v10162_v53  ;;  %v3543_v21 = vpack.c.bf16 %v3535_v61, %v3535_v61 }
 0xa65   :  { %12498 = vst [vmem:[#allocation110_spill] sm:$0xff] %v10164_v54  ;;  %v10167_v46 = vpop.permute.xlu1 %3517  ;;  %v3404_v57 = vsel %vm12207_vm7, %v10164_v54, %v3382_v55  ;;  %v3414_v19 = vpack.c.bf16 %v3406_v63, %v3406_v63 }
 0xa66   :  { %v3528_v0 = vsel %vm12213_vm4, %v3516_v15, %v10167_v46  ;;  %4007 = vrot.lane.b32.xlu0 %v10126_v59, %s7434_s30  ;;  %v3405_v56 = vmul.f32 %v3404_v57, %v12417_v28  ;;  %v5023_v55 = vrot.slane %v3543_v21, 4  ;;  %vm4587_vm4 = vcmp.lt.s32.totalorder %v7634_v13, 3 }
 0xa67   :  { %v3536_v32 = vmul.f32 %v3528_v0, %v12409_v16  ;;  %4413 = vrot.lane.b32.xlu1 %v9609_v24, %s7445_s14  ;;  %v4990_v63 = vrot.slane %v3414_v19, 4 }
 0xa68   :  { %v10184_v34 = vpop.permute.xlu0 %3343  ;;  %v3413_v0 = vpack.c.bf16 %v3405_v56, %v3405_v56 }
 0xa69   :  { %v3544_v1 = vpack.c.bf16 %v3536_v32, %v3536_v32  ;;  %v3342_v38 = vpop.permute.xlu1 %3341 }
 0xa6a   :  { %v3363_v15 = vsel %vm12212_vm8, %v3342_v38, %v10184_v34  ;;  %4329 = vrot.lane.b32.xlu0 %v9574_v18, %s7446_s15 }
 0xa6b   :  { %v5024_v61 = vrot.slane %v3544_v1, 4  ;;  %v3366_v26 = vmul.f32 %v3363_v15, %v12413_v8  ;;  %4009 = vrot.lane.b32.xlu1 %v10142_v12, %s7434_s30  ;;  %v5183_v1 = vsel %vm942_vm2, %v9931_v5, %v5023_v55  ;;  %v12505_v8 = vld [vmem:[#allocation45_spill] sm:$0xff] }
 0xa6c   :  { %v3466_v4 = vpop.permute.xlu0 %3465 }
 0xa6d   :  { %v3374_v57 = vpack.c.bf16 %v3366_v26, %v3366_v26  ;;  %v10195_v32 = vpop.permute.xlu1 %3355  ;;  %v5187_v21 = vsel %vm942_vm2, %v9921_v31, %v5024_v61  ;;  %v3482_v19 = vsel %vm12202_vm5, %v10065_v44, %v3466_v4  ;;  %v201_v61 = vld [vmem:[#allocation9 + $0xc7] ss:$8 sm:$0xf] }
 0xa6e   :  { %12499 = vst [vmem:[#allocation111_spill] sm:$0xff] %v10195_v32  ;;  %v3364_v17 = vsel %vm12212_vm8, %v10195_v32, %v3342_v38  ;;  %4249 = vrot.lane.b32.xlu0 %v9609_v24, %s7447_s16  ;;  %5687 = vmatprep.subr.bf16.mxu1 %v5187_v21  ;;  %v202_v26 = vld [vmem:[#allocation9 + $0xc7] ss:$8 sm:$0xf0]  ;;  %v4989_v21 = vrot.slane %v3413_v0, 4 }
 0xa6f   :  { %v3365_v56 = vmul.f32 %v3364_v17, %v12421_v52  ;;  %4331 = vrot.lane.b32.xlu1 %v9609_v24, %s7446_s15  ;;  %5688 = vmatpush1.bf16.msra.mxu1 %v5183_v1  ;;  %v5115_v15 = vsel %vm942_vm2, %v3374_v57, %v4990_v63  ;;  %v12500_v44 = vld [vmem:[#allocation42_spill] sm:$0xff]  ;;  %v12501_v63 = vld [vmem:[#allocation43_spill] sm:$0xff] }
 0xa70   :  { %v3426_v38 = vpop.permute.xlu0 %3425  ;;  %5650 = vmatprep.subr.bf16.mxu0 %v5115_v15  ;;  %v3487_v17 = vmul.f32 %v3482_v19, %v12500_v44  ;;  %v190_v44 = vld [vmem:[#allocation9 + $0xc4] ss:$8 sm:$0xf0] }
 0xa71   :  { %v3373_v18 = vpack.c.bf16 %v3365_v56, %v3365_v56  ;;  %v3442_v55 = vsel %vm12206_vm6, %v10094_v14, %v3426_v38  ;;  %v10216_v28 = vpop.permute.xlu1 %3467  ;;  %v10228_v56 = vor.u32 %v202_v26, %v201_v61  ;;  %v12503_v14 = vld [vmem:[#allocation44_spill] sm:$0xff] }
 0xa72   :  { %v3481_v1 = vsel %vm12202_vm5, %v3466_v4, %v10216_v28  ;;  %3923 = vrot.lane.b32.xlu0 %v9606_v62, %s7435_s6  ;;  %v3447_v15 = vmul.f32 %v3442_v55, %v12503_v14  ;;  %v3495_v4 = vpack.c.bf16 %v3487_v17, %v3487_v17  ;;  %vm12215_vm5 = vcmp.lt.s32.totalorder %v7634_v13, 77 }
 0xa73   :  { %v3488_v57 = vmul.f32 %v3481_v1, %v12501_v63  ;;  %4251 = vrot.lane.b32.xlu1 %v9606_v62, %s7447_s16  ;;  %v5111_v0 = vsel %vm942_vm2, %v3373_v18, %v4989_v21  ;;  %12502 = vst [vmem:[#allocation112_spill] sm:$0xff] %v10228_v56  ;;  %v4928_v61 = vrot.slane %v10228_v56, %v12452_v58 }
 0xa74   :  { %v10231_v52 = vpop.permute.xlu0 %4899  ;;  %5651 = vmatpush1.bf16.msra.mxu0 %v5111_v0  ;;  %v4932_v26 = vrot.slane %v10228_v56, %v12461_v48  ;;  %v3455_v21 = vpack.c.bf16 %v3447_v15, %v3447_v15  ;;  %v5007_v0 = vrot.slane %v3495_v4, 4 }
 0xa75   :  { %12504 = vst [vmem:[#allocation113_spill] sm:$0xff] %v10231_v52  ;;  %v3496_v19 = vpack.c.bf16 %v3488_v57, %v3488_v57  ;;  %v10233_v43 = vpop.permute.xlu1 %3427 }
 0xa76   :  { %v3441_v1 = vsel %vm12206_vm6, %v3426_v38, %v10233_v43  ;;  %4167 = vrot.lane.b32.xlu0 %v9609_v24, %s7448_s2  ;;  %v5151_v4 = vsel %vm942_vm2, %v3455_v21, %v5007_v0  ;;  %vm12231_vm6 = vcmp.lt.s32.totalorder %v7634_v13, 80 }
 0xa77   :  { %v3448_v18 = vmul.f32 %v3441_v1, %v12505_v8  ;;  %3925 = vrot.lane.b32.xlu1 %v10126_v59, %s7435_s6  ;;  %v5008_v38 = vrot.slane %v3496_v19, 4  ;;  %v189_v8 = vld [vmem:[#allocation9 + $0xc4] ss:$8 sm:$0xf] }
 0xa78   :  { %v10248_v55 = vpop.permute.xlu0 %4903 }
 0xa79   :  { %v3456_v17 = vpack.c.bf16 %v3448_v18, %v3448_v18  ;;  %v4902_v57 = vpop.permute.xlu1 %4901 }
 0xa7a   :  { %v4921_v1 = vsel %vm12215_vm5, %v4902_v57, %v10248_v55  ;;  %v4922_v24 = vsel %vm12215_vm5, %v10231_v52, %v4902_v57  ;;  %3841 = vrot.lane.b32.xlu0 %v9606_v62, %s7436_s7  ;;  %v197_v57 = vld [vmem:[#allocation9 + $0xc6] ss:$8 sm:$0xf] }
 0xa7b   :  { %v4965_v29 = vmul.f32 %v4928_v61, %v4922_v24  ;;  %v4966_v16 = vmul.f32 %v4932_v26, %v4921_v1  ;;  %4169 = vrot.lane.b32.xlu1 %v9606_v62, %s7448_s2  ;;  %v5155_v15 = vsel %vm942_vm2, %v3456_v17, %v5008_v38  ;;  %v198_v24 = vld [vmem:[#allocation9 + $0xc6] ss:$8 sm:$0xf0]  ;;  %v193_v38 = vld [vmem:[#allocation9 + $0xc5] ss:$8 sm:$0xf] }
 0xa7c   :  { %v10261_v19 = vpop.permute.xlu0 %3387  ;;  %5689 = vmatprep.subr.bf16.mxu1 %v5155_v15  ;;  %v10272_v21 = vor.u32 %v198_v24, %v197_v57  ;;  %v194_v17 = vld [vmem:[#allocation9 + $0xc5] ss:$8 sm:$0xf0] }
 0xa7d   :  { %v4973_v18 = vpack.c.bf16 %v4965_v29, %v4965_v29  ;;  %v4974_v27 = vpack.c.bf16 %v4966_v16, %v4966_v16  ;;  %5690 = vmatpush1.bf16.msra.mxu1 %v5151_v4  ;;  %v3386_v63 = vpop.permute.xlu1 %3385  ;;  %v12507_v1 = vld [vmem:[#allocation51_spill] sm:$0xff]  ;;  %v12509_v24 = vld [vmem:[#allocation49_spill] sm:$0xff] }
 0xa7e   :  { %4093 = vrot.lane.b32.xlu0 %v9592_v20, %s7433_s29  ;;  %12506 = vst [vmem:[#allocation114_spill] sm:$0xff] %v10272_v21  ;;  %v3401_v29 = vsel %vm12207_vm7, %v3386_v63, %v10261_v19  ;;  %v4850_v4 = vrot.slane %v10272_v21, %v12461_v48 }
 0xa7f   :  { %3843 = vrot.lane.b32.xlu1 %v10126_v59, %s7436_s7  ;;  %7100 = vmatprep.subr.msk.bf16.mxu0 %vm942_vm2, %v4974_v27  ;;  %v5613_v61 = vsel %vm942_vm2, %v4973_v18, 0  ;;  %v3402_v27 = vsel %vm12207_vm7, %v10147_v41, %v3386_v63  ;;  %v3408_v15 = vmul.f32 %v3401_v29, %v12507_v1  ;;  %v4846_v63 = vrot.slane %v10272_v21, %v12452_v58 }
 0xa80   :  { %v10270_v26 = vpop.permute.xlu0 %4821  ;;  %5657 = vmatpush2.bf16.msra.mxu0 %v5613_v61  ;;  %v3407_v61 = vmul.f32 %v3402_v27, %v12509_v24  ;;  %v10301_v29 = vor.u32 %v194_v17, %v193_v38  ;;  %v12511_v27 = vld [vmem:[#allocation52_spill] sm:$0xff]  ;;  %vm12230_vm7 = vcmp.lt.s32.totalorder %v7634_v13, 83 }
 0xa81   :  { %v4820_v16 = vpop.permute.xlu1 %4819  ;;  %v3416_v14 = vpack.c.bf16 %v3408_v15, %v3408_v15 }
 0xa82   :  { %3761 = vrot.lane.b32.xlu0 %v10126_v59, %s7437_s1  ;;  %v4839_v41 = vsel %vm12231_vm6, %v4820_v16, %v10270_v26  ;;  %12510 = vst [vmem:[#allocation116_spill] sm:$0xff] %v10301_v29  ;;  %v3415_v38 = vpack.c.bf16 %v3407_v61, %v3407_v61  ;;  %v4768_v15 = vrot.slane %v10301_v29, %v12461_v48 }
 0xa83   :  { %3759 = vrot.lane.b32.xlu1 %v9606_v62, %s7437_s1  ;;  %v4884_v33 = vmul.f32 %v4850_v4, %v4839_v41  ;;  %v10324_v4 = vor.u32 %v190_v44, %v189_v8 }
 0xa84   :  { %v3346_v0 = vpop.permute.xlu0 %3345 }
 0xa85   :  { %v3362_v18 = vsel %vm12212_vm8, %v10184_v34, %v3346_v0  ;;  %v10291_v57 = vpop.permute.xlu1 %4817 }
 0xa86   :  { %12508 = vst [vmem:[#allocation115_spill] sm:$0xff] %v10291_v57  ;;  %3677 = vrot.lane.b32.xlu0 %v9606_v62, %s7438_s8  ;;  %v4840_v34 = vsel %vm12231_vm6, %v10291_v57, %v4820_v16  ;;  %v3367_v1 = vmul.f32 %v3362_v18, %v12511_v27  ;;  %v4764_v18 = vrot.slane %v10301_v29, %v12452_v58  ;;  %v12512_v27 = vld [vmem:[#allocation53_spill] sm:$0xff] }
 0xa87   :  { %4011 = vrot.lane.b32.xlu1 %v9592_v20, %s7434_s30  ;;  %v4883_v17 = vmul.f32 %v4846_v63, %v4840_v34  ;;  %v4892_v63 = vpack.c.bf16 %v4884_v33, %v4884_v33 }
 0xa88   :  { %v4738_v24 = vpop.permute.xlu0 %4737  ;;  %v3375_v61 = vpack.c.bf16 %v3367_v1, %v3367_v1 }
 0xa89   :  { %v10309_v7 = vpop.permute.xlu1 %3347 }
 0xa8a   :  { %v3361_v16 = vsel %vm12212_vm8, %v3346_v0, %v10309_v7  ;;  %3639 = vrot.lane.b32.xlu0 %v10126_v59, %s7416_s3  ;;  %v4992_v0 = vrot.slane %v3416_v14, 4  ;;  %vm12233_vm8 = vcmp.lt.s32.totalorder %v7634_v13, 125  ;;  %v4686_v14 = vrot.slane %v10324_v4, %v12461_v48 }
 0xa8b   :  { %v3368_v57 = vmul.f32 %v3361_v16, %v12512_v27  ;;  %3679 = vrot.lane.b32.xlu1 %v10126_v59, %s7438_s8  ;;  %v4991_v16 = vrot.slane %v3415_v38, 4  ;;  %v4891_v27 = vpack.c.bf16 %v4883_v17, %v4883_v17 }
 0xa8c   :  { %v10326_v41 = vpop.permute.xlu0 %4735 }
 0xa8d   :  { %12513 = vst [vmem:[#allocation117_spill] sm:$0xff] %v10326_v41  ;;  %v3376_v34 = vpack.c.bf16 %v3368_v57, %v3368_v57  ;;  %v4758_v52 = vsel %vm12230_vm7, %v10326_v41, %v4738_v24  ;;  %v10331_v32 = vpop.permute.xlu1 %4739  ;;  %v5119_v57 = vsel %vm942_vm2, %v3375_v61, %v4991_v16 }
 0xa8e   :  { %v4801_v54 = vmul.f32 %v4764_v18, %v4758_v52  ;;  %v4757_v8 = vsel %vm12230_vm7, %v4738_v24, %v10331_v32  ;;  %3927 = vrot.lane.b32.xlu0 %v10142_v12, %s7435_s6  ;;  %v5438_v24 = vrot.slane %v4892_v63, 4  ;;  %v5437_v18 = vrot.slane %v4891_v27, 4 }
 0xa8f   :  { %v4802_v44 = vmul.f32 %v4768_v15, %v4757_v8  ;;  %3641 = vrot.lane.b32.xlu1 %v10142_v12, %s7416_s3  ;;  %v5123_v33 = vsel %vm942_vm2, %v3376_v34, %v4992_v0  ;;  %v4682_v63 = vrot.slane %v10324_v4, %v12452_v58 }
 0xa90   :  { %v4809_v1 = vpack.c.bf16 %v4801_v54, %v4801_v54  ;;  %v10344_v52 = vpop.permute.xlu0 %4657  ;;  %5691 = vmatprep.subr.bf16.mxu1 %v5123_v33  ;;  %v4936_v54 = vrot.slane %v10228_v56, %v12467_v23 }
 0xa91   :  { %v4810_v38 = vpack.c.bf16 %v4802_v44, %v4802_v44  ;;  %5692 = vmatpush1.bf16.msra.mxu1 %v5119_v57  ;;  %v4656_v17 = vpop.permute.xlu1 %4655  ;;  %v186_v57 = vld [vmem:[#allocation9 + $0xc3] ss:$8 sm:$0xf0] }
 0xa92   :  { %v4675_v15 = vsel %vm12233_vm8, %v4656_v17, %v10344_v52  ;;  %3601 = vrot.lane.b32.xlu0 %v10142_v12, %s7417_s4  ;;  %v5567_v34 = vsel %vm942_vm2, %v4809_v1, %v5437_v18 }
 0xa93   :  { %v4720_v0 = vmul.f32 %v4686_v14, %v4675_v15  ;;  %3599 = vrot.lane.b32.xlu1 %v10126_v59, %s7417_s4  ;;  %v5571_v61 = vsel %vm942_vm2, %v4810_v38, %v5438_v24  ;;  %v185_v14 = vld [vmem:[#allocation9 + $0xc3] ss:$8 sm:$0xf] }
 0xa94   :  { %v4906_v27 = vpop.permute.xlu0 %4905  ;;  %5658 = vmatprep.subr.bf16.mxu0 %v5571_v61  ;;  %v10378_v61 = vor.u32 %v186_v57, %v185_v14  ;;  %v182_v14 = vld [vmem:[#allocation9 + $0xc2] ss:$8 sm:$0xf0] }
 0xa95   :  { %v4728_v16 = vpack.c.bf16 %v4720_v0, %v4720_v0  ;;  %v4920_v8 = vsel %vm12215_vm5, %v10248_v55, %v4906_v27  ;;  %5659 = vmatpush2.bf16.msra.mxu0 %v5567_v34  ;;  %v10363_v44 = vpop.permute.xlu1 %4653  ;;  %v4940_v55 = vrot.slane %v10228_v56, %v12465_v45 }
 0xa96   :  { %12514 = vst [vmem:[#allocation118_spill] sm:$0xff] %v10363_v44  ;;  %v4676_v33 = vsel %vm12233_vm8, %v10363_v44, %v4656_v17  ;;  %3559 = vrot.lane.b32.xlu0 %v10126_v59, %s7418_s19  ;;  %v4967_v38 = vmul.f32 %v4936_v54, %v4920_v8 }
 0xa97   :  { %v5422_v24 = vrot.slane %v4728_v16, 4  ;;  %v4719_v1 = vmul.f32 %v4682_v63, %v4676_v33  ;;  %3845 = vrot.lane.b32.xlu1 %v10142_v12, %s7436_s7  ;;  %v181_v33 = vld [vmem:[#allocation9 + $0xc2] ss:$8 sm:$0xf] }
 0xa98   :  { %v4572_v18 = vpop.permute.xlu0 %4571  ;;  %v4975_v63 = vpack.c.bf16 %v4967_v38, %v4967_v38 }
 0xa99   :  { %v4727_v15 = vpack.c.bf16 %v4719_v1, %v4719_v1  ;;  %v10374_v0 = vpop.permute.xlu1 %4907  ;;  %v5545_v17 = vsel %vm942_vm2, %v9770_v50, %v5422_v24  ;;  %v4604_v24 = vrot.slane %v10378_v61, %v12461_v48 }
 0xa9a   :  { %12515 = vst [vmem:[#allocation119_spill] sm:$0xff] %v10374_v0  ;;  %v4919_v54 = vsel %vm12215_vm5, %v4906_v27, %v10374_v0  ;;  %3763 = vrot.lane.b32.xlu0 %v10142_v12, %s7437_s1  ;;  %5660 = vmatprep.subr.bf16.mxu0 %v5545_v17  ;;  %v4854_v17 = vrot.slane %v10272_v21, %v12467_v23  ;;  %vm4505_vm5 = vcmp.lt.s32.totalorder %v7634_v13, 45 }
 0xa9b   :  { %v5421_v34 = vrot.slane %v4727_v15, 4  ;;  %v4968_v16 = vmul.f32 %v4940_v55, %v4919_v54  ;;  %3561 = vrot.lane.b32.xlu1 %v10142_v12, %s7418_s19  ;;  %v5619_v55 = vsel %vm942_vm2, %v4975_v63, 0  ;;  %v10403_v15 = vor.u32 %v182_v14, %v181_v33 }
 0xa9c   :  { %v4824_v8 = vpop.permute.xlu0 %4823 }
 0xa9d   :  { %v4976_v57 = vpack.c.bf16 %v4968_v16, %v4968_v16  ;;  %v10390_v27 = vpop.permute.xlu1 %4573  ;;  %v5542_v1 = vsel %vm942_vm2, %v9779_v25, %v5421_v34  ;;  %12516 = vst [vmem:[#allocation120_spill] sm:$0xff] %v10403_v15  ;;  %v4838_v34 = vsel %vm12231_vm6, %v10270_v26, %v4824_v8  ;;  %v4522_v26 = vrot.slane %v10403_v15, %v12461_v48 }
 0xa9e   :  { %v4594_v38 = vsel %vm4587_vm4, %v4572_v18, %v10390_v27  ;;  %3521 = vrot.lane.b32.xlu0 %v10142_v12, %s7419_s20  ;;  %5661 = vmatpush2.bf16.msra.mxu0 %v5542_v1  ;;  %v4858_v1 = vrot.slane %v10272_v21, %v12465_v45  ;;  %v4885_v33 = vmul.f32 %v4854_v17, %v4838_v34 }
 0xa9f   :  { %3519 = vrot.lane.b32.xlu1 %v10126_v59, %s7419_s20  ;;  %7102 = vmatprep.subr.msk.bf16.mxu1 %vm942_vm2, %v4976_v57  ;;  %v4638_v16 = vmul.f32 %v4604_v24, %v4594_v38  ;;  %v4600_v24 = vrot.slane %v10378_v61, %v12452_v58  ;;  %v4772_v34 = vrot.slane %v10301_v29, %v12467_v23 }
 0xaa0   :  { %v10407_v54 = vpop.permute.xlu0 %4585  ;;  %5698 = vmatpush2.bf16.msra.mxu1 %v5619_v55 }
 0xaa1   :  { %12517 = vst [vmem:[#allocation121_spill] sm:$0xff] %v10407_v54  ;;  %v10414_v25 = vpop.permute.xlu1 %4825  ;;  %v4646_v57 = vpack.c.bf16 %v4638_v16, %v4638_v16  ;;  %v4595_v55 = vsel %vm4587_vm4, %v10407_v54, %v4572_v18  ;;  %v4776_v16 = vrot.slane %v10301_v29, %v12465_v45  ;;  %v177_v18 = vld [vmem:[#allocation9 + $0xc1] ss:$8 sm:$0xf] }
 0xaa2   :  { %12518 = vst [vmem:[#allocation122_spill] sm:$0xff] %v10414_v25  ;;  %v4837_v63 = vsel %vm12231_vm6, %v4824_v8, %v10414_v25  ;;  %3643 = vrot.lane.b32.xlu0 %v9592_v20, %s7416_s3  ;;  %v4637_v44 = vmul.f32 %v4600_v24, %v4595_v55  ;;  %v4518_v24 = vrot.slane %v10403_v15, %v12452_v58  ;;  %vm4341_vm6 = vcmp.lt.s32.totalorder %v7634_v13, 51 }
 0xaa3   :  { %3681 = vrot.lane.b32.xlu1 %v10142_v12, %s7438_s8  ;;  %v4886_v38 = vmul.f32 %v4858_v1, %v4837_v63  ;;  %v4893_v1 = vpack.c.bf16 %v4885_v33, %v4885_v33  ;;  %v5406_v54 = vrot.slane %v4646_v57, 4 }
 0xaa4   :  { %v10426_v14 = vpop.permute.xlu0 %4491 }
 0xaa5   :  { %v4490_v8 = vpop.permute.xlu1 %4489  ;;  %v4894_v41 = vpack.c.bf16 %v4886_v38, %v4886_v38  ;;  %v5439_v38 = vrot.slane %v4893_v1, 4 }
 0xaa6   :  { %v4512_v50 = vsel %vm4505_vm5, %v4490_v8, %v10426_v14  ;;  %3471 = vrot.lane.b32.xlu0 %v10126_v59, %s7420_s21 }
 0xaa7   :  { %v4556_v17 = vmul.f32 %v4522_v26, %v4512_v50  ;;  %3469 = vrot.lane.b32.xlu1 %v9606_v62, %s7420_s21 }
 0xaa8   :  { %v10444_v63 = vpop.permute.xlu0 %4743 }
 0xaa9   :  { %12519 = vst [vmem:[#allocation123_spill] sm:$0xff] %v10444_v63  ;;  %v4564_v25 = vpack.c.bf16 %v4556_v17, %v4556_v17  ;;  %v4742_v21 = vpop.permute.xlu1 %4741  ;;  %v10459_v17 = vor.u32 %v178_v36, %v177_v18 }
 0xaaa   :  { %v4755_v50 = vsel %vm12230_vm7, %v4742_v21, %v10444_v63  ;;  %v4756_v26 = vsel %vm12230_vm7, %v10331_v32, %v4742_v21  ;;  %3429 = vrot.lane.b32.xlu0 %v9606_v62, %s7421_s22  ;;  %v4645_v63 = vpack.c.bf16 %v4637_v44, %v4637_v44  ;;  %v5440_v32 = vrot.slane %v4894_v41, 4  ;;  %v173_v44 = vld [vmem:[#allocation9 + $0xc0] ss:$8 sm:$0xf] }
 0xaab   :  { %v4803_v33 = vmul.f32 %v4772_v34, %v4756_v26  ;;  %v4804_v29 = vmul.f32 %v4776_v16, %v4755_v50  ;;  %3603 = vrot.lane.b32.xlu1 %v9592_v20, %s7417_s4  ;;  %v5515_v57 = vsel %vm942_vm2, %v4564_v25, %v5406_v54  ;;  %v4690_v25 = vrot.slane %v10324_v4, %v12467_v23 }
 0xaac   :  { %v4408_v55 = vpop.permute.xlu0 %4407  ;;  %5662 = vmatprep.subr.bf16.mxu0 %v5515_v57  ;;  %vm4423_vm7 = vcmp.lt.s32.totalorder %v7634_v13, 48  ;;  %v5405_v16 = vrot.slane %v4645_v63, 4  ;;  %v4440_v50 = vrot.slane %v10459_v17, %v12461_v48 }
 0xaad   :  { %v4811_v21 = vpack.c.bf16 %v4803_v33, %v4803_v33  ;;  %v4812_v0 = vpack.c.bf16 %v4804_v29, %v4804_v29  ;;  %v10461_v56 = vpop.permute.xlu1 %4503 }
 0xaae   :  { %12520 = vst [vmem:[#allocation124_spill] sm:$0xff] %v10461_v56  ;;  %v4513_v34 = vsel %vm4505_vm5, %v10461_v56, %v4490_v8  ;;  %3563 = vrot.lane.b32.xlu0 %v9592_v20, %s7418_s19  ;;  %v174_v8 = vld [vmem:[#allocation9 + $0xc0] ss:$8 sm:$0xf0] }
 0xaaf   :  { %v4555_v54 = vmul.f32 %v4518_v24, %v4513_v34  ;;  %3431 = vrot.lane.b32.xlu1 %v10126_v59, %s7421_s22  ;;  %v5579_v36 = vsel %vm942_vm2, %v4812_v0, %v5440_v32  ;;  %v5575_v29 = vsel %vm942_vm2, %v4811_v21, %v5439_v38  ;;  %v10492_v57 = vor.u32 %v174_v8, %v173_v44 }
 0xab0   :  { %v4660_v41 = vpop.permute.xlu0 %4659  ;;  %5699 = vmatprep.subr.bf16.mxu1 %v5579_v36  ;;  %v4436_v32 = vrot.slane %v10459_v17, %v12452_v58  ;;  %v7449_v34 = vmov 7  }
 0xab1   :  { %v4563_v1 = vpack.c.bf16 %v4555_v54, %v4555_v54  ;;  %v4674_v18 = vsel %vm12233_vm8, %v10344_v52, %v4660_v41  ;;  %5700 = vmatpush2.bf16.msra.mxu1 %v5575_v29  ;;  %v10480_v26 = vpop.permute.xlu1 %4409  ;;  %v4694_v52 = vrot.slane %v10324_v4, %v12465_v45  ;;  %7210 = vset.pattern.permute.xlu0 %v7449_v34 }
 0xab2   :  { %v4721_v0 = vmul.f32 %v4690_v25, %v4674_v18  ;;  %v4430_v33 = vsel %vm4423_vm7, %v4408_v55, %v10480_v26  ;;  %3391 = vrot.lane.b32.xlu0 %v10126_v59, %s7422_s23  ;;  %v4358_v44 = vrot.slane %v10492_v57, %v12461_v48 }
 0xab3   :  { %3389 = vrot.lane.b32.xlu1 %v9606_v62, %s7422_s23  ;;  %v5511_v63 = vsel %vm942_vm2, %v4563_v1, %v5405_v16  ;;  %v4474_v38 = vmul.f32 %v4440_v50, %v4430_v33  ;;  %v169_v50 = vld [vmem:[#allocation9 + $0x87] ss:$8 sm:$0xf] }
 0xab4   :  { %v10494_v24 = vpop.permute.xlu0 %4421  ;;  %5663 = vmatpush2.bf16.msra.mxu0 %v5511_v63  ;;  %v4729_v25 = vpack.c.bf16 %v4721_v0, %v4721_v0 }
 0xab5   :  { %12521 = vst [vmem:[#allocation125_spill] sm:$0xff] %v10494_v24  ;;  %v10498_v21 = vpop.permute.xlu1 %4661  ;;  %v4431_v54 = vsel %vm4423_vm7, %v10494_v24, %v4408_v55  ;;  %v4482_v16 = vpack.c.bf16 %v4474_v38, %v4474_v38  ;;  %v4354_v38 = vrot.slane %v10492_v57, %v12452_v58 }
 0xab6   :  { %v4673_v36 = vsel %vm12233_vm8, %v4660_v41, %v10498_v21  ;;  %3349 = vrot.lane.b32.xlu0 %v9606_v62, %s7423_s24  ;;  %v4473_v55 = vmul.f32 %v4436_v32, %v4431_v54  ;;  %v170_v41 = vld [vmem:[#allocation9 + $0x87] ss:$8 sm:$0xf0]  ;;  %v5423_v0 = vrot.slane %v4729_v25, 4  ;;  %vm4259_vm8 = vcmp.lt.s32.totalorder %v7634_v13, 94 }
 0xab7   :  { %v4722_v29 = vmul.f32 %v4694_v52, %v4673_v36  ;;  %3523 = vrot.lane.b32.xlu1 %v9592_v20, %s7419_s20  ;;  %v10524_v34 = vor.u32 %v170_v41, %v169_v50  ;;  %v5390_v54 = vrot.slane %v4482_v16, 4  ;;  %v165_v41 = vld [vmem:[#allocation9 + $0x86] ss:$8 sm:$0xf] }
 0xab8   :  { %v10513_v8 = vpop.permute.xlu0 %4327  ;;  %v4481_v25 = vpack.c.bf16 %v4473_v55, %v4473_v55 }
 0xab9   :  { %v4730_v1 = vpack.c.bf16 %v4722_v29, %v4722_v29  ;;  %v4326_v18 = vpop.permute.xlu1 %4325 }
 0xaba   :  { %v4348_v33 = vsel %vm4341_vm6, %v4326_v18, %v10513_v8  ;;  %3473 = vrot.lane.b32.xlu0 %v10142_v12, %s7420_s21 }
 0xabb   :  { %v5424_v63 = vrot.slane %v4730_v1, 4  ;;  %v4392_v52 = vmul.f32 %v4358_v44, %v4348_v33  ;;  %3351 = vrot.lane.b32.xlu1 %v10126_v59, %s7423_s24  ;;  %v5548_v1 = vsel %vm942_vm2, %v9931_v5, %v5423_v0  ;;  %v5389_v33 = vrot.slane %v4481_v25, 4 }
 0xabc   :  { %v4246_v32 = vpop.permute.xlu0 %4245  ;;  %v4608_v25 = vrot.slane %v10378_v61, %v12467_v23 }
 0xabd   :  { %v4400_v36 = vpack.c.bf16 %v4392_v52, %v4392_v52  ;;  %v10526_v29 = vpop.permute.xlu1 %4339  ;;  %v5551_v56 = vsel %vm942_vm2, %v9921_v31, %v5424_v63 }
 0xabe   :  { %12522 = vst [vmem:[#allocation126_spill] sm:$0xff] %v10526_v29  ;;  %v4349_v44 = vsel %vm4341_vm6, %v10526_v29, %v4326_v18  ;;  %4909 = vrot.lane.b32.xlu0 %v10126_v59, %s7439_s9  ;;  %5701 = vmatprep.subr.bf16.mxu1 %v5551_v56  ;;  %v166_v18 = vld [vmem:[#allocation9 + $0x86] ss:$8 sm:$0xf0]  ;;  %v4276_v56 = vrot.slane %v10524_v34, %v12461_v48 }
 0xabf   :  { %v4391_v50 = vmul.f32 %v4354_v38, %v4349_v44  ;;  %3433 = vrot.lane.b32.xlu1 %v10142_v12, %s7421_s22  ;;  %5702 = vmatpush2.bf16.msra.mxu1 %v5548_v1  ;;  %v5483_v16 = vsel %vm942_vm2, %v4400_v36, %v5390_v54  ;;  %v10553_v54 = vor.u32 %v166_v18, %v165_v41 }
 0xac0   :  { %v4576_v55 = vpop.permute.xlu0 %4575  ;;  %5664 = vmatprep.subr.bf16.mxu0 %v5483_v16 }
 0xac1   :  { %v4399_v63 = vpack.c.bf16 %v4391_v50, %v4391_v50  ;;  %v10543_v52 = vpop.permute.xlu1 %4247  ;;  %12523 = vst [vmem:[#allocation127_spill] sm:$0xff] %v10553_v54  ;;  %v4593_v44 = vsel %vm4587_vm4, %v10390_v27, %v4576_v55  ;;  %v4612_v50 = vrot.slane %v10378_v61, %v12465_v45  ;;  %v4194_v27 = vrot.slane %v10553_v54, %v12461_v48 }
 0xac2   :  { %v4265_v0 = vsel %vm4259_vm8, %v4246_v32, %v10543_v52  ;;  %3393 = vrot.lane.b32.xlu0 %v10142_v12, %s7422_s23  ;;  %v4639_v18 = vmul.f32 %v4608_v25, %v4593_v44  ;;  %v4526_v25 = vrot.slane %v10403_v15, %v12467_v23  ;;  %v4530_v44 = vrot.slane %v10403_v15, %v12465_v45 }
 0xac3   :  { %4911 = vrot.lane.b32.xlu1 %v10142_v12, %s7439_s9  ;;  %v5479_v38 = vsel %vm942_vm2, %v4399_v63, %v5389_v33  ;;  %v4310_v1 = vmul.f32 %v4276_v56, %v4265_v0  ;;  %v4272_v56 = vrot.slane %v10524_v34, %v12452_v58 }
 0xac4   :  { %v10557_v36 = vpop.permute.xlu0 %4243  ;;  %5665 = vmatpush2.bf16.msra.mxu0 %v5479_v38 }
 0xac5   :  { %12524 = vst [vmem:[#allocation128_spill] sm:$0xff] %v10557_v36  ;;  %v10564_v16 = vpop.permute.xlu1 %4577  ;;  %v4318_v63 = vpack.c.bf16 %v4310_v1, %v4310_v1  ;;  %v4266_v38 = vsel %vm4259_vm8, %v10557_v36, %v4246_v32  ;;  %v4647_v1 = vpack.c.bf16 %v4639_v18, %v4639_v18 }
 0xac6   :  { %v4592_v41 = vsel %vm4587_vm4, %v4576_v55, %v10564_v16  ;;  %4829 = vrot.lane.b32.xlu0 %v10142_v12, %s7440_s10 }
 0xac7   :  { %4827 = vrot.lane.b32.xlu1 %v10126_v59, %s7440_s10  ;;  %v4640_v0 = vmul.f32 %v4612_v50, %v4592_v41  ;;  %v5374_v32 = vrot.slane %v4318_v63, 4  ;;  %v4309_v41 = vmul.f32 %v4272_v56, %v4266_v38  ;;  %v4190_v56 = vrot.slane %v10553_v54, %v12452_v58 }
 0xac8   :  { %v10576_v33 = vpop.permute.xlu0 %4165 }
 0xac9   :  { %v4164_v55 = vpop.permute.xlu1 %4163  ;;  %v4648_v31 = vpack.c.bf16 %v4640_v0, %v4640_v0  ;;  %v5407_v0 = vrot.slane %v4647_v1, 4 }
 0xaca   :  { %v4183_v5 = vsel %vm4177_vm3, %v4164_v55, %v10576_v33  ;;  %4745 = vrot.lane.b32.xlu0 %v10126_v59, %s7441_s11 }
 0xacb   :  { %v4228_v48 = vmul.f32 %v4194_v27, %v4183_v5  ;;  %3353 = vrot.lane.b32.xlu1 %v10142_v12, %s7423_s24 }
 0xacc   :  { %v10594_v50 = vpop.permute.xlu0 %4495 }
 0xacd   :  { %12525 = vst [vmem:[#allocation129_spill] sm:$0xff] %v10594_v50  ;;  %v4236_v29 = vpack.c.bf16 %v4228_v48, %v4228_v48  ;;  %v4494_v36 = vpop.permute.xlu1 %4493  ;;  %v4317_v48 = vpack.c.bf16 %v4309_v41, %v4309_v41  ;;  %v12527_v41 = vld [vmem:[#allocation55_spill] sm:$0xff] }
 0xace   :  { %v4510_v5 = vsel %vm4505_vm5, %v4494_v36, %v10594_v50  ;;  %v4511_v27 = vsel %vm4505_vm5, %v10426_v14, %v4494_v36  ;;  %4663 = vrot.lane.b32.xlu0 %v10126_v59, %s7442_s0  ;;  %v5408_v50 = vrot.slane %v4648_v31, 4 }
 0xacf   :  { %v4557_v24 = vmul.f32 %v4526_v25, %v4511_v27  ;;  %v4558_v18 = vmul.f32 %v4530_v44, %v4510_v5  ;;  %4747 = vrot.lane.b32.xlu1 %v10142_v12, %s7441_s11  ;;  %v5451_v63 = vsel %vm942_vm2, %v4236_v29, %v5374_v32  ;;  %v4128_v5 = vrot.slane %v9703_v10, %v12527_v41  ;;  %v12528_v27 = vld [vmem:[#allocation54_spill] sm:$0xff] }
 0xad0   :  { %v4090_v38 = vpop.permute.xlu0 %4089  ;;  %5666 = vmatprep.subr.bf16.mxu0 %v5451_v63 }
 0xad1   :  { %v4565_v15 = vpack.c.bf16 %v4557_v24, %v4557_v24  ;;  %v4566_v14 = vpack.c.bf16 %v4558_v18, %v4558_v18  ;;  %v10609_v36 = vpop.permute.xlu1 %4161  ;;  %v5373_v24 = vrot.slane %v4317_v48, 4  ;;  %v4124_v18 = vrot.slane %v9703_v10, %v12528_v27 }
 0xad2   :  { %12526 = vst [vmem:[#allocation130_spill] sm:$0xff] %v10609_v36  ;;  %v4184_v25 = vsel %vm4177_vm3, %v10609_v36, %v4164_v55  ;;  %4913 = vrot.lane.b32.xlu0 %v9592_v20, %s7439_s9 }
 0xad3   :  { %v4227_v29 = vmul.f32 %v4190_v56, %v4184_v25  ;;  %4665 = vrot.lane.b32.xlu1 %v10142_v12, %s7442_s0  ;;  %v5523_v44 = vsel %vm942_vm2, %v4566_v14, %v5408_v50  ;;  %v5519_v1 = vsel %vm942_vm2, %v4565_v15, %v5407_v0  ;;  %v4098_v15 = vsel %vm4095_vm12, %v9796_v2, %v4090_v38 }
 0xad4   :  { %v4412_v31 = vpop.permute.xlu0 %4411  ;;  %5703 = vmatprep.subr.bf16.mxu1 %v5523_v44  ;;  %v10639_v56 = vcombine.low %v10155_v30, %v10155_v30  ;;  %v4042_v0 = vrot.slane %v9712_v37, %v12528_v27  ;;  %v4448_v2 = vrot.slane %v10459_v17, %v12465_v45  ;;  %v4444_v30 = vrot.slane %v10459_v17, %v12467_v23 }
 0xad5   :  { %v4235_v32 = vpack.c.bf16 %v4227_v29, %v4227_v29  ;;  %5704 = vmatpush2.bf16.msra.mxu1 %v5519_v1  ;;  %v10622_v55 = vpop.permute.xlu1 %4091  ;;  %v4149_v29 = vmul.f32 %v4124_v18, %v4098_v15  ;;  %v4046_v1 = vrot.slane %v9712_v37, %v12527_v41 }
 0xad6   :  { %v4097_v63 = vsel %vm4095_vm12, %v4090_v38, %v10622_v55  ;;  %4581 = vrot.lane.b32.xlu0 %v10126_v59, %s7443_s12 }
 0xad7   :  { %4579 = vrot.lane.b32.xlu1 %v9606_v62, %s7443_s12  ;;  %v5447_v50 = vsel %vm942_vm2, %v4235_v32, %v5373_v24  ;;  %v4150_v14 = vmul.f32 %v4128_v5, %v4097_v63  ;;  %v4362_v32 = vrot.slane %v10492_v57, %v12467_v23  ;;  %v4157_v15 = vpack.c.bf16 %v4149_v29, %v4149_v29 }
 0xad8   :  { %v4008_v48 = vpop.permute.xlu0 %4007  ;;  %5667 = vmatpush2.bf16.msra.mxu0 %v5447_v50 }
 0xad9   :  { %v4016_v25 = vsel %vm4013_vm13, %v9859_v51, %v4008_v48  ;;  %v10648_v38 = vpop.permute.xlu1 %4413  ;;  %v4429_v51 = vsel %vm4423_vm7, %v10480_v26, %v4412_v31  ;;  %v4158_v18 = vpack.c.bf16 %v4150_v14, %v4150_v14  ;;  %v4366_v14 = vrot.slane %v10492_v57, %v12465_v45 }
 0xada   :  { %v4428_v44 = vsel %vm4423_vm7, %v4412_v31, %v10648_v38  ;;  %4497 = vrot.lane.b32.xlu0 %v9606_v62, %s7444_s13  ;;  %v4067_v24 = vmul.f32 %v4042_v0, %v4016_v25  ;;  %v4475_v50 = vmul.f32 %v4444_v30, %v4429_v51  ;;  %v5105_v36 = vrot.slane %v4157_v15, 4 }
 0xadb   :  { %4831 = vrot.lane.b32.xlu1 %v9592_v20, %s7440_s10  ;;  %5669 = vmatmul.mubr.bf16.vlgmr.msra.gmra.mxu0 %v10639_v56  ;;  %v4476_v63 = vmul.f32 %v4448_v2, %v4428_v44  ;;  %v5106_v58 = vrot.slane %v4158_v18, 4  ;;  %v3960_v18 = vrot.slane %v9740_v49, %v12528_v27 }
 0xadc   :  { %v4330_v5 = vpop.permute.xlu0 %4329  ;;  %7105 = vmatprep.mubr.msk.bf16.mxu0 %vm5608_vm9, %v10162_v53  ;;  %v4075_v2 = vpack.c.bf16 %v4067_v24, %v4067_v24 }
 0xadd   :  { %v4347_v26 = vsel %vm4341_vm6, %v10513_v8, %v4330_v5  ;;  %v10672_v31 = vpop.permute.xlu1 %4009  ;;  %v4484_v29 = vpack.c.bf16 %v4476_v63, %v4476_v63 }
 0xade   :  { %v4015_v0 = vsel %vm4013_vm13, %v4008_v48, %v10672_v31  ;;  %4749 = vrot.lane.b32.xlu0 %v9592_v20, %s7441_s11  ;;  %v4393_v8 = vmul.f32 %v4362_v32, %v4347_v26  ;;  %v4483_v48 = vpack.c.bf16 %v4475_v50, %v4475_v50  ;;  %v5351_v26 = vsel %vm942_vm2, %v4075_v2, %v5105_v36 }
 0xadf   :  { %v4068_v25 = vmul.f32 %v4046_v1, %v4015_v0  ;;  %4499 = vrot.lane.b32.xlu1 %v10126_v59, %s7444_s13  ;;  %v5392_v15 = vrot.slane %v4484_v29, 4  ;;  %v3964_v29 = vrot.slane %v9740_v49, %v12527_v41 }
 0xae0   :  { %v4250_v44 = vpop.permute.xlu0 %4249  ;;  %v4401_v32 = vpack.c.bf16 %v4393_v8, %v4393_v8  ;;  %v4280_v8 = vrot.slane %v10524_v34, %v12467_v23 }
 0xae1   :  { %v4076_v30 = vpack.c.bf16 %v4068_v25, %v4068_v25  ;;  %v10683_v51 = vpop.permute.xlu1 %4331  ;;  %v4264_v2 = vsel %vm4259_vm8, %v10543_v52, %v4250_v44 }
 0xae2   :  { %v4346_v1 = vsel %vm4341_vm6, %v4330_v5, %v10683_v51  ;;  %4417 = vrot.lane.b32.xlu0 %v10126_v59, %s7445_s14  ;;  %v4284_v5 = vrot.slane %v10524_v34, %v12465_v45 }
 0xae3   :  { %v4394_v0 = vmul.f32 %v4366_v14, %v4346_v1  ;;  %4415 = vrot.lane.b32.xlu1 %v9606_v62, %s7445_s14  ;;  %v5355_v24 = vsel %vm942_vm2, %v4076_v30, %v5106_v58  ;;  %v5391_v58 = vrot.slane %v4483_v48, 4  ;;  %v4198_v1 = vrot.slane %v10553_v54, %v12467_v23 }
 0xae4   :  { %v3924_v63 = vpop.permute.xlu0 %3923  ;;  %5718 = vmatprep.subr.bf16.mxu0 %v5355_v24 }
 0xae5   :  { %v4402_v50 = vpack.c.bf16 %v4394_v0, %v4394_v0  ;;  %v3935_v25 = vsel %vm3931_vm15, %v9917_v3, %v3924_v63  ;;  %5719 = vmatpush1.bf16.msra.mxu0 %v5351_v26  ;;  %v10701_v14 = vpop.permute.xlu1 %4251  ;;  %v5487_v24 = vsel %vm942_vm2, %v4401_v32, %v5391_v58  ;;  %v10728_v26 = vpack.c.bf16 %v10126_v59, %v10126_v59 }
 0xae6   :  { %v4263_v36 = vsel %vm4259_vm8, %v4250_v44, %v10701_v14  ;;  %4333 = vrot.lane.b32.xlu0 %v9606_v62, %s7446_s15  ;;  %v3985_v30 = vmul.f32 %v3960_v18, %v3935_v25  ;;  %v4311_v18 = vmul.f32 %v4280_v8, %v4264_v2  ;;  %v10737_v32 = vpack.c.bf16 %v9606_v62, %v9606_v62 }
 0xae7   :  { %4667 = vrot.lane.b32.xlu1 %v9592_v20, %s7442_s0  ;;  %v5491_v3 = vsel %vm942_vm2, %v4402_v50, %v5392_v15  ;;  %v4312_v48 = vmul.f32 %v4284_v5, %v4263_v36  ;;  %12529 = vst [vmem:[#allocation55_spill] sm:$0xff] %v10728_v26  ;;  %v4202_v5 = vrot.slane %v10553_v54, %v12465_v45  ;;  %v5090_v2 = vrot.slane %v10728_v26, 4 }
 0xae8   :  { %v4168_v0 = vpop.permute.xlu0 %4167  ;;  %5705 = vmatprep.subr.bf16.mxu1 %v5491_v3  ;;  %12530 = vst [vmem:[#allocation54_spill] sm:$0xff] %v10737_v32  ;;  %v3993_v15 = vpack.c.bf16 %v3985_v30, %v3985_v30  ;;  %v4319_v3 = vpack.c.bf16 %v4311_v18, %v4311_v18  ;;  %v5089_v30 = vrot.slane %v10737_v32, 4 }
 0xae9   :  { %v4182_v52 = vsel %vm4177_vm3, %v10576_v33, %v4168_v0  ;;  %5706 = vmatpush2.bf16.msra.mxu1 %v5487_v24  ;;  %v10724_v44 = vpop.permute.xlu1 %3925  ;;  %v4320_v50 = vpack.c.bf16 %v4312_v48, %v4312_v48 }
 0xaea   :  { %v3934_v23 = vsel %vm3931_vm15, %v3924_v63, %v10724_v44  ;;  %4253 = vrot.lane.b32.xlu0 %v10126_v59, %s7447_s16  ;;  %v4229_v25 = vmul.f32 %v4198_v1, %v4182_v52  ;;  %v3878_v63 = vrot.slane %v9786_v42, %v12528_v27  ;;  %v12532_v1 = vld [vmem:[#allocation58_spill] sm:$0xff] }
 0xaeb   :  { %v3986_v33 = vmul.f32 %v3964_v29, %v3934_v23  ;;  %4335 = vrot.lane.b32.xlu1 %v10126_v59, %s7446_s15  ;;  %v4132_v24 = vrot.slane %v9703_v10, %v12532_v1  ;;  %v5376_v18 = vrot.slane %v4320_v50, 4 }
 0xaec   :  { %v3842_v58 = vpop.permute.xlu0 %3841  ;;  %v4237_v23 = vpack.c.bf16 %v4229_v25, %v4229_v25  ;;  %v5375_v25 = vrot.slane %v4319_v3, 4 }
 0xaed   :  { %v3994_v8 = vpack.c.bf16 %v3986_v33, %v3986_v33  ;;  %v10745_v36 = vpop.permute.xlu1 %4169  ;;  %v3853_v29 = vsel %vm3849_vm10, %v9946_v47, %v3842_v58  ;;  %v3882_v47 = vrot.slane %v9786_v42, %v12527_v41 }
 0xaee   :  { %12531 = vst [vmem:[#allocation131_spill] sm:$0xff] %v10745_v36  ;;  %v4181_v45 = vsel %vm4177_vm3, %v4168_v0, %v10745_v36  ;;  %4583 = vrot.lane.b32.xlu0 %v10142_v12, %s7443_s12  ;;  %v12533_v0 = vld [vmem:[#allocation60_spill] sm:$0xff] }
 0xaef   :  { %v4230_v48 = vmul.f32 %v4202_v5, %v4181_v45  ;;  %4255 = vrot.lane.b32.xlu1 %v10142_v12, %s7447_s16  ;;  %v5323_v52 = vsel %vm942_vm2, %v3994_v8, %v5090_v2  ;;  %v4136_v33 = vrot.slane %v9703_v10, %v12533_v0  ;;  %v5319_v5 = vsel %vm942_vm2, %v3993_v15, %v5089_v30 }
 0xaf0   :  { %v4094_v62 = vpop.permute.xlu0 %4093  ;;  %5720 = vmatprep.subr.bf16.mxu0 %v5323_v52  ;;  %v3903_v45 = vmul.f32 %v3878_v63, %v3853_v29 }
 0xaf1   :  { %v4238_v36 = vpack.c.bf16 %v4230_v48, %v4230_v48  ;;  %v4096_v54 = vsel %vm4095_vm12, %v10622_v55, %v4094_v62  ;;  %v4103_v8 = vsel %vm4095_vm12, %v4094_v62, %v9714_v39  ;;  %5721 = vmatpush1.bf16.msra.mxu0 %v5319_v5  ;;  %v10773_v50 = vpop.permute.xlu1 %3843  ;;  %v3796_v62 = vrot.slane %v9808_v35, %v12528_v27 }
 0xaf2   :  { %v3852_v10 = vsel %vm3849_vm10, %v3842_v58, %v10773_v50  ;;  %4173 = vrot.lane.b32.xlu0 %v10142_v12, %s7448_s2  ;;  %v3800_v39 = vrot.slane %v9808_v35, %v12527_v41  ;;  %v4151_v63 = vmul.f32 %v4132_v24, %v4096_v54  ;;  %v4152_v2 = vmul.f32 %v4136_v33, %v4103_v8 }
 0xaf3   :  { %v3904_v15 = vmul.f32 %v3882_v47, %v3852_v10  ;;  %4171 = vrot.lane.b32.xlu1 %v10126_v59, %s7448_s2  ;;  %v5459_v55 = vsel %vm942_vm2, %v4238_v36, %v5376_v18  ;;  %v5455_v58 = vsel %vm942_vm2, %v4237_v23, %v5375_v25  ;;  %v3911_v29 = vpack.c.bf16 %v3903_v45, %v3903_v45 }
 0xaf4   :  { %v10787_v3 = vpop.permute.xlu0 %3761  ;;  %5707 = vmatprep.subr.bf16.mxu1 %v5459_v55  ;;  %v4050_v47 = vrot.slane %v9712_v37, %v12532_v1  ;;  %v4054_v18 = vrot.slane %v9712_v37, %v12533_v0  ;;  %v4159_v23 = vpack.c.bf16 %v4151_v63, %v4151_v63  ;;  %v4160_v33 = vpack.c.bf16 %v4152_v2, %v4152_v2 }
 0xaf5   :  { %v3912_v30 = vpack.c.bf16 %v3904_v15, %v3904_v15  ;;  %5708 = vmatpush2.bf16.msra.mxu1 %v5455_v58  ;;  %v3760_v48 = vpop.permute.xlu1 %3759  ;;  %v3714_v5 = vrot.slane %v9854_v6, %v12528_v27  ;;  %v5073_v45 = vrot.slane %v3911_v29, 4 }
 0xaf6   :  { %v3770_v36 = vsel %vm3767_vm11, %v3760_v48, %v10787_v3  ;;  %v3771_v52 = vsel %vm3767_vm11, %v9999_v40, %v3760_v48  ;;  %4419 = vrot.lane.b32.xlu0 %v10142_v12, %s7445_s14  ;;  %v5107_v58 = vrot.slane %v4159_v23, 4  ;;  %v5108_v29 = vrot.slane %v4160_v33, 4 }
 0xaf7   :  { %v3821_v54 = vmul.f32 %v3796_v62, %v3771_v52  ;;  %v3822_v24 = vmul.f32 %v3800_v39, %v3770_v36  ;;  %4501 = vrot.lane.b32.xlu1 %v10142_v12, %s7444_s13  ;;  %v5074_v8 = vrot.slane %v3912_v30, 4  ;;  %v3718_v39 = vrot.slane %v9854_v6, %v12527_v41 }
 0xaf8   :  { %v3678_v40 = vpop.permute.xlu0 %3677  ;;  %5710 = vmatmul.mubr.bf16.vlgmr.msra.gmra.mxu1 %v10639_v56 }
 0xaf9   :  { %v3829_v25 = vpack.c.bf16 %v3821_v54, %v3821_v54  ;;  %v3830_v10 = vpack.c.bf16 %v3822_v24, %v3822_v24  ;;  %v4012_v15 = vpop.permute.xlu1 %4011  ;;  %7107 = vmatprep.mubr.msk.bf16.mxu1 %vm5608_vm9, %v10162_v53  ;;  %v3689_v37 = vsel %vm3685_vm14, %v10022_v60, %v3678_v40  ;;  %vm12542_vm9 = vcmp.lt.s32.totalorder %v7634_v13, 113 }
 0xafa   :  { %v4014_v55 = vsel %vm4013_vm13, %v10672_v31, %v4012_v15  ;;  %v4021_v62 = vsel %vm4013_vm13, %v4012_v15, %v9746_v22  ;;  %4257 = vrot.lane.b32.xlu0 %v9592_v20, %s7447_s16  ;;  %v99_v31 = vld [vmem:[#allocation8] sm:$0x7]  ;;  %v3739_v22 = vmul.f32 %v3714_v5, %v3689_v37  ;;  %v10844_v5 = vpack.c.bf16 %v9592_v20, %v9592_v20  ;;  %v12537_v15 = vld [vmem:[#allocation19_spill] sm:$0xff]  ;;  %vm12546_vm12 = vmmov %vm12542_vm9 }
 0xafb   :  { %v4069_v63 = vmul.f32 %v4050_v47, %v4014_v55  ;;  %v4070_v53 = vmul.f32 %v4054_v18, %v4021_v62  ;;  %4337 = vrot.lane.b32.xlu1 %v10142_v12, %s7446_s15  ;;  %v5291_v60 = vsel %vm942_vm2, %v3830_v10, %v5074_v8  ;;  %v5287_v2 = vsel %vm942_vm2, %v3829_v25, %v5073_v45 }
 0xafc   :  { %v3640_v30 = vpop.permute.xlu0 %3639  ;;  %5722 = vmatprep.subr.bf16.mxu0 %v5291_v60  ;;  %v3968_v47 = vrot.slane %v9740_v49, %v12532_v1  ;;  %v3972_v18 = vrot.slane %v9740_v49, %v12533_v0  ;;  %12534 = vst [vmem:[#allocation58_spill] sm:$0xff] %v10844_v5  ;;  %v10849_v49 = vpack.c.bf16 %v10142_v12, %v10142_v12  ;;  %v12538_v60 = vld [vmem:[#allocation57_spill] sm:$0xff]  ;;  %vm12548_vm13 = vcmp.lt.s32.totalorder %v7634_v13, 127 }
 0xafd   :  { %v4077_v48 = vpack.c.bf16 %v4069_v63, %v4069_v63  ;;  %v4078_v36 = vpack.c.bf16 %v4070_v53, %v4070_v53  ;;  %v3647_v52 = vsel %vm812_vm0, %v10055_v9, %v3640_v30  ;;  %5723 = vmatpush1.bf16.msra.mxu0 %v5287_v2  ;;  %v10829_v54 = vpop.permute.xlu1 %3679  ;;  %v3747_v25 = vpack.c.bf16 %v3739_v22, %v3739_v22 }
 0xafe   :  { %v3688_v24 = vsel %vm3685_vm14, %v3678_v40, %v10829_v54  ;;  %5599 = vperm.xlu0 %7210, %v99_v31   ;;  %v12535_v40 = vld [vmem:[#allocation56_spill] sm:$0xff]  ;;  %12536 = vst [vmem:[#allocation60_spill] sm:$0xff] %v10849_v49  ;;  %v5092_v31 = vrot.slane %v10844_v5, 4 }
 0xaff   :  { %v3740_v23 = vmul.f32 %v3718_v39, %v3688_v24  ;;  %4175 = vrot.lane.b32.xlu1 %v9592_v20, %s7448_s2  ;;  %v5363_v9 = vsel %vm942_vm2, %v4078_v36, %v5108_v29  ;;  %v5359_v33 = vsel %vm942_vm2, %v4077_v48, %v5107_v58  ;;  %v3657_v45 = vmul.f32 %v3647_v52, %v12535_v40 }
 0xb00   :  { %v3928_v8 = vpop.permute.xlu0 %3927  ;;  %5759 = vmatprep.subr.bf16.mxu1 %v5363_v9  ;;  %v5057_v36 = vrot.slane %v3747_v25, 4  ;;  %v12539_v25 = vld [vmem:[#allocation61_spill] sm:$0xff] }
 0xb01   :  { %v3748_v10 = vpack.c.bf16 %v3740_v23, %v3740_v23  ;;  %v3932_v37 = vsel %vm3931_vm15, %v3928_v8, %v12537_v15  ;;  %v3933_v55 = vsel %vm3931_vm15, %v10724_v44, %v3928_v8  ;;  %5760 = vmatpush1.bf16.msra.mxu1 %v5359_v33  ;;  %v10857_v62 = vpop.permute.xlu1 %3641  ;;  %v3665_v58 = vpack.c.bf16 %v3657_v45, %v3657_v45  ;;  %v12540_v15 = vld [vmem:[#allocation59_spill] sm:$0xff]  ;;  %vm12549_vm15 = vmmov %vm12548_vm13 }
 0xb02   :  { %v3987_v39 = vmul.f32 %v3968_v47, %v3933_v55  ;;  %v3988_v63 = vmul.f32 %v3972_v18, %v3932_v37  ;;  %v3646_v53 = vsel %vm812_vm0, %v3640_v30, %v10857_v62  ;;  %v5091_v44 = vrot.slane %v10849_v49, 4 }
 0xb03   :  { %v3658_v2 = vmul.f32 %v3646_v53, %v12538_v60  ;;  %v5058_v52 = vrot.slane %v3748_v10, 4  ;;  %v3886_v45 = vrot.slane %v9786_v42, %v12532_v1  ;;  %v3890_v8 = vrot.slane %v9786_v42, %v12533_v0 }
 0xb04   :  { %v3995_v29 = vpack.c.bf16 %v3987_v39, %v3987_v39  ;;  %v3996_v22 = vpack.c.bf16 %v3988_v63, %v3988_v63  ;;  %v10864_v48 = vpop.permute.xlu0 %3601  ;;  %v12541_v39 = vld [vmem:[#allocation106_spill] sm:$0xff] }
 0xb05   :  { %v3666_v24 = vpack.c.bf16 %v3658_v2, %v3658_v2  ;;  %v3600_v47 = vpop.permute.xlu1 %3599  ;;  %v12543_v2 = vld [vmem:[#allocation22_spill] sm:$0xff] }
 0xb06   :  { %v3606_v18 = vsel %vm730_vm1, %v3600_v47, %v10864_v48  ;;  %v3607_v30 = vsel %vm730_vm1, %v10084_v11, %v3600_v47  ;;  %v5331_v23 = vsel %vm942_vm2, %v3996_v22, %v5092_v31  ;;  %v5327_v9 = vsel %vm942_vm2, %v3995_v29, %v5091_v44 }
 0xb07   :  { %5761 = vmatprep.subr.bf16.mxu1 %v5331_v23  ;;  %v5259_v33 = vsel %vm942_vm2, %v3666_v24, %v5058_v52  ;;  %v3617_v10 = vmul.f32 %v3607_v30, %v12539_v25  ;;  %v3618_v37 = vmul.f32 %v3606_v18, %v12540_v15  ;;  %v5255_v11 = vsel %vm942_vm2, %v3665_v58, %v5057_v36  ;;  %v12544_v24 = vld [vmem:[#allocation64_spill] sm:$0xff] }
 0xb08   :  { %v3560_v55 = vpop.permute.xlu0 %3559  ;;  %5724 = vmatprep.subr.bf16.mxu0 %v5259_v33  ;;  %5762 = vmatpush1.bf16.msra.mxu1 %v5327_v9  ;;  %v3804_v29 = vrot.slane %v9808_v35, %v12532_v1  ;;  %v3808_v58 = vrot.slane %v9808_v35, %v12533_v0  ;;  %v12545_v9 = vld [vmem:[#allocation23_spill] sm:$0xff] }
 0xb09   :  { %v3567_v63 = vsel %vm12542_vm9, %v12541_v39, %v3560_v55  ;;  %5725 = vmatpush1.bf16.msra.mxu0 %v5255_v11  ;;  %v3846_v53 = vpop.permute.xlu1 %3845  ;;  %v3625_v36 = vpack.c.bf16 %v3617_v10, %v3617_v10  ;;  %v3626_v52 = vpack.c.bf16 %v3618_v37, %v3618_v37  ;;  %v12547_v39 = vld [vmem:[#allocation66_spill] sm:$0xff] }
 0xb0a   :  { %v3850_v31 = vsel %vm3849_vm10, %v3846_v53, %v12543_v2  ;;  %v3851_v42 = vsel %vm3849_vm10, %v10773_v50, %v3846_v53  ;;  %v3577_v47 = vmul.f32 %v3567_v63, %v12544_v24 }
 0xb0b   :  { %v3905_v22 = vmul.f32 %v3886_v45, %v3851_v42  ;;  %v3906_v44 = vmul.f32 %v3890_v8, %v3850_v31  ;;  %v5041_v53 = vrot.slane %v3625_v36, 4 }
 0xb0c   :  { %v3764_v18 = vpop.permute.xlu0 %3763  ;;  %v3585_v2 = vpack.c.bf16 %v3577_v47, %v3577_v47 }
 0xb0d   :  { %v3913_v30 = vpack.c.bf16 %v3905_v22, %v3905_v22  ;;  %v3914_v23 = vpack.c.bf16 %v3906_v44, %v3906_v44  ;;  %v3768_v33 = vsel %vm3767_vm11, %v3764_v18, %v12545_v9  ;;  %v3769_v50 = vsel %vm3767_vm11, %v10787_v3, %v3764_v18  ;;  %v10903_v11 = vpop.permute.xlu1 %3561 }
 0xb0e   :  { %v3823_v35 = vmul.f32 %v3804_v29, %v3769_v50  ;;  %v3824_v45 = vmul.f32 %v3808_v58, %v3768_v33  ;;  %v3566_v8 = vsel %vm12546_vm12, %v3560_v55, %v10903_v11  ;;  %v5042_v44 = vrot.slane %v3626_v52, 4  ;;  %v12551_v52 = vld [vmem:[#allocation69_spill] sm:$0xff]  ;;  %vm12566_vm12 = vmmov %vm12542_vm9 }
 0xb0f   :  { %v5075_v10 = vrot.slane %v3913_v30, 4  ;;  %v5076_v37 = vrot.slane %v3914_v23, 4  ;;  %v3578_v63 = vmul.f32 %v3566_v8, %v12547_v39  ;;  %v3722_v29 = vrot.slane %v9854_v6, %v12532_v1  ;;  %v12550_v30 = vld [vmem:[#allocation68_spill] sm:$0xff]  ;;  %v12597_v39 = vld [vmem:[#allocation110_spill] sm:$0xff] }
 0xb10   :  { %v3831_v31 = vpack.c.bf16 %v3823_v35, %v3823_v35  ;;  %v3832_v42 = vpack.c.bf16 %v3824_v45, %v3824_v45  ;;  %v10909_v22 = vpop.permute.xlu0 %3521  ;;  %v3726_v50 = vrot.slane %v9854_v6, %v12533_v0  ;;  %v5223_v45 = vsel %vm942_vm2, %v3585_v2, %v5041_v53  ;;  %v12554_v6 = vld [vmem:[#allocation98_spill] sm:$0xff] }
 0xb11   :  { %v3586_v3 = vpack.c.bf16 %v3578_v63, %v3578_v63  ;;  %v3520_v18 = vpop.permute.xlu1 %3519  ;;  %vm12560_vm11 = vcmp.lt.s32.totalorder %v7634_v13, 15 }
 0xb12   :  { %v3526_v55 = vsel %vm12548_vm13, %v3520_v18, %v10909_v22  ;;  %v3527_v58 = vsel %vm12549_vm15, %v10167_v46, %v3520_v18  ;;  %v5299_v36 = vsel %vm942_vm2, %v3832_v42, %v5076_v37  ;;  %v5295_v47 = vsel %vm942_vm2, %v3831_v31, %v5075_v10  ;;  %v12552_v37 = vld [vmem:[#allocation99_spill] sm:$0xff]  ;;  %vm12569_vm13 = vmmov %vm12560_vm11 }
 0xb13   :  { %v3537_v23 = vmul.f32 %v3527_v58, %v12550_v30  ;;  %v3538_v9 = vmul.f32 %v3526_v55, %v12551_v52  ;;  %5763 = vmatprep.subr.bf16.mxu1 %v5299_v36  ;;  %v5227_v33 = vsel %vm942_vm2, %v3586_v3, %v5042_v44  ;;  %v12553_v42 = vld [vmem:[#allocation63_spill] sm:$0xff]  ;;  %v12555_v58 = vld [vmem:[#allocation62_spill] sm:$0xff]  ;;  %vm12571_vm15 = vcmp.lt.s32.totalorder %v7634_v13, 16 }
 0xb14   :  { %v3644_v35 = vpop.permute.xlu0 %3643  ;;  %5726 = vmatprep.subr.bf16.mxu0 %v5227_v33  ;;  %5764 = vmatpush1.bf16.msra.mxu1 %v5295_v47 }
 0xb15   :  { %v3545_v46 = vpack.c.bf16 %v3537_v23, %v3537_v23  ;;  %v3546_v8 = vpack.c.bf16 %v3538_v9, %v3538_v9  ;;  %v3645_v10 = vsel %vm812_vm0, %v10857_v62, %v3644_v35  ;;  %v3652_v63 = vsel %vm812_vm0, %v3644_v35, %v12552_v37  ;;  %5727 = vmatpush1.bf16.msra.mxu0 %v5223_v45  ;;  %v3682_v31 = vpop.permute.xlu1 %3681  ;;  %v12558_v37 = vld [vmem:[#allocation74_spill] sm:$0xff] }
 0xb16   :  { %v3660_v44 = vmul.f32 %v3652_v63, %v12553_v42  ;;  %v3686_v3 = vsel %vm3685_vm14, %v3682_v31, %v12554_v6  ;;  %v3687_v53 = vsel %vm3685_vm14, %v10829_v54, %v3682_v31  ;;  %v3659_v36 = vmul.f32 %v3645_v10, %v12555_v58  ;;  %v12559_v31 = vld [vmem:[#allocation75_spill] sm:$0xff] }
 0xb17   :  { %v5025_v2 = vrot.slane %v3545_v46, 4  ;;  %v5026_v18 = vrot.slane %v3546_v8, 4  ;;  %v3741_v55 = vmul.f32 %v3722_v29, %v3687_v53  ;;  %v3742_v62 = vmul.f32 %v3726_v50, %v3686_v3 }
 0xb18   :  { %v10941_v47 = vpop.permute.xlu0 %3471  ;;  %vm12556_vm14 = vcmp.lt.s32.totalorder %v7634_v13, 1  ;;  %v3668_v50 = vpack.c.bf16 %v3660_v44, %v3660_v44  ;;  %v3667_v10 = vpack.c.bf16 %v3659_v36, %v3659_v36  ;;  %v12561_v44 = vld [vmem:[#allocation102_spill] sm:$0xff]  ;;  %v12562_v36 = vld [vmem:[#allocation67_spill] sm:$0xff] }
 0xb19   :  { %v3749_v23 = vpack.c.bf16 %v3741_v55, %v3741_v55  ;;  %v3750_v9 = vpack.c.bf16 %v3742_v62, %v3742_v62  ;;  %v3470_v33 = vpop.permute.xlu1 %3469  ;;  %v5195_v35 = vsel %vm942_vm2, %v10728_v26, %v5026_v18  ;;  %v5191_v45 = vsel %vm942_vm2, %v10737_v32, %v5025_v2  ;;  %vm12557_vm10 = vmmov %vm12556_vm14 }
 0xb1a   :  { %v3479_v54 = vsel %vm12556_vm14, %v3470_v33, %v10941_v47  ;;  %v3480_v29 = vsel %vm12557_vm10, %v10216_v28, %v3470_v33  ;;  %5728 = vmatprep.subr.bf16.mxu0 %v5195_v35  ;;  %vm12572_vm14 = vmmov %vm12571_vm15  ;;  %vm12575_vm10 = vcmp.lt.s32.totalorder %v7634_v13, 17 }
 0xb1b   :  { %v5059_v46 = vrot.slane %v3749_v23, 4  ;;  %v5060_v8 = vrot.slane %v3750_v9, 4  ;;  %5729 = vmatpush1.bf16.msra.mxu0 %v5191_v45  ;;  %v3489_v63 = vmul.f32 %v3480_v29, %v12558_v37  ;;  %v3490_v6 = vmul.f32 %v3479_v54, %v12559_v31  ;;  %v12563_v9 = vld [vmem:[#allocation65_spill] sm:$0xff]  ;;  %v12564_v45 = vld [vmem:[#allocation76_spill] sm:$0xff] }
 0xb1c   :  { %v3430_v3 = vpop.permute.xlu0 %3429 }
 0xb1d   :  { %v3440_v53 = vsel %vm12560_vm11, %v10233_v43, %v3430_v3  ;;  %v3604_v2 = vpop.permute.xlu1 %3603  ;;  %v5267_v18 = vsel %vm942_vm2, %v3668_v50, %v5060_v8  ;;  %v5263_v62 = vsel %vm942_vm2, %v3667_v10, %v5059_v46  ;;  %v3497_v43 = vpack.c.bf16 %v3489_v63, %v3489_v63 }
 0xb1e   :  { %v3605_v28 = vsel %vm730_vm1, %v10864_v48, %v3604_v2  ;;  %v3612_v55 = vsel %vm730_vm1, %v3604_v2, %v12561_v44  ;;  %5765 = vmatprep.subr.bf16.mxu1 %v5267_v18  ;;  %v3498_v35 = vpack.c.bf16 %v3490_v6, %v3490_v6  ;;  %v3449_v54 = vmul.f32 %v3440_v53, %v12564_v45  ;;  %v12565_v2 = vld [vmem:[#allocation103_spill] sm:$0xff]  ;;  %v12567_v18 = vld [vmem:[#allocation73_spill] sm:$0xff]  ;;  %v12568_v44 = vld [vmem:[#allocation72_spill] sm:$0xff] }
 0xb1f   :  { %v3619_v23 = vmul.f32 %v3605_v28, %v12562_v36  ;;  %v3620_v33 = vmul.f32 %v3612_v55, %v12563_v9  ;;  %5766 = vmatpush1.bf16.msra.mxu1 %v5263_v62  ;;  %v12570_v62 = vld [vmem:[#allocation77_spill] sm:$0xff]  ;;  %vm12576_vm11 = vcmp.lt.s32.totalorder %v7634_v13, 127 }
 0xb20   :  { %v3564_v29 = vpop.permute.xlu0 %3563 }
 0xb21   :  { %v3627_v50 = vpack.c.bf16 %v3619_v23, %v3619_v23  ;;  %v3628_v8 = vpack.c.bf16 %v3620_v33, %v3620_v33  ;;  %v3565_v48 = vsel %vm12542_vm9, %v10903_v11, %v3564_v29  ;;  %v3572_v46 = vsel %vm12566_vm12, %v3564_v29, %v12565_v2  ;;  %v10975_v10 = vpop.permute.xlu1 %3431  ;;  %vm12578_vm9 = vmmov %vm12576_vm11 }
 0xb22   :  { %v3579_v28 = vmul.f32 %v3565_v48, %v12567_v18  ;;  %v3580_v63 = vmul.f32 %v3572_v46, %v12568_v44  ;;  %v3439_v6 = vsel %vm12569_vm13, %v3430_v3, %v10975_v10  ;;  %v5009_v33 = vrot.slane %v3497_v43, 4 }
 0xb23   :  { %v5043_v53 = vrot.slane %v3627_v50, 4  ;;  %v5044_v55 = vrot.slane %v3628_v8, 4  ;;  %v3450_v23 = vmul.f32 %v3439_v6, %v12570_v62  ;;  %v3457_v11 = vpack.c.bf16 %v3449_v54, %v3449_v54  ;;  %v12573_v8 = vld [vmem:[#allocation80_spill] sm:$0xff] }
 0xb24   :  { %v3587_v20 = vpack.c.bf16 %v3579_v28, %v3579_v28  ;;  %v3588_v59 = vpack.c.bf16 %v3580_v63, %v3580_v63  ;;  %v10983_v12 = vpop.permute.xlu0 %3391  ;;  %v5010_v29 = vrot.slane %v3498_v35, 4  ;;  %v12574_v35 = vld [vmem:[#allocation83_spill] sm:$0xff]  ;;  %vm12583_vm12 = vcmp.lt.s32.totalorder %v7634_v13, 1 }
 0xb25   :  { %v3458_v2 = vpack.c.bf16 %v3450_v23, %v3450_v23  ;;  %v3390_v31 = vpop.permute.xlu1 %3389  ;;  %v5159_v6 = vsel %vm942_vm2, %v3457_v11, %v5009_v33  ;;  %v12581_v11 = vld [vmem:[#allocation84_spill] sm:$0xff]  ;;  %vm12584_vm13 = vmmov %vm12583_vm12 }
 0xb26   :  { %v3399_v48 = vsel %vm12571_vm15, %v3390_v31, %v10983_v12  ;;  %v3400_v3 = vsel %vm12572_vm14, %v10261_v19, %v3390_v31  ;;  %v5235_v50 = vsel %vm942_vm2, %v3588_v59, %v5044_v55  ;;  %v5231_v43 = vsel %vm942_vm2, %v3587_v20, %v5043_v53  ;;  %v12577_v31 = vld [vmem:[#allocation104_spill] sm:$0xff]  ;;  %v12579_v55 = vld [vmem:[#allocation71_spill] sm:$0xff]  ;;  %vm12587_vm15 = vmmov %vm12575_vm10 }
 0xb27   :  { %5767 = vmatprep.subr.bf16.mxu1 %v5235_v50  ;;  %v5163_v54 = vsel %vm942_vm2, %v3458_v2, %v5010_v29  ;;  %v3409_v46 = vmul.f32 %v3400_v3, %v12573_v8  ;;  %v3410_v28 = vmul.f32 %v3399_v48, %v12574_v35  ;;  %v12580_v29 = vld [vmem:[#allocation70_spill] sm:$0xff]  ;;  %vm12591_vm14 = vcmp.lt.s32.totalorder %v7634_v13, 77 }
 0xb28   :  { %v3350_v63 = vpop.permute.xlu0 %3349  ;;  %5730 = vmatprep.subr.bf16.mxu0 %v5163_v54  ;;  %5768 = vmatpush1.bf16.msra.mxu1 %v5231_v43  ;;  %v12582_v54 = vld [vmem:[#allocation105_spill] sm:$0xff] }
 0xb29   :  { %v3360_v19 = vsel %vm12575_vm10, %v10309_v7, %v3350_v63  ;;  %5731 = vmatpush1.bf16.msra.mxu0 %v5159_v6  ;;  %v3524_v59 = vpop.permute.xlu1 %3523  ;;  %v3417_v48 = vpack.c.bf16 %v3409_v46, %v3409_v46  ;;  %v3418_v33 = vpack.c.bf16 %v3410_v28, %v3410_v28  ;;  %vm12593_vm10 = vcmp.lt.s32.totalorder %v7634_v13, 15 }
 0xb2a   :  { %v3525_v20 = vsel %vm12576_vm11, %v10909_v22, %v3524_v59  ;;  %v3532_v53 = vsel %vm12578_vm9, %v3524_v59, %v12577_v31  ;;  %v3369_v3 = vmul.f32 %v3360_v19, %v12581_v11  ;;  %vm12594_vm11 = vmmov %vm12593_vm10  ;;  %vm12598_vm9 = vcmp.lt.s32.totalorder %v7634_v13, 16 }
 0xb2b   :  { %v3539_v23 = vmul.f32 %v3525_v20, %v12579_v55  ;;  %v3540_v2 = vmul.f32 %v3532_v53, %v12580_v29  ;;  %v12585_v20 = vld [vmem:[#allocation79_spill] sm:$0xff]  ;;  %v12586_v53 = vld [vmem:[#allocation78_spill] sm:$0xff]  ;;  %v4993_v11 = vrot.slane %v3417_v48, 4  ;;  %v4994_v44 = vrot.slane %v3418_v33, 4 }
 0xb2c   :  { %v3474_v50 = vpop.permute.xlu0 %3473 }
 0xb2d   :  { %v3547_v7 = vpack.c.bf16 %v3539_v23, %v3539_v23  ;;  %v3548_v43 = vpack.c.bf16 %v3540_v2, %v3540_v2  ;;  %v3477_v6 = vsel %vm12583_vm12, %v3474_v50, %v12582_v54  ;;  %v3478_v22 = vsel %vm12584_vm13, %v10941_v47, %v3474_v50  ;;  %v11015_v59 = vpop.permute.xlu1 %3351  ;;  %v12588_v2 = vld [vmem:[#allocation85_spill] sm:$0xff]  ;;  %v12589_v54 = vld [vmem:[#allocation112_spill] sm:$0xff]  ;;  %vm12599_vm12 = vmmov %vm12598_vm9 }
 0xb2e   :  { %v3491_v31 = vmul.f32 %v3478_v22, %v12585_v20  ;;  %v3492_v46 = vmul.f32 %v3477_v6, %v12586_v53  ;;  %v3359_v28 = vsel %vm12587_vm15, %v3350_v63, %v11015_v59  ;;  %v4944_v35 = vrot.slane %v12589_v54, %v12528_v27  ;;  %v12590_v22 = vld [vmem:[#allocation119_spill] sm:$0xff]  ;;  %vm12600_vm13 = vmmov %vm12591_vm14 }
 0xb2f   :  { %v5027_v19 = vrot.slane %v3547_v7, 4  ;;  %v5028_v23 = vrot.slane %v3548_v43, 4  ;;  %v3370_v62 = vmul.f32 %v3359_v28, %v12588_v2  ;;  %v3377_v47 = vpack.c.bf16 %v3369_v3, %v3369_v3  ;;  %v12592_v28 = vld [vmem:[#allocation108_spill] sm:$0xff] }
 0xb30   :  { %v3500_v50 = vpack.c.bf16 %v3492_v46, %v3492_v46  ;;  %v4910_v18 = vpop.permute.xlu0 %4909  ;;  %v3499_v43 = vpack.c.bf16 %v3491_v31, %v3491_v31  ;;  %v12595_v46 = vld [vmem:[#allocation82_spill] sm:$0xff]  ;;  %vm12604_vm15 = vcmp.lt.s32.totalorder %v7634_v13, 80 }
 0xb31   :  { %v3378_v29 = vpack.c.bf16 %v3370_v62, %v3370_v62  ;;  %v4918_v6 = vsel %vm12591_vm14, %v12590_v22, %v4910_v18  ;;  %v3434_v20 = vpop.permute.xlu1 %3433  ;;  %v5203_v63 = vsel %vm942_vm2, %v10844_v5, %v5028_v23  ;;  %v5199_v7 = vsel %vm942_vm2, %v10849_v49, %v5027_v19  ;;  %v12596_v19 = vld [vmem:[#allocation81_spill] sm:$0xff]  ;;  %vm12606_vm14 = vmmov %vm12604_vm15 }
 0xb32   :  { %v3437_v48 = vsel %vm12593_vm10, %v3434_v20, %v12592_v28  ;;  %5769 = vmatprep.subr.bf16.mxu1 %v5203_v63  ;;  %v4948_v62 = vrot.slane %v12589_v54, %v12527_v41  ;;  %v4969_v33 = vmul.f32 %v4944_v35, %v4918_v6  ;;  %v3438_v3 = vsel %vm12594_vm11, %v10975_v10, %v3434_v20 }
 0xb33   :  { %v3452_v22 = vmul.f32 %v3437_v48, %v12595_v46  ;;  %5770 = vmatpush1.bf16.msra.mxu1 %v5199_v7  ;;  %v5131_v23 = vsel %vm942_vm2, %v3378_v29, %v4994_v44  ;;  %v3451_v31 = vmul.f32 %v3438_v3, %v12596_v19  ;;  %v5127_v28 = vsel %vm942_vm2, %v3377_v47, %v4993_v11  ;;  %v12601_v47 = vld [vmem:[#allocation89_spill] sm:$0xff]  ;;  %v12602_v3 = vld [vmem:[#allocation88_spill] sm:$0xff] }
 0xb34   :  { %v3394_v2 = vpop.permute.xlu0 %3393  ;;  %5732 = vmatprep.subr.bf16.mxu0 %v5131_v23  ;;  %v5012_v63 = vrot.slane %v3500_v50, 4  ;;  %v5011_v6 = vrot.slane %v3499_v43, 4  ;;  %v4977_v7 = vpack.c.bf16 %v4969_v33, %v4969_v33  ;;  %v12605_v33 = vld [vmem:[#allocation122_spill] sm:$0xff]  ;;  %vm12609_vm10 = vcmp.lt.s32.totalorder %v7634_v13, 83 }
 0xb35   :  { %v3460_v55 = vpack.c.bf16 %v3452_v22, %v3452_v22  ;;  %v3397_v35 = vsel %vm12598_vm9, %v3394_v2, %v12597_v39  ;;  %v3398_v10 = vsel %vm12599_vm12, %v10983_v12, %v3394_v2  ;;  %5733 = vmatpush1.bf16.msra.mxu0 %v5127_v28  ;;  %v4912_v20 = vpop.permute.xlu1 %4911  ;;  %v3459_v44 = vpack.c.bf16 %v3451_v31, %v3451_v31  ;;  %v12603_v2 = vld [vmem:[#allocation114_spill] sm:$0xff] }
 0xb36   :  { %v4917_v29 = vsel %vm12600_vm13, %v4910_v18, %v4912_v20  ;;  %v3411_v50 = vmul.f32 %v3398_v10, %v12601_v47  ;;  %v3412_v22 = vmul.f32 %v3397_v35, %v12602_v3  ;;  %v4862_v43 = vrot.slane %v12603_v2, %v12528_v27  ;;  %v12610_v47 = vld [vmem:[#allocation111_spill] sm:$0xff]  ;;  %vm12616_vm13 = vmmov %vm12609_vm10 }
 0xb37   :  { %v4970_v48 = vmul.f32 %v4948_v62, %v4917_v29  ;;  %v5171_v11 = vsel %vm942_vm2, %v3460_v55, %v5012_v63  ;;  %v5167_v12 = vsel %vm942_vm2, %v3459_v44, %v5011_v6  ;;  %v4866_v18 = vrot.slane %v12603_v2, %v12527_v41  ;;  %v12607_v6 = vld [vmem:[#allocation116_spill] sm:$0xff] }
 0xb38   :  { %v11055_v39 = vpop.permute.xlu0 %4829  ;;  %5771 = vmatprep.subr.bf16.mxu1 %v5171_v11  ;;  %v5625_v28 = vsel %vm942_vm2, %v4977_v7, 0  ;;  %v3419_v63 = vpack.c.bf16 %v3411_v50, %v3411_v50  ;;  %v3420_v35 = vpack.c.bf16 %v3412_v22, %v3412_v22  ;;  %v4780_v44 = vrot.slane %v12607_v6, %v12528_v27  ;;  %v12608_v11 = vld [vmem:[#allocation123_spill] sm:$0xff]  ;;  %v12613_v22 = vld [vmem:[#allocation86_spill] sm:$0xff] }
 0xb39   :  { %v4978_v23 = vpack.c.bf16 %v4970_v48, %v4970_v48  ;;  %5772 = vmatpush1.bf16.msra.mxu1 %v5167_v12  ;;  %v4828_v62 = vpop.permute.xlu1 %4827  ;;  %vm12611_vm11 = vcmp.lt.s32.totalorder %v7634_v13, 17  ;;  %v4698_v50 = vrot.slane %v10324_v4, %v12528_v27  ;;  %vm12615_vm12 = vcmp.lt.s32.totalorder %v7634_v13, 125 }
 0xb3a   :  { %v4835_v55 = vsel %vm12604_vm15, %v4828_v62, %v11055_v39  ;;  %v4836_v31 = vsel %vm12606_vm14, %v12605_v33, %v4828_v62  ;;  %vm12612_vm9 = vmmov %vm12611_vm11  ;;  %v12614_v62 = vld [vmem:[#allocation87_spill] sm:$0xff]  ;;  %v4995_v33 = vrot.slane %v3419_v63, 4  ;;  %v4952_v63 = vrot.slane %v12589_v54, %v12532_v1 }
 0xb3b   :  { %7104 = vmatprep.subr.msk.bf16.mxu0 %vm942_vm2, %v4978_v23  ;;  %v4887_v10 = vmul.f32 %v4862_v43, %v4836_v31  ;;  %v4888_v48 = vmul.f32 %v4866_v18, %v4835_v55  ;;  %v4784_v55 = vrot.slane %v12607_v6, %v12527_v41  ;;  %v4996_v31 = vrot.slane %v3420_v35, 4 }
 0xb3c   :  { %v4746_v29 = vpop.permute.xlu0 %4745  ;;  %5739 = vmatpush2.bf16.msra.mxu0 %v5625_v28  ;;  %v4956_v35 = vrot.slane %v12589_v54, %v12533_v0  ;;  %vm12617_vm15 = vcmp.lt.s32.totalorder %v7634_v13, 77 }
 0xb3d   :  { %v4754_v12 = vsel %vm12609_vm10, %v12608_v11, %v4746_v29  ;;  %v3354_v19 = vpop.permute.xlu1 %3353  ;;  %v4895_v28 = vpack.c.bf16 %v4887_v10, %v4887_v10  ;;  %vm12619_vm14 = vmmov %vm12617_vm15 }
 0xb3e   :  { %v3357_v23 = vsel %vm12611_vm11, %v3354_v19, %v12610_v47  ;;  %v3358_v7 = vsel %vm12612_vm9, %v11015_v59, %v3354_v19  ;;  %v4805_v11 = vmul.f32 %v4780_v44, %v4754_v12  ;;  %v4896_v47 = vpack.c.bf16 %v4888_v48, %v4888_v48  ;;  %vm12620_vm10 = vmmov %vm12615_vm12 }
 0xb3f   :  { %v3371_v43 = vmul.f32 %v3358_v7, %v12613_v22  ;;  %v3372_v18 = vmul.f32 %v3357_v23, %v12614_v62  ;;  %v5441_v12 = vrot.slane %v4895_v28, 4  ;;  %v12618_v22 = vld [vmem:[#allocation113_spill] sm:$0xff]  ;;  %vm12623_vm11 = vcmp.lt.s32.totalorder %v7634_v13, 80 }
 0xb40   :  { %v4664_v3 = vpop.permute.xlu0 %4663  ;;  %vm12625_vm9 = vmmov %vm12623_vm11 }
 0xb41   :  { %v3379_v24 = vpack.c.bf16 %v3371_v43, %v3371_v43  ;;  %v3380_v52 = vpack.c.bf16 %v3372_v18, %v3372_v18  ;;  %v4672_v59 = vsel %vm12615_vm12, %v10498_v21, %v4664_v3  ;;  %v11090_v19 = vpop.permute.xlu1 %4747  ;;  %v4702_v21 = vrot.slane %v10324_v4, %v12527_v41  ;;  %vm12626_vm12 = vmmov %vm12616_vm13 }
 0xb42   :  { %v4723_v7 = vmul.f32 %v4698_v50, %v4672_v59  ;;  %v4753_v23 = vsel %vm12616_vm13, %v4746_v29, %v11090_v19  ;;  %v4813_v50 = vpack.c.bf16 %v4805_v11, %v4805_v11  ;;  %v5442_v18 = vrot.slane %v4896_v47, 4  ;;  %vm12628_vm13 = vmmov %vm12626_vm12 }
 0xb43   :  { %v4806_v10 = vmul.f32 %v4784_v55, %v4753_v23  ;;  %v5139_v44 = vsel %vm942_vm2, %v3380_v52, %v4996_v31  ;;  %v5135_v48 = vsel %vm942_vm2, %v3379_v24, %v4995_v33 }
 0xb44   :  { %v4914_v43 = vpop.permute.xlu0 %4913  ;;  %5773 = vmatprep.subr.bf16.mxu1 %v5139_v44  ;;  %v4731_v24 = vpack.c.bf16 %v4723_v7, %v4723_v7  ;;  %v4620_v7 = vrot.slane %v10378_v61, %v12527_v41 }
 0xb45   :  { %v4814_v29 = vpack.c.bf16 %v4806_v10, %v4806_v10  ;;  %v4916_v59 = vsel %vm12617_vm15, %v4912_v20, %v4914_v43  ;;  %v4923_v54 = vsel %vm12619_vm14, %v4914_v43, %v12618_v22  ;;  %5774 = vmatpush1.bf16.msra.mxu1 %v5135_v48  ;;  %v11108_v52 = vpop.permute.xlu1 %4665  ;;  %v4616_v20 = vrot.slane %v10378_v61, %v12528_v27  ;;  %vm12629_vm15 = vmmov %vm12620_vm10 }
 0xb46   :  { %v4971_v55 = vmul.f32 %v4952_v63, %v4916_v59  ;;  %v4972_v33 = vmul.f32 %v4956_v35, %v4923_v54  ;;  %v4671_v31 = vsel %vm12620_vm10, %v4664_v3, %v11108_v52  ;;  %v5583_v22 = vsel %vm942_vm2, %v4813_v50, %v5441_v12  ;;  %v12621_v59 = vld [vmem:[#allocation120_spill] sm:$0xff]  ;;  %vm12631_vm14 = vmmov %vm12620_vm10 }
 0xb47   :  { %v4724_v28 = vmul.f32 %v4702_v21, %v4671_v31  ;;  %v5587_v11 = vsel %vm942_vm2, %v4814_v29, %v5442_v18  ;;  %v5425_v3 = vrot.slane %v4731_v24, 4  ;;  %v4870_v50 = vrot.slane %v12603_v2, %v12532_v1 }
 0xb48   :  { %v4979_v47 = vpack.c.bf16 %v4971_v55, %v4971_v55  ;;  %v4980_v23 = vpack.c.bf16 %v4972_v33, %v4972_v33  ;;  %v11116_v10 = vpop.permute.xlu0 %4581  ;;  %5740 = vmatprep.subr.bf16.mxu0 %v5587_v11  ;;  %v4874_v43 = vrot.slane %v12603_v2, %v12533_v0  ;;  %v4534_v54 = vrot.slane %v12621_v59, %v12528_v27  ;;  %v12622_v55 = vld [vmem:[#allocation129_spill] sm:$0xff]  ;;  %v12624_v11 = vld [vmem:[#allocation115_spill] sm:$0xff] }
 0xb49   :  { %v4732_v63 = vpack.c.bf16 %v4724_v28, %v4724_v28  ;;  %5741 = vmatpush2.bf16.msra.mxu0 %v5583_v22  ;;  %v4580_v35 = vpop.permute.xlu1 %4579  ;;  %v4788_v28 = vrot.slane %v12607_v6, %v12532_v1  ;;  %vm12656_vm10 = vcmp.lt.s32.totalorder %v7634_v13, 15 }
 0xb4a   :  { %v4590_v44 = vsel %vm4587_vm4, %v4580_v35, %v11116_v10  ;;  %v4591_v48 = vsel %vm4587_vm4, %v10564_v16, %v4580_v35  ;;  %7106 = vmatprep.subr.msk.bf16.mxu1 %vm942_vm2, %v4980_v23  ;;  %v5631_v21 = vsel %vm942_vm2, %v4979_v47, 0  ;;  %v5554_v47 = vsel %vm942_vm2, %v10737_v32, %v5425_v3  ;;  %v12627_v3 = vld [vmem:[#allocation117_spill] sm:$0xff]  ;;  %v12649_v32 = vld [vmem:[#allocation31_spill] sm:$0xff] }
 0xb4b   :  { %v5426_v12 = vrot.slane %v4732_v63, 4  ;;  %5780 = vmatpush2.bf16.msra.mxu1 %v5631_v21  ;;  %v4641_v18 = vmul.f32 %v4616_v20, %v4591_v48  ;;  %v4642_v29 = vmul.f32 %v4620_v7, %v4590_v44  ;;  %v4792_v23 = vrot.slane %v12607_v6, %v12533_v0 }
 0xb4c   :  { %v4498_v24 = vpop.permute.xlu0 %4497  ;;  %v4538_v63 = vrot.slane %v12621_v59, %v12527_v41 }
 0xb4d   :  { %v4509_v16 = vsel %vm4505_vm5, %v12622_v55, %v4498_v24  ;;  %v4832_v33 = vpop.permute.xlu1 %4831  ;;  %v5557_v31 = vsel %vm942_vm2, %v10728_v26, %v5426_v12  ;;  %v4649_v35 = vpack.c.bf16 %v4641_v18, %v4641_v18  ;;  %v4650_v44 = vpack.c.bf16 %v4642_v29, %v4642_v29 }
 0xb4e   :  { %v4834_v2 = vsel %vm12623_vm11, %v11055_v39, %v4832_v33  ;;  %v4841_v20 = vsel %vm12625_vm9, %v4832_v33, %v12624_v11  ;;  %5742 = vmatprep.subr.bf16.mxu0 %v5557_v31  ;;  %v4559_v39 = vmul.f32 %v4534_v54, %v4509_v16  ;;  %v4452_v29 = vrot.slane %v10459_v17, %v12528_v27  ;;  %vm12658_vm9 = vmmov %vm12656_vm10 }
 0xb4f   :  { %v4889_v22 = vmul.f32 %v4870_v50, %v4834_v2  ;;  %v4890_v7 = vmul.f32 %v4874_v43, %v4841_v20  ;;  %5743 = vmatpush2.bf16.msra.mxu0 %v5554_v47  ;;  %v5409_v2 = vrot.slane %v4649_v35, 4 }
 0xb50   :  { %v4750_v48 = vpop.permute.xlu0 %4749  ;;  %v4567_v11 = vpack.c.bf16 %v4559_v39, %v4559_v39 }
 0xb51   :  { %v4897_v21 = vpack.c.bf16 %v4889_v22, %v4889_v22  ;;  %v4898_v12 = vpack.c.bf16 %v4890_v7, %v4890_v7  ;;  %v4752_v55 = vsel %vm12626_vm12, %v11090_v19, %v4750_v48  ;;  %v4759_v6 = vsel %vm12628_vm13, %v4750_v48, %v12627_v3  ;;  %v11160_v50 = vpop.permute.xlu1 %4499 }
 0xb52   :  { %v4807_v43 = vmul.f32 %v4788_v28, %v4752_v55  ;;  %v4808_v33 = vmul.f32 %v4792_v23, %v4759_v6  ;;  %v4508_v18 = vsel %vm4505_vm5, %v4498_v24, %v11160_v50  ;;  %v4456_v19 = vrot.slane %v10459_v17, %v12527_v41 }
 0xb53   :  { %v5443_v54 = vrot.slane %v4897_v21, 4  ;;  %v5444_v16 = vrot.slane %v4898_v12, 4  ;;  %v4560_v31 = vmul.f32 %v4538_v63, %v4508_v18  ;;  %v5410_v28 = vrot.slane %v4650_v44, 4 }
 0xb54   :  { %v4815_v20 = vpack.c.bf16 %v4807_v43, %v4807_v43  ;;  %v4816_v47 = vpack.c.bf16 %v4808_v33, %v4808_v33  ;;  %v11169_v22 = vpop.permute.xlu0 %4417  ;;  %v4370_v24 = vrot.slane %v10492_v57, %v12528_v27  ;;  %v4706_v12 = vrot.slane %v10324_v4, %v12532_v1 }
 0xb55   :  { %v4568_v23 = vpack.c.bf16 %v4560_v31, %v4560_v31  ;;  %v4416_v7 = vpop.permute.xlu1 %4415  ;;  %v4710_v55 = vrot.slane %v10324_v4, %v12533_v0  ;;  %vm12662_vm12 = vcmp.lt.s32.totalorder %v7634_v13, 1 }
 0xb56   :  { %v4426_v48 = vsel %vm4423_vm7, %v4416_v7, %v11169_v22  ;;  %v4427_v63 = vsel %vm4423_vm7, %v10648_v38, %v4416_v7  ;;  %v5595_v35 = vsel %vm942_vm2, %v4816_v47, %v5444_v16  ;;  %v5591_v39 = vsel %vm942_vm2, %v4815_v20, %v5443_v54  ;;  %v12630_v54 = vld [vmem:[#allocation118_spill] sm:$0xff]  ;;  %vm12663_vm13 = vmmov %vm12662_vm12 }
 0xb57   :  { %v4477_v21 = vmul.f32 %v4452_v29, %v4427_v63  ;;  %5781 = vmatprep.subr.bf16.mxu1 %v5595_v35  ;;  %v5531_v44 = vsel %vm942_vm2, %v4568_v23, %v5410_v28  ;;  %v4478_v3 = vmul.f32 %v4456_v19, %v4426_v48  ;;  %v5527_v38 = vsel %vm942_vm2, %v4567_v11, %v5409_v2 }
 0xb58   :  { %v4334_v6 = vpop.permute.xlu0 %4333  ;;  %5744 = vmatprep.subr.bf16.mxu0 %v5531_v44  ;;  %5782 = vmatpush2.bf16.msra.mxu1 %v5591_v39  ;;  %v4374_v2 = vrot.slane %v10492_v57, %v12527_v41  ;;  %v4292_v48 = vrot.slane %v10524_v34, %v12527_v41 }
 0xb59   :  { %v4345_v43 = vsel %vm4341_vm6, %v10683_v51, %v4334_v6  ;;  %5745 = vmatpush2.bf16.msra.mxu0 %v5527_v38  ;;  %v4668_v33 = vpop.permute.xlu1 %4667  ;;  %v4485_v18 = vpack.c.bf16 %v4477_v21, %v4477_v21  ;;  %v4486_v11 = vpack.c.bf16 %v4478_v3, %v4478_v3  ;;  %v4288_v51 = vrot.slane %v10524_v34, %v12528_v27 }
 0xb5a   :  { %v4670_v29 = vsel %vm12629_vm15, %v11108_v52, %v4668_v33  ;;  %v4677_v4 = vsel %vm12631_vm14, %v4668_v33, %v12630_v54  ;;  %v4395_v16 = vmul.f32 %v4370_v24, %v4345_v43  ;;  %v12632_v43 = vld [vmem:[#allocation121_spill] sm:$0xff]  ;;  %vm12664_vm15 = vmmov %vm12658_vm9 }
 0xb5b   :  { %v4725_v31 = vmul.f32 %v4706_v12, %v4670_v29  ;;  %v4726_v19 = vmul.f32 %v4710_v55, %v4677_v4  ;;  %v5393_v7 = vrot.slane %v4485_v18, 4  ;;  %v5394_v44 = vrot.slane %v4486_v11, 4  ;;  %vm12668_vm14 = vmmov %vm12662_vm12 }
 0xb5c   :  { %v4254_v20 = vpop.permute.xlu0 %4253  ;;  %v4403_v63 = vpack.c.bf16 %v4395_v16, %v4395_v16  ;;  %v4624_v55 = vrot.slane %v10378_v61, %v12532_v1 }
 0xb5d   :  { %v4733_v47 = vpack.c.bf16 %v4725_v31, %v4725_v31  ;;  %v4734_v28 = vpack.c.bf16 %v4726_v19, %v4726_v19  ;;  %v4262_v52 = vsel %vm4259_vm8, %v10701_v14, %v4254_v20  ;;  %v11203_v23 = vpop.permute.xlu1 %4335  ;;  %v4628_v14 = vrot.slane %v10378_v61, %v12533_v0  ;;  %v12633_v61 = vld [vmem:[#allocation127_spill] sm:$0xff] }
 0xb5e   :  { %v4344_v24 = vsel %vm4341_vm6, %v4334_v6, %v11203_v23  ;;  %v4313_v12 = vmul.f32 %v4288_v51, %v4262_v52  ;;  %v4206_v4 = vrot.slane %v12633_v61, %v12528_v27  ;;  %v4210_v16 = vrot.slane %v12633_v61, %v12527_v41 }
 0xb5f   :  { %v5427_v35 = vrot.slane %v4733_v47, 4  ;;  %v5428_v39 = vrot.slane %v4734_v28, 4  ;;  %v4396_v21 = vmul.f32 %v4374_v2, %v4344_v24  ;;  %v4460_v31 = vrot.slane %v10459_v17, %v12532_v1 }
 0xb60   :  { %v4584_v3 = vpop.permute.xlu0 %4583  ;;  %v5495_v11 = vsel %vm942_vm2, %v4403_v63, %v5393_v7  ;;  %v4321_v51 = vpack.c.bf16 %v4313_v12, %v4313_v12  ;;  %v4464_v52 = vrot.slane %v10459_v17, %v12533_v0  ;;  %v4542_v24 = vrot.slane %v12621_v59, %v12532_v1  ;;  %v12634_v63 = vld [vmem:[#allocation131_spill] sm:$0xff] }
 0xb61   :  { %v4404_v38 = vpack.c.bf16 %v4396_v21, %v4396_v21  ;;  %v4588_v6 = vsel %vm4587_vm4, %v4584_v3, %v12632_v43  ;;  %v4589_v33 = vsel %vm4587_vm4, %v11116_v10, %v4584_v3  ;;  %v4256_v18 = vpop.permute.xlu1 %4255  ;;  %v5563_v29 = vsel %vm942_vm2, %v10844_v5, %v5428_v39 }
 0xb62   :  { %v4261_v54 = vsel %vm4259_vm8, %v4254_v20, %v4256_v18  ;;  %5783 = vmatprep.subr.bf16.mxu1 %v5563_v29  ;;  %v5560_v10 = vsel %vm942_vm2, %v10849_v49, %v5427_v35  ;;  %v4643_v20 = vmul.f32 %v4624_v55, %v4589_v33  ;;  %v4644_v47 = vmul.f32 %v4628_v14, %v4588_v6  ;;  %v12635_v29 = vld [vmem:[#allocation125_spill] sm:$0xff] }
 0xb63   :  { %v4314_v19 = vmul.f32 %v4292_v48, %v4261_v54  ;;  %v5499_v2 = vsel %vm942_vm2, %v4404_v38, %v5394_v44  ;;  %5784 = vmatpush2.bf16.msra.mxu1 %v5560_v10  ;;  %v4546_v48 = vrot.slane %v12621_v59, %v12533_v0  ;;  %v4296_v39 = vrot.slane %v10524_v34, %v12532_v1  ;;  %v12636_v10 = vld [vmem:[#allocation124_spill] sm:$0xff] }
 0xb64   :  { %v11234_v28 = vpop.permute.xlu0 %4173  ;;  %5746 = vmatprep.subr.bf16.mxu0 %v5499_v2  ;;  %v4300_v17 = vrot.slane %v10524_v34, %v12533_v0  ;;  %v4378_v12 = vrot.slane %v10492_v57, %v12532_v1  ;;  %v4382_v59 = vrot.slane %v10492_v57, %v12533_v0  ;;  %v5377_v55 = vrot.slane %v4321_v51, 4 }
 0xb65   :  { %v4322_v27 = vpack.c.bf16 %v4314_v19, %v4314_v19  ;;  %5747 = vmatpush2.bf16.msra.mxu0 %v5495_v11  ;;  %v4172_v41 = vpop.permute.xlu1 %4171  ;;  %v4651_v14 = vpack.c.bf16 %v4643_v20, %v4643_v20  ;;  %v4652_v3 = vpack.c.bf16 %v4644_v47, %v4644_v47  ;;  %vm12645_vm4 = vcmp.lt.s32.totalorder %v7634_v13, 113 }
 0xb66   :  { %v4179_v7 = vsel %vm4177_vm3, %v4172_v41, %v11234_v28  ;;  %v4180_v35 = vsel %vm4177_vm3, %v12634_v63, %v4172_v41 }
 0xb67   :  { %v4231_v21 = vmul.f32 %v4206_v4, %v4180_v35  ;;  %v4232_v44 = vmul.f32 %v4210_v16, %v4179_v7  ;;  %v5378_v38 = vrot.slane %v4322_v27, 4  ;;  %v5411_v27 = vrot.slane %v4651_v14, 4 }
 0xb68   :  { %v4420_v43 = vpop.permute.xlu0 %4419  ;;  %v5412_v41 = vrot.slane %v4652_v3, 4 }
 0xb69   :  { %v4239_v6 = vpack.c.bf16 %v4231_v21, %v4231_v21  ;;  %v4240_v33 = vpack.c.bf16 %v4232_v44, %v4232_v44  ;;  %v4424_v54 = vsel %vm4423_vm7, %v4420_v43, %v12635_v29  ;;  %v4425_v34 = vsel %vm4423_vm7, %v11169_v22, %v4420_v43  ;;  %v4502_v4 = vpop.permute.xlu1 %4501  ;;  %v12637_v21 = vld [vmem:[#allocation128_spill] sm:$0xff] }
 0xb6a   :  { %v4479_v16 = vmul.f32 %v4460_v31, %v4425_v34  ;;  %v4480_v19 = vmul.f32 %v4464_v52, %v4424_v54  ;;  %v4506_v57 = vsel %vm4505_vm5, %v4502_v4, %v12636_v10  ;;  %v4507_v2 = vsel %vm4505_vm5, %v11160_v50, %v4502_v4  ;;  %vm12646_vm5 = vmmov %vm12645_vm4 }
 0xb6b   :  { %v4561_v11 = vmul.f32 %v4542_v24, %v4507_v2  ;;  %v4562_v51 = vmul.f32 %v4546_v48, %v4506_v57  ;;  %v5467_v20 = vsel %vm942_vm2, %v4240_v33, %v5378_v38  ;;  %v5463_v47 = vsel %vm942_vm2, %v4239_v6, %v5377_v55  ;;  %v12638_v55 = vld [vmem:[#allocation126_spill] sm:$0xff] }
 0xb6c   :  { %v4487_v22 = vpack.c.bf16 %v4479_v16, %v4479_v16  ;;  %v4488_v7 = vpack.c.bf16 %v4480_v19, %v4480_v19  ;;  %v4258_v31 = vpop.permute.xlu0 %4257  ;;  %5748 = vmatprep.subr.bf16.mxu0 %v5467_v20  ;;  %v12639_v34 = vmov 0   ;;  %vm12652_vm7 = vcmp.lt.s32.totalorder %v7634_v13, 127 }
 0xb6d   :  { %v4569_v52 = vpack.c.bf16 %v4561_v11, %v4561_v11  ;;  %v4570_v63 = vpack.c.bf16 %v4562_v51, %v4562_v51  ;;  %v4260_v35 = vsel %vm4259_vm8, %v4256_v18, %v4258_v31  ;;  %v4267_v50 = vsel %vm4259_vm8, %v4258_v31, %v12637_v21  ;;  %5749 = vmatpush2.bf16.msra.mxu0 %v5463_v47  ;;  %v4338_v24 = vpop.permute.xlu1 %4337  ;;  %vm12653_vm8 = vmmov %vm12652_vm7 }
 0xb6e   :  { %v4315_v48 = vmul.f32 %v4296_v39, %v4260_v35  ;;  %v4316_v44 = vmul.f32 %v4300_v17, %v4267_v50  ;;  %v4342_v14 = vsel %vm4341_vm6, %v4338_v24, %v12638_v55  ;;  %v4343_v3 = vsel %vm4341_vm6, %v11203_v23, %v4338_v24  ;;  %vm12650_vm6 = vmmov %vm12645_vm4 }
 0xb6f   :  { %v5539_v38 = vsel %vm942_vm2, %v4570_v63, %v5412_v41  ;;  %v5535_v18 = vsel %vm942_vm2, %v4569_v52, %v5411_v27  ;;  %v4397_v43 = vmul.f32 %v4378_v12, %v4343_v3  ;;  %v4398_v6 = vmul.f32 %v4382_v59, %v4342_v14  ;;  %v12640_v59 = vld [vmem:[#allocation130_spill] sm:$0xff]  ;;  %vm12657_vm11 = vmmov %vm12652_vm7 }
 0xb70   :  { %5751 = vmatmul.mubr.bf16.vlgmr.msra.gmra.mxu0 %v10639_v56  ;;  %v4214_v39 = vrot.slane %v12633_v61, %v12532_v1  ;;  %v4218_v17 = vrot.slane %v12633_v61, %v12533_v0  ;;  %v5395_v33 = vrot.slane %v4487_v22, 4  ;;  %v5396_v29 = vrot.slane %v4488_v7, 4  ;;  %5785 = vmatprep.subr.bf16.mxu1 %v5539_v38 }
 0xb71   :  { %v4176_v54 = vpop.permute.xlu1 %4175  ;;  %6389 = vmatprep.mubr.bf16.mxu0 %v12639_v34  ;;  %v4323_v23 = vpack.c.bf16 %v4315_v48, %v4315_v48  ;;  %v4324_v4 = vpack.c.bf16 %v4316_v44, %v4316_v44  ;;  %v4405_v16 = vpack.c.bf16 %v4397_v43, %v4397_v43  ;;  %v4406_v19 = vpack.c.bf16 %v4398_v6, %v4398_v6 }
 0xb72   :  { %5786 = vmatpush2.bf16.msra.mxu1 %v5535_v18  ;;  %v4178_v12 = vsel %vm4177_vm3, %v11234_v28, %v4176_v54  ;;  %v4185_v1 = vsel %vm4177_vm3, %v4176_v54, %v12640_v59  ;;  %vm5800_vm3 = vcmask 1042432  }
 0xb73   :  { %v4233_v0 = vmul.f32 %v4214_v39, %v4178_v12  ;;  %v4234_v61 = vmul.f32 %v4218_v17, %v4185_v1  ;;  %v5507_v10 = vsel %vm942_vm2, %v4406_v19, %v5396_v29  ;;  %v5503_v57 = vsel %vm942_vm2, %v4405_v16, %v5395_v33 }
 0xb74   :  { %5787 = vmatprep.subr.bf16.mxu1 %v5507_v10  ;;  %v5379_v2 = vrot.slane %v4323_v23, 4  ;;  %v5380_v11 = vrot.slane %v4324_v4, 4 }
 0xb75   :  { %v4241_v51 = vpack.c.bf16 %v4233_v0, %v4233_v0  ;;  %v4242_v20 = vpack.c.bf16 %v4234_v61, %v4234_v61 }
 0xb76   :  { %5788 = vmatpush2.bf16.msra.mxu1 %v5503_v57 }
 0xb77   :  { %v5475_v47 = vsel %vm942_vm2, %v4242_v20, %v5380_v11  ;;  %v5471_v28 = vsel %vm942_vm2, %v4241_v51, %v5379_v2 }
 0xb78   :  { %5789 = vmatprep.subr.bf16.mxu1 %v5475_v47 }
 0xb79   :  { %v11301_v27 = vpop.permute.xlu0 %5599 }
 0xb7a   :  { %5790 = vmatpush2.bf16.msra.mxu1 %v5471_v28 }
 0xb7d   :  { %5792 = vmatmul.mubr.bf16.vlgmr.msra.gmra.mxu1 %v10639_v56 }
 0xb7e   :  { %6430 = vmatprep.mubr.bf16.mxu1 %v12639_v34 }
 0xb9b   :  { %v5670_v41 = vpop.f32.mrf.mxu0 }
 0xb9c   :  { %v5671_v22 = vadd.f32 %v5670_v41, %v11301_v27 }
 0xb9d   :  { %v5672_v7 = vpop.f32.mrf.mxu0 }
 0xb9e   :  { %v11305_v31 = vsel %vm5800_vm3, %v5671_v22, 0.0  ;;  %v5673_v44 = vadd.f32 %v5672_v7, %v11301_v27 }
 0xb9f   :  { %6097 = vrot.lane.b32.xlu1 %v11305_v31, %s7416_s3  ;;  %v5674_v52 = vpop.f32.mrf.mxu0 }
 0xba0   :  { %v11341_v55 = vsel %vm5800_vm3, %v5673_v44, 0.0 }
 0xba1   :  { %v5675_v63 = vpop.f32.mrf.mxu0 }
 0xba2   :  { %v12641_v63 = vld [vmem:[#allocation21_spill] sm:$0xff] }
 0xba3   :  { %6057 = vrot.lane.b32.xlu1 %v11305_v31, %s7417_s4 }
 0xbb8   :  { %v5711_v56 = vpop.f32.mrf.mxu1 }
 0xbb9   :  { %v5712_v35 = vadd.f32 %v5711_v56, %v11301_v27 }
 0xbba   :  { %v5713_v21 = vpop.f32.mrf.mxu1 }
 0xbbb   :  { %v11313_v50 = vsel %vm5800_vm3, %v5712_v35, 0.0  ;;  %v5714_v14 = vadd.f32 %v5713_v21, %v11301_v27  ;;  %v12642_v35 = vld [vmem:[#allocation20_spill] sm:$0xff] }
 0xbbc   :  { %6021 = vrot.lane.b32.xlu1 %v11313_v50, %s7418_s19  ;;  %6101 = vrot.lane.b32.xlu0 %v11313_v50, %s7416_s3  ;;  %v5715_v24 = vpop.f32.mrf.mxu1 }
 0xbbd   :  { %v11349_v3 = vsel %vm5800_vm3, %v5714_v14, 0.0 }
 0xbbe   :  { %v5716_v48 = vpop.f32.mrf.mxu1 }
 0xbc0   :  { %5977 = vrot.lane.b32.xlu1 %v11305_v31, %s7419_s20  ;;  %6061 = vrot.lane.b32.xlu0 %v11313_v50, %s7417_s4 }
 0xbc4   :  { %5889 = vrot.lane.b32.xlu1 %v11305_v31, %s7421_s22  ;;  %6017 = vrot.lane.b32.xlu0 %v11305_v31, %s7418_s19 }
 0xbc8   :  { %5893 = vrot.lane.b32.xlu1 %v11313_v50, %s7421_s22  ;;  %5981 = vrot.lane.b32.xlu0 %v11313_v50, %s7419_s20 }
 0xbcc   :  { %5809 = vrot.lane.b32.xlu1 %v11305_v31, %s7423_s24  ;;  %5929 = vrot.lane.b32.xlu0 %v11305_v31, %s7420_s21 }
 0xbd0   :  { %5813 = vrot.lane.b32.xlu1 %v11313_v50, %s7423_s24  ;;  %5933 = vrot.lane.b32.xlu0 %v11313_v50, %s7420_s21 }
 0xbd4   :  { %6099 = vrot.lane.b32.xlu1 %v11341_v55, %s7416_s3  ;;  %5849 = vrot.lane.b32.xlu0 %v11305_v31, %s7422_s23 }
 0xbd8   :  { %6103 = vrot.lane.b32.xlu1 %v11349_v3, %s7416_s3  ;;  %5853 = vrot.lane.b32.xlu0 %v11313_v50, %s7422_s23 }
 0xbdc   :  { %6059 = vrot.lane.b32.xlu1 %v11341_v55, %s7417_s4  ;;  %6019 = vrot.lane.b32.xlu0 %v11341_v55, %s7418_s19 }
 0xbe0   :  { %6063 = vrot.lane.b32.xlu1 %v11349_v3, %s7417_s4  ;;  %6023 = vrot.lane.b32.xlu0 %v11349_v3, %s7418_s19 }
 0xbe4   :  { %5979 = vrot.lane.b32.xlu1 %v11341_v55, %s7419_s20  ;;  %5891 = vrot.lane.b32.xlu0 %v11341_v55, %s7421_s22 }
 0xbe8   :  { %5983 = vrot.lane.b32.xlu1 %v11349_v3, %s7419_s20  ;;  %5895 = vrot.lane.b32.xlu0 %v11349_v3, %s7421_s22 }
 0xbec   :  { %5931 = vrot.lane.b32.xlu1 %v11341_v55, %s7420_s21  ;;  %5811 = vrot.lane.b32.xlu0 %v11341_v55, %s7423_s24 }
 0xbf0   :  { %5935 = vrot.lane.b32.xlu1 %v11349_v3, %s7420_s21  ;;  %5815 = vrot.lane.b32.xlu0 %v11349_v3, %s7423_s24 }
 0xbf4   :  { %5851 = vrot.lane.b32.xlu1 %v11341_v55, %s7422_s23 }
 0xbf8   :  { %5855 = vrot.lane.b32.xlu1 %v11349_v3, %s7422_s23 }
 0xc11   :  { %v11383_v38 = vpop.permute.xlu1 %6097 }
 0xc15   :  { %v11385_v18 = vpop.permute.xlu1 %6057 }
 0xc2e   :  { %v11387_v43 = vpop.permute.xlu1 %6021  ;;  %v11389_v6 = vpop.permute.xlu0 %6101 }
 0xc30   :  { %v5752_v39 = vpop.f32.mrf.mxu0 }
 0xc31   :  { %v5753_v17 = vadd.f32 %v5752_v39, %v11301_v27 }
 0xc32   :  { %v5754_v33 = vpop.f32.mrf.mxu0  ;;  %v11392_v29 = vpop.permute.xlu1 %5977 }
 0xc33   :  { %v11395_v54 = vsel %vm5800_vm3, %v5753_v17, 0.0  ;;  %v6062_v23 = vpop.permute.xlu0 %6061 }
 0xc34   :  { %v5756_v4 = vpop.f32.mrf.mxu0  ;;  %6025 = vrot.lane.b32.xlu1 %v11395_v54, %s7418_s19  ;;  %6105 = vrot.lane.b32.xlu0 %v11395_v54, %s7416_s3 }
 0xc36   :  { %v5757_v16 = vpop.f32.mrf.mxu0  ;;  %v11401_v19 = vpop.permute.xlu1 %5889 }
 0xc37   :  { %v11403_v12 = vpop.permute.xlu0 %6017 }
 0xc38   :  { %6065 = vrot.lane.b32.xlu0 %v11395_v54, %s7417_s4 }
 0xc3a   :  { %v11407_v59 = vpop.permute.xlu1 %5893 }
 0xc3b   :  { %v11409_v1 = vpop.permute.xlu0 %5981 }
 0xc3c   :  { %5985 = vrot.lane.b32.xlu0 %v11395_v54, %s7419_s20 }
 0xc3d   :  { %v5793_v0 = vpop.f32.mrf.mxu1 }
 0xc3e   :  { %v5794_v61 = vadd.f32 %v5793_v0, %v11301_v27  ;;  %v11414_v10 = vpop.permute.xlu1 %5809 }
 0xc3f   :  { %v5795_v57 = vpop.f32.mrf.mxu1  ;;  %v11416_v2 = vpop.permute.xlu0 %5929 }
 0xc40   :  { %v11419_v11 = vsel %vm5800_vm3, %v5794_v61, 0.0  ;;  %v5796_v14 = vadd.f32 %v5795_v57, %v11301_v27 }
 0xc41   :  { %v5797_v51 = vpop.f32.mrf.mxu1  ;;  %6109 = vrot.lane.b32.xlu1 %v11419_v11, %s7416_s3  ;;  %6069 = vrot.lane.b32.xlu0 %v11419_v11, %s7417_s4 }
 0xc42   :  { %v11425_v20 = vpop.permute.xlu1 %5813  ;;  %v11459_v16 = vsel %vm5800_vm3, %v5796_v14, 0.0  ;;  %v12643_v51 = vld [vmem:[#allocation28_spill] sm:$0xff] }
 0xc43   :  { %v5798_v47 = vpop.f32.mrf.mxu1  ;;  %v11427_v28 = vpop.permute.xlu0 %5933 }
 0xc45   :  { %6029 = vrot.lane.b32.xlu1 %v11419_v11, %s7418_s19  ;;  %5989 = vrot.lane.b32.xlu0 %v11419_v11, %s7419_s20 }
 0xc46   :  { %v6100_v41 = vpop.permute.xlu1 %6099 }
 0xc47   :  { %v6118_v22 = vsel %vm812_vm0, %v6100_v41, %v11389_v6  ;;  %v6119_v7 = vsel %vm812_vm0, %v11383_v38, %v6100_v41  ;;  %v11439_v52 = vpop.permute.xlu0 %5849  ;;  %v12644_v41 = vld [vmem:[#allocation24_spill] sm:$0xff] }
 0xc48   :  { %v6121_v56 = vmul.f32 %v6119_v7, %v12641_v63  ;;  %v6122_v21 = vmul.f32 %v6118_v22, %v12642_v35 }
 0xc49   :  { %5897 = vrot.lane.b32.xlu1 %v11395_v54, %s7421_s22  ;;  %5937 = vrot.lane.b32.xlu0 %v11395_v54, %s7420_s21 }
 0xc4a   :  { %v6129_v24 = vpack.c.bf16 %v6121_v56, %v6121_v56  ;;  %v6130_v48 = vpack.c.bf16 %v6122_v21, %v6122_v21  ;;  %v11447_v44 = vpop.permute.xlu1 %6103  ;;  %v12647_v56 = vld [vmem:[#allocation29_spill] sm:$0xff]  ;;  %v12648_v21 = vld [vmem:[#allocation27_spill] sm:$0xff] }
 0xc4b   :  { %v11450_v39 = vpop.permute.xlu0 %5853 }
 0xc4c   :  { %7108 = vmatprep.subr.msk.bf16.mxu0 %vm942_vm2, %v6130_v48  ;;  %v6334_v17 = vsel %vm942_vm2, %v6129_v24, 0 }
 0xc4d   :  { %5901 = vrot.lane.b32.xlu1 %v11419_v11, %s7421_s22  ;;  %5941 = vrot.lane.b32.xlu0 %v11419_v11, %s7420_s21 }
 0xc4e   :  { %v6060_v4 = vpop.permute.xlu1 %6059  ;;  %6364 = vmatpush1.bf16.msra.mxu0 %v6334_v17 }
 0xc4f   :  { %v6078_v0 = vsel %vm730_vm1, %v6060_v4, %v6062_v23  ;;  %v6079_v61 = vsel %vm730_vm1, %v11385_v18, %v6060_v4  ;;  %v6020_v57 = vpop.permute.xlu0 %6019  ;;  %v5755_v4 = vadd.f32 %v5754_v33, %v11301_v27  ;;  %v12651_v27 = vld [vmem:[#allocation33_spill] sm:$0xff] }
 0xc50   :  { %v6081_v47 = vmul.f32 %v6079_v61, %v12643_v51  ;;  %v6082_v22 = vmul.f32 %v6078_v0, %v12644_v41  ;;  %v6038_v7 = vsel %vm12645_vm4, %v6020_v57, %v11387_v43  ;;  %v6039_v63 = vsel %vm12646_vm5, %v11403_v12, %v6020_v57 }
 0xc51   :  { %5903 = vrot.lane.b32.xlu1 %v11459_v16, %s7421_s22  ;;  %5857 = vrot.lane.b32.xlu0 %v11395_v54, %s7422_s23  ;;  %v6041_v35 = vmul.f32 %v6039_v63, %v12647_v56  ;;  %v6042_v24 = vmul.f32 %v6038_v7, %v12648_v21  ;;  %vm12671_vm4 = vcmp.lt.s32.totalorder %v7634_v13, 16 }
 0xc52   :  { %v6089_v48 = vpack.c.bf16 %v6081_v47, %v6081_v47  ;;  %v6090_v14 = vpack.c.bf16 %v6082_v22, %v6082_v22  ;;  %v11480_v17 = vpop.permute.xlu1 %6063 }
 0xc53   :  { %v6077_v0 = vsel %vm730_vm1, %v6062_v23, %v11480_v17  ;;  %v6049_v61 = vpack.c.bf16 %v6041_v35, %v6041_v35  ;;  %v6050_v57 = vpack.c.bf16 %v6042_v24, %v6042_v24  ;;  %v11486_v51 = vpop.permute.xlu0 %6023 }
 0xc54   :  { %v6193_v41 = vrot.slane %v6089_v48, 4  ;;  %v6194_v49 = vrot.slane %v6090_v14, 4  ;;  %v6083_v63 = vmul.f32 %v6077_v0, %v12649_v32  ;;  %v6037_v47 = vsel %vm12650_vm6, %v11387_v43, %v11486_v51  ;;  %v12654_v14 = vld [vmem:[#allocation34_spill] sm:$0xff]  ;;  %vm12675_vm6 = vmmov %vm12671_vm4 }
 0xc55   :  { %5823 = vrot.lane.b32.xlu1 %v11459_v16, %s7423_s24  ;;  %5943 = vrot.lane.b32.xlu0 %v11459_v16, %s7420_s21  ;;  %v6043_v33 = vmul.f32 %v6037_v47, %v12651_v27  ;;  %v11501_v32 = vsel %vm5800_vm3, %v5755_v4, 0.0  ;;  %vm12670_vm3 = vcmp.lt.s32.totalorder %v7634_v13, 17 }
 0xc56   :  { %v6091_v23 = vpack.c.bf16 %v6083_v63, %v6083_v63  ;;  %v5980_v22 = vpop.permute.xlu1 %5979  ;;  %v6303_v7 = vsel %vm942_vm2, %v6050_v57, %v6194_v49  ;;  %v6299_v56 = vsel %vm942_vm2, %v6049_v61, %v6193_v41  ;;  %v12655_v49 = vld [vmem:[#allocation32_spill] sm:$0xff]  ;;  %vm12674_vm5 = vmmov %vm12670_vm3 }
 0xc57   :  { %v5998_v43 = vsel %vm12652_vm7, %v5980_v22, %v11409_v1  ;;  %v5999_v35 = vsel %vm12653_vm8, %v11392_v29, %v5980_v22  ;;  %v6051_v21 = vpack.c.bf16 %v6043_v33, %v6043_v33  ;;  %v5892_v24 = vpop.permute.xlu0 %5891  ;;  %6365 = vmatprep.subr.bf16.mxu0 %v6303_v7  ;;  %v5969_v22 = vpack.c.bf16 %v11305_v31, %v11305_v31 }
 0xc58   :  { %v6195_v48 = vrot.slane %v6091_v23, 4  ;;  %v6001_v0 = vmul.f32 %v5999_v35, %v12654_v14  ;;  %v6002_v57 = vmul.f32 %v5998_v43, %v12655_v49  ;;  %v5910_v4 = vsel %vm12656_vm10, %v5892_v24, %v11407_v59  ;;  %6366 = vmatpush1.bf16.msra.mxu0 %v6299_v56  ;;  %v12659_v43 = vld [vmem:[#allocation36_spill] sm:$0xff]  ;;  %vm12685_vm10 = vmmov %vm12671_vm4 }
 0xc59   :  { %6067 = vrot.lane.b32.xlu1 %v11501_v32, %s7417_s4  ;;  %5863 = vrot.lane.b32.xlu0 %v11459_v16, %s7422_s23  ;;  %v5911_v33 = vsel %vm12658_vm9, %v11401_v19, %v5892_v24  ;;  %v12661_v24 = vld [vmem:[#allocation40_spill] sm:$0xff]  ;;  %vm12681_vm7 = vcmp.lt.s32.totalorder %v7634_v13, 113  ;;  %vm12688_vm9 = vmmov %vm12670_vm3 }
 0xc5a   :  { %v6009_v61 = vpack.c.bf16 %v6001_v0, %v6001_v0  ;;  %v6010_v41 = vpack.c.bf16 %v6002_v57, %v6002_v57  ;;  %v11518_v63 = vpop.permute.xlu1 %5983  ;;  %v11521_v47 = vsel %vm942_vm2, %v6051_v21, %v6195_v48  ;;  %v5970_v21 = vpack.c.bf16 %v11341_v55, %v11341_v55  ;;  %v12660_v48 = vld [vmem:[#allocation44_spill] sm:$0xff] }
 0xc5b   :  { %v5997_v27 = vsel %vm12657_vm11, %v11409_v1, %v11518_v63  ;;  %v11530_v23 = vpop.permute.xlu0 %5895  ;;  %v5915_v14 = vmul.f32 %v5910_v4, %v12660_v48  ;;  %v5914_v0 = vmul.f32 %v5911_v33, %v12661_v24  ;;  %vm12687_vm11 = vcmask 588800  }
 0xc5c   :  { %v6177_v7 = vrot.slane %v6009_v61, 4  ;;  %v6178_v56 = vrot.slane %v6010_v41, 4  ;;  %v6003_v35 = vmul.f32 %v5997_v27, %v12659_v43  ;;  %v5909_v61 = vsel %vm12664_vm15, %v11407_v59, %v11530_v23  ;;  %v12665_v27 = vld [vmem:[#allocation38_spill] sm:$0xff] }
 0xc5d   :  { %6071 = vrot.lane.b32.xlu1 %v11459_v16, %s7417_s4  ;;  %6107 = vrot.lane.b32.xlu0 %v11501_v32, %s7416_s3  ;;  %v5922_v59 = vpack.c.bf16 %v5914_v0, %v5914_v0 }
 0xc5e   :  { %v6011_v1 = vpack.c.bf16 %v6003_v35, %v6003_v35  ;;  %v5932_v49 = vpop.permute.xlu1 %5931  ;;  %v6271_v31 = vsel %vm942_vm2, %v5970_v21, %v6178_v56  ;;  %v6267_v57 = vsel %vm942_vm2, %v5969_v22, %v6177_v7  ;;  %v12666_v56 = vld [vmem:[#allocation42_spill] sm:$0xff]  ;;  %v5923_v7 = vpack.c.bf16 %v5915_v14, %v5915_v14 }
 0xc5f   :  { %v5950_v55 = vsel %vm12662_vm12, %v5932_v49, %v11427_v28  ;;  %v5951_v4 = vsel %vm12663_vm13, %v11416_v2, %v5932_v49  ;;  %6367 = vmatprep.subr.bf16.mxu0 %v6271_v31  ;;  %v11557_v22 = vpop.permute.xlu0 %5811  ;;  %v5971_v35 = vpack.c.bf16 %v11313_v50, %v11313_v50  ;;  %vm12689_vm13 = vmmov %vm12664_vm15 }
 0xc60   :  { %v6179_v41 = vrot.slane %v6011_v1, 4  ;;  %v5954_v33 = vmul.f32 %v5951_v4, %v12665_v27  ;;  %v5955_v43 = vmul.f32 %v5950_v55, %v12666_v56  ;;  %6368 = vmatpush1.bf16.msra.mxu0 %v6267_v57  ;;  %v12667_v1 = vld [vmem:[#allocation45_spill] sm:$0xff]  ;;  %v12669_v4 = vld [vmem:[#allocation43_spill] sm:$0xff]  ;;  %v5830_v50 = vsel %vm12670_vm3, %v11557_v22, %v11425_v20  ;;  %vm12691_vm15 = vmmov %vm12662_vm12 }
 0xc61   :  { %5817 = vrot.lane.b32.xlu1 %v11395_v54, %s7423_s24  ;;  %6111 = vrot.lane.b32.xlu0 %v11459_v16, %s7416_s3  ;;  %v5916_v24 = vmul.f32 %v5909_v61, %v12667_v1  ;;  %v12673_v1 = vld [vmem:[#allocation49_spill] sm:$0xff]  ;;  %vm12695_vm3 = vmmov %vm12662_vm12  ;;  %s7451_s3 = smov [#allocation12]  }
 0xc62   :  { %v5962_v21 = vpack.c.bf16 %v5954_v33, %v5954_v33  ;;  %v5963_v48 = vpack.c.bf16 %v5955_v43, %v5955_v43  ;;  %v11566_v49 = vpop.permute.xlu1 %5935  ;;  %v11573_v31 = vsel %vm942_vm2, %v5971_v35, %v6179_v41  ;;  %s7055_s4 = sshll.u32 %s7451_s3, 4  ;;  %s7056_s4 = int_to_ptr.vmem [resolvable:$true] %s7055_s4 }
 0xc63   :  { %v5949_v14 = vsel %vm12668_vm14, %v11427_v28, %v11566_v49  ;;  %v5924_v0 = vpack.c.bf16 %v5916_v24, %v5916_v24  ;;  %v11586_v41 = vpop.permute.xlu0 %5815  ;;  %vm12692_vm14 = vmmov %vm12689_vm13  ;;  %p7382_p12 = scmp.lt.s32.totalorder %s7056_s4, %s7056_s4 }
 0xc64   :  { %v6162_v57 = vrot.slane %v5962_v21, 4  ;;  %v6163_v55 = vrot.slane %v5963_v48, 4  ;;  %v5956_v27 = vmul.f32 %v5949_v14, %v12669_v4  ;;  %v12672_v21 = vld [vmem:[#allocation52_spill] sm:$0xff]  ;;  %v5829_v14 = vsel %vm12674_vm5, %v11425_v20, %v11586_v41 }
 0xc65   :  { %5987 = vrot.lane.b32.xlu1 %v11501_v32, %s7419_s20  ;;  %6027 = vrot.lane.b32.xlu0 %v11501_v32, %s7418_s19  ;;  %v5835_v48 = vmul.f32 %v5830_v50, %v12672_v21  ;;  %v12676_v50 = vld [vmem:[#allocation53_spill] sm:$0xff] }
 0xc66   :  { %v5964_v28 = vpack.c.bf16 %v5956_v27, %v5956_v27  ;;  %v11584_v61 = vpop.permute.xlu1 %5851  ;;  %v6239_v33 = vsel %vm942_vm2, %v5922_v59, %v6162_v57  ;;  %v11590_v56 = vsel %vm942_vm2, %v5923_v7, %v6163_v55  ;;  %v5836_v20 = vmul.f32 %v5829_v14, %v12676_v50  ;;  %v12679_v14 = vld [vmem:[#allocation26_spill] sm:$0xff] }
 0xc67   :  { %v5870_v43 = vsel %vm12671_vm4, %v11584_v61, %v11450_v39  ;;  %6369 = vmatprep.subr.bf16.mxu0 %v6239_v33  ;;  %v5843_v4 = vpack.c.bf16 %v5835_v48, %v5835_v48  ;;  %v11629_v48 = vld [vmem:[#allocation6 + $0x50] sm:$0xf]  ;;  %vm12696_vm4 = vmmov %vm12674_vm5 }
 0xc68   :  { %v6164_v35 = vrot.slane %v5964_v28, 4  ;;  %v5875_v24 = vmul.f32 %v5870_v43, %v12673_v1  ;;  %v12677_v28 = vld [vmem:[#allocation51_spill] sm:$0xff]  ;;  %12678 = vst [vmem:[#allocation56_spill] sm:$0xff] %v11629_v48  ;;  %v7124_v1 = vcombine.low %v11629_v48, %v11629_v48  ;;  %vm12697_vm5 = vmmov %vm12675_vm6 }
 0xc69   :  { %5991 = vrot.lane.b32.xlu1 %v11459_v16, %s7419_s20  ;;  %6031 = vrot.lane.b32.xlu0 %v11459_v16, %s7418_s19  ;;  %s7377_s19 = scalar_lea.vmem %s7056_s4, 1024 }
 0xc6a   :  { %v5883_v7 = vpack.c.bf16 %v5875_v24, %v5875_v24  ;;  %v11606_v59 = vpop.permute.xlu1 %5855  ;;  %v6247_v57 = vsel %vm942_vm2, %v5924_v0, %v6164_v35  ;;  %v5844_v35 = vpack.c.bf16 %v5836_v20, %v5836_v20  ;;  %v6117_v24 = vsel %vm812_vm0, %v11389_v6, %v11447_v44  ;;  %v12680_v20 = vld [vmem:[#allocation25_spill] sm:$0xff]  ;;  %p7378_p11 = scmp.ne.s32.totalorder %s7056_s4, %s7377_s19  ;;  %p7383_p13 = scmp.lt.s32.totalorder %s7377_s19, %s7377_s19 }
 0xc6b   :  { %v5869_v55 = vsel %vm12675_vm6, %v11450_v39, %v11606_v59  ;;  %vm12698_vm6 = vmmov %vm12689_vm13 }
 0xc6c   :  { %v6147_v27 = vrot.slane %v5883_v7, 4  ;;  %v5876_v33 = vmul.f32 %v5869_v55, %v12677_v28  ;;  %v6123_v7 = vmul.f32 %v6117_v24, %v12679_v14  ;;  %v12683_v24 = vld [vmem:[#allocation30_spill] sm:$0xff]  ;;  %p7384_p0 = por %p7383_p13, %p7382_p12 }
 0xc6d   :  { %5939 = vrot.lane.b32.xlu1 %v11501_v32, %s7420_s21  ;;  %5861 = vrot.lane.b32.xlu0 %v11419_v11, %s7422_s23 }
 0xc6e   :  { %v5884_v43 = vpack.c.bf16 %v5876_v33, %v5876_v33  ;;  %v6211_v0 = vsel %vm942_vm2, %v5843_v4, %v6147_v27  ;;  %v6131_v50 = vpack.c.bf16 %v6123_v7, %v6123_v7  ;;  %p7385_p1 = pnand %p7384_p0, %p7378_p11 }
 0xc70   :  { %v6148_v21 = vrot.slane %v5884_v43, 4  ;;  %v6340_v14 = vsel %vm942_vm2, %v6131_v50, 0 }
 0xc71   :  { %5859 = vrot.lane.b32.xlu1 %v11501_v32, %s7422_s23  ;;  %5899 = vrot.lane.b32.xlu0 %v11501_v32, %s7421_s22 }
 0xc72   :  { %v6215_v39 = vsel %vm942_vm2, %v5844_v35, %v6148_v21  ;;  %v12682_v21 = vld [vmem:[#allocation35_spill] sm:$0xff] }
 0xc75   :  { %5821 = vrot.lane.b32.xlu1 %v11419_v11, %s7423_s24  ;;  %5819 = vrot.lane.b32.xlu0 %v11501_v32, %s7423_s24 }
 0xc79   :  { %6620 = vrot.lane.b32.xlu0 %v7124_v1, %s7426_s27 }
 0xca6   :  { %v11639_v55 = vpop.permute.xlu1 %6025  ;;  %v11641_v4 = vpop.permute.xlu0 %6105 }
 0xca7   :  { %v6116_v27 = vsel %vm812_vm0, %v11447_v44, %v11641_v4  ;;  %v6036_v33 = vsel %vm12681_vm7, %v11486_v51, %v11639_v55  ;;  %vm12701_vm7 = vmmov %vm12697_vm5 }
 0xca8   :  { %v6124_v28 = vmul.f32 %v6116_v27, %v12680_v20  ;;  %v6044_v1 = vmul.f32 %v6036_v33, %v12682_v21 }
 0xcaa   :  { %v6132_v6 = vpack.c.bf16 %v6124_v28, %v6124_v28  ;;  %v11652_v43 = vpop.permute.xlu0 %6065  ;;  %v6052_v20 = vpack.c.bf16 %v6044_v1, %v6044_v1 }
 0xcab   :  { %v6076_v35 = vsel %vm730_vm1, %v11480_v17, %v11652_v43  ;;  %v12684_v17 = vld [vmem:[#allocation37_spill] sm:$0xff] }
 0xcac   :  { %v6084_v44 = vmul.f32 %v6076_v35, %v12683_v24  ;;  %7110 = vmatprep.subr.msk.bf16.mxu1 %vm942_vm2, %v6132_v6  ;;  %v5972_v24 = vpack.c.bf16 %v11349_v3, %v11349_v3 }
 0xcad   :  { %6405 = vmatpush1.bf16.msra.mxu1 %v6340_v14 }
 0xcae   :  { %v6092_v7 = vpack.c.bf16 %v6084_v44, %v6084_v44  ;;  %v11662_v27 = vpop.permute.xlu0 %5985 }
 0xcaf   :  { %v5996_v51 = vsel %vm12653_vm8, %v11518_v63, %v11662_v27 }
 0xcb0   :  { %v6196_v28 = vrot.slane %v6092_v7, 4  ;;  %v6004_v48 = vmul.f32 %v5996_v51, %v12684_v17  ;;  %v5871_v7 = vsel %vm12685_vm10, %v11439_v52, %v11584_v61  ;;  %v11696_v51 = vld [vmem:[#allocation6 + $0x40] sm:$0x1] }
 0xcb2   :  { %v6012_v33 = vpack.c.bf16 %v6004_v48, %v6004_v48  ;;  %v6311_v35 = vsel %vm942_vm2, %v6052_v20, %v6196_v28 }
 0xcb3   :  { %v11670_v21 = vpop.permute.xlu1 %6109  ;;  %v11672_v6 = vpop.permute.xlu0 %6069  ;;  %6406 = vmatprep.subr.bf16.mxu1 %v6311_v35 }
 0xcb4   :  { %v6180_v50 = vrot.slane %v6012_v33, 4  ;;  %6407 = vmatpush1.bf16.msra.mxu1 %v11521_v47 }
 0xcb6   :  { %v6279_v63 = vsel %vm942_vm2, %v5972_v24, %v6180_v50 }
 0xcb7   :  { %v11678_v1 = vpop.permute.xlu1 %6029  ;;  %v11680_v44 = vpop.permute.xlu0 %5989  ;;  %6408 = vmatprep.subr.bf16.mxu1 %v6279_v63  ;;  %v12693_v63 = vld [vmem:[#allocation41_spill] sm:$0xff] }
 0xcb8   :  { %6409 = vmatpush1.bf16.msra.mxu1 %v11573_v31  ;;  %v12686_v31 = vld [vmem:[#allocation46_spill] sm:$0xff] }
 0xcb9   :  { %6410 = vmatprep.subr.bf16.mxu1 %v6247_v57  ;;  %v5874_v57 = vmul.f32 %v5871_v7, %v12686_v31 }
 0xcbb   :  { %v11683_v48 = vpop.permute.xlu1 %5897  ;;  %v11685_v14 = vpop.permute.xlu0 %5937  ;;  %v5882_v33 = vpack.c.bf16 %v5874_v57, %v5874_v57 }
 0xcbc   :  { %6411 = vmatpush1.bf16.msra.mxu1 %v11590_v56  ;;  %v5831_v56 = vsel %vm12688_vm9, %v11414_v10, %v11557_v22  ;;  %v5948_v61 = vsel %vm12662_vm12, %v11566_v49, %v11685_v14  ;;  %v5908_v24 = vsel %vm12692_vm14, %v11530_v23, %v11683_v48  ;;  %vm12717_vm14 = vmmov %vm12695_vm3 }
 0xcbd   :  { %6412 = vmatprep.subr.bf16.mxu1 %v6215_v39  ;;  %v12690_v39 = vld [vmem:[#allocation48_spill] sm:$0xff]  ;;  %v5957_v49 = vmul.f32 %v5948_v61, %v12558_v37  ;;  %v6146_v5 = vrot.slane %v5882_v33, 4 }
 0xcbe   :  { %v5834_v17 = vmul.f32 %v5831_v56, %v12690_v39  ;;  %v12700_v56 = vld [vmem:[#allocation47_spill] sm:$0xff] }
 0xcbf   :  { %v11688_v47 = vpop.permute.xlu1 %5901  ;;  %v11690_v3 = vpop.permute.xlu0 %5941 }
 0xcc0   :  { %6413 = vmatpush1.bf16.msra.mxu1 %v6211_v0  ;;  %v5842_v23 = vpack.c.bf16 %v5834_v17, %v5834_v17 }
 0xcc3   :  { %v5904_v20 = vpop.permute.xlu1 %5903  ;;  %v11699_v28 = vpop.permute.xlu0 %5857  ;;  %7111 = vmatmul.mubr.msk.bf16.vlgmr.msra.gmra.mxu1 %vm12687_vm11, %v11696_v51 }
 0xcc4   :  { %6512 = vmatprep.mubr.bf16.mxu1 %v12639_v34  ;;  %v5912_v0 = vsel %vm12689_vm13, %v5904_v20, %v11401_v19  ;;  %v12694_v19 = vld [vmem:[#allocation39_spill] sm:$0xff] }
 0xcc5   :  { %v5913_v7 = vmul.f32 %v5912_v0, %v12693_v63 }
 0xcc7   :  { %v11716_v35 = vpop.permute.xlu1 %5823  ;;  %v5944_v50 = vpop.permute.xlu0 %5943 }
 0xcc8   :  { %v5952_v22 = vsel %vm12691_vm15, %v5944_v50, %v11416_v2  ;;  %v5945_v57 = vsel %vm12695_vm3, %v11690_v3, %v5944_v50  ;;  %v5832_v37 = vsel %vm12696_vm4, %v11716_v35, %v11414_v10  ;;  %v5917_v50 = vmul.f32 %v5908_v24, %v12564_v45  ;;  %v12699_v24 = vld [vmem:[#allocation50_spill] sm:$0xff]  ;;  %vm12718_vm4 = vmmov %vm12697_vm5 }
 0xcc9   :  { %v5953_v31 = vmul.f32 %v5952_v22, %v12694_v19  ;;  %v5965_v10 = vpack.c.bf16 %v5957_v49, %v5957_v49  ;;  %v5921_v19 = vpack.c.bf16 %v5913_v7, %v5913_v7  ;;  %v5905_v45 = vsel %vm12698_vm6, %v11688_v47, %v5904_v20  ;;  %vm12725_vm6 = vmmov %vm12718_vm4 }
 0xcca   :  { %v5833_v2 = vmul.f32 %v5832_v37, %v12699_v24 }
 0xccb   :  { %v5961_v61 = vpack.c.bf16 %v5953_v31, %v5953_v31  ;;  %v6068_v0 = vpop.permute.xlu1 %6067  ;;  %v11741_v22 = vpop.permute.xlu0 %5863  ;;  %v5960_v31 = vmul.f32 %v5945_v57, %v12586_v53  ;;  %v6207_v57 = vsel %vm942_vm2, %v5842_v23, %v6146_v5  ;;  %v5868_v5 = vsel %vm12701_vm7, %v11606_v59, %v11699_v28  ;;  %vm12726_vm7 = vmmov %vm12718_vm4 }
 0xccc   :  { %v6074_v63 = vsel %vm730_vm1, %v6068_v0, %v11672_v6  ;;  %v6075_v17 = vsel %vm730_vm1, %v11652_v43, %v6068_v0  ;;  %v5872_v33 = vsel %vm12697_vm5, %v11741_v22, %v11439_v52  ;;  %v5976_v43 = vpack.c.bf16 %v11459_v16, %v11459_v16 }
 0xccd   :  { %v6161_v39 = vrot.slane %v5961_v61, 4  ;;  %v5873_v26 = vmul.f32 %v5872_v33, %v12700_v56  ;;  %v6085_v0 = vmul.f32 %v6075_v17, %v12539_v25  ;;  %v6086_v52 = vmul.f32 %v6074_v63, %v12540_v15 }
 0xcce   :  { %v5925_v61 = vpack.c.bf16 %v5917_v50, %v5917_v50  ;;  %v6165_v25 = vrot.slane %v5965_v10, 4  ;;  %v11773_v15 = vmul.f32 %v5905_v45, %v12595_v46  ;;  %vm12723_vm5 = vcmp.lt.s32.totalorder %v7634_v13, 17 }
 0xccf   :  { %v6072_v49 = vpop.permute.xlu1 %6071  ;;  %v6108_v7 = vpop.permute.xlu0 %6107  ;;  %v6235_v53 = vsel %vm942_vm2, %v5921_v19, %v6161_v39  ;;  %v5881_v62 = vpack.c.bf16 %v5873_v26, %v5873_v26  ;;  %v5968_v39 = vpack.c.bf16 %v5960_v31, %v5960_v31  ;;  %v5841_v26 = vpack.c.bf16 %v5833_v2, %v5833_v2 }
 0xcd0   :  { %v6073_v20 = vsel %vm730_vm1, %v11672_v6, %v6072_v49  ;;  %v6114_v56 = vsel %vm812_vm0, %v6108_v7, %v11670_v21  ;;  %6370 = vmatpush1.bf16.msra.mxu0 %v6235_v53  ;;  %v6115_v6 = vsel %vm812_vm0, %v11641_v4, %v6108_v7  ;;  %v6093_v50 = vpack.c.bf16 %v6085_v0, %v6085_v0 }
 0xcd1   :  { %6371 = vmatprep.subr.bf16.mxu0 %v6207_v57  ;;  %v6145_v23 = vrot.slane %v5881_v62, 4  ;;  %v6126_v37 = vmul.f32 %v6114_v56, %v12538_v60  ;;  %v6094_v63 = vpack.c.bf16 %v6086_v52, %v6086_v52  ;;  %v6087_v46 = vmul.f32 %v6073_v20, %v12562_v36 }
 0xcd2   :  { %v6125_v17 = vmul.f32 %v6115_v6, %v12535_v40  ;;  %v6080_v59 = vsel %vm730_vm1, %v6072_v49, %v11385_v18  ;;  %v5928_v36 = vpack.c.bf16 %v11773_v15, %v11773_v15  ;;  %v11799_v40 = vmul.f32 %v5868_v5, %v12573_v8 }
 0xcd3   :  { %v11785_v33 = vpop.permute.xlu1 %5817  ;;  %v6112_v10 = vpop.permute.xlu0 %6111  ;;  %v6134_v62 = vpack.c.bf16 %v6126_v37, %v6126_v37  ;;  %v11801_v2 = vrot.slane %v5968_v39, 4  ;;  %v11804_v19 = vsel %vm942_vm2, %v5925_v61, %v6165_v25  ;;  %v6203_v45 = vsel %vm942_vm2, %v5841_v26, %v6145_v23  ;;  %v12704_v61 = vld [vmem:[#allocation69_spill] sm:$0xff]  ;;  %v12707_v25 = vld [vmem:[#allocation64_spill] sm:$0xff]  ;;  %v12708_v39 = vld [vmem:[#allocation66_spill] sm:$0xff] }
 0xcd4   :  { %v6113_v4 = vsel %vm812_vm0, %v11670_v21, %v6112_v10  ;;  %v6120_v60 = vsel %vm812_vm0, %v6112_v10, %v11383_v38  ;;  %v6133_v18 = vpack.c.bf16 %v6125_v17, %v6125_v17  ;;  %v6197_v24 = vrot.slane %v6093_v50, 4  ;;  %6372 = vmatpush1.bf16.msra.mxu0 %v6203_v45  ;;  %vm12702_vm0 = vmmov %vm12653_vm8 }
 0xcd5   :  { %v6127_v31 = vmul.f32 %v6113_v4, %v12555_v58  ;;  %v6128_v21 = vmul.f32 %v6120_v60, %v12553_v42  ;;  %v6198_v38 = vrot.slane %v6094_v63, 4  ;;  %v6088_v0 = vmul.f32 %v6080_v59, %v12563_v9  ;;  %7112 = vmatprep.subr.msk.bf16.mxu0 %vm942_vm2, %v6134_v62  ;;  %vm12703_vm1 = vmmov %vm12702_vm0  ;;  %v12711_v60 = vld [vmem:[#allocation71_spill] sm:$0xff] }
 0xcd6   :  { %v6095_v52 = vpack.c.bf16 %v6087_v46, %v6087_v46  ;;  %vm12705_vm8 = vcmp.lt.s32.totalorder %v7634_v13, 113  ;;  %vm12709_vm9 = vmmov %vm12702_vm0 }
 0xcd7   :  { %v5988_v8 = vpop.permute.xlu1 %5987  ;;  %v6028_v49 = vpop.permute.xlu0 %6027  ;;  %v6135_v7 = vpack.c.bf16 %v6127_v31, %v6127_v31  ;;  %v6136_v53 = vpack.c.bf16 %v6128_v21, %v6128_v21  ;;  %vm12706_vm10 = vmmov %vm12705_vm8  ;;  %7109 = vmatmul.mubr.msk.bf16.vlgmr.msra.gmra.mxu0 %vm12687_vm11, %v11696_v51  ;;  %v6096_v23 = vpack.c.bf16 %v6088_v0, %v6088_v0  ;;  %v12712_v31 = vld [vmem:[#allocation70_spill] sm:$0xff] }
 0xcd8   :  { %v5994_v58 = vsel %vm12702_vm0, %v5988_v8, %v11680_v44  ;;  %v5995_v42 = vsel %vm12703_vm1, %v11662_v27, %v5988_v8  ;;  %v6034_v20 = vsel %vm12705_vm8, %v6028_v49, %v11678_v1  ;;  %v6035_v56 = vsel %vm12706_vm10, %v11639_v55, %v6028_v49  ;;  %vm12710_vm12 = vmmov %vm12702_vm0  ;;  %6471 = vmatprep.mubr.bf16.mxu0 %v12639_v34  ;;  %v12715_v49 = vld [vmem:[#allocation73_spill] sm:$0xff] }
 0xcd9   :  { %v6005_v57 = vmul.f32 %v5995_v42, %v12550_v30  ;;  %v6006_v9 = vmul.f32 %v5994_v58, %v12704_v61  ;;  %v6045_v5 = vmul.f32 %v6035_v56, %v12707_v25  ;;  %v6046_v26 = vmul.f32 %v6034_v20, %v12708_v39  ;;  %7114 = vmatprep.subr.msk.bf16.mxu1 %vm942_vm2, %v6136_v53  ;;  %vm12713_vm13 = vmmov %vm12705_vm8  ;;  %v12716_v53 = vld [vmem:[#allocation72_spill] sm:$0xff] }
 0xcda   :  { %v6346_v27 = vsel %vm942_vm2, %v6133_v18, 0  ;;  %v6352_v30 = vsel %vm942_vm2, %v6135_v7, 0  ;;  %v6199_v6 = vrot.slane %v6095_v52, 4  ;;  %vm12714_vm15 = vmmov %vm12705_vm8  ;;  %vm12728_vm0 = vcmp.lt.s32.totalorder %v7634_v13, 15 }
 0xcdb   :  { %v6013_v37 = vpack.c.bf16 %v6005_v57, %v6005_v57  ;;  %v6014_v50 = vpack.c.bf16 %v6006_v9, %v6006_v9  ;;  %6446 = vmatpush1.bf16.msra.mxu0 %v6346_v27  ;;  %6487 = vmatpush1.bf16.msra.mxu1 %v6352_v30  ;;  %v5992_v55 = vpop.permute.xlu1 %5991  ;;  %v6032_v63 = vpop.permute.xlu0 %6031  ;;  %v6053_v46 = vpack.c.bf16 %v6045_v5, %v6045_v5  ;;  %v6200_v9 = vrot.slane %v6096_v23, 4  ;;  %v12720_v5 = vld [vmem:[#allocation75_spill] sm:$0xff]  ;;  %v12722_v27 = vld [vmem:[#allocation88_spill] sm:$0xff]  ;;  %vm12729_vm1 = vmmov %vm12728_vm0 }
 0xcdc   :  { %v6054_v17 = vpack.c.bf16 %v6046_v26, %v6046_v26  ;;  %v5993_v10 = vsel %vm12709_vm9, %v11680_v44, %v5992_v55  ;;  %v6000_v59 = vsel %vm12710_vm12, %v5992_v55, %v11392_v29  ;;  %v6033_v45 = vsel %vm12713_vm13, %v11678_v1, %v6032_v63  ;;  %v12721_v26 = vld [vmem:[#allocation79_spill] sm:$0xff]  ;;  %vm12735_vm8 = vmmov %vm12723_vm5 }
 0xcdd   :  { %v6181_v62 = vrot.slane %v6013_v37, 4  ;;  %v6182_v4 = vrot.slane %v6014_v50, 4  ;;  %v6007_v18 = vmul.f32 %v5993_v10, %v12711_v60  ;;  %v6008_v21 = vmul.f32 %v6000_v59, %v12712_v31  ;;  %v12727_v59 = vld [vmem:[#allocation89_spill] sm:$0xff]  ;;  %v12730_v60 = vld [vmem:[#allocation84_spill] sm:$0xff]  ;;  %v12731_v31 = vld [vmem:[#allocation83_spill] sm:$0xff] }
 0xcde   :  { %v6040_v44 = vsel %vm12714_vm15, %v6032_v63, %v11403_v12  ;;  %v6319_v0 = vsel %vm942_vm2, %v6054_v17, %v6198_v38  ;;  %v6315_v29 = vsel %vm942_vm2, %v6053_v46, %v6197_v24  ;;  %v6047_v7 = vmul.f32 %v6033_v45, %v12715_v49  ;;  %vm12736_vm10 = vmmov %vm12723_vm5 }
 0xcdf   :  { %v6015_v52 = vpack.c.bf16 %v6007_v18, %v6007_v18  ;;  %v6016_v8 = vpack.c.bf16 %v6008_v21, %v6008_v21  ;;  %v6048_v58 = vmul.f32 %v6040_v44, %v12716_v53  ;;  %6447 = vmatprep.subr.bf16.mxu0 %v6319_v0  ;;  %v5940_v42 = vpop.permute.xlu1 %5939  ;;  %v5862_v57 = vpop.permute.xlu0 %5861  ;;  %v12719_v38 = vpack.c.bf16 %v11501_v32, %v11501_v32  ;;  %v12733_v0 = vld [vmem:[#allocation77_spill] sm:$0xff]  ;;  %vm12737_vm11 = vmmov %vm12723_vm5 }
 0xce0   :  { %v5946_v1 = vsel %vm12717_vm14, %v5940_v42, %v11690_v3  ;;  %v5947_v12 = vsel %vm12695_vm3, %v11685_v14, %v5940_v42  ;;  %6448 = vmatpush1.bf16.msra.mxu0 %v6315_v29  ;;  %v5865_v24 = vsel %vm12718_vm4, %v5862_v57, %v11741_v22  ;;  %v6055_v56 = vpack.c.bf16 %v6047_v7, %v6047_v7 }
 0xce1   :  { %v6287_v61 = vsel %vm942_vm2, %v12719_v38, %v6182_v4  ;;  %v6184_v20 = vrot.slane %v6016_v8, 4  ;;  %v6056_v25 = vpack.c.bf16 %v6048_v58, %v6048_v58  ;;  %v6183_v3 = vrot.slane %v6015_v52, 4  ;;  %v12739_v38 = vld [vmem:[#allocation85_spill] sm:$0xff] }
 0xce2   :  { %6449 = vmatprep.subr.bf16.mxu0 %v6287_v61  ;;  %v5958_v39 = vmul.f32 %v5947_v12, %v12720_v5  ;;  %v5959_v14 = vmul.f32 %v5946_v1, %v12721_v26  ;;  %v5880_v30 = vmul.f32 %v5865_v24, %v12722_v27  ;;  %v5828_v22 = vsel %vm12723_vm5, %v11586_v41, %v11785_v33  ;;  %v12738_v1 = vld [vmem:[#allocation87_spill] sm:$0xff] }
 0xce3   :  { %v6327_v32 = vsel %vm942_vm2, %v6056_v25, %v6200_v9  ;;  %v5860_v37 = vpop.permute.xlu1 %5859  ;;  %v12724_v23 = vpack.c.bf16 %v11395_v54, %v11395_v54  ;;  %v5900_v55 = vpop.permute.xlu0 %5899  ;;  %v6323_v63 = vsel %vm942_vm2, %v6055_v56, %v6199_v6  ;;  %v6295_v41 = vsel %vm942_vm2, %v5976_v43, %v6184_v20  ;;  %v12740_v9 = vld [vmem:[#allocation86_spill] sm:$0xff] }
 0xce4   :  { %v5966_v46 = vpack.c.bf16 %v5958_v39, %v5958_v39  ;;  %v5967_v17 = vpack.c.bf16 %v5959_v14, %v5959_v14  ;;  %6488 = vmatprep.subr.bf16.mxu1 %v6327_v32  ;;  %v5866_v10 = vsel %vm12725_vm6, %v5860_v37, %v5862_v57  ;;  %v5867_v54 = vsel %vm12726_vm7, %v11699_v28, %v5860_v37 }
 0xce5   :  { %v6283_v50 = vsel %vm942_vm2, %v12724_v23, %v6181_v62  ;;  %v5879_v62 = vmul.f32 %v5866_v10, %v12727_v59  ;;  %v5906_v6 = vsel %vm12728_vm0, %v5900_v55, %v11688_v47  ;;  %v5907_v4 = vsel %vm12729_vm1, %v11683_v48, %v5900_v55  ;;  %6489 = vmatpush1.bf16.msra.mxu1 %v6323_v63  ;;  %v12734_v47 = vld [vmem:[#allocation81_spill] sm:$0xff] }
 0xce6   :  { %6450 = vmatpush1.bf16.msra.mxu0 %v6283_v50  ;;  %v5837_v18 = vmul.f32 %v5828_v22, %v12730_v60  ;;  %v5888_v16 = vpack.c.bf16 %v5880_v30, %v5880_v30  ;;  %v5878_v43 = vmul.f32 %v5867_v54, %v12731_v31  ;;  %v12732_v28 = vpack.c.bf16 %v11419_v11, %v11419_v11  ;;  %v7276_v30 = vld [vmem:[#allocation8] sm:$0xff] }
 0xce7   :  { %v6166_v45 = vrot.slane %v5966_v46, 4  ;;  %v6167_v44 = vrot.slane %v5967_v17, 4  ;;  %v5918_v29 = vmul.f32 %v5907_v4, %v12733_v0  ;;  %v5919_v52 = vmul.f32 %v5906_v6, %v12734_v47  ;;  %6490 = vmatprep.subr.bf16.mxu1 %v6295_v41  ;;  %v5822_v8 = vpop.permute.xlu1 %5821  ;;  %v5820_v48 = vpop.permute.xlu0 %5819  ;;  %v12744_v0 = vld [vmem:[#allocation95_spill] sm:$0xff]  ;;  %v12745_v47 = vld [vmem:[#allocation90_spill] sm:$0xff] }
 0xce8   :  { %v6291_v21 = vsel %vm942_vm2, %v12732_v28, %v6183_v3  ;;  %v5886_v49 = vpack.c.bf16 %v5878_v43, %v5878_v43  ;;  %v5825_v7 = vsel %vm12735_vm8, %v5822_v8, %v11716_v35  ;;  %v5826_v53 = vsel %vm12736_vm10, %v5820_v48, %v5822_v8  ;;  %v12743_v28 = vld [vmem:[#allocation18_spill] sm:$0xff] }
 0xce9   :  { %v5827_v11 = vsel %vm12737_vm11, %v11785_v33, %v5820_v48  ;;  %v5887_v58 = vpack.c.bf16 %v5879_v62, %v5879_v62  ;;  %v5926_v42 = vpack.c.bf16 %v5918_v29, %v5918_v29  ;;  %v5927_v57 = vpack.c.bf16 %v5919_v52, %v5919_v52  ;;  %6491 = vmatpush1.bf16.msra.mxu1 %v6291_v21 }
 0xcea   :  { %v5840_v12 = vmul.f32 %v5825_v7, %v12738_v1  ;;  %v5885_v24 = vpack.c.bf16 %v11799_v40, %v11799_v40  ;;  %v5838_v61 = vmul.f32 %v5827_v11, %v12739_v38  ;;  %v5839_v20 = vmul.f32 %v5826_v53, %v12740_v9 }
 0xceb   :  { %v6263_v13 = vsel %vm942_vm2, %v5928_v36, %v11801_v2  ;;  %v6152_v35 = vrot.slane %v5888_v16, 4  ;;  %v6255_v56 = vsel %vm942_vm2, %v5926_v42, %v6166_v45  ;;  %v6259_v25 = vsel %vm942_vm2, %v5927_v57, %v6167_v44  ;;  %v11938_v42 = vpop.permute.xlu0 %6620 }
 0xcec   :  { %v5848_v33 = vpack.c.bf16 %v5840_v12, %v5840_v12  ;;  %6492 = vmatprep.subr.bf16.mxu1 %v6263_v13  ;;  %v5845_v3 = vpack.c.bf16 %v5837_v18, %v5837_v18  ;;  %v6150_v40 = vrot.slane %v5886_v49, 4  ;;  %v5846_v5 = vpack.c.bf16 %v5838_v61, %v5838_v61  ;;  %6451 = vmatprep.subr.bf16.mxu0 %v6255_v56 }
 0xced   :  { %v5847_v39 = vpack.c.bf16 %v5839_v20, %v5839_v20  ;;  %v6151_v26 = vrot.slane %v5887_v58, 4  ;;  %6452 = vmatpush1.bf16.msra.mxu0 %v11804_v19  ;;  %v6149_v15 = vrot.slane %v5885_v24, 4  ;;  %6493 = vmatpush1.bf16.msra.mxu1 %v6259_v25  ;;  %vm12741_vm9 = vcmask 588800  }
 0xcee   :  { %v6231_v14 = vsel %vm942_vm2, %v5848_v33, %v6152_v35  ;;  %v6223_v36 = vsel %vm942_vm2, %v5846_v5, %v6150_v40  ;;  %vm12742_vm12 = vmmov %vm12741_vm9  ;;  %v7450_v19 = vmov 6   ;;  %v6329_v22 = vstv %s7070_s17 }
 0xcef   :  { %6453 = vmatprep.subr.bf16.mxu0 %v6223_v36  ;;  %6494 = vmatprep.subr.bf16.mxu1 %v6231_v14  ;;  %v6227_v2 = vsel %vm942_vm2, %v5847_v39, %v6151_v26  ;;  %v6219_v27 = vsel %vm942_vm2, %v5845_v3, %v6149_v15  ;;  %vm12746_vm13 = vcmask 64512   ;;  %v12747_v36 = vld [vmem:[#allocation93_spill] sm:$0xff] }
 0xcf0   :  { %7211 = vset.pattern.permute.xlu1 %v7450_v19  ;;  %7212 = vset.pattern.permute.xlu0 %v7450_v19  ;;  %vm12749_vm15 = vmmov %vm12746_vm13 }
 0xcf1   :  { %6454 = vmatpush1.bf16.msra.mxu0 %v6219_v27  ;;  %6495 = vmatpush1.bf16.msra.mxu1 %v6227_v2  ;;  %v12748_v27 = vld [vmem:[#allocation92_spill] sm:$0xff]  ;;  %vm12756_vm14 = vmmov %vm12746_vm13 }
 0xcf2   :  { %6997 = vperm.xlu1 %7211, %v7276_v30   ;;  %vm12758_vm3 = vmmov %vm12746_vm13 }
 0xcf3   :  { %vm12763_vm4 = vmmov %vm12758_vm3 }
 0xcf4   :  { %7113 = vmatmul.mubr.msk.bf16.vlgmr.msra.gmra.mxu0 %vm12741_vm9, %v11696_v51  ;;  %7115 = vmatmul.mubr.msk.bf16.vlgmr.msra.gmra.mxu1 %vm12742_vm12, %v11696_v51  ;;  %vm12765_vm5 = vmmov %vm12758_vm3 }
 0xcf5   :  { %6681 = vmatprep.mubr.bf16.mxu0 %v12639_v34  ;;  %6722 = vmatprep.mubr.bf16.mxu1 %v12639_v34  ;;  %vm12767_vm6 = vmmov %vm12758_vm3 }
 0xcf6   :  { %vm12768_vm7 = vmmov %vm12758_vm3 }
 0xd83   :  { %v6432_v32 = vpop.f32.mrf.mxu1 }
 0xd84   :  { %v6433_v37 = vadd.f32 %v6432_v32, %v6329_v22 }
 0xd85   :  { %v6434_v23 = vpop.f32.mrf.mxu1 }
 0xd86   :  { %v7118_v50 = vmul.f32 -1.442695, %v6433_v37  ;;  %v6435_v55 = vadd.f32 %v6434_v23, %v6329_v22 }
 0xd87   :  { %v6436_v63 = vpop.f32.mrf.mxu1 }
 0xd88   :  { %7242 = vpow2.f32 %v7118_v50  ;;  %v7119_v46 = vmul.f32 -1.442695, %v6435_v55 }
 0xd89   :  { %v6437_v51 = vpop.f32.mrf.mxu1 }
 0xd8a   :  { %7244 = vpow2.f32 %v7119_v46 }
 0xd95   :  { %v7243_v17 = vpop.eup %7242 }
 0xd96   :  { %v6547_v10 = vadd.f32 1.0, %v7243_v17 }
 0xd97   :  { %v7245_v41 = vpop.eup %7244  ;;  %v6391_v59 = vpop.f32.mrf.mxu0 }
 0xd98   :  { %7246 = vrcp.f32 %v6547_v10  ;;  %v6548_v54 = vadd.f32 1.0, %v7245_v41  ;;  %v6392_v62 = vadd.f32 %v6391_v59, %v6329_v22 }
 0xd99   :  { %v6393_v6 = vpop.f32.mrf.mxu0 }
 0xd9a   :  { %7248 = vrcp.f32 %v6548_v54  ;;  %v7116_v4 = vmul.f32 -1.442695, %v6392_v62  ;;  %v6394_v60 = vadd.f32 %v6393_v6, %v6329_v22 }
 0xd9b   :  { %v6395_v18 = vpop.f32.mrf.mxu0 }
 0xd9c   :  { %7250 = vpow2.f32 %v7116_v4  ;;  %v7117_v16 = vmul.f32 -1.442695, %v6394_v60  ;;  %v12750_v60 = vld [vmem:[#allocation91_spill] sm:$0xff] }
 0xd9d   :  { %v6396_v31 = vpop.f32.mrf.mxu0 }
 0xd9e   :  { %7252 = vpow2.f32 %v7117_v16  ;;  %v12751_v31 = vld [vmem:[#allocation109_spill] sm:$0xff] }
 0xda5   :  { %v7247_v43 = vpop.eup %7246 }
 0xda6   :  { %v6580_v21 = vrot.slane %v7247_v43, %v12743_v28 }
 0xda7   :  { %v7249_v45 = vpop.eup %7248 }
 0xda8   :  { %v6584_v44 = vrot.slane %v7249_v45, %v12743_v28  ;;  %v6603_v29 = vmul.f32 %v6580_v21, %v12744_v0  ;;  %v12752_v21 = vld [vmem:[#allocation107_spill] sm:$0xff]  ;;  %v12753_v0 = vld [vmem:[#allocation94_spill] sm:$0xff] }
 0xda9   :  { %v7251_v48 = vpop.eup %7250 }
 0xdaa   :  { %v6604_v52 = vmul.f32 %v6584_v44, %v12745_v47  ;;  %v6611_v8 = vpack.c.bf16 %v6603_v29, %v6603_v29  ;;  %v6545_v7 = vadd.f32 1.0, %v7251_v48 }
 0xdab   :  { %v7253_v53 = vpop.eup %7252 }
 0xdac   :  { %v6612_v49 = vpack.c.bf16 %v6604_v52, %v6604_v52  ;;  %v6632_v11 = vsel %vm942_vm2, %v6611_v8, 0  ;;  %7254 = vrcp.f32 %v6545_v7  ;;  %v6546_v58 = vadd.f32 1.0, %v7253_v53  ;;  %v12755_v7 = vld [vmem:[#allocation100_spill] sm:$0xff]  ;;  %v12757_v53 = vld [vmem:[#allocation97_spill] sm:$0xff] }
 0xdae   :  { %7127 = vmatprep.subr.msk.bf16.mxu1 %vm942_vm2, %v6612_v49  ;;  %7256 = vrcp.f32 %v6546_v58  ;;  %v12759_v58 = vld [vmem:[#allocation101_spill] sm:$0xff] }
 0xdaf   :  { %6705 = vmatpush1.bf16.msra.mxu1 %v6632_v11  ;;  %v6816_v11 = vsel %vm942_vm2, %v12757_v53, 0 }
 0xdb2   :  { %7128 = vmatmul.mubr.msk.bf16.vlgmr.msra.gmra.mxu1 %vm12746_vm13, %v11938_v42 }
 0xdb3   :  { %6804 = vmatprep.mubr.bf16.mxu1 %v12639_v34 }
 0xdb4   :  { %v6473_v57 = vpop.f32.mrf.mxu0  ;;  %v6514_v12 = vpop.f32.mrf.mxu1 }
 0xdb5   :  { %v6474_v1 = vadd.f32 %v6473_v57, %v6329_v22  ;;  %v6515_v24 = vadd.f32 %v6514_v12, %v6329_v22  ;;  %v6820_v57 = vsel %vm942_vm2, %v12759_v58, 0  ;;  %v12761_v12 = vld [vmem:[#allocation58_spill] sm:$0xff] }
 0xdb6   :  { %v6475_v38 = vpop.f32.mrf.mxu0  ;;  %v6516_v20 = vpop.f32.mrf.mxu1 }
 0xdb7   :  { %v7120_v61 = vmul.f32 -1.442695, %v6474_v1  ;;  %v6476_v9 = vadd.f32 %v6475_v38, %v6329_v22  ;;  %v7122_v13 = vmul.f32 -1.442695, %v6515_v24  ;;  %v6517_v35 = vadd.f32 %v6516_v20, %v6329_v22  ;;  %v12760_v1 = vld [vmem:[#allocation55_spill] sm:$0xff]  ;;  %v12762_v24 = vld [vmem:[#allocation56_spill] sm:$0xff] }
 0xdb8   :  { %v6477_v33 = vpop.f32.mrf.mxu0  ;;  %v6518_v25 = vpop.f32.mrf.mxu1  ;;  %v12764_v38 = vld [vmem:[#allocation54_spill] sm:$0xff] }
 0xdb9   :  { %7258 = vpow2.f32 %v7120_v61  ;;  %v7121_v56 = vmul.f32 -1.442695, %v6476_v9  ;;  %v7123_v3 = vmul.f32 -1.442695, %v6517_v35  ;;  %v7255_v39 = vpop.eup %7254  ;;  %v12766_v61 = vld [vmem:[#allocation60_spill] sm:$0xff] }
 0xdba   :  { %7260 = vpow2.f32 %v7122_v13  ;;  %v6478_v40 = vpop.f32.mrf.mxu0  ;;  %v6519_v5 = vpop.f32.mrf.mxu1  ;;  %v6572_v26 = vrot.slane %v7255_v39, %v12743_v28  ;;  %v6828_v9 = vsel %vm942_vm2, %v12766_v61, 0 }
 0xdbb   :  { %7262 = vpow2.f32 %v7121_v56  ;;  %v7257_v14 = vpop.eup %7256 }
 0xdbc   :  { %7264 = vpow2.f32 %v7123_v3  ;;  %v6576_v15 = vrot.slane %v7257_v14, %v12743_v28  ;;  %v6601_v2 = vmul.f32 %v6572_v26, %v12747_v36 }
 0xdbe   :  { %v6602_v19 = vmul.f32 %v6576_v15, %v12748_v27  ;;  %v6609_v30 = vpack.c.bf16 %v6601_v2, %v6601_v2 }
 0xdc0   :  { %v6610_v22 = vpack.c.bf16 %v6602_v19, %v6602_v19  ;;  %v6626_v32 = vsel %vm942_vm2, %v6609_v30, 0  ;;  %v6998_v19 = vpop.permute.xlu1 %6997 }
 0xdc2   :  { %7125 = vmatprep.subr.msk.bf16.mxu0 %vm942_vm2, %v6610_v22 }
 0xdc3   :  { %6664 = vmatpush1.bf16.msra.mxu0 %v6626_v32 }
 0xdc6   :  { %v7259_v37 = vpop.eup %7258  ;;  %7126 = vmatmul.mubr.msk.bf16.vlgmr.msra.gmra.mxu0 %vm12749_vm15, %v11938_v42 }
 0xdc7   :  { %v7261_v23 = vpop.eup %7260  ;;  %v6549_v50 = vadd.f32 1.0, %v7259_v37  ;;  %6763 = vmatprep.mubr.bf16.mxu0 %v12639_v34 }
 0xdc8   :  { %v7263_v55 = vpop.eup %7262  ;;  %v6551_v63 = vadd.f32 1.0, %v7261_v23 }
 0xdc9   :  { %v7265_v46 = vpop.eup %7264  ;;  %7266 = vrcp.f32 %v6549_v50  ;;  %v6550_v51 = vadd.f32 1.0, %v7263_v55 }
 0xdca   :  { %7268 = vrcp.f32 %v6551_v63  ;;  %v6552_v17 = vadd.f32 1.0, %v7265_v46  ;;  %v11996_v63 = vstv %s7067_s18 }
 0xdcb   :  { %7270 = vrcp.f32 %v6550_v51 }
 0xdcc   :  { %7272 = vrcp.f32 %v6552_v17 }
 0xdd6   :  { %v7267_v10 = vpop.eup %7266 }
 0xdd7   :  { %v7269_v41 = vpop.eup %7268  ;;  %v6588_v54 = vrot.slane %v7267_v10, %v12743_v28  ;;  %v7277_v10 = vld [vmem:[#allocation2] sm:$0xff] }
 0xdd8   :  { %v7271_v59 = vpop.eup %7270  ;;  %v6596_v62 = vrot.slane %v7269_v41, %v12743_v28 }
 0xdd9   :  { %v7273_v6 = vpop.eup %7272  ;;  %v6592_v4 = vrot.slane %v7271_v59, %v12743_v28  ;;  %v6605_v18 = vmul.f32 %v6588_v54, %v12750_v60 }
 0xdda   :  { %v6600_v16 = vrot.slane %v7273_v6, %v12743_v28  ;;  %v6607_v43 = vmul.f32 %v6596_v62, %v12751_v31  ;;  %v12754_v28 = vld [vmem:[#allocation96_spill] sm:$0xff]  ;;  %v7278_v62 = vld [vmem:[#allocation2 + $0x10] sm:$0xff] }
 0xddb   :  { %v6606_v45 = vmul.f32 %v6592_v4, %v12752_v21  ;;  %v6613_v44 = vpack.c.bf16 %v6605_v18, %v6605_v18 }
 0xddc   :  { %v6608_v29 = vmul.f32 %v6600_v16, %v12753_v0  ;;  %v6615_v47 = vpack.c.bf16 %v6607_v43, %v6607_v43  ;;  %v7279_v16 = vld [vmem:[#allocation2 + $0x8] sm:$0xff] }
 0xddd   :  { %v6614_v52 = vpack.c.bf16 %v6606_v45, %v6606_v45  ;;  %v6638_v48 = vsel %vm942_vm2, %v6613_v44, 0  ;;  %v7280_v45 = vld [vmem:[#allocation2 + $0x18] sm:$0xff] }
 0xdde   :  { %v6616_v8 = vpack.c.bf16 %v6608_v29, %v6608_v29  ;;  %v6644_v49 = vsel %vm942_vm2, %v6615_v47, 0 }
 0xddf   :  { %7129 = vmatprep.subr.msk.bf16.mxu0 %vm942_vm2, %v6614_v52 }
 0xde0   :  { %7131 = vmatprep.subr.msk.bf16.mxu1 %vm942_vm2, %v6616_v8  ;;  %6746 = vmatpush1.bf16.msra.mxu0 %v6638_v48 }
 0xde1   :  { %6787 = vmatpush1.bf16.msra.mxu1 %v6644_v49  ;;  %7133 = vmatprep.subr.msk.bf16.mxu0 %vm942_vm2, %v12754_v28 }
 0xde2   :  { %7135 = vmatprep.subr.msk.bf16.mxu1 %vm942_vm2, %v12755_v7 }
 0xde3   :  { %7130 = vmatmul.mubr.msk.bf16.vlgmr.msra.gmra.mxu0 %vm12756_vm14, %v11938_v42 }
 0xde4   :  { %7132 = vmatmul.mubr.msk.bf16.vlgmr.msra.gmra.mxu1 %vm12758_vm3, %v11938_v42  ;;  %6847 = vmatpush1.bf16.msra.mxu0 %v6816_v11  ;;  %v6824_v42 = vsel %vm942_vm2, %v12764_v38, 0 }
 0xde5   :  { %6888 = vmatpush1.bf16.msra.mxu1 %v6820_v57  ;;  %7137 = vmatprep.subr.msk.bf16.mxu0 %vm942_vm2, %v12760_v1 }
 0xde6   :  { %7139 = vmatprep.subr.msk.bf16.mxu1 %vm942_vm2, %v12761_v12  ;;  %6864 = vmatprep.mubr.bf16.mxu0 %v12639_v34 }
 0xde7   :  { %6905 = vmatprep.mubr.bf16.mxu1 %v12639_v34 }
 0xdeb   :  { %7134 = vmatmul.mubr.msk.bf16.vlgmr.msra.gmra.mxu0 %vm12763_vm4, %v12762_v24 }
 0xdec   :  { %7136 = vmatmul.mubr.msk.bf16.vlgmr.msra.gmra.mxu1 %vm12765_vm5, %v12762_v24  ;;  %6929 = vmatpush1.bf16.msra.mxu0 %v6824_v42  ;;  %v7281_v42 = vld [vmem:[#allocation2 + $0x20] sm:$0xff] }
 0xded   :  { %6970 = vmatpush1.bf16.msra.mxu1 %v6828_v9  ;;  %6946 = vmatprep.mubr.bf16.mxu0 %v12639_v34 }
 0xdee   :  { %6987 = vmatprep.mubr.bf16.mxu1 %v12639_v34 }
 0xdf3   :  { %7138 = vmatmul.mubr.msk.bf16.vlgmr.msra.gmra.mxu0 %vm12767_vm6, %v12762_v24 }
 0xdf4   :  { %7140 = vmatmul.mubr.msk.bf16.vlgmr.msra.gmra.mxu1 %vm12768_vm7, %v12762_v24 }
 0xe72   :  { %v6724_v20 = vpop.f32.mrf.mxu1 }
 0xe74   :  { %v6726_v13 = vpop.f32.mrf.mxu1 }
 0xe76   :  { %v6728_v35 = vpop.f32.mrf.mxu1 }
 0xe78   :  { %v6729_v33 = vpop.f32.mrf.mxu1 }
 0xe86   :  { %v6683_v56 = vpop.f32.mrf.mxu0 }
 0xe88   :  { %v6685_v25 = vpop.f32.mrf.mxu0 }
 0xe8a   :  { %v6687_v3 = vpop.f32.mrf.mxu0 }
 0xe8b   :  { %v7283_v3 = vld [vmem:[#allocation2 + $0x28] sm:$0xff] }
 0xe8c   :  { %v6688_v40 = vpop.f32.mrf.mxu0 }
 0xea3   :  { %v6765_v5 = vpop.f32.mrf.mxu0 }
 0xea4   :  { %v6806_v39 = vpop.f32.mrf.mxu1 }
 0xea5   :  { %v6767_v26 = vpop.f32.mrf.mxu0 }
 0xea6   :  { %v6808_v14 = vpop.f32.mrf.mxu1 }
 0xea7   :  { %v6769_v15 = vpop.f32.mrf.mxu0 }
 0xea8   :  { %v6810_v34 = vpop.f32.mrf.mxu1 }
 0xea9   :  { %v6770_v36 = vpop.f32.mrf.mxu0 }
 0xeaa   :  { %v6811_v2 = vpop.f32.mrf.mxu1 }
 0xeab   :  { %v6866_v27 = vpop.f32.mrf.mxu0 }
 0xeac   :  { %v6867_v30 = vadd.f32 %v6866_v27, %v6683_v56  ;;  %v6907_v22 = vpop.f32.mrf.mxu1 }
 0xead   :  { %v6908_v32 = vadd.f32 %v6907_v22, %v6724_v20  ;;  %v6868_v37 = vpop.f32.mrf.mxu0 }
 0xeae   :  { %v7000_v23 = vadd.f32 %v6998_v19, %v6867_v30  ;;  %v6869_v50 = vadd.f32 %v6868_v37, %v6685_v25  ;;  %v6909_v55 = vpop.f32.mrf.mxu1 }
 0xeaf   :  { %v7002_v46 = vadd.f32 %v6998_v19, %v6908_v32  ;;  %v6910_v51 = vadd.f32 %v6909_v55, %v6726_v13  ;;  %v6870_v17 = vpop.f32.mrf.mxu0  ;;  %v7282_v13 = vld [vmem:[#allocation2 + $0x30] sm:$0xff] }
 0xeb0   :  { %v7008_v41 = vadd.f32 %v7277_v10, %v7000_v23  ;;  %v7001_v54 = vadd.f32 %v6998_v19, %v6869_v50  ;;  %v6911_v59 = vpop.f32.mrf.mxu1 }
 0xeb1   :  { %v7010_v6 = vadd.f32 %v7278_v62, %v7002_v46  ;;  %v7003_v4 = vadd.f32 %v6998_v19, %v6910_v51  ;;  %v6871_v60 = vpop.f32.mrf.mxu0 }
 0xeb2   :  { %vm7016_vm2 = vcmp.ge.f32.partialorder %v7008_v41, 0.0  ;;  %v7025_v18 = vmul.f32 %v11996_v63, %v7008_v41  ;;  %v7009_v31 = vadd.f32 %v7279_v16, %v7001_v54  ;;  %v6912_v43 = vpop.f32.mrf.mxu1 }
 0xeb3   :  { %vm7018_vm0 = vcmp.ge.f32.partialorder %v7010_v6, 0.0  ;;  %v7027_v21 = vmul.f32 %v11996_v63, %v7010_v6  ;;  %v7011_v44 = vadd.f32 %v7280_v45, %v7003_v4  ;;  %v6948_v0 = vpop.f32.mrf.mxu0 }
 0xeb4   :  { %vm7017_vm1 = vcmp.ge.f32.partialorder %v7009_v31, 0.0  ;;  %v7026_v29 = vmul.f32 %v11996_v63, %v7009_v31  ;;  %v6949_v47 = vadd.f32 %v6948_v0, %v6765_v5  ;;  %v6989_v52 = vpop.f32.mrf.mxu1  ;;  %v7033_v8 = vsel %vm7016_vm2, %v7008_v41, %v7025_v18 }
 0xeb5   :  { %vm7019_vm8 = vcmp.ge.f32.partialorder %v7011_v44, 0.0  ;;  %v7028_v48 = vmul.f32 %v11996_v63, %v7011_v44  ;;  %v6990_v49 = vadd.f32 %v6989_v52, %v6806_v39  ;;  %v6950_v28 = vpop.f32.mrf.mxu0  ;;  %v7035_v7 = vsel %vm7018_vm0, %v7010_v6, %v7027_v21  ;;  %7041 = vst [vmem:[#allocation12] sm:$0xff] %v7033_v8 }
 0xeb6   :  { %v7034_v53 = vsel %vm7017_vm1, %v7009_v31, %v7026_v29  ;;  %v7004_v11 = vadd.f32 %v6998_v19, %v6949_v47  ;;  %v6951_v58 = vadd.f32 %v6950_v28, %v6767_v26  ;;  %v6991_v57 = vpop.f32.mrf.mxu1  ;;  %7043 = vst [vmem:[#allocation12 + $0x10] sm:$0xff] %v7035_v7  ;;  %v7284_v26 = vld [vmem:[#allocation2 + $0x38] sm:$0xff] }
 0xeb7   :  { %7042 = vst [vmem:[#allocation12 + $0x8] sm:$0xff] %v7034_v53  ;;  %v7036_v1 = vsel %vm7019_vm8, %v7011_v44, %v7028_v48  ;;  %v7006_v12 = vadd.f32 %v6998_v19, %v6990_v49  ;;  %v6992_v24 = vadd.f32 %v6991_v57, %v6808_v14  ;;  %v6952_v38 = vpop.f32.mrf.mxu0 }
 0xeb8   :  { %7044 = vst [vmem:[#allocation12 + $0x18] sm:$0xff] %v7036_v1  ;;  %v7012_v61 = vadd.f32 %v7281_v42, %v7004_v11  ;;  %v7005_v9 = vadd.f32 %v6998_v19, %v6951_v58  ;;  %v6993_v20 = vpop.f32.mrf.mxu1 }
 0xeb9   :  { %v7014_v35 = vadd.f32 %v7282_v13, %v7006_v12  ;;  %v7007_v33 = vadd.f32 %v6998_v19, %v6992_v24  ;;  %v6953_v56 = vpop.f32.mrf.mxu0 }
 0xeba   :  { %vm7020_vm10 = vcmp.ge.f32.partialorder %v7012_v61, 0.0  ;;  %v7029_v25 = vmul.f32 %v11996_v63, %v7012_v61  ;;  %v7013_v40 = vadd.f32 %v7283_v3, %v7005_v9  ;;  %v6994_v5 = vpop.f32.mrf.mxu1 }
 0xebb   :  { %vm7022_vm11 = vcmp.ge.f32.partialorder %v7014_v35, 0.0  ;;  %v7031_v39 = vmul.f32 %v11996_v63, %v7014_v35  ;;  %v7015_v14 = vadd.f32 %v7284_v26, %v7007_v33 }
 0xebc   :  { %v7037_v15 = vsel %vm7020_vm10, %v7012_v61, %v7029_v25  ;;  %vm7021_vm9 = vcmp.ge.f32.partialorder %v7013_v40, 0.0  ;;  %v7030_v34 = vmul.f32 %v11996_v63, %v7013_v40 }
 0xebd   :  { %7045 = vst [vmem:[#allocation12 + $0x20] sm:$0xff] %v7037_v15  ;;  %v7039_v36 = vsel %vm7022_vm11, %v7014_v35, %v7031_v39  ;;  %vm7023_vm12 = vcmp.ge.f32.partialorder %v7015_v14, 0.0  ;;  %v7032_v2 = vmul.f32 %v11996_v63, %v7015_v14 }
 0xebe   :  { %7047 = vst [vmem:[#allocation12 + $0x30] sm:$0xff] %v7039_v36  ;;  %v7038_v27 = vsel %vm7021_vm9, %v7013_v40, %v7030_v34 }
 0xebf   :  { %7046 = vst [vmem:[#allocation12 + $0x28] sm:$0xff] %v7038_v27  ;;  %v7040_v19 = vsel %vm7023_vm12, %v7015_v14, %v7032_v2 }
 0xec0   :  { %7048 = vst [vmem:[#allocation12 + $0x38] sm:$0xff] %v7040_v19 }
 0xec1   :  { %7388 = shalt.err (!%p7385_p1)
}
 0xec2   :  { %7058 = dma.vmem_to_hbm [thread:$0]  %s7056_s4, 1024, %s12014_s5, [#allocation4]  }
 0xec3   :  { %7405 = dma.done.wait [#allocation4], 1024  }
 0xec4   :  { %7406 = vsyncadd [#allocation4], 4294966272 }
 0xec5   :  { %7062 = vsyncpa [#allocation3], 1 }
 0xec6   :  { %7063 = vsyncpa [#allocation7], 1 }
 0xec7   :  { %7064 = vsyncpa [#allocation10], 1 }
 0xec8   :  { %7065 = vsyncpa [#allocation4], 1 }
 0xec9   :  { %7066 = vsyncpa [#allocation5], 1 }

</bundles_post_ra>
